<compile_context>
chip_gen: v7x
topology: tpu7x:2x2x1
jax: 0.10.0
libtpu: 0.0.40
codegen_flags: <defaults>
</compile_context>

<pallas_src>
import functools

import jax
import jax.numpy as jnp
from jax.experimental import pallas as pl
from jax.experimental.pallas import tpu as pltpu

_VMEM_LIMIT = 32 * 1024 * 1024  # generous for these shapes, safe on v5e/v6e/v7x


# ---------------------------------------------------------------------------
# In-kernel helpers (operate on values; no explicit VMEM scratch round-trips).
# ---------------------------------------------------------------------------
def _pad_hw1(x):
    """Zero-pad H and W by 1 on each side.  x: (B, H, W, C) value."""
    B, H, W, C = x.shape
    zw = jnp.zeros((B, H, 1, C), x.dtype)
    x = jnp.concatenate([zw, x, zw], axis=2)
    zh = jnp.zeros((B, 1, W + 2, C), x.dtype)
    return jnp.concatenate([zh, x, zh], axis=1)


def _conv3x3_relu(x, w_ref, b_ref):
    """3x3 conv (pad=1) + bias + ReLU as 9 MXU matmuls with K = Cin.

    x: (B, H, W, Cin) bf16 value; w_ref: (9, Cin, Cout) bf16; b_ref: (1, Cout) f32.
    Accumulation stays in a local f32 value (register/MRB friendly on v7x,
    no extra VMEM store passes for v5e's single vst slot).
    Returns (B, H, W, Cout) f32.
    """
    B, H, W, Cin = x.shape
    Cout = w_ref.shape[-1]
    xp = _pad_hw1(x)
    acc = None
    for dy in range(3):            # static unroll: 9 lane-aligned K=Cin matmuls
        for dx in range(3):
            tap = xp[:, dy:dy + H, dx:dx + W, :].reshape(B * H * W, Cin)
            p = jnp.dot(tap, w_ref[dy * 3 + dx],
                        preferred_element_type=jnp.float32)
            acc = p if acc is None else acc + p
    out = jnp.maximum(acc + b_ref[...], 0.0)
    return out.reshape(B, H, W, Cout)


def _maxpool2x2(x):
    """2x2 / stride-2 max pool on a value; rank kept <= 4 throughout."""
    B, H, W, C = x.shape
    x = x.reshape(B * (H // 2), 2, W, C)
    x = jnp.maximum(x[:, 0], x[:, 1])          # pool rows (leading-dim pair)
    x = x.reshape(B * (H // 2), W // 2, 2, C)
    x = jnp.max(x, axis=2)                     # pool cols (sublane pair reduce)
    return x.reshape(B, H // 2, W // 2, C)


# ---------------------------------------------------------------------------
# Fused kernel: truncated VGG (conv1_1..conv2_2) + pool + MSE partial sums.
# One batch element per grid step; fake & real branches stacked on M (B = 2).
# ---------------------------------------------------------------------------
def vgg_features_mse_kernel(cols_ref, w0_ref, b0_ref, w1_ref, b1_ref,
                            w2_ref, b2_ref, w3_ref, b3_ref, ssq_ref, *, H, W):
    # cols_ref: (1, 2*H*W, 32) bf16  -- im2col'd [fake ; real] for this image
    # w0: (32, 64) bf16, w1: (9,64,64), w2: (9,64,128), w3: (9,128,128) bf16
    # biases: (1, Cout) f32 ; ssq_ref: (1, 1, 128) f32 output

    # conv1_1 (3 -> 64): single matmul on the pre-im2col'd pair, K padded to 32.
    h = jnp.dot(cols_ref[0], w0_ref[...], preferred_element_type=jnp.float32)
    h = jnp.maximum(h + b0_ref[...], 0.0)
    h = h.reshape(2, H, W, 64).astype(jnp.bfloat16)

    # conv1_2 (64 -> 64) + fused 2x2 max pool (applied to the in-VMEM value;
    # the full-resolution activation is never written back anywhere).
    h = _conv3x3_relu(h, w1_ref, b1_ref).astype(jnp.bfloat16)
    h = _maxpool2x2(h)                                   # (2, H/2, W/2, 64)

    # conv2_1 (64 -> 128)
    h = _conv3x3_relu(h, w2_ref, b2_ref).astype(jnp.bfloat16)

    # conv2_2 (128 -> 128) fused with the MSE partial reduction.
    f = _conv3x3_relu(h, w3_ref, b3_ref)                 # (2, H/2, W/2, 128) f32
    Hp, Wp = H // 2, W // 2
    f = f.reshape(2, Hp * Wp, 128)
    d = f[0] - f[1]                                      # fake - real features
    ssq_ref[...] = jnp.sum(d * d, axis=0, keepdims=True).reshape(1, 1, 128)


def vgg_content_mse(cols, params, H, W):
    """cols: (N, 2*H*W, 32) bf16 -> scalar content MSE over conv2_2 features."""
    N = cols.shape[0]
    (w0, b0), (w1, b1), (w2, b2), (w3, b3) = params
    kernel = functools.partial(vgg_features_mse_kernel, H=H, W=W)
    ssq = pl.pallas_call(
        kernel,
        out_shape=jax.ShapeDtypeStruct((N, 1, 128), jnp.float32),
        grid=(N,),
        in_specs=[
            pl.BlockSpec((1, 2 * H * W, 32), lambda n: (n, 0, 0)),
            pl.BlockSpec((32, 64), lambda n: (0, 0)),
            pl.BlockSpec((1, 64), lambda n: (0, 0)),
            pl.BlockSpec((9, 64, 64), lambda n: (0, 0, 0)),
            pl.BlockSpec((1, 64), lambda n: (0, 0)),
            pl.BlockSpec((9, 64, 128), lambda n: (0, 0, 0)),
            pl.BlockSpec((1, 128), lambda n: (0, 0)),
            pl.BlockSpec((9, 128, 128), lambda n: (0, 0, 0)),
            pl.BlockSpec((1, 128), lambda n: (0, 0)),
        ],
        out_specs=pl.BlockSpec((1, 1, 128), lambda n: (n, 0, 0)),
        compiler_params=pltpu.CompilerParams(
            dimension_semantics=("parallel",),       # shards batch over 2 TCs on v7x
            vmem_limit_bytes=_VMEM_LIMIT),
    )(cols, w0, b0, w1, b1, w2, b2, w3, b3)
    Hp, Wp = H // 2, W // 2
    return jnp.sum(ssq) / (N * Hp * Wp * 128)


# ---------------------------------------------------------------------------
# Wrapper glue (XLA): layout change, im2col for the tiny 3->64 conv, BCE term.
# ---------------------------------------------------------------------------
def _im2col_pad32(x):
    """x: (N, H, W, 3) bf16 -> (N, H*W, 32) bf16 im2col (3x3, pad=1), K 27->32."""
    N, H, W, C = x.shape
    xp = jnp.pad(x, ((0, 0), (1, 1), (1, 1), (0, 0)))
    cols = jnp.concatenate(
        [xp[:, dy:dy + H, dx:dx + W, :] for dy in range(3) for dx in range(3)],
        axis=-1).reshape(N, H * W, 9 * C)
    return jnp.pad(cols, ((0, 0), (0, 0), (0, 32 - 9 * C)))


# ---------------------------------------------------------------------------
# Truncated synthetic VGG19 parameters (blocks 1 & 2).
# ---------------------------------------------------------------------------
def init_vgg_params(key):
    """Deterministic He-style init: 3->64->64 | 64->128->128, raw (3,3,Cin,Cout)."""
    shapes = [(3, 3, 3, 64), (3, 3, 64, 64), (3, 3, 64, 128), (3, 3, 128, 128)]
    params = []
    for i, s in enumerate(shapes):
        k = jax.random.fold_in(key, i)
        fan_in = s[0] * s[1] * s[2]
        w = jax.random.normal(k, s, jnp.float32) * jnp.sqrt(2.0 / fan_in)
        b = jnp.zeros((s[3],), jnp.float32)
        params.append((w, b))
    return params


def prepare_params(params):
    """Layer 0 -> (32, 64) bf16 im2col matrix (K padded 27->32);
    layers 1..3 -> (9, Cin, Cout) bf16 per-tap matrices.  Biases (1, Cout) f32."""
    (w0, b0) = params[0]
    w0m = jnp.pad(w0.reshape(27, w0.shape[-1]), ((0, 5), (0, 0)))
    prepped = [(w0m.astype(jnp.bfloat16), b0.reshape(1, -1))]
    for (w, b) in params[1:]:
        kh, kw, cin, cout = w.shape
        prepped.append((w.reshape(kh * kw, cin, cout).astype(jnp.bfloat16),
                        b.reshape(1, -1)))
    return prepped


# ---------------------------------------------------------------------------
# GeneratorLoss forward
# ---------------------------------------------------------------------------
@functools.partial(jax.jit, static_argnames=("alpha",))
def generator_loss(fake_hr_nchw, real_hr_nchw, fake_preds, params, alpha=0.001):
    # NCHW (PyTorch convention) -> NHWC (kernel layout), bf16 activations.
    fake = jnp.transpose(fake_hr_nchw, (0, 2, 3, 1)).astype(jnp.bfloat16)
    real = jnp.transpose(real_hr_nchw, (0, 2, 3, 1)).astype(jnp.bfloat16)
    N, H, W, _ = fake.shape

    # Stack the fake/real pair on the M dimension: (N, 2*H*W, 32) bf16.
    cols = jnp.concatenate([_im2col_pad32(fake), _im2col_pad32(real)], axis=1)

    # content loss: truncated VGG features + MSE, fully fused in one kernel.
    content_loss = vgg_content_mse(cols, params, H, W)

    # Adversarial BCE against all-ones target (tiny, plain JAX; PyTorch clamp).
    logp = jnp.maximum(jnp.log(fake_preds.astype(jnp.float32)), -100.0)
    adversarial_loss = jnp.mean(-logp)

    return 0.006 * content_loss + alpha * adversarial_loss


if __name__ == "__main__":
    key = jax.random.PRNGKey(0)
    k_img_f, k_img_r, k_pred, k_par = jax.random.split(key, 4)

    # Small shapes: batch=2, RGB 16x16 images (NCHW like PyTorch), preds (2, 1).
    fake_hr = jax.random.uniform(k_img_f, (2, 3, 16, 16), jnp.float32)
    real_hr = jax.random.uniform(k_img_r, (2, 3, 16, 16), jnp.float32)
    fake_preds = jax.nn.sigmoid(
        jax.random.normal(k_pred, (2, 1), jnp.float32))  # probabilities in (0,1)

    params = prepare_params(init_vgg_params(k_par))

    loss = generator_loss(fake_hr, real_hr, fake_preds, params, alpha=0.001)
    loss = jax.block_until_ready(loss)
    assert jnp.isfinite(loss)
    print("KERNEL_OK")
</pallas_src>

<mosaic_0001>
module attributes {stable_mosaic.version = 11 : i64} {
  func.func @vgg_features_mse_kernel(%arg0: i32, %arg1: memref<1x512x32xbf16, #tpu.memory_space<vmem>>, %arg2: memref<32x64xbf16, #tpu.memory_space<vmem>>, %arg3: memref<1x64xf32, #tpu.memory_space<vmem>>, %arg4: memref<9x64x64xbf16, #tpu.memory_space<vmem>>, %arg5: memref<1x64xf32, #tpu.memory_space<vmem>>, %arg6: memref<9x64x128xbf16, #tpu.memory_space<vmem>>, %arg7: memref<1x128xf32, #tpu.memory_space<vmem>>, %arg8: memref<9x128x128xbf16, #tpu.memory_space<vmem>>, %arg9: memref<1x128xf32, #tpu.memory_space<vmem>>, %arg10: memref<1x1x128xf32, #tpu.memory_space<vmem>>) attributes {dimension_semantics = [#tpu.dimension_semantics<parallel>], iteration_bounds = array<i64: 2>, scalar_prefetch = 0 : i64, scratch_operands = 0 : i64, tpu.core_type = #tpu.core_type<tc>, window_params = [{transform_indices = @transform_0, window_bounds = array<i64: 1, 512, 32>}, {pipeline_mode = #tpu.pipeline_mode<synchronous>, transform_indices = @transform_1, window_bounds = array<i64: 32, 64>}, {pipeline_mode = #tpu.pipeline_mode<synchronous>, transform_indices = @transform_2, window_bounds = array<i64: 1, 64>}, {pipeline_mode = #tpu.pipeline_mode<synchronous>, transform_indices = @transform_3, window_bounds = array<i64: 9, 64, 64>}, {pipeline_mode = #tpu.pipeline_mode<synchronous>, transform_indices = @transform_4, window_bounds = array<i64: 1, 64>}, {pipeline_mode = #tpu.pipeline_mode<synchronous>, transform_indices = @transform_5, window_bounds = array<i64: 9, 64, 128>}, {pipeline_mode = #tpu.pipeline_mode<synchronous>, transform_indices = @transform_6, window_bounds = array<i64: 1, 128>}, {pipeline_mode = #tpu.pipeline_mode<synchronous>, transform_indices = @transform_7, window_bounds = array<i64: 9, 128, 128>}, {pipeline_mode = #tpu.pipeline_mode<synchronous>, transform_indices = @transform_8, window_bounds = array<i64: 1, 128>}, {transform_indices = @transform_9, window_bounds = array<i64: 1, 1, 128>}]} {
    %c0 = arith.constant 0 : index
    %c0_0 = arith.constant 0 : index
    %c0_1 = arith.constant 0 : index
    %0 = vector.load %arg1[%c0, %c0_0, %c0_1] : memref<1x512x32xbf16, #tpu.memory_space<vmem>>, vector<1x512x32xbf16>
    %1 = vector.shape_cast %0 : vector<1x512x32xbf16> to vector<512x32xbf16>
    %c0_2 = arith.constant 0 : index
    %c0_3 = arith.constant 0 : index
    %2 = vector.load %arg2[%c0_2, %c0_3] : memref<32x64xbf16, #tpu.memory_space<vmem>>, vector<32x64xbf16>
    %cst = arith.constant dense<0.000000e+00> : vector<512x64xf32>
    %3 = tpu.matmul %1, %2, %cst {dimension_numbers = #tpu.dot_dimension_numbers<[1], [0], [0], [1], [0, 0, 1, 1], [], []>} : vector<512x32xbf16>, vector<32x64xbf16>, vector<512x64xf32> -> vector<512x64xf32>
    %c0_4 = arith.constant 0 : index
    %c0_5 = arith.constant 0 : index
    %4 = vector.load %arg3[%c0_4, %c0_5] : memref<1x64xf32, #tpu.memory_space<vmem>>, vector<1x64xf32>
    %5 = vector.broadcast %4 : vector<1x64xf32> to vector<512x64xf32>
    %6 = arith.addf %3, %5 : vector<512x64xf32>
    %cst_6 = arith.constant 0.000000e+00 : f32
    %7 = vector.broadcast %cst_6 : f32 to vector<512x64xf32>
    %8 = arith.maximumf %6, %7 : vector<512x64xf32>
    %9 = vector.shape_cast %8 : vector<512x64xf32> to vector<2x16x16x64xf32>
    %10 = arith.truncf %9 : vector<2x16x16x64xf32> to vector<2x16x16x64xbf16>
    %cst_7 = arith.constant 0.000000e+00 : bf16
    %11 = vector.broadcast %cst_7 : bf16 to vector<2x16x1x64xbf16>
    %12 = tpu.concatenate %11, %10, %11 in 2 : vector<2x16x1x64xbf16>, vector<2x16x16x64xbf16>, vector<2x16x1x64xbf16> -> vector<2x16x18x64xbf16>
    %cst_8 = arith.constant 0.000000e+00 : bf16
    %13 = vector.broadcast %cst_8 : bf16 to vector<2x1x18x64xbf16>
    %14 = tpu.concatenate %13, %12, %13 in 1 : vector<2x1x18x64xbf16>, vector<2x16x18x64xbf16>, vector<2x1x18x64xbf16> -> vector<2x18x18x64xbf16>
    %15 = vector.extract_strided_slice %14 {offsets = [0, 0, 0, 0], sizes = [2, 16, 16, 64], strides = [1, 1, 1, 1]} : vector<2x18x18x64xbf16> to vector<2x16x16x64xbf16>
    %16 = vector.shape_cast %15 : vector<2x16x16x64xbf16> to vector<512x64xbf16>
    %c0_9 = arith.constant 0 : index
    %c0_10 = arith.constant 0 : index
    %c0_11 = arith.constant 0 : index
    %17 = vector.load %arg4[%c0_9, %c0_10, %c0_11] : memref<9x64x64xbf16, #tpu.memory_space<vmem>>, vector<1x64x64xbf16>
    %18 = vector.shape_cast %17 : vector<1x64x64xbf16> to vector<64x64xbf16>
    %cst_12 = arith.constant dense<0.000000e+00> : vector<512x64xf32>
    %19 = tpu.matmul %16, %18, %cst_12 {dimension_numbers = #tpu.dot_dimension_numbers<[1], [0], [0], [1], [0, 0, 1, 1], [], []>} : vector<512x64xbf16>, vector<64x64xbf16>, vector<512x64xf32> -> vector<512x64xf32>
    %20 = vector.extract_strided_slice %14 {offsets = [0, 0, 1, 0], sizes = [2, 16, 16, 64], strides = [1, 1, 1, 1]} : vector<2x18x18x64xbf16> to vector<2x16x16x64xbf16>
    %21 = vector.shape_cast %20 : vector<2x16x16x64xbf16> to vector<512x64xbf16>
    %c1 = arith.constant 1 : index
    %c0_13 = arith.constant 0 : index
    %c0_14 = arith.constant 0 : index
    %22 = vector.load %arg4[%c1, %c0_13, %c0_14] : memref<9x64x64xbf16, #tpu.memory_space<vmem>>, vector<1x64x64xbf16>
    %23 = vector.shape_cast %22 : vector<1x64x64xbf16> to vector<64x64xbf16>
    %cst_15 = arith.constant dense<0.000000e+00> : vector<512x64xf32>
    %24 = tpu.matmul %21, %23, %cst_15 {dimension_numbers = #tpu.dot_dimension_numbers<[1], [0], [0], [1], [0, 0, 1, 1], [], []>} : vector<512x64xbf16>, vector<64x64xbf16>, vector<512x64xf32> -> vector<512x64xf32>
    %25 = arith.addf %19, %24 : vector<512x64xf32>
    %26 = vector.extract_strided_slice %14 {offsets = [0, 0, 2, 0], sizes = [2, 16, 16, 64], strides = [1, 1, 1, 1]} : vector<2x18x18x64xbf16> to vector<2x16x16x64xbf16>
    %27 = vector.shape_cast %26 : vector<2x16x16x64xbf16> to vector<512x64xbf16>
    %c2 = arith.constant 2 : index
    %c0_16 = arith.constant 0 : index
    %c0_17 = arith.constant 0 : index
    %28 = vector.load %arg4[%c2, %c0_16, %c0_17] : memref<9x64x64xbf16, #tpu.memory_space<vmem>>, vector<1x64x64xbf16>
    %29 = vector.shape_cast %28 : vector<1x64x64xbf16> to vector<64x64xbf16>
    %cst_18 = arith.constant dense<0.000000e+00> : vector<512x64xf32>
    %30 = tpu.matmul %27, %29, %cst_18 {dimension_numbers = #tpu.dot_dimension_numbers<[1], [0], [0], [1], [0, 0, 1, 1], [], []>} : vector<512x64xbf16>, vector<64x64xbf16>, vector<512x64xf32> -> vector<512x64xf32>
    %31 = arith.addf %25, %30 : vector<512x64xf32>
    %32 = vector.extract_strided_slice %14 {offsets = [0, 1, 0, 0], sizes = [2, 16, 16, 64], strides = [1, 1, 1, 1]} : vector<2x18x18x64xbf16> to vector<2x16x16x64xbf16>
    %33 = vector.shape_cast %32 : vector<2x16x16x64xbf16> to vector<512x64xbf16>
    %c3 = arith.constant 3 : index
    %c0_19 = arith.constant 0 : index
    %c0_20 = arith.constant 0 : index
    %34 = vector.load %arg4[%c3, %c0_19, %c0_20] : memref<9x64x64xbf16, #tpu.memory_space<vmem>>, vector<1x64x64xbf16>
    %35 = vector.shape_cast %34 : vector<1x64x64xbf16> to vector<64x64xbf16>
    %cst_21 = arith.constant dense<0.000000e+00> : vector<512x64xf32>
    %36 = tpu.matmul %33, %35, %cst_21 {dimension_numbers = #tpu.dot_dimension_numbers<[1], [0], [0], [1], [0, 0, 1, 1], [], []>} : vector<512x64xbf16>, vector<64x64xbf16>, vector<512x64xf32> -> vector<512x64xf32>
    %37 = arith.addf %31, %36 : vector<512x64xf32>
    %38 = vector.extract_strided_slice %14 {offsets = [0, 1, 1, 0], sizes = [2, 16, 16, 64], strides = [1, 1, 1, 1]} : vector<2x18x18x64xbf16> to vector<2x16x16x64xbf16>
    %39 = vector.shape_cast %38 : vector<2x16x16x64xbf16> to vector<512x64xbf16>
    %c4 = arith.constant 4 : index
    %c0_22 = arith.constant 0 : index
    %c0_23 = arith.constant 0 : index
    %40 = vector.load %arg4[%c4, %c0_22, %c0_23] : memref<9x64x64xbf16, #tpu.memory_space<vmem>>, vector<1x64x64xbf16>
    %41 = vector.shape_cast %40 : vector<1x64x64xbf16> to vector<64x64xbf16>
    %cst_24 = arith.constant dense<0.000000e+00> : vector<512x64xf32>
    %42 = tpu.matmul %39, %41, %cst_24 {dimension_numbers = #tpu.dot_dimension_numbers<[1], [0], [0], [1], [0, 0, 1, 1], [], []>} : vector<512x64xbf16>, vector<64x64xbf16>, vector<512x64xf32> -> vector<512x64xf32>
    %43 = arith.addf %37, %42 : vector<512x64xf32>
    %44 = vector.extract_strided_slice %14 {offsets = [0, 1, 2, 0], sizes = [2, 16, 16, 64], strides = [1, 1, 1, 1]} : vector<2x18x18x64xbf16> to vector<2x16x16x64xbf16>
    %45 = vector.shape_cast %44 : vector<2x16x16x64xbf16> to vector<512x64xbf16>
    %c5 = arith.constant 5 : index
    %c0_25 = arith.constant 0 : index
    %c0_26 = arith.constant 0 : index
    %46 = vector.load %arg4[%c5, %c0_25, %c0_26] : memref<9x64x64xbf16, #tpu.memory_space<vmem>>, vector<1x64x64xbf16>
    %47 = vector.shape_cast %46 : vector<1x64x64xbf16> to vector<64x64xbf16>
    %cst_27 = arith.constant dense<0.000000e+00> : vector<512x64xf32>
    %48 = tpu.matmul %45, %47, %cst_27 {dimension_numbers = #tpu.dot_dimension_numbers<[1], [0], [0], [1], [0, 0, 1, 1], [], []>} : vector<512x64xbf16>, vector<64x64xbf16>, vector<512x64xf32> -> vector<512x64xf32>
    %49 = arith.addf %43, %48 : vector<512x64xf32>
    %50 = vector.extract_strided_slice %14 {offsets = [0, 2, 0, 0], sizes = [2, 16, 16, 64], strides = [1, 1, 1, 1]} : vector<2x18x18x64xbf16> to vector<2x16x16x64xbf16>
    %51 = vector.shape_cast %50 : vector<2x16x16x64xbf16> to vector<512x64xbf16>
    %c6 = arith.constant 6 : index
    %c0_28 = arith.constant 0 : index
    %c0_29 = arith.constant 0 : index
    %52 = vector.load %arg4[%c6, %c0_28, %c0_29] : memref<9x64x64xbf16, #tpu.memory_space<vmem>>, vector<1x64x64xbf16>
    %53 = vector.shape_cast %52 : vector<1x64x64xbf16> to vector<64x64xbf16>
    %cst_30 = arith.constant dense<0.000000e+00> : vector<512x64xf32>
    %54 = tpu.matmul %51, %53, %cst_30 {dimension_numbers = #tpu.dot_dimension_numbers<[1], [0], [0], [1], [0, 0, 1, 1], [], []>} : vector<512x64xbf16>, vector<64x64xbf16>, vector<512x64xf32> -> vector<512x64xf32>
    %55 = arith.addf %49, %54 : vector<512x64xf32>
    %56 = vector.extract_strided_slice %14 {offsets = [0, 2, 1, 0], sizes = [2, 16, 16, 64], strides = [1, 1, 1, 1]} : vector<2x18x18x64xbf16> to vector<2x16x16x64xbf16>
    %57 = vector.shape_cast %56 : vector<2x16x16x64xbf16> to vector<512x64xbf16>
    %c7 = arith.constant 7 : index
    %c0_31 = arith.constant 0 : index
    %c0_32 = arith.constant 0 : index
    %58 = vector.load %arg4[%c7, %c0_31, %c0_32] : memref<9x64x64xbf16, #tpu.memory_space<vmem>>, vector<1x64x64xbf16>
    %59 = vector.shape_cast %58 : vector<1x64x64xbf16> to vector<64x64xbf16>
    %cst_33 = arith.constant dense<0.000000e+00> : vector<512x64xf32>
    %60 = tpu.matmul %57, %59, %cst_33 {dimension_numbers = #tpu.dot_dimension_numbers<[1], [0], [0], [1], [0, 0, 1, 1], [], []>} : vector<512x64xbf16>, vector<64x64xbf16>, vector<512x64xf32> -> vector<512x64xf32>
    %61 = arith.addf %55, %60 : vector<512x64xf32>
    %62 = vector.extract_strided_slice %14 {offsets = [0, 2, 2, 0], sizes = [2, 16, 16, 64], strides = [1, 1, 1, 1]} : vector<2x18x18x64xbf16> to vector<2x16x16x64xbf16>
    %63 = vector.shape_cast %62 : vector<2x16x16x64xbf16> to vector<512x64xbf16>
    %c8 = arith.constant 8 : index
    %c0_34 = arith.constant 0 : index
    %c0_35 = arith.constant 0 : index
    %64 = vector.load %arg4[%c8, %c0_34, %c0_35] : memref<9x64x64xbf16, #tpu.memory_space<vmem>>, vector<1x64x64xbf16>
    %65 = vector.shape_cast %64 : vector<1x64x64xbf16> to vector<64x64xbf16>
    %cst_36 = arith.constant dense<0.000000e+00> : vector<512x64xf32>
    %66 = tpu.matmul %63, %65, %cst_36 {dimension_numbers = #tpu.dot_dimension_numbers<[1], [0], [0], [1], [0, 0, 1, 1], [], []>} : vector<512x64xbf16>, vector<64x64xbf16>, vector<512x64xf32> -> vector<512x64xf32>
    %67 = arith.addf %61, %66 : vector<512x64xf32>
    %c0_37 = arith.constant 0 : index
    %c0_38 = arith.constant 0 : index
    %68 = vector.load %arg5[%c0_37, %c0_38] : memref<1x64xf32, #tpu.memory_space<vmem>>, vector<1x64xf32>
    %69 = vector.broadcast %68 : vector<1x64xf32> to vector<512x64xf32>
    %70 = arith.addf %67, %69 : vector<512x64xf32>
    %cst_39 = arith.constant 0.000000e+00 : f32
    %71 = vector.broadcast %cst_39 : f32 to vector<512x64xf32>
    %72 = arith.maximumf %70, %71 : vector<512x64xf32>
    %73 = vector.shape_cast %72 : vector<512x64xf32> to vector<2x16x16x64xf32>
    %74 = arith.truncf %73 : vector<2x16x16x64xf32> to vector<2x16x16x64xbf16>
    %75 = vector.shape_cast %74 : vector<2x16x16x64xbf16> to vector<16x2x16x64xbf16>
    %76 = vector.extract_strided_slice %75 {offsets = [0, 0, 0, 0], sizes = [16, 1, 16, 64], strides = [1, 1, 1, 1]} : vector<16x2x16x64xbf16> to vector<16x1x16x64xbf16>
    %77 = vector.shape_cast %76 : vector<16x1x16x64xbf16> to vector<16x16x64xbf16>
    %78 = vector.extract_strided_slice %75 {offsets = [0, 1, 0, 0], sizes = [16, 1, 16, 64], strides = [1, 1, 1, 1]} : vector<16x2x16x64xbf16> to vector<16x1x16x64xbf16>
    %79 = vector.shape_cast %78 : vector<16x1x16x64xbf16> to vector<16x16x64xbf16>
    %80 = arith.maximumf %77, %79 : vector<16x16x64xbf16>
    %81 = vector.shape_cast %80 : vector<16x16x64xbf16> to vector<16x8x2x64xbf16>
    %cst_40 = arith.constant dense<0xFF80> : vector<16x8x64xbf16>
    %82 = vector.multi_reduction <maximumf>, %81, %cst_40 [2] : vector<16x8x2x64xbf16> to vector<16x8x64xbf16>
    %83 = vector.shape_cast %82 : vector<16x8x64xbf16> to vector<2x8x8x64xbf16>
    %cst_41 = arith.constant 0.000000e+00 : bf16
    %84 = vector.broadcast %cst_41 : bf16 to vector<2x8x1x64xbf16>
    %85 = tpu.concatenate %84, %83, %84 in 2 : vector<2x8x1x64xbf16>, vector<2x8x8x64xbf16>, vector<2x8x1x64xbf16> -> vector<2x8x10x64xbf16>
    %cst_42 = arith.constant 0.000000e+00 : bf16
    %86 = vector.broadcast %cst_42 : bf16 to vector<2x1x10x64xbf16>
    %87 = tpu.concatenate %86, %85, %86 in 1 : vector<2x1x10x64xbf16>, vector<2x8x10x64xbf16>, vector<2x1x10x64xbf16> -> vector<2x10x10x64xbf16>
    %88 = vector.extract_strided_slice %87 {offsets = [0, 0, 0, 0], sizes = [2, 8, 8, 64], strides = [1, 1, 1, 1]} : vector<2x10x10x64xbf16> to vector<2x8x8x64xbf16>
    %89 = vector.shape_cast %88 : vector<2x8x8x64xbf16> to vector<128x64xbf16>
    %c0_43 = arith.constant 0 : index
    %c0_44 = arith.constant 0 : index
    %c0_45 = arith.constant 0 : index
    %90 = vector.load %arg6[%c0_43, %c0_44, %c0_45] : memref<9x64x128xbf16, #tpu.memory_space<vmem>>, vector<1x64x128xbf16>
    %91 = vector.shape_cast %90 : vector<1x64x128xbf16> to vector<64x128xbf16>
    %cst_46 = arith.constant dense<0.000000e+00> : vector<128x128xf32>
    %92 = tpu.matmul %89, %91, %cst_46 {dimension_numbers = #tpu.dot_dimension_numbers<[1], [0], [0], [1], [0, 0, 1, 1], [], []>} : vector<128x64xbf16>, vector<64x128xbf16>, vector<128x128xf32> -> vector<128x128xf32>
    %93 = vector.extract_strided_slice %87 {offsets = [0, 0, 1, 0], sizes = [2, 8, 8, 64], strides = [1, 1, 1, 1]} : vector<2x10x10x64xbf16> to vector<2x8x8x64xbf16>
    %94 = vector.shape_cast %93 : vector<2x8x8x64xbf16> to vector<128x64xbf16>
    %c1_47 = arith.constant 1 : index
    %c0_48 = arith.constant 0 : index
    %c0_49 = arith.constant 0 : index
    %95 = vector.load %arg6[%c1_47, %c0_48, %c0_49] : memref<9x64x128xbf16, #tpu.memory_space<vmem>>, vector<1x64x128xbf16>
    %96 = vector.shape_cast %95 : vector<1x64x128xbf16> to vector<64x128xbf16>
    %cst_50 = arith.constant dense<0.000000e+00> : vector<128x128xf32>
    %97 = tpu.matmul %94, %96, %cst_50 {dimension_numbers = #tpu.dot_dimension_numbers<[1], [0], [0], [1], [0, 0, 1, 1], [], []>} : vector<128x64xbf16>, vector<64x128xbf16>, vector<128x128xf32> -> vector<128x128xf32>
    %98 = arith.addf %92, %97 : vector<128x128xf32>
    %99 = vector.extract_strided_slice %87 {offsets = [0, 0, 2, 0], sizes = [2, 8, 8, 64], strides = [1, 1, 1, 1]} : vector<2x10x10x64xbf16> to vector<2x8x8x64xbf16>
    %100 = vector.shape_cast %99 : vector<2x8x8x64xbf16> to vector<128x64xbf16>
    %c2_51 = arith.constant 2 : index
    %c0_52 = arith.constant 0 : index
    %c0_53 = arith.constant 0 : index
    %101 = vector.load %arg6[%c2_51, %c0_52, %c0_53] : memref<9x64x128xbf16, #tpu.memory_space<vmem>>, vector<1x64x128xbf16>
    %102 = vector.shape_cast %101 : vector<1x64x128xbf16> to vector<64x128xbf16>
    %cst_54 = arith.constant dense<0.000000e+00> : vector<128x128xf32>
    %103 = tpu.matmul %100, %102, %cst_54 {dimension_numbers = #tpu.dot_dimension_numbers<[1], [0], [0], [1], [0, 0, 1, 1], [], []>} : vector<128x64xbf16>, vector<64x128xbf16>, vector<128x128xf32> -> vector<128x128xf32>
    %104 = arith.addf %98, %103 : vector<128x128xf32>
    %105 = vector.extract_strided_slice %87 {offsets = [0, 1, 0, 0], sizes = [2, 8, 8, 64], strides = [1, 1, 1, 1]} : vector<2x10x10x64xbf16> to vector<2x8x8x64xbf16>
    %106 = vector.shape_cast %105 : vector<2x8x8x64xbf16> to vector<128x64xbf16>
    %c3_55 = arith.constant 3 : index
    %c0_56 = arith.constant 0 : index
    %c0_57 = arith.constant 0 : index
    %107 = vector.load %arg6[%c3_55, %c0_56, %c0_57] : memref<9x64x128xbf16, #tpu.memory_space<vmem>>, vector<1x64x128xbf16>
    %108 = vector.shape_cast %107 : vector<1x64x128xbf16> to vector<64x128xbf16>
    %cst_58 = arith.constant dense<0.000000e+00> : vector<128x128xf32>
    %109 = tpu.matmul %106, %108, %cst_58 {dimension_numbers = #tpu.dot_dimension_numbers<[1], [0], [0], [1], [0, 0, 1, 1], [], []>} : vector<128x64xbf16>, vector<64x128xbf16>, vector<128x128xf32> -> vector<128x128xf32>
    %110 = arith.addf %104, %109 : vector<128x128xf32>
    %111 = vector.extract_strided_slice %87 {offsets = [0, 1, 1, 0], sizes = [2, 8, 8, 64], strides = [1, 1, 1, 1]} : vector<2x10x10x64xbf16> to vector<2x8x8x64xbf16>
    %112 = vector.shape_cast %111 : vector<2x8x8x64xbf16> to vector<128x64xbf16>
    %c4_59 = arith.constant 4 : index
    %c0_60 = arith.constant 0 : index
    %c0_61 = arith.constant 0 : index
    %113 = vector.load %arg6[%c4_59, %c0_60, %c0_61] : memref<9x64x128xbf16, #tpu.memory_space<vmem>>, vector<1x64x128xbf16>
    %114 = vector.shape_cast %113 : vector<1x64x128xbf16> to vector<64x128xbf16>
    %cst_62 = arith.constant dense<0.000000e+00> : vector<128x128xf32>
    %115 = tpu.matmul %112, %114, %cst_62 {dimension_numbers = #tpu.dot_dimension_numbers<[1], [0], [0], [1], [0, 0, 1, 1], [], []>} : vector<128x64xbf16>, vector<64x128xbf16>, vector<128x128xf32> -> vector<128x128xf32>
    %116 = arith.addf %110, %115 : vector<128x128xf32>
    %117 = vector.extract_strided_slice %87 {offsets = [0, 1, 2, 0], sizes = [2, 8, 8, 64], strides = [1, 1, 1, 1]} : vector<2x10x10x64xbf16> to vector<2x8x8x64xbf16>
    %118 = vector.shape_cast %117 : vector<2x8x8x64xbf16> to vector<128x64xbf16>
    %c5_63 = arith.constant 5 : index
    %c0_64 = arith.constant 0 : index
    %c0_65 = arith.constant 0 : index
    %119 = vector.load %arg6[%c5_63, %c0_64, %c0_65] : memref<9x64x128xbf16, #tpu.memory_space<vmem>>, vector<1x64x128xbf16>
    %120 = vector.shape_cast %119 : vector<1x64x128xbf16> to vector<64x128xbf16>
    %cst_66 = arith.constant dense<0.000000e+00> : vector<128x128xf32>
    %121 = tpu.matmul %118, %120, %cst_66 {dimension_numbers = #tpu.dot_dimension_numbers<[1], [0], [0], [1], [0, 0, 1, 1], [], []>} : vector<128x64xbf16>, vector<64x128xbf16>, vector<128x128xf32> -> vector<128x128xf32>
    %122 = arith.addf %116, %121 : vector<128x128xf32>
    %123 = vector.extract_strided_slice %87 {offsets = [0, 2, 0, 0], sizes = [2, 8, 8, 64], strides = [1, 1, 1, 1]} : vector<2x10x10x64xbf16> to vector<2x8x8x64xbf16>
    %124 = vector.shape_cast %123 : vector<2x8x8x64xbf16> to vector<128x64xbf16>
    %c6_67 = arith.constant 6 : index
    %c0_68 = arith.constant 0 : index
    %c0_69 = arith.constant 0 : index
    %125 = vector.load %arg6[%c6_67, %c0_68, %c0_69] : memref<9x64x128xbf16, #tpu.memory_space<vmem>>, vector<1x64x128xbf16>
    %126 = vector.shape_cast %125 : vector<1x64x128xbf16> to vector<64x128xbf16>
    %cst_70 = arith.constant dense<0.000000e+00> : vector<128x128xf32>
    %127 = tpu.matmul %124, %126, %cst_70 {dimension_numbers = #tpu.dot_dimension_numbers<[1], [0], [0], [1], [0, 0, 1, 1], [], []>} : vector<128x64xbf16>, vector<64x128xbf16>, vector<128x128xf32> -> vector<128x128xf32>
    %128 = arith.addf %122, %127 : vector<128x128xf32>
    %129 = vector.extract_strided_slice %87 {offsets = [0, 2, 1, 0], sizes = [2, 8, 8, 64], strides = [1, 1, 1, 1]} : vector<2x10x10x64xbf16> to vector<2x8x8x64xbf16>
    %130 = vector.shape_cast %129 : vector<2x8x8x64xbf16> to vector<128x64xbf16>
    %c7_71 = arith.constant 7 : index
    %c0_72 = arith.constant 0 : index
    %c0_73 = arith.constant 0 : index
    %131 = vector.load %arg6[%c7_71, %c0_72, %c0_73] : memref<9x64x128xbf16, #tpu.memory_space<vmem>>, vector<1x64x128xbf16>
    %132 = vector.shape_cast %131 : vector<1x64x128xbf16> to vector<64x128xbf16>
    %cst_74 = arith.constant dense<0.000000e+00> : vector<128x128xf32>
    %133 = tpu.matmul %130, %132, %cst_74 {dimension_numbers = #tpu.dot_dimension_numbers<[1], [0], [0], [1], [0, 0, 1, 1], [], []>} : vector<128x64xbf16>, vector<64x128xbf16>, vector<128x128xf32> -> vector<128x128xf32>
    %134 = arith.addf %128, %133 : vector<128x128xf32>
    %135 = vector.extract_strided_slice %87 {offsets = [0, 2, 2, 0], sizes = [2, 8, 8, 64], strides = [1, 1, 1, 1]} : vector<2x10x10x64xbf16> to vector<2x8x8x64xbf16>
    %136 = vector.shape_cast %135 : vector<2x8x8x64xbf16> to vector<128x64xbf16>
    %c8_75 = arith.constant 8 : index
    %c0_76 = arith.constant 0 : index
    %c0_77 = arith.constant 0 : index
    %137 = vector.load %arg6[%c8_75, %c0_76, %c0_77] : memref<9x64x128xbf16, #tpu.memory_space<vmem>>, vector<1x64x128xbf16>
    %138 = vector.shape_cast %137 : vector<1x64x128xbf16> to vector<64x128xbf16>
    %cst_78 = arith.constant dense<0.000000e+00> : vector<128x128xf32>
    %139 = tpu.matmul %136, %138, %cst_78 {dimension_numbers = #tpu.dot_dimension_numbers<[1], [0], [0], [1], [0, 0, 1, 1], [], []>} : vector<128x64xbf16>, vector<64x128xbf16>, vector<128x128xf32> -> vector<128x128xf32>
    %140 = arith.addf %134, %139 : vector<128x128xf32>
    %c0_79 = arith.constant 0 : index
    %c0_80 = arith.constant 0 : index
    %141 = vector.load %arg7[%c0_79, %c0_80] : memref<1x128xf32, #tpu.memory_space<vmem>>, vector<1x128xf32>
    %142 = vector.broadcast %141 : vector<1x128xf32> to vector<128x128xf32>
    %143 = arith.addf %140, %142 : vector<128x128xf32>
    %cst_81 = arith.constant 0.000000e+00 : f32
    %144 = vector.broadcast %cst_81 : f32 to vector<128x128xf32>
    %145 = arith.maximumf %143, %144 : vector<128x128xf32>
    %146 = vector.shape_cast %145 : vector<128x128xf32> to vector<2x8x8x128xf32>
    %147 = arith.truncf %146 : vector<2x8x8x128xf32> to vector<2x8x8x128xbf16>
    %cst_82 = arith.constant 0.000000e+00 : bf16
    %148 = vector.broadcast %cst_82 : bf16 to vector<2x8x1x128xbf16>
    %149 = tpu.concatenate %148, %147, %148 in 2 : vector<2x8x1x128xbf16>, vector<2x8x8x128xbf16>, vector<2x8x1x128xbf16> -> vector<2x8x10x128xbf16>
    %cst_83 = arith.constant 0.000000e+00 : bf16
    %150 = vector.broadcast %cst_83 : bf16 to vector<2x1x10x128xbf16>
    %151 = tpu.concatenate %150, %149, %150 in 1 : vector<2x1x10x128xbf16>, vector<2x8x10x128xbf16>, vector<2x1x10x128xbf16> -> vector<2x10x10x128xbf16>
    %152 = vector.extract_strided_slice %151 {offsets = [0, 0, 0, 0], sizes = [2, 8, 8, 128], strides = [1, 1, 1, 1]} : vector<2x10x10x128xbf16> to vector<2x8x8x128xbf16>
    %153 = vector.shape_cast %152 : vector<2x8x8x128xbf16> to vector<128x128xbf16>
    %c0_84 = arith.constant 0 : index
    %c0_85 = arith.constant 0 : index
    %c0_86 = arith.constant 0 : index
    %154 = vector.load %arg8[%c0_84, %c0_85, %c0_86] : memref<9x128x128xbf16, #tpu.memory_space<vmem>>, vector<1x128x128xbf16>
    %155 = vector.shape_cast %154 : vector<1x128x128xbf16> to vector<128x128xbf16>
    %cst_87 = arith.constant dense<0.000000e+00> : vector<128x128xf32>
    %156 = tpu.matmul %153, %155, %cst_87 {dimension_numbers = #tpu.dot_dimension_numbers<[1], [0], [0], [1], [0, 0, 1, 1], [], []>} : vector<128x128xbf16>, vector<128x128xbf16>, vector<128x128xf32> -> vector<128x128xf32>
    %157 = vector.extract_strided_slice %151 {offsets = [0, 0, 1, 0], sizes = [2, 8, 8, 128], strides = [1, 1, 1, 1]} : vector<2x10x10x128xbf16> to vector<2x8x8x128xbf16>
    %158 = vector.shape_cast %157 : vector<2x8x8x128xbf16> to vector<128x128xbf16>
    %c1_88 = arith.constant 1 : index
    %c0_89 = arith.constant 0 : index
    %c0_90 = arith.constant 0 : index
    %159 = vector.load %arg8[%c1_88, %c0_89, %c0_90] : memref<9x128x128xbf16, #tpu.memory_space<vmem>>, vector<1x128x128xbf16>
    %160 = vector.shape_cast %159 : vector<1x128x128xbf16> to vector<128x128xbf16>
    %cst_91 = arith.constant dense<0.000000e+00> : vector<128x128xf32>
    %161 = tpu.matmul %158, %160, %cst_91 {dimension_numbers = #tpu.dot_dimension_numbers<[1], [0], [0], [1], [0, 0, 1, 1], [], []>} : vector<128x128xbf16>, vector<128x128xbf16>, vector<128x128xf32> -> vector<128x128xf32>
    %162 = arith.addf %156, %161 : vector<128x128xf32>
    %163 = vector.extract_strided_slice %151 {offsets = [0, 0, 2, 0], sizes = [2, 8, 8, 128], strides = [1, 1, 1, 1]} : vector<2x10x10x128xbf16> to vector<2x8x8x128xbf16>
    %164 = vector.shape_cast %163 : vector<2x8x8x128xbf16> to vector<128x128xbf16>
    %c2_92 = arith.constant 2 : index
    %c0_93 = arith.constant 0 : index
    %c0_94 = arith.constant 0 : index
    %165 = vector.load %arg8[%c2_92, %c0_93, %c0_94] : memref<9x128x128xbf16, #tpu.memory_space<vmem>>, vector<1x128x128xbf16>
    %166 = vector.shape_cast %165 : vector<1x128x128xbf16> to vector<128x128xbf16>
    %cst_95 = arith.constant dense<0.000000e+00> : vector<128x128xf32>
    %167 = tpu.matmul %164, %166, %cst_95 {dimension_numbers = #tpu.dot_dimension_numbers<[1], [0], [0], [1], [0, 0, 1, 1], [], []>} : vector<128x128xbf16>, vector<128x128xbf16>, vector<128x128xf32> -> vector<128x128xf32>
    %168 = arith.addf %162, %167 : vector<128x128xf32>
    %169 = vector.extract_strided_slice %151 {offsets = [0, 1, 0, 0], sizes = [2, 8, 8, 128], strides = [1, 1, 1, 1]} : vector<2x10x10x128xbf16> to vector<2x8x8x128xbf16>
    %170 = vector.shape_cast %169 : vector<2x8x8x128xbf16> to vector<128x128xbf16>
    %c3_96 = arith.constant 3 : index
    %c0_97 = arith.constant 0 : index
    %c0_98 = arith.constant 0 : index
    %171 = vector.load %arg8[%c3_96, %c0_97, %c0_98] : memref<9x128x128xbf16, #tpu.memory_space<vmem>>, vector<1x128x128xbf16>
    %172 = vector.shape_cast %171 : vector<1x128x128xbf16> to vector<128x128xbf16>
    %cst_99 = arith.constant dense<0.000000e+00> : vector<128x128xf32>
    %173 = tpu.matmul %170, %172, %cst_99 {dimension_numbers = #tpu.dot_dimension_numbers<[1], [0], [0], [1], [0, 0, 1, 1], [], []>} : vector<128x128xbf16>, vector<128x128xbf16>, vector<128x128xf32> -> vector<128x128xf32>
    %174 = arith.addf %168, %173 : vector<128x128xf32>
    %175 = vector.extract_strided_slice %151 {offsets = [0, 1, 1, 0], sizes = [2, 8, 8, 128], strides = [1, 1, 1, 1]} : vector<2x10x10x128xbf16> to vector<2x8x8x128xbf16>
    %176 = vector.shape_cast %175 : vector<2x8x8x128xbf16> to vector<128x128xbf16>
    %c4_100 = arith.constant 4 : index
    %c0_101 = arith.constant 0 : index
    %c0_102 = arith.constant 0 : index
    %177 = vector.load %arg8[%c4_100, %c0_101, %c0_102] : memref<9x128x128xbf16, #tpu.memory_space<vmem>>, vector<1x128x128xbf16>
    %178 = vector.shape_cast %177 : vector<1x128x128xbf16> to vector<128x128xbf16>
    %cst_103 = arith.constant dense<0.000000e+00> : vector<128x128xf32>
    %179 = tpu.matmul %176, %178, %cst_103 {dimension_numbers = #tpu.dot_dimension_numbers<[1], [0], [0], [1], [0, 0, 1, 1], [], []>} : vector<128x128xbf16>, vector<128x128xbf16>, vector<128x128xf32> -> vector<128x128xf32>
    %180 = arith.addf %174, %179 : vector<128x128xf32>
    %181 = vector.extract_strided_slice %151 {offsets = [0, 1, 2, 0], sizes = [2, 8, 8, 128], strides = [1, 1, 1, 1]} : vector<2x10x10x128xbf16> to vector<2x8x8x128xbf16>
    %182 = vector.shape_cast %181 : vector<2x8x8x128xbf16> to vector<128x128xbf16>
    %c5_104 = arith.constant 5 : index
    %c0_105 = arith.constant 0 : index
    %c0_106 = arith.constant 0 : index
    %183 = vector.load %arg8[%c5_104, %c0_105, %c0_106] : memref<9x128x128xbf16, #tpu.memory_space<vmem>>, vector<1x128x128xbf16>
    %184 = vector.shape_cast %183 : vector<1x128x128xbf16> to vector<128x128xbf16>
    %cst_107 = arith.constant dense<0.000000e+00> : vector<128x128xf32>
    %185 = tpu.matmul %182, %184, %cst_107 {dimension_numbers = #tpu.dot_dimension_numbers<[1], [0], [0], [1], [0, 0, 1, 1], [], []>} : vector<128x128xbf16>, vector<128x128xbf16>, vector<128x128xf32> -> vector<128x128xf32>
    %186 = arith.addf %180, %185 : vector<128x128xf32>
    %187 = vector.extract_strided_slice %151 {offsets = [0, 2, 0, 0], sizes = [2, 8, 8, 128], strides = [1, 1, 1, 1]} : vector<2x10x10x128xbf16> to vector<2x8x8x128xbf16>
    %188 = vector.shape_cast %187 : vector<2x8x8x128xbf16> to vector<128x128xbf16>
    %c6_108 = arith.constant 6 : index
    %c0_109 = arith.constant 0 : index
    %c0_110 = arith.constant 0 : index
    %189 = vector.load %arg8[%c6_108, %c0_109, %c0_110] : memref<9x128x128xbf16, #tpu.memory_space<vmem>>, vector<1x128x128xbf16>
    %190 = vector.shape_cast %189 : vector<1x128x128xbf16> to vector<128x128xbf16>
    %cst_111 = arith.constant dense<0.000000e+00> : vector<128x128xf32>
    %191 = tpu.matmul %188, %190, %cst_111 {dimension_numbers = #tpu.dot_dimension_numbers<[1], [0], [0], [1], [0, 0, 1, 1], [], []>} : vector<128x128xbf16>, vector<128x128xbf16>, vector<128x128xf32> -> vector<128x128xf32>
    %192 = arith.addf %186, %191 : vector<128x128xf32>
    %193 = vector.extract_strided_slice %151 {offsets = [0, 2, 1, 0], sizes = [2, 8, 8, 128], strides = [1, 1, 1, 1]} : vector<2x10x10x128xbf16> to vector<2x8x8x128xbf16>
    %194 = vector.shape_cast %193 : vector<2x8x8x128xbf16> to vector<128x128xbf16>
    %c7_112 = arith.constant 7 : index
    %c0_113 = arith.constant 0 : index
    %c0_114 = arith.constant 0 : index
    %195 = vector.load %arg8[%c7_112, %c0_113, %c0_114] : memref<9x128x128xbf16, #tpu.memory_space<vmem>>, vector<1x128x128xbf16>
    %196 = vector.shape_cast %195 : vector<1x128x128xbf16> to vector<128x128xbf16>
    %cst_115 = arith.constant dense<0.000000e+00> : vector<128x128xf32>
    %197 = tpu.matmul %194, %196, %cst_115 {dimension_numbers = #tpu.dot_dimension_numbers<[1], [0], [0], [1], [0, 0, 1, 1], [], []>} : vector<128x128xbf16>, vector<128x128xbf16>, vector<128x128xf32> -> vector<128x128xf32>
    %198 = arith.addf %192, %197 : vector<128x128xf32>
    %199 = vector.extract_strided_slice %151 {offsets = [0, 2, 2, 0], sizes = [2, 8, 8, 128], strides = [1, 1, 1, 1]} : vector<2x10x10x128xbf16> to vector<2x8x8x128xbf16>
    %200 = vector.shape_cast %199 : vector<2x8x8x128xbf16> to vector<128x128xbf16>
    %c8_116 = arith.constant 8 : index
    %c0_117 = arith.constant 0 : index
    %c0_118 = arith.constant 0 : index
    %201 = vector.load %arg8[%c8_116, %c0_117, %c0_118] : memref<9x128x128xbf16, #tpu.memory_space<vmem>>, vector<1x128x128xbf16>
    %202 = vector.shape_cast %201 : vector<1x128x128xbf16> to vector<128x128xbf16>
    %cst_119 = arith.constant dense<0.000000e+00> : vector<128x128xf32>
    %203 = tpu.matmul %200, %202, %cst_119 {dimension_numbers = #tpu.dot_dimension_numbers<[1], [0], [0], [1], [0, 0, 1, 1], [], []>} : vector<128x128xbf16>, vector<128x128xbf16>, vector<128x128xf32> -> vector<128x128xf32>
    %204 = arith.addf %198, %203 : vector<128x128xf32>
    %c0_120 = arith.constant 0 : index
    %c0_121 = arith.constant 0 : index
    %205 = vector.load %arg9[%c0_120, %c0_121] : memref<1x128xf32, #tpu.memory_space<vmem>>, vector<1x128xf32>
    %206 = vector.broadcast %205 : vector<1x128xf32> to vector<128x128xf32>
    %207 = arith.addf %204, %206 : vector<128x128xf32>
    %cst_122 = arith.constant 0.000000e+00 : f32
    %208 = vector.broadcast %cst_122 : f32 to vector<128x128xf32>
    %209 = arith.maximumf %207, %208 : vector<128x128xf32>
    %210 = vector.shape_cast %209 : vector<128x128xf32> to vector<2x8x8x128xf32>
    %211 = vector.shape_cast %210 : vector<2x8x8x128xf32> to vector<2x64x128xf32>
    %212 = vector.extract_strided_slice %211 {offsets = [0, 0, 0], sizes = [1, 64, 128], strides = [1, 1, 1]} : vector<2x64x128xf32> to vector<1x64x128xf32>
    %213 = vector.shape_cast %212 : vector<1x64x128xf32> to vector<64x128xf32>
    %214 = vector.extract_strided_slice %211 {offsets = [1, 0, 0], sizes = [1, 64, 128], strides = [1, 1, 1]} : vector<2x64x128xf32> to vector<1x64x128xf32>
    %215 = vector.shape_cast %214 : vector<1x64x128xf32> to vector<64x128xf32>
    %216 = arith.subf %213, %215 : vector<64x128xf32>
    %217 = arith.mulf %216, %216 : vector<64x128xf32>
    %cst_123 = arith.constant dense<0.000000e+00> : vector<128xf32>
    %218 = vector.multi_reduction <add>, %217, %cst_123 [0] : vector<64x128xf32> to vector<128xf32>
    %219 = vector.shape_cast %218 : vector<128xf32> to vector<1x128xf32>
    %220 = vector.shape_cast %219 : vector<1x128xf32> to vector<1x1x128xf32>
    %c0_124 = arith.constant 0 : index
    %c0_125 = arith.constant 0 : index
    %c0_126 = arith.constant 0 : index
    %221 = vector.load %arg10[%c0_124, %c0_125, %c0_126] : memref<1x1x128xf32, #tpu.memory_space<vmem>>, vector<1x1x128xf32>
    tpu.vector_store %arg10[%c0_124, %c0_125, %c0_126], %220 {strides = array<i32>} : memref<1x1x128xf32, #tpu.memory_space<vmem>>, vector<1x1x128xf32>,
    return
  }
  func.func @transform_0(%arg0: i32) -> (i32, i32, i32) {
    %c0_i32 = arith.constant 0 : i32
    %c0_i32_0 = arith.constant 0 : i32
    %c0_i32_1 = arith.constant 0 : i32
    return %arg0, %c0_i32, %c0_i32_0 : i32, i32, i32
  }
  func.func @transform_1(%arg0: i32) -> (i32, i32) {
    %c0_i32 = arith.constant 0 : i32
    %c0_i32_0 = arith.constant 0 : i32
    %c0_i32_1 = arith.constant 0 : i32
    return %c0_i32, %c0_i32_0 : i32, i32
  }
  func.func @transform_2(%arg0: i32) -> (i32, i32) {
    %c0_i32 = arith.constant 0 : i32
    %c0_i32_0 = arith.constant 0 : i32
    %c0_i32_1 = arith.constant 0 : i32
    return %c0_i32, %c0_i32_0 : i32, i32
  }
  func.func @transform_3(%arg0: i32) -> (i32, i32, i32) {
    %c0_i32 = arith.constant 0 : i32
    %c0_i32_0 = arith.constant 0 : i32
    %c0_i32_1 = arith.constant 0 : i32
    %c0_i32_2 = arith.constant 0 : i32
    return %c0_i32, %c0_i32_0, %c0_i32_1 : i32, i32, i32
  }
  func.func @transform_4(%arg0: i32) -> (i32, i32) {
    %c0_i32 = arith.constant 0 : i32
    %c0_i32_0 = arith.constant 0 : i32
    %c0_i32_1 = arith.constant 0 : i32
    return %c0_i32, %c0_i32_0 : i32, i32
  }
  func.func @transform_5(%arg0: i32) -> (i32, i32, i32) {
    %c0_i32 = arith.constant 0 : i32
    %c0_i32_0 = arith.constant 0 : i32
    %c0_i32_1 = arith.constant 0 : i32
    %c0_i32_2 = arith.constant 0 : i32
    return %c0_i32, %c0_i32_0, %c0_i32_1 : i32, i32, i32
  }
  func.func @transform_6(%arg0: i32) -> (i32, i32) {
    %c0_i32 = arith.constant 0 : i32
    %c0_i32_0 = arith.constant 0 : i32
    %c0_i32_1 = arith.constant 0 : i32
    return %c0_i32, %c0_i32_0 : i32, i32
  }
  func.func @transform_7(%arg0: i32) -> (i32, i32, i32) {
    %c0_i32 = arith.constant 0 : i32
    %c0_i32_0 = arith.constant 0 : i32
    %c0_i32_1 = arith.constant 0 : i32
    %c0_i32_2 = arith.constant 0 : i32
    return %c0_i32, %c0_i32_0, %c0_i32_1 : i32, i32, i32
  }
  func.func @transform_8(%arg0: i32) -> (i32, i32) {
    %c0_i32 = arith.constant 0 : i32
    %c0_i32_0 = arith.constant 0 : i32
    %c0_i32_1 = arith.constant 0 : i32
    return %c0_i32, %c0_i32_0 : i32, i32
  }
  func.func @transform_9(%arg0: i32) -> (i32, i32, i32) {
    %c0_i32 = arith.constant 0 : i32
    %c0_i32_0 = arith.constant 0 : i32
    %c0_i32_1 = arith.constant 0 : i32
    return %arg0, %c0_i32, %c0_i32_0 : i32, i32, i32
  }
}

</mosaic_0001>

<bundles_post_ra>
// kernel: generator_loss.1
= control target key start
LH: loop header
LB: loop body
LE: loop exit
PB: predicated region body
PF: predicated region fallthrough
CT: control target
= control target key end

     0   :  { %s16894_s30 = smov 0   ;;  %s22045_s0 = inlined_call_operand.vmem [shape: bf16[2,512,32], index: 0, kind: input, shape index: {}]   ;;  %s22046_s1 = inlined_call_operand.vmem [shape: bf16[32,64], index: 1, kind: input, shape index: {}]   ;;  %s22047_s2 = inlined_call_operand.vmem [shape: f32[1,64], index: 2, kind: input, shape index: {}]   ;;  %s22048_s3 = inlined_call_operand.vmem [shape: bf16[9,64,64], index: 3, kind: input, shape index: {}]   ;;  %s22049_s4 = inlined_call_operand.vmem [shape: f32[1,64], index: 4, kind: input, shape index: {}]   ;;  %s22050_s5 = inlined_call_operand.vmem [shape: bf16[9,64,128], index: 5, kind: input, shape index: {}]   ;;  %s22051_s6 = inlined_call_operand.vmem [shape: f32[1,128], index: 6, kind: input, shape index: {}]   ;;  %s22052_s7 = inlined_call_operand.vmem [shape: bf16[9,128,128], index: 7, kind: input, shape index: {}]   ;;  %s22053_s8 = inlined_call_operand.vmem [shape: f32[1,128], index: 8, kind: input, shape index: {}]   ;;  %s22054_s9 = inlined_call_operand.vmem [shape: f32[2,1,128], index: 9, kind: output, shape index: {}]  }
   0x1 LB: > { %s12991_s10 = sadd.s32 4294967295, %s16840_s30   ;;  %p12995_p0 = scmp.ge.s32.totalorder %s16840_s30, 1  ;;  %s16840_s30 = sphi %s16894_s30, %s19_s30  }
   0x2   : > { %p287_p1 = scmp.lt.s32.totalorder %s16840_s30, 3 }
   0x4   : > { %p288_p2 = pnand %p12995_p0, %p287_p1 }
   0x6   : > { %291 = sbr.rel (%p288_p2) target bundleno = 2979 (0xba3), region = 56 }
   0xd   : > { %v16650_v0 = vld [vmem:[%s22046_s1] sm:$0xff]   ;;  %p321_p3 = scmp.lt.s32.totalorder %s12991_s10, 1  ;;  %v16651_v1 = vld [vmem:[%s22046_s1 + $0x8] sm:$0xff]   ;;  %vm578_vm0 = vcmask 261120   ;;  %v16686_v32 = vld [vmem:[%s22048_s3 + $0x30] sm:$0xff]   ;;  %v22055_v36 = vmov 0  }
   0xe   : > { %14644 = vmatprep.subr.bf16.mxu0 %v16650_v0  ;;  %v16684_v27 = vld [vmem:[%s22048_s3 + $0x20] sm:$0xff]   ;;  %v16685_v30 = vld [vmem:[%s22048_s3 + $0x28] sm:$0xff]   ;;  %v16687_v34 = vld [vmem:[%s22048_s3 + $0x38] sm:$0xff]   ;;  %v16988_v37 = vrot.slane %v22055_v36, 1  ;;  %vm1825_vm1 = vcmask 523264   ;;  %vm1348_vm2 = vcmask 1040384  }
   0xf   : > { %s22969_s10 = smov (!%p321_p3, %s12991_s10), 1  ;;  %14645 = vmatpush3.bf16.msra.mxu0 %v16650_v0  ;;  %v17000_v40 = vld [vmem:[%s22048_s3] sm:$0xff]   ;;  %v17008_v41 = vld [vmem:[%s22048_s3 + $0x8] sm:$0xff]   ;;  %v17013_v42 = vld [vmem:[%s22048_s3 + $0x10] sm:$0xff]   ;;  %vm1349_vm3 = vsmask.f32 256 }
  0x10   : > { %14646 = vmatprep.subr.bf16.mxu0 %v16651_v1  ;;  %s14033_s15 = sshll.u32 %s22969_s10, 8  ;;  %22304 = vst [vmem:[#allocation2_spill] sm:$0xff] %v16988_v37  ;;  %15864 = vmatprep.subr.bf16.mxu1 %v17000_v40  ;;  %v17022_v43 = vld [vmem:[%s22048_s3 + $0x18] sm:$0xff]   ;;  %v16692_v44 = vld [vmem:[%s22048_s3 + $0x40] sm:$0xff]   ;;  %vm17040_vm4 = vmand %vm1348_vm2, %vm1349_vm3  ;;  %vm1423_vm5 = vsmask.f32 7424  ;;  %s328_s25 = scalar_lea.vmem %s22054_s9, %s22969_s10 }
  0x11   : > { %s16914_s18 = scalar_lea.vmem %s22045_s0, %s14033_s15  ;;  %15868 = vmatpush3.bf16.msra.mxu1 %v17000_v40  ;;  %v17030_v45 = vld [vmem:[%s22047_s2] ss:$0 sm:$0xff]  ;;  %vm2644_vm6 = vcmask 1046528   ;;  %vm6565_vm7 = vcmask 516096   ;;  %vm8487_vm8 = vcmask 1042434   ;;  %vm8489_vm9 = vcmask 1043459  }
  0x12   : > { %v16652_v2 = vld [vmem:[%s16914_s18] sm:$0xff]   ;;  %v16653_v3 = vld [vmem:[%s16914_s18 + $0x8] sm:$0xff]   ;;  %v16654_v4 = vld [vmem:[%s16914_s18 + $0x10] sm:$0xff]   ;;  %15865 = vmatprep.subr.bf16.mxu1 %v17008_v41  ;;  %vm8491_vm10 = vcmask 1044484   ;;  %vm8493_vm11 = vcmask 1045509   ;;  %vm8495_vm12 = vcmask 1046534  }
  0x13   : > { %14647 = vmatpush3.bf16.msra.mxu0 %v16651_v1  ;;  %14648 = vmatprep.mubr.msk.bf16.mxu0 %vm578_vm0, %v16652_v2  ;;  %v16655_v5 = vld [vmem:[%s16914_s18 + $0x18] sm:$0xff]   ;;  %v16656_v6 = vld [vmem:[%s16914_s18 + $0x20] sm:$0xff]   ;;  %v16657_v7 = vld [vmem:[%s16914_s18 + $0x28] sm:$0xff]   ;;  %vm8497_vm13 = vcmask 1047559   ;;  %vm8637_vm14 = vcmask 1044480  }
  0x14   : > { %v16658_v8 = vld [vmem:[%s16914_s18 + $0x30] sm:$0xff]   ;;  %v16659_v9 = vld [vmem:[%s16914_s18 + $0x38] sm:$0xff]   ;;  %v16660_v10 = vld [vmem:[%s16914_s18 + $0x40] sm:$0xff]   ;;  %14712 = vmatprep.subr.bf16.mxu0 %v16684_v27  ;;  %vm8638_vm15 = vsmask.f32 4352 }
  0x15   : > { %v16661_v11 = vld [vmem:[%s16914_s18 + $0x48] sm:$0xff]   ;;  %v16662_v12 = vld [vmem:[%s16914_s18 + $0x50] sm:$0xff]   ;;  %v16663_v13 = vld [vmem:[%s16914_s18 + $0x58] sm:$0xff]   ;;  %15869 = vmatpush3.bf16.msra.mxu1 %v17008_v41  ;;  %vm8738_vm2 = vsmask.f32 3328 }
  0x16   : > { %14649 = vmatmul.mubr.msk.bf16.vlgmr.msra.gmra.mrb[0].mxu0 %vm578_vm0, %v16653_v3  ;;  %v16664_v14 = vld [vmem:[%s16914_s18 + $0x60] sm:$0xff]   ;;  %v16665_v15 = vld [vmem:[%s16914_s18 + $0x68] sm:$0xff]   ;;  %v16666_v16 = vld [vmem:[%s16914_s18 + $0x70] sm:$0xff]   ;;  %15866 = vmatprep.subr.bf16.mxu1 %v17013_v42  ;;  %vm8739_vm3 = vsmask.f32 7440 }
  0x17   : > { %14652 = vmatprep.mubr.msk.bf16.mxu0 %vm578_vm0, %v16654_v4  ;;  %v16667_v17 = vld [vmem:[%s16914_s18 + $0x78] sm:$0xff]   ;;  %v16668_v18 = vld [vmem:[%s16914_s18 + $0x80] sm:$0xff]   ;;  %v16669_v19 = vld [vmem:[%s16914_s18 + $0x88] sm:$0xff]   ;;  %14713 = vmatpush3.bf16.msra.mxu0 %v16684_v27 }
  0x18   : > { %v16670_v20 = vld [vmem:[%s16914_s18 + $0x90] sm:$0xff]   ;;  %v16671_v21 = vld [vmem:[%s16914_s18 + $0x98] sm:$0xff]   ;;  %v16672_v22 = vld [vmem:[%s16914_s18 + $0xa0] sm:$0xff]   ;;  %14714 = vmatprep.subr.bf16.mxu0 %v16685_v30 }
  0x19   : > { %v16673_v23 = vld [vmem:[%s16914_s18 + $0xa8] sm:$0xff]   ;;  %v16674_v24 = vld [vmem:[%s16914_s18 + $0xb0] sm:$0xff]   ;;  %v16675_v25 = vld [vmem:[%s16914_s18 + $0xb8] sm:$0xff]   ;;  %15870 = vmatpush3.bf16.msra.mxu1 %v17013_v42 }
  0x1a   : > { %v16676_v26 = vld [vmem:[%s16914_s18 + $0xc0] sm:$0xff]   ;;  %v16677_v28 = vld [vmem:[%s16914_s18 + $0xc8] sm:$0xff]   ;;  %v16678_v29 = vld [vmem:[%s16914_s18 + $0xd0] sm:$0xff]   ;;  %15867 = vmatprep.subr.bf16.mxu1 %v17022_v43 }
  0x1b   : > { %14715 = vmatpush3.bf16.msra.mxu0 %v16685_v30  ;;  %v16679_v31 = vld [vmem:[%s16914_s18 + $0xd8] sm:$0xff]   ;;  %v16680_v33 = vld [vmem:[%s16914_s18 + $0xe0] sm:$0xff]   ;;  %v16681_v35 = vld [vmem:[%s16914_s18 + $0xe8] sm:$0xff]  }
  0x1c   : > { %14716 = vmatprep.subr.bf16.mxu0 %v16686_v32  ;;  %v16682_v38 = vld [vmem:[%s16914_s18 + $0xf0] sm:$0xff]   ;;  %v16683_v39 = vld [vmem:[%s16914_s18 + $0xf8] sm:$0xff]  }
  0x1d   : > { %15871 = vmatpush3.bf16.msra.mxu1 %v17022_v43 }
  0x1e   : > { %14653 = vmatmul.mubr.msk.bf16.gmra.mrb[4].mxu0 %vm578_vm0, %v16655_v5  ;;  %14856 = vmatprep.subr.bf16.mxu1 %v16692_v44  ;;  %v22305_v5 = vmov 0 }
  0x1f   : > { %14656 = vmatprep.mubr.msk.bf16.mxu0 %vm578_vm0, %v16656_v6  ;;  %14717 = vmatpush3.bf16.msra.mxu0 %v16686_v32  ;;  %v22306_v5 = vsel %vm17040_vm4, 4294967295, %v22305_v5 }
  0x20   : > { %14718 = vmatprep.subr.bf16.mxu0 %v16687_v34  ;;  %22307 = vst [vmem:[#allocation3_spill] sm:$0xff] %v22306_v5 }
  0x23   : > { %14719 = vmatpush3.bf16.msra.mxu0 %v16687_v34 }
  0x24   : > { %14784 = vmatprep.subr.bf16.mxu0 %v17000_v40 }
  0x26   : > { %14657 = vmatmul.mubr.msk.bf16.gmra.mrb[8].mxu0 %vm578_vm0, %v16657_v7 }
  0x27   : > { %14660 = vmatprep.mubr.msk.bf16.mxu0 %vm578_vm0, %v16658_v8 }
  0x2e   : > { %14661 = vmatmul.mubr.msk.bf16.gmra.mrb[12].mxu0 %vm578_vm0, %v16659_v9 }
  0x2f   : > { %14664 = vmatprep.mubr.msk.bf16.mxu0 %vm578_vm0, %v16660_v10 }
  0x36   : > { %14665 = vmatmul.mubr.msk.bf16.gmra.mrb[16].mxu0 %vm578_vm0, %v16661_v11 }
  0x37   : > { %14668 = vmatprep.mubr.msk.bf16.mxu0 %vm578_vm0, %v16662_v12 }
  0x3e   : > { %14669 = vmatmul.mubr.msk.bf16.gmra.mrb[20].mxu0 %vm578_vm0, %v16663_v13 }
  0x3f   : > { %14672 = vmatprep.mubr.msk.bf16.mxu0 %vm578_vm0, %v16664_v14 }
  0x46   : > { %14673 = vmatmul.mubr.msk.bf16.gmra.mrb[24].mxu0 %vm578_vm0, %v16665_v15 }
  0x47   : > { %14676 = vmatprep.mubr.msk.bf16.mxu0 %vm578_vm0, %v16666_v16 }
  0x4e   : > { %14677 = vmatmul.mubr.msk.bf16.gmra.mrb[28].mxu0 %vm578_vm0, %v16667_v17 }
  0x4f   : > { %14680 = vmatprep.mubr.msk.bf16.mxu0 %vm578_vm0, %v16668_v18 }
  0x56   : > { %14681 = vmatmul.mubr.msk.bf16.gmra.mrb[32].mxu0 %vm578_vm0, %v16669_v19 }
  0x57   : > { %14684 = vmatprep.mubr.msk.bf16.mxu0 %vm578_vm0, %v16670_v20 }
  0x5e   : > { %14685 = vmatmul.mubr.msk.bf16.gmra.mrb[36].mxu0 %vm578_vm0, %v16671_v21 }
  0x5f   : > { %14688 = vmatprep.mubr.msk.bf16.mxu0 %vm578_vm0, %v16672_v22 }
  0x66   : > { %14689 = vmatmul.mubr.msk.bf16.gmra.mrb[40].mxu0 %vm578_vm0, %v16673_v23 }
  0x67   : > { %14692 = vmatprep.mubr.msk.bf16.mxu0 %vm578_vm0, %v16674_v24 }
  0x6e   : > { %14693 = vmatmul.mubr.msk.bf16.gmra.mrb[44].mxu0 %vm578_vm0, %v16675_v25 }
  0x6f   : > { %14696 = vmatprep.mubr.msk.bf16.mxu0 %vm578_vm0, %v16676_v26 }
  0x76   : > { %14697 = vmatmul.mubr.msk.bf16.gmra.mrb[48].mxu0 %vm578_vm0, %v16677_v28 }
  0x77   : > { %14700 = vmatprep.mubr.msk.bf16.mxu0 %vm578_vm0, %v16678_v29 }
  0x7e   : > { %14701 = vmatmul.mubr.msk.bf16.gmra.mrb[52].mxu0 %vm578_vm0, %v16679_v31 }
  0x7f   : > { %14704 = vmatprep.mubr.msk.bf16.mxu0 %vm578_vm0, %v16680_v33 }
  0x86   : > { %14705 = vmatmul.mubr.msk.bf16.gmra.mrb[56].mxu0 %vm578_vm0, %v16681_v35 }
  0x87   : > { %14708 = vmatprep.mubr.msk.bf16.mxu0 %vm578_vm0, %v16682_v38 }
  0x8e   : > { %14709 = vmatmul.mubr.msk.bf16.gmra.mrb[60].mxu0 %vm578_vm0, %v16683_v39  ;;  %vm19271_vm0 = vmand %vm8637_vm14, %vm8638_vm15 }
  0x8f   : > { %14720 = vmatprep.mubr.msk.bf16.mxu0 %vm1825_vm1, %v16988_v37 }
  0xe9   : > { %v14650_v46 = vpop.f32.mrb[0].mxu0 }
  0xea   : > { %v718_v47 = vadd.f32 %v14650_v46, %v17030_v45  ;;  %v709_v48 = vpop.f32.mrb[1].mxu0 }
  0xeb   : > { %v710_v49 = vadd.f32 %v17030_v45, %v709_v48  ;;  %v14651_v50 = vpop.f32.mrb[2].mxu0 }
  0xec   : > { %v721_v51 = vadd.f32 %v14651_v50, %v17030_v45  ;;  %v712_v52 = vpop.f32.mrb[3].mxu0  ;;  %v966_v54 = vmax.f32 %v718_v47, 0.0 }
  0xed   : > { %v713_v53 = vadd.f32 %v17030_v45, %v712_v52  ;;  %v964_v56 = vmax.f32 %v710_v49, 0.0 }
  0xee   : > { %v967_v55 = vmax.f32 %v721_v51, 0.0 }
  0xef   : > { %v965_v57 = vmax.f32 %v713_v53, 0.0 }
  0xf0   : > { %v1029_v58 = vpack.c.bf16 %v967_v55, %v966_v54 }
  0xf1   : > { %v1028_v59 = vpack.c.bf16 %v965_v57, %v964_v56  ;;  %v14654_v60 = vpop.f32.mrb[4].mxu0 }
  0xf2   : > { %v1068_v61 = vshrl.u32 %v1029_v58, 16  ;;  %v734_v62 = vadd.f32 %v14654_v60, %v17030_v45  ;;  %v725_v63 = vpop.f32.mrb[5].mxu0  ;;  %v1071_v4 = vshll.u32 %v1029_v58, 16 }
  0xf3   : > { %v1061_v0 = vshrl.u32 %v1028_v59, 16  ;;  %v726_v1 = vadd.f32 %v17030_v45, %v725_v63  ;;  %v14655_v2 = vpop.f32.mrb[6].mxu0  ;;  %v1064_v9 = vshll.u32 %v1028_v59, 16 }
  0xf4   : > { %v1070_v3 = vrot.slane %v1068_v61, 7  ;;  %v737_v6 = vadd.f32 %v14655_v2, %v17030_v45  ;;  %v728_v7 = vpop.f32.mrb[7].mxu0  ;;  %v970_v12 = vmax.f32 %v734_v62, 0.0 }
  0xf5   : > { %v1063_v8 = vrot.slane %v1061_v0, 7  ;;  %v729_v10 = vadd.f32 %v17030_v45, %v728_v7  ;;  %v968_v13 = vmax.f32 %v726_v1, 0.0 }
  0xf6   : > { %v1073_v11 = vor.u32 %v1071_v4, %v1070_v3  ;;  %v971_v14 = vmax.f32 %v737_v6, 0.0  ;;  %v17048_v15 = vsel %vm17040_vm4, %v1070_v3, 0 }
  0xf7   : > { %v1066_v16 = vor.u32 %v1064_v9, %v1063_v8  ;;  %v17052_v17 = vsel %vm17040_vm4, %v1063_v8, 0  ;;  %v969_v18 = vmax.f32 %v729_v10, 0.0  ;;  %v1452_v29 = vshll.u32 %v17048_v15, 16 }
  0xf8   : > { %v17056_v19 = vsel %vm17040_vm4, 0, %v1073_v11  ;;  %v1031_v20 = vpack.c.bf16 %v971_v14, %v970_v12  ;;  %v1440_v22 = vshll.u32 %v17052_v17, 16 }
  0xf9   : > { %v17060_v21 = vsel %vm17040_vm4, 0, %v1066_v16  ;;  %v1030_v23 = vpack.c.bf16 %v969_v18, %v968_v13  ;;  %v14658_v24 = vpop.f32.mrb[8].mxu0  ;;  %v1445_v28 = vshrl.u32 %v17056_v19, 16  ;;  %v1447_v34 = vshll.u32 %v17056_v19, 16 }
  0xfa   : > { %v1435_v25 = vshll.u32 %v17060_v21, 16  ;;  %v1082_v26 = vshrl.u32 %v1031_v20, 16  ;;  %v741_v27 = vpop.f32.mrb[9].mxu0  ;;  %v750_v31 = vadd.f32 %v14658_v24, %v17030_v45  ;;  %v1433_v44 = vshrl.u32 %v17060_v21, 16 }
  0xfb   : > { %v1075_v30 = vshrl.u32 %v1030_v23, 16  ;;  %v742_v32 = vadd.f32 %v17030_v45, %v741_v27  ;;  %v14659_v33 = vpop.f32.mrb[10].mxu0  ;;  %v1442_v47 = vrot.slane %v1440_v22, 1  ;;  %v1078_v49 = vshll.u32 %v1030_v23, 16 }
  0xfc   : > { %v1084_v35 = vrot.slane %v1082_v26, 7  ;;  %v753_v38 = vadd.f32 %v14659_v33, %v17030_v45  ;;  %v744_v39 = vpop.f32.mrb[11].mxu0  ;;  %v1437_v46 = vrot.slane %v1435_v25, 1  ;;  %v1085_v51 = vshll.u32 %v1031_v20, 16 }
  0xfd   : > { %v1077_v48 = vrot.slane %v1075_v30, 7  ;;  %v745_v50 = vadd.f32 %v17030_v45, %v744_v39  ;;  %v974_v52 = vmax.f32 %v750_v31, 0.0  ;;  %v972_v56 = vmax.f32 %v742_v32, 0.0 }
  0xfe   : > { %v975_v53 = vmax.f32 %v753_v38, 0.0  ;;  %v1438_v54 = vor.u32 %v1437_v46, %v1433_v44  ;;  %v1449_v58 = vrot.slane %v1447_v34, 1  ;;  %v1087_v59 = vor.u32 %v1085_v51, %v1084_v35 }
  0xff   : > { %v1080_v55 = vor.u32 %v1078_v49, %v1077_v48  ;;  %v973_v57 = vmax.f32 %v745_v50, 0.0  ;;  %v17074_v60 = vsel %vm17040_vm4, %v1077_v48, 0  ;;  %v1454_v3 = vrot.slane %v1452_v29, 1 }
 0x100   : > { %v1033_v61 = vpack.c.bf16 %v975_v53, %v974_v52  ;;  %v17077_v62 = vsel %vm1423_vm5, %v1438_v54, %v1442_v47  ;;  %v1450_v2 = vor.u32 %v1449_v58, %v1445_v28  ;;  %v1464_v12 = vshll.u32 %v17074_v60, 16 }
 0x101   : > { %22308 = vst [vmem:[#allocation4_spill] sm:$0xff] %v17077_v62  ;;  %v17081_v63 = vsel %vm17040_vm4, 0, %v1080_v55  ;;  %v1032_v0 = vpack.c.bf16 %v973_v57, %v972_v56  ;;  %v14662_v1 = vpop.f32.mrb[12].mxu0  ;;  %14721 = vmatmul.mubr.msk.bf16.vlgmr.msra.gmra.mrb[64].mxu0 %vm1825_vm1, %v17077_v62  ;;  %v17095_v13 = vsel %vm17040_vm4, 0, %v1087_v59  ;;  %v17099_v14 = vsel %vm17040_vm4, %v1084_v35, 0 }
 0x102   : > { %v1096_v4 = vshrl.u32 %v1033_v61, 16  ;;  %v766_v6 = vadd.f32 %v14662_v1, %v17030_v45  ;;  %v757_v7 = vpop.f32.mrb[13].mxu0  ;;  %14785 = vmatpush3.bf16.msra.mxu0 %v17000_v40  ;;  %v17089_v10 = vsel %vm1423_vm5, %v1450_v2, %v1454_v3  ;;  %v1459_v18 = vshll.u32 %v17081_v63, 16 }
 0x103   : > { %v1089_v8 = vshrl.u32 %v1032_v0, 16  ;;  %v758_v9 = vadd.f32 %v17030_v45, %v757_v7  ;;  %22309 = vst [vmem:[#allocation5_spill] sm:$0xff] %v17089_v10  ;;  %v14663_v11 = vpop.f32.mrb[14].mxu0  ;;  %14786 = vmatprep.subr.bf16.mxu0 %v17008_v41  ;;  %14724 = vmatprep.mubr.msk.bf16.mxu0 %vm1825_vm1, %v17089_v10  ;;  %v1457_v24 = vshrl.u32 %v17081_v63, 16  ;;  %v1092_v25 = vshll.u32 %v1032_v0, 16 }
 0x104   : > { %v769_v40 = vadd.f32 %v14663_v11, %v17030_v45  ;;  %v760_v16 = vpop.f32.mrb[15].mxu0  ;;  %v1098_v20 = vrot.slane %v1096_v4, 7  ;;  %v978_v26 = vmax.f32 %v766_v6, 0.0  ;;  %v1461_v28 = vrot.slane %v1459_v18, 1 }
 0x105   : > { %v1091_v22 = vrot.slane %v1089_v8, 7  ;;  %v761_v23 = vadd.f32 %v17030_v45, %v760_v16  ;;  %v1099_v29 = vshll.u32 %v1033_v61, 16  ;;  %v976_v30 = vmax.f32 %v758_v9, 0.0 }
 0x106   : > { %v979_v27 = vmax.f32 %v769_v40, 0.0  ;;  %14787 = vmatpush3.bf16.msra.mxu0 %v17008_v41  ;;  %v1466_v32 = vrot.slane %v1464_v12, 1  ;;  %v1462_v35 = vor.u32 %v1461_v28, %v1457_v24  ;;  %v1471_v38 = vshll.u32 %v17095_v13, 16 }
 0x107   : > { %v977_v31 = vmax.f32 %v761_v23, 0.0  ;;  %14788 = vmatprep.subr.bf16.mxu0 %v17013_v42  ;;  %v1094_v33 = vor.u32 %v1092_v25, %v1091_v22  ;;  %v1101_v39 = vor.u32 %v1099_v29, %v1098_v20  ;;  %v1476_v47 = vshll.u32 %v17099_v14, 16 }
 0x108   : > { %v1035_v34 = vpack.c.bf16 %v979_v27, %v978_v26  ;;  %v17113_v48 = vsel %vm17040_vm4, %v1098_v20, 0  ;;  %v17117_v50 = vsel %vm1423_vm5, %v1462_v35, %v1466_v32  ;;  %v1469_v54 = vshrl.u32 %v17095_v13, 16 }
 0x109   : > { %v1034_v44 = vpack.c.bf16 %v977_v31, %v976_v30  ;;  %v14666_v46 = vpop.f32.mrb[16].mxu0  ;;  %22310 = vst [vmem:[#allocation6_spill] sm:$0xff] %v17117_v50  ;;  %14725 = vmatmul.mubr.msk.bf16.gmra.mrb[68].mxu0 %vm1825_vm1, %v17117_v50  ;;  %v1473_v55 = vrot.slane %v1471_v38, 1  ;;  %v17127_v57 = vsel %vm17040_vm4, 0, %v1094_v33  ;;  %v17131_v58 = vsel %vm17040_vm4, %v1091_v22, 0 }
 0x10a   : > { %v1110_v41 = vshrl.u32 %v1035_v34, 16  ;;  %v782_v49 = vadd.f32 %v14666_v46, %v17030_v45  ;;  %v773_v51 = vpop.f32.mrb[17].mxu0  ;;  %14789 = vmatpush3.bf16.msra.mxu0 %v17013_v42  ;;  %v1478_v2 = vrot.slane %v1476_v47, 1  ;;  %v17137_v4 = vsel %vm17040_vm4, 0, %v1101_v39 }
 0x10b   : > { %v1103_v52 = vshrl.u32 %v1034_v44, 16  ;;  %v774_v53 = vadd.f32 %v17030_v45, %v773_v51  ;;  %v14667_v56 = vpop.f32.mrb[18].mxu0  ;;  %14790 = vmatprep.subr.bf16.mxu0 %v17022_v43  ;;  %v1474_v1 = vor.u32 %v1473_v55, %v1469_v54  ;;  %v1113_v6 = vshll.u32 %v1035_v34, 16 }
 0x10c   : > { %v1112_v42 = vrot.slane %v1110_v41, 7  ;;  %v785_v59 = vadd.f32 %v14667_v56, %v17030_v45  ;;  %v776_v61 = vpop.f32.mrb[19].mxu0  ;;  %v982_v7 = vmax.f32 %v782_v49, 0.0  ;;  %v1106_v9 = vshll.u32 %v1034_v44, 16 }
 0x10d   : > { %v1105_v0 = vrot.slane %v1103_v52, 7  ;;  %v777_v3 = vadd.f32 %v17030_v45, %v776_v61  ;;  %v980_v11 = vmax.f32 %v774_v53, 0.0  ;;  %v17141_v12 = vsel %vm1423_vm5, %v1474_v1, %v1478_v2 }
 0x10e   : > { %v983_v8 = vmax.f32 %v785_v59, 0.0  ;;  %14791 = vmatpush3.bf16.msra.mxu0 %v17022_v43  ;;  %22311 = vst [vmem:[#allocation7_spill] sm:$0xff] %v17141_v12  ;;  %v1115_v16 = vor.u32 %v1113_v6, %v1112_v42  ;;  %14728 = vmatprep.mubr.msk.bf16.mxu0 %vm1825_vm1, %v17141_v12  ;;  %v1483_v20 = vshll.u32 %v17127_v57, 16  ;;  %v1488_v22 = vshll.u32 %v17131_v58, 16 }
 0x10f   : > { %v981_v40 = vmax.f32 %v777_v3, 0.0  ;;  %v17149_v23 = vsel %vm17040_vm4, %v1112_v42, 0  ;;  %v1108_v43 = vor.u32 %v1106_v9, %v1105_v0  ;;  %v1495_v26 = vshll.u32 %v17137_v4, 16 }
 0x110   : > { %v1037_v18 = vpack.c.bf16 %v983_v8, %v982_v7  ;;  %22312 = vst [vmem:[#allocation8_spill] sm:$0xff] %v17149_v23  ;;  %v17154_v27 = vsel %vm17040_vm4, %v1105_v0, 0  ;;  %v1481_v29 = vshrl.u32 %v17127_v57, 16  ;;  %v1485_v30 = vrot.slane %v1483_v20, 1 }
 0x111   : > { %v1036_v24 = vpack.c.bf16 %v981_v40, %v980_v11  ;;  %v14670_v25 = vpop.f32.mrb[20].mxu0  ;;  %22313 = vst [vmem:[#allocation9_spill] sm:$0xff] %v17154_v27  ;;  %v1493_v34 = vshrl.u32 %v17137_v4, 16  ;;  %v1497_v35 = vrot.slane %v1495_v26, 1  ;;  %v1490_v44 = vrot.slane %v1488_v22, 1 }
 0x112   : > { %v1124_v28 = vshrl.u32 %v1037_v18, 16  ;;  %v789_v31 = vpop.f32.mrb[21].mxu0  ;;  %v798_v33 = vadd.f32 %v14670_v25, %v17030_v45  ;;  %v1486_v39 = vor.u32 %v1485_v30, %v1481_v29  ;;  %v1500_v47 = vshll.u32 %v17113_v48, 16 }
 0x113   : > { %v1117_v32 = vshrl.u32 %v1036_v24, 16  ;;  %v14671_v38 = vpop.f32.mrb[22].mxu0  ;;  %v790_v46 = vadd.f32 %v17030_v45, %v789_v31  ;;  %v17163_v49 = vsel %vm17040_vm4, 0, %v1108_v43  ;;  %v1498_v52 = vor.u32 %v1497_v35, %v1493_v34 }
 0x114   : > { %v792_v41 = vpop.f32.mrb[23].mxu0  ;;  %v801_v53 = vadd.f32 %v14671_v38, %v17030_v45  ;;  %v17168_v54 = vsel %vm17040_vm4, 0, %v1115_v16  ;;  %v1126_v55 = vrot.slane %v1124_v28, 7  ;;  %v17171_v56 = vsel %vm1423_vm5, %v1486_v39, %v1490_v44 }
 0x115   : > { %v1119_v51 = vrot.slane %v1117_v32, 7  ;;  %22314 = vst [vmem:[#allocation10_spill] sm:$0xff] %v17171_v56  ;;  %v1502_v42 = vrot.slane %v1500_v47, 1  ;;  %v1120_v59 = vshll.u32 %v1036_v24, 16  ;;  %v986_v61 = vmax.f32 %v798_v33, 0.0  ;;  %14729 = vmatmul.mubr.msk.bf16.gmra.mrb[72].mxu0 %vm1825_vm1, %v17171_v56 }
 0x116   : > { %v987_v0 = vmax.f32 %v801_v53, 0.0  ;;  %v793_v1 = vadd.f32 %v17030_v45, %v792_v41  ;;  %v1127_v2 = vshll.u32 %v1037_v18, 16  ;;  %v984_v3 = vmax.f32 %v790_v46, 0.0 }
 0x117   : > { %v17177_v6 = vsel %vm1423_vm5, %v1498_v52, %v1502_v42  ;;  %v1507_v7 = vshll.u32 %v17163_v49, 16  ;;  %v1122_v8 = vor.u32 %v1120_v59, %v1119_v51  ;;  %v1512_v16 = vshll.u32 %v17154_v27, 16 }
 0x118   : > { %22315 = vst [vmem:[#allocation11_spill] sm:$0xff] %v17177_v6  ;;  %14732 = vmatprep.mubr.msk.bf16.mxu0 %vm1825_vm1, %v17177_v6  ;;  %v1039_v9 = vpack.c.bf16 %v987_v0, %v986_v61  ;;  %v985_v11 = vmax.f32 %v793_v1, 0.0  ;;  %v1129_v20 = vor.u32 %v1127_v2, %v1126_v55  ;;  %v1505_v22 = vshrl.u32 %v17163_v49, 16 }
 0x119   : > { %v14674_v40 = vpop.f32.mrb[24].mxu0  ;;  %v1509_v43 = vrot.slane %v1507_v7, 1  ;;  %v1519_v24 = vshll.u32 %v17168_v54, 16  ;;  %v17187_v25 = vsel %vm17040_vm4, %v1119_v51, 0  ;;  %v1514_v32 = vrot.slane %v1512_v16, 1 }
 0x11a   : > { %v805_v18 = vpop.f32.mrb[25].mxu0  ;;  %22316 = vst [vmem:[#allocation12_spill] sm:$0xff] %v17187_v25  ;;  %v1138_v26 = vshrl.u32 %v1039_v9, 16  ;;  %v1038_v28 = vpack.c.bf16 %v985_v11, %v984_v3  ;;  %v814_v29 = vadd.f32 %v14674_v40, %v17030_v45  ;;  %v1517_v33 = vshrl.u32 %v17168_v54, 16 }
 0x11b   : > { %v14675_v30 = vpop.f32.mrb[26].mxu0  ;;  %v1510_v31 = vor.u32 %v1509_v43, %v1505_v22  ;;  %v1521_v34 = vrot.slane %v1519_v24, 1  ;;  %v17193_v38 = vsel %vm17040_vm4, 0, %v1122_v8  ;;  %v806_v44 = vadd.f32 %v17030_v45, %v805_v18 }
 0x11c   : > { %v808_v35 = vpop.f32.mrb[27].mxu0  ;;  %22317 = vst [vmem:[#allocation13_spill] sm:$0xff] %v17193_v38  ;;  %v1131_v39 = vshrl.u32 %v1038_v28, 16  ;;  %v1524_v46 = vshll.u32 %v17149_v23, 16  ;;  %v17199_v47 = vsel %vm17040_vm4, 0, %v1129_v20  ;;  %v817_v52 = vadd.f32 %v14675_v30, %v17030_v45 }
 0x11d   : > { %22318 = vst [vmem:[#allocation14_spill] sm:$0xff] %v17199_v47  ;;  %v17202_v41 = vsel %vm1423_vm5, %v1510_v31, %v1514_v32  ;;  %v1522_v51 = vor.u32 %v1521_v34, %v1517_v33  ;;  %v1140_v53 = vrot.slane %v1138_v26, 7  ;;  %v1134_v59 = vshll.u32 %v1038_v28, 16 }
 0x11e   : > { %22319 = vst [vmem:[#allocation15_spill] sm:$0xff] %v17202_v41  ;;  %v1133_v42 = vrot.slane %v1131_v39, 7  ;;  %14733 = vmatmul.mubr.msk.bf16.gmra.mrb[76].mxu0 %vm1825_vm1, %v17202_v41  ;;  %v1526_v61 = vrot.slane %v1524_v46, 1  ;;  %v990_v0 = vmax.f32 %v814_v29, 0.0  ;;  %v991_v1 = vmax.f32 %v817_v52, 0.0 }
 0x11f   : > { %v809_v2 = vadd.f32 %v17030_v45, %v808_v35  ;;  %v1531_v3 = vshll.u32 %v17193_v38, 16  ;;  %v1141_v7 = vshll.u32 %v1039_v9, 16  ;;  %v988_v11 = vmax.f32 %v806_v44, 0.0 }
 0x120   : > { %v1136_v8 = vor.u32 %v1134_v59, %v1133_v42  ;;  %v17210_v40 = vsel %vm1423_vm5, %v1522_v51, %v1526_v61  ;;  %v1041_v20 = vpack.c.bf16 %v991_v1, %v990_v0  ;;  %v17217_v26 = vsel %vm17040_vm4, %v1126_v55, 0 }
 0x121   : > { %22320 = vst [vmem:[#allocation16_spill] sm:$0xff] %v17210_v40  ;;  %v14678_v16 = vpop.f32.mrb[28].mxu0  ;;  %14736 = vmatprep.mubr.msk.bf16.mxu0 %vm1825_vm1, %v17210_v40  ;;  %v989_v22 = vmax.f32 %v809_v2, 0.0  ;;  %v1533_v18 = vrot.slane %v1531_v3, 1  ;;  %22321 = vst [vmem:[#allocation17_spill] sm:$0xff] %v17217_v26  ;;  %v1143_v9 = vor.u32 %v1141_v7, %v1140_v53  ;;  %v1529_v28 = vshrl.u32 %v17193_v38, 16 }
 0x122   : > { %v830_v43 = vadd.f32 %v14678_v16, %v17030_v45  ;;  %v821_v24 = vpop.f32.mrb[29].mxu0  ;;  %v1536_v29 = vshll.u32 %v17187_v25, 16  ;;  %v17223_v31 = vsel %vm17040_vm4, %v1133_v42, 0  ;;  %v1152_v32 = vshrl.u32 %v1041_v20, 16 }
 0x123   : > { %v14679_v30 = vpop.f32.mrb[30].mxu0  ;;  %22322 = vst [vmem:[#allocation18_spill] sm:$0xff] %v17223_v31  ;;  %v1040_v33 = vpack.c.bf16 %v989_v22, %v988_v11  ;;  %v822_v34 = vadd.f32 %v17030_v45, %v821_v24  ;;  %v17228_v39 = vsel %vm17040_vm4, 0, %v1136_v8  ;;  %v1534_v55 = vor.u32 %v1533_v18, %v1529_v28 }
 0x124   : > { %v824_v35 = vpop.f32.mrb[31].mxu0  ;;  %22323 = vst [vmem:[#allocation19_spill] sm:$0xff] %v17228_v39  ;;  %v1538_v44 = vrot.slane %v1536_v29, 1  ;;  %v1543_v46 = vshll.u32 %v17199_v47, 16  ;;  %v994_v52 = vmax.f32 %v830_v43, 0.0  ;;  %v1541_v59 = vshrl.u32 %v17199_v47, 16 }
 0x125   : > { %v1145_v51 = vshrl.u32 %v1040_v33, 16  ;;  %v1548_v42 = vshll.u32 %v17217_v26, 16  ;;  %v833_v1 = vadd.f32 %v14679_v30, %v17030_v45  ;;  %v825_v2 = vadd.f32 %v17030_v45, %v824_v35 }
 0x126   : > { %v17234_v61 = vsel %vm1423_vm5, %v1534_v55, %v1538_v44  ;;  %v1545_v0 = vrot.slane %v1543_v46, 1  ;;  %v1154_v3 = vrot.slane %v1152_v32, 7  ;;  %v1148_v8 = vshll.u32 %v1040_v33, 16 }
 0x127   : > { %22324 = vst [vmem:[#allocation20_spill] sm:$0xff] %v17234_v61  ;;  %v1147_v7 = vrot.slane %v1145_v51, 7  ;;  %14737 = vmatmul.mubr.msk.bf16.gmra.mrb[80].mxu0 %vm1825_vm1, %v17234_v61  ;;  %v992_v11 = vmax.f32 %v822_v34, 0.0  ;;  %v1550_v22 = vrot.slane %v1548_v42, 1  ;;  %v995_v43 = vmax.f32 %v833_v1, 0.0 }
 0x128   : > { %v1546_v16 = vor.u32 %v1545_v0, %v1541_v59  ;;  %v993_v18 = vmax.f32 %v825_v2, 0.0  ;;  %v1155_v28 = vshll.u32 %v1041_v20, 16  ;;  %v1555_v33 = vshll.u32 %v17228_v39, 16 }
 0x129   : > { %v14682_v24 = vpop.f32.mrb[32].mxu0  ;;  %v1150_v29 = vor.u32 %v1148_v8, %v1147_v7  ;;  %v17243_v30 = vpack.c.bf16 %v995_v43, %v994_v52  ;;  %v17248_v34 = vsel %vm17040_vm4, 0, %v1143_v9  ;;  %v17252_v46 = vsel %vm17040_vm4, %v1140_v53, 0 }
 0x12a   : > { %v837_v55 = vpop.f32.mrb[33].mxu0  ;;  %v17241_v44 = vsel %vm1423_vm5, %v1546_v16, %v1550_v22  ;;  %v1042_v32 = vpack.c.bf16 %v993_v18, %v992_v11  ;;  %22326 = vst [vmem:[#allocation22_spill] sm:$0xff] %v17248_v34  ;;  %22327 = vst [vmem:[#allocation23_spill] sm:$0xff] %v17252_v46  ;;  %v1560_v20 = vshll.u32 %v17223_v31, 16  ;;  %v1157_v52 = vor.u32 %v1155_v28, %v1154_v3 }
 0x12b   : > { %22325 = vst [vmem:[#allocation21_spill] sm:$0xff] %v17241_v44  ;;  %v14683_v35 = vpop.f32.mrb[34].mxu0  ;;  %14740 = vmatprep.mubr.msk.bf16.mxu0 %vm1825_vm1, %v17241_v44  ;;  %v17259_v59 = vsel %vm17040_vm4, %v1154_v3, 0  ;;  %v846_v0 = vadd.f32 %v14682_v24, %v17030_v45  ;;  %v17264_v9 = vsel %vm17040_vm4, 0, %v1150_v29  ;;  %v1553_v53 = vshrl.u32 %v17228_v39, 16 }
 0x12c   : > { %v840_v51 = vpop.f32.mrb[35].mxu0  ;;  %22328 = vst [vmem:[#allocation24_spill] sm:$0xff] %v17259_v59  ;;  %v1159_v42 = vshrl.u32 %v1042_v32, 16  ;;  %22329 = vst [vmem:[#allocation25_spill] sm:$0xff] %v17264_v9  ;;  %v1557_v1 = vrot.slane %v1555_v33, 1  ;;  %v838_v2 = vadd.f32 %v17030_v45, %v837_v55  ;;  %v1162_v11 = vshll.u32 %v1042_v32, 16 }
 0x12d   : > { %v1562_v16 = vrot.slane %v1560_v20, 1  ;;  %v1567_v22 = vshll.u32 %v17248_v34, 16  ;;  %v1572_v3 = vshll.u32 %v17252_v46, 16  ;;  %v849_v18 = vadd.f32 %v14683_v35, %v17030_v45 }
 0x12e   : > { %v1161_v8 = vrot.slane %v1159_v42, 7  ;;  %v1558_v43 = vor.u32 %v1557_v1, %v1553_v53  ;;  %v841_v24 = vadd.f32 %v17030_v45, %v840_v51  ;;  %v17274_v28 = vsel %vm17040_vm4, 0, %v1157_v52 }
 0x12f   : > { %22330 = vst [vmem:[#allocation26_spill] sm:$0xff] %v17274_v28  ;;  %v17278_v29 = vsel %vm17040_vm4, %v1147_v7, 0  ;;  %v998_v55 = vmax.f32 %v846_v0, 0.0  ;;  %v1565_v32 = vshrl.u32 %v17248_v34, 16  ;;  %v1569_v53 = vrot.slane %v1567_v22, 1 }
 0x130   : > { %22331 = vst [vmem:[#allocation27_spill] sm:$0xff] %v17278_v29  ;;  %v1164_v20 = vor.u32 %v1162_v11, %v1161_v8  ;;  %v17282_v42 = vsel %vm1423_vm5, %v1558_v43, %v1562_v16  ;;  %v999_v35 = vmax.f32 %v849_v18, 0.0  ;;  %v996_v51 = vmax.f32 %v838_v2, 0.0 }
 0x131   : > { %v14686_v33 = vpop.f32.mrb[36].mxu0  ;;  %22332 = vst [vmem:[#allocation28_spill] sm:$0xff] %v17282_v42  ;;  %14741 = vmatmul.mubr.msk.bf16.gmra.mrb[84].mxu0 %vm1825_vm1, %v17282_v42  ;;  %v997_v52 = vmax.f32 %v841_v24, 0.0  ;;  %v1579_v7 = vshll.u32 %v17264_v9, 16  ;;  %v1570_v44 = vor.u32 %v1569_v53, %v1565_v32  ;;  %v1574_v61 = vrot.slane %v1572_v3, 1  ;;  %v22380_v5 = vld [vmem:[#allocation22_spill] sm:$0xff] }
 0x132   : > { %v853_v1 = vpop.f32.mrb[37].mxu0  ;;  %v862_v36 = vadd.f32 %v14686_v33, %v17030_v45  ;;  %v1045_v40 = vpack.c.bf16 %v999_v35, %v998_v55  ;;  %v1584_v11 = vshll.u32 %v17278_v29, 16  ;;  %v17291_v22 = vsel %vm17040_vm4, %v1161_v8, 0 }
 0x133   : > { %v14687_v0 = vpop.f32.mrb[38].mxu0  ;;  %22333 = vst [vmem:[#allocation29_spill] sm:$0xff] %v17291_v22  ;;  %v1044_v43 = vpack.c.bf16 %v997_v52, %v996_v51  ;;  %v1577_v18 = vshrl.u32 %v17264_v9, 16  ;;  %v1581_v2 = vrot.slane %v1579_v7, 1  ;;  %v17296_v24 = vsel %vm17040_vm4, 0, %v1164_v20 }
 0x134   : > { %v856_v16 = vpop.f32.mrb[39].mxu0  ;;  %22334 = vst [vmem:[#allocation30_spill] sm:$0xff] %v17296_v24  ;;  %v17299_v33 = vsel %vm1423_vm5, %v1570_v44, %v1574_v61  ;;  %v1180_v3 = vshrl.u32 %v1045_v40, 16  ;;  %v854_v55 = vadd.f32 %v17030_v45, %v853_v1  ;;  %v1002_v8 = vmax.f32 %v862_v36, 0.0 }
 0x135   : > { %22335 = vst [vmem:[#allocation31_spill] sm:$0xff] %v17299_v33  ;;  %14744 = vmatprep.mubr.msk.bf16.mxu0 %vm1825_vm1, %v17299_v33  ;;  %v1173_v32 = vshrl.u32 %v1044_v43, 16  ;;  %v1582_v53 = vor.u32 %v1581_v2, %v1577_v18  ;;  %v1586_v35 = vrot.slane %v1584_v11, 1  ;;  %v1591_v52 = vshll.u32 %v17274_v28, 16 }
 0x136   : > { %v1182_v51 = vrot.slane %v1180_v3, 7  ;;  %v1596_v7 = vshll.u32 %v17259_v59, 16  ;;  %v865_v20 = vadd.f32 %v14687_v0, %v17030_v45  ;;  %v1176_v61 = vshll.u32 %v1044_v43, 16 }
 0x137   : > { %v1175_v42 = vrot.slane %v1173_v32, 7  ;;  %v17308_v44 = vsel %vm1423_vm5, %v1582_v53, %v1586_v35  ;;  %v857_v1 = vadd.f32 %v17030_v45, %v856_v16  ;;  %v1183_v33 = vshll.u32 %v1045_v40, 16 }
 0x138   : > { %22336 = vst [vmem:[#allocation32_spill] sm:$0xff] %v17308_v44  ;;  %v1000_v6 = vmax.f32 %v854_v55, 0.0  ;;  %v1589_v36 = vshrl.u32 %v17274_v28, 16  ;;  %v1593_v11 = vrot.slane %v1591_v52, 1  ;;  %v1003_v3 = vmax.f32 %v865_v20, 0.0 }
 0x139   : > { %v14690_v41 = vpop.f32.mrb[40].mxu0  ;;  %v1178_v2 = vor.u32 %v1176_v61, %v1175_v42  ;;  %14745 = vmatmul.mubr.msk.bf16.gmra.mrb[88].mxu0 %vm1825_vm1, %v17308_v44  ;;  %v1001_v0 = vmax.f32 %v857_v1, 0.0  ;;  %v1601_v43 = vshrl.u32 %v17296_v24, 16  ;;  %v1185_v53 = vor.u32 %v1183_v33, %v1182_v51 }
 0x13a   : > { %v869_v18 = vpop.f32.mrb[41].mxu0  ;;  %v1594_v35 = vor.u32 %v1593_v11, %v1589_v36  ;;  %v1598_v56 = vrot.slane %v1596_v7, 1  ;;  %v1603_v16 = vshll.u32 %v17296_v24, 16  ;;  %v1047_v55 = vpack.c.bf16 %v1003_v3, %v1002_v8 }
 0x13b   : > { %v14691_v32 = vpop.f32.mrb[42].mxu0  ;;  %v1046_v12 = vpack.c.bf16 %v1001_v0, %v1000_v6  ;;  %v878_v52 = vadd.f32 %v14690_v41, %v17030_v45  ;;  %v1608_v61 = vshll.u32 %v17291_v22, 16  ;;  %v17320_v44 = vsel %vm17040_vm4, %v1182_v51, 0 }
 0x13c   : > { %v872_v40 = vpop.f32.mrb[43].mxu0  ;;  %v17324_v20 = vsel %vm17040_vm4, %v1175_v42, 0  ;;  %v17327_v33 = vsel %vm1423_vm5, %v1594_v35, %v1598_v56  ;;  %v1605_v7 = vrot.slane %v1603_v16, 1  ;;  %v17331_v8 = vsel %vm17040_vm4, 0, %v1178_v2 }
 0x13d   : > { %22337 = vst [vmem:[#allocation33_spill] sm:$0xff] %v17324_v20  ;;  %22338 = vst [vmem:[#allocation34_spill] sm:$0xff] %v17327_v33  ;;  %14748 = vmatprep.mubr.msk.bf16.mxu0 %vm1825_vm1, %v17327_v33  ;;  %v1194_v6 = vshrl.u32 %v1047_v55, 16  ;;  %v1187_v41 = vshrl.u32 %v1046_v12, 16  ;;  %v870_v51 = vadd.f32 %v17030_v45, %v869_v18  ;;  %v17338_v1 = vsel %vm17040_vm4, 0, %v1185_v53 }
 0x13e   : > { %22339 = vst [vmem:[#allocation35_spill] sm:$0xff] %v17331_v8  ;;  %v1606_v42 = vor.u32 %v1605_v7, %v1601_v43  ;;  %v1610_v36 = vrot.slane %v1608_v61, 1  ;;  %v881_v56 = vadd.f32 %v14691_v32, %v17030_v45  ;;  %v1006_v0 = vmax.f32 %v878_v52, 0.0 }
 0x13f   : > { %v1196_v11 = vrot.slane %v1194_v6, 7  ;;  %v1189_v3 = vrot.slane %v1187_v41, 7  ;;  %v873_v2 = vadd.f32 %v17030_v45, %v872_v40  ;;  %v1197_v16 = vshll.u32 %v1047_v55, 16 }
 0x140   : > { %v17343_v33 = vsel %vm1423_vm5, %v1606_v42, %v1610_v36  ;;  %v1007_v50 = vmax.f32 %v881_v56, 0.0  ;;  %v1615_v18 = vshll.u32 %v17331_v8, 16  ;;  %v1190_v53 = vshll.u32 %v1046_v12, 16 }
 0x141   : > { %v14694_v35 = vpop.f32.mrb[44].mxu0  ;;  %22340 = vst [vmem:[#allocation36_spill] sm:$0xff] %v17343_v33  ;;  %14749 = vmatmul.mubr.msk.bf16.gmra.mrb[92].mxu0 %vm1825_vm1, %v17343_v33  ;;  %v1004_v43 = vmax.f32 %v870_v51, 0.0  ;;  %v1613_v52 = vshrl.u32 %v17331_v8, 16  ;;  %v1199_v40 = vor.u32 %v1197_v16, %v1196_v11  ;;  %v1005_v55 = vmax.f32 %v873_v2, 0.0 }
 0x142   : > { %v885_v10 = vpop.f32.mrb[45].mxu0  ;;  %v894_v32 = vadd.f32 %v14694_v35, %v17030_v45  ;;  %v1049_v7 = vpack.c.bf16 %v1007_v50, %v1006_v0  ;;  %14752 = vmatprep.mubr.msk.bf16.mxu0 %vm1825_vm1, %v16988_v37  ;;  %v1617_v6 = vrot.slane %v1615_v18, 1  ;;  %v17354_v12 = vsel %vm17040_vm4, %v1196_v11, 0 }
 0x143   : > { %v14695_v61 = vpop.f32.mrb[46].mxu0  ;;  %v1192_v42 = vor.u32 %v1190_v53, %v1189_v3  ;;  %v17358_v51 = vsel %vm17040_vm4, %v1189_v3, 0  ;;  %v1620_v36 = vshll.u32 %v17324_v20, 16  ;;  %v1048_v35 = vpack.c.bf16 %v1005_v55, %v1004_v43 }
 0x144   : > { %v888_v41 = vpop.f32.mrb[47].mxu0  ;;  %v1208_v56 = vshrl.u32 %v1049_v7, 16  ;;  %v1618_v50 = vor.u32 %v1617_v6, %v1613_v52  ;;  %v886_v0 = vadd.f32 %v17030_v45, %v885_v10  ;;  %v1211_v2 = vshll.u32 %v1049_v7, 16 }
 0x145   : > { %v1010_v16 = vmax.f32 %v894_v32, 0.0  ;;  %v1622_v18 = vrot.slane %v1620_v36, 1  ;;  %v1627_v33 = vshll.u32 %v17338_v1, 16  ;;  %v1201_v11 = vshrl.u32 %v1048_v35, 16 }
 0x146   : > { %v1210_v62 = vrot.slane %v1208_v56, 7  ;;  %v1625_v53 = vshrl.u32 %v17338_v1, 16  ;;  %v1632_v8 = vshll.u32 %v17320_v44, 16  ;;  %v897_v43 = vadd.f32 %v14695_v61, %v17030_v45 }
 0x147   : > { %v17366_v3 = vsel %vm1423_vm5, %v1618_v50, %v1622_v18  ;;  %v1629_v20 = vrot.slane %v1627_v33, 1  ;;  %v889_v52 = vadd.f32 %v17030_v45, %v888_v41  ;;  %v17372_v32 = vsel %vm17040_vm4, 0, %v1192_v42 }
 0x148   : > { %22341 = vst [vmem:[#allocation37_spill] sm:$0xff] %v17366_v3  ;;  %v1213_v7 = vor.u32 %v1211_v2, %v1210_v62  ;;  %v1203_v55 = vrot.slane %v1201_v11, 7  ;;  %v1008_v6 = vmax.f32 %v886_v0, 0.0  ;;  %v1634_v50 = vrot.slane %v1632_v8, 1 }
 0x149   : > { %v14698_v10 = vpop.f32.mrb[48].mxu0  ;;  %14753 = vmatmul.mubr.msk.bf16.gmra.mrb[96].mxu0 %vm1825_vm1, %v17366_v3  ;;  %v1630_v56 = vor.u32 %v1629_v20, %v1625_v53  ;;  %v1011_v18 = vmax.f32 %v897_v43, 0.0  ;;  %v1009_v33 = vmax.f32 %v889_v52, 0.0  ;;  %v17378_v61 = vsel %vm17040_vm4, 0, %v1199_v40 }
 0x14a   : > { %v901_v36 = vpop.f32.mrb[49].mxu0  ;;  %v17382_v41 = vsel %vm17040_vm4, %v1210_v62, 0  ;;  %v1204_v42 = vshll.u32 %v1048_v35, 16  ;;  %v910_v0 = vadd.f32 %v14698_v10, %v17030_v45  ;;  %v17387_v11 = vsel %vm17040_vm4, 0, %v1213_v7 }
 0x14b   : > { %v14699_v22 = vpop.f32.mrb[50].mxu0  ;;  %v17390_v20 = vsel %vm1423_vm5, %v1630_v56, %v1634_v50  ;;  %v1051_v8 = vpack.c.bf16 %v1011_v18, %v1010_v16  ;;  %v1050_v53 = vpack.c.bf16 %v1009_v33, %v1008_v6  ;;  %v17394_v40 = vsel %vm17040_vm4, %v1203_v55, 0 }
 0x14c   : > { %v904_v2 = vpop.f32.mrb[51].mxu0  ;;  %22342 = vst [vmem:[#allocation38_spill] sm:$0xff] %v17390_v20  ;;  %v1206_v43 = vor.u32 %v1204_v42, %v1203_v55  ;;  %14756 = vmatprep.mubr.msk.bf16.mxu0 %vm1825_vm1, %v17390_v20  ;;  %v1639_v62 = vshll.u32 %v17372_v32, 16  ;;  %v1644_v35 = vshll.u32 %v17358_v51, 16  ;;  %v1637_v7 = vshrl.u32 %v17372_v32, 16 }
 0x14d   : > { %v1222_v52 = vshrl.u32 %v1051_v8, 16  ;;  %v1215_v10 = vshrl.u32 %v1050_v53, 16  ;;  %v902_v56 = vadd.f32 %v17030_v45, %v901_v36  ;;  %v1225_v16 = vshll.u32 %v1051_v8, 16 }
 0x14e   : > { %v1218_v6 = vshll.u32 %v1050_v53, 16  ;;  %v1014_v50 = vmax.f32 %v910_v0, 0.0  ;;  %v1641_v18 = vrot.slane %v1639_v62, 1  ;;  %v1651_v42 = vshll.u32 %v17378_v61, 16 }
 0x14f   : > { %v1224_v33 = vrot.slane %v1222_v52, 7  ;;  %v1217_v55 = vrot.slane %v1215_v10, 7  ;;  %v1656_v20 = vshll.u32 %v17354_v12, 16  ;;  %v1646_v59 = vrot.slane %v1644_v35, 1 }
 0x150   : > { %v1642_v24 = vor.u32 %v1641_v18, %v1637_v7  ;;  %v913_v29 = vadd.f32 %v14699_v22, %v17030_v45  ;;  %v905_v28 = vadd.f32 %v17030_v45, %v904_v2  ;;  %v17408_v36 = vsel %vm17040_vm4, 0, %v1206_v43 }
 0x151   : > { %v14702_v3 = vpop.f32.mrb[52].mxu0  ;;  %v1227_v0 = vor.u32 %v1225_v16, %v1224_v33  ;;  %v1220_v8 = vor.u32 %v1218_v6, %v1217_v55  ;;  %v1012_v53 = vmax.f32 %v902_v56, 0.0  ;;  %v1649_v10 = vshrl.u32 %v17378_v61, 16 }
 0x152   : > { %v917_v9 = vpop.f32.mrb[53].mxu0  ;;  %v17411_v52 = vsel %vm1423_vm5, %v1642_v24, %v1646_v59  ;;  %v1653_v7 = vrot.slane %v1651_v42, 1  ;;  %v1015_v35 = vmax.f32 %v913_v29, 0.0  ;;  %v17416_v22 = vsel %vm17040_vm4, %v1224_v33, 0 }
 0x153   : > { %v14703_v62 = vpop.f32.mrb[54].mxu0  ;;  %22343 = vst [vmem:[#allocation39_spill] sm:$0xff] %v17411_v52  ;;  %14757 = vmatmul.mubr.msk.bf16.gmra.mrb[100].mxu0 %vm1825_vm1, %v17411_v52  ;;  %v1658_v2 = vrot.slane %v1656_v20, 1  ;;  %v1013_v43 = vmax.f32 %v905_v28, 0.0  ;;  %v926_v56 = vadd.f32 %v14702_v3, %v17030_v45  ;;  %v1663_v59 = vshll.u32 %v17408_v36, 16 }
 0x154   : > { %v920_v18 = vpop.f32.mrb[55].mxu0  ;;  %v1654_v16 = vor.u32 %v1653_v7, %v1649_v10  ;;  %v1053_v6 = vpack.c.bf16 %v1015_v35, %v1014_v50  ;;  %v1668_v24 = vshll.u32 %v17394_v40, 16  ;;  %v17425_v29 = vsel %vm17040_vm4, 0, %v1220_v8 }
 0x155   : > { %v17429_v33 = vsel %vm17040_vm4, %v1217_v55, 0  ;;  %v1052_v42 = vpack.c.bf16 %v1013_v43, %v1012_v53  ;;  %v17433_v28 = vsel %vm17040_vm4, 0, %v1227_v0  ;;  %v1661_v50 = vshrl.u32 %v17408_v36, 16 }
 0x156   : > { %v17436_v3 = vsel %vm1423_vm5, %v1654_v16, %v1658_v2  ;;  %v1236_v20 = vshrl.u32 %v1053_v6, 16  ;;  %v1665_v10 = vrot.slane %v1663_v59, 1  ;;  %14840 = vmatprep.mubr.msk.bf16.mxu1 %vm1825_vm1, %v17433_v28  ;;  %v1018_v8 = vmax.f32 %v926_v56, 0.0 }
 0x157   : > { %22344 = vst [vmem:[#allocation40_spill] sm:$0xff] %v17436_v3  ;;  %14760 = vmatprep.mubr.msk.bf16.mxu0 %vm1825_vm1, %v17436_v3  ;;  %v1229_v55 = vshrl.u32 %v1052_v42, 16  ;;  %v1670_v53 = vrot.slane %v1668_v24, 1  ;;  %v918_v7 = vadd.f32 %v17030_v45, %v917_v9  ;;  %v1675_v2 = vshll.u32 %v17387_v11, 16  ;;  %v17450_v3 = vld [vmem:[%s22047_s2] ss:$0 sm:$0xff] }
 0x158   : > { %v1238_v35 = vrot.slane %v1236_v20, 7  ;;  %v1666_v43 = vor.u32 %v1665_v10, %v1661_v50  ;;  %v1680_v16 = vshll.u32 %v17382_v41, 16  ;;  %v1239_v59 = vshll.u32 %v1053_v6, 16 }
 0x159   : > { %v14706_v0 = vpop.f32.mrb[56].mxu0  ;;  %v1231_v46 = vrot.slane %v1229_v55, 7  ;;  %v929_v31 = vadd.f32 %v14703_v62, %v17030_v45  ;;  %v921_v56 = vadd.f32 %v17450_v3, %v920_v18  ;;  %v1232_v24 = vshll.u32 %v1052_v42, 16 }
 0x15a   : > { %v933_v52 = vpop.f32.mrb[57].mxu0  ;;  %v17454_v20 = vsel %vm1423_vm5, %v1666_v43, %v1670_v53  ;;  %v1673_v50 = vshrl.u32 %v17387_v11, 16  ;;  %v1677_v10 = vrot.slane %v1675_v2, 1  ;;  %v1241_v6 = vor.u32 %v1239_v59, %v1238_v35 }
 0x15b   : > { %v14707_v9 = vpop.f32.mrb[58].mxu0  ;;  %22345 = vst [vmem:[#allocation41_spill] sm:$0xff] %v17454_v20  ;;  %14761 = vmatmul.mubr.msk.bf16.gmra.mrb[104].mxu0 %vm1825_vm1, %v17454_v20  ;;  %v1016_v45 = vmax.f32 %v918_v7, 0.0  ;;  %v1019_v62 = vmax.f32 %v929_v31, 0.0  ;;  %v942_v55 = vadd.f32 %v17450_v3, %v14706_v0  ;;  %v17462_v18 = vsel %vm17040_vm4, %v1238_v35, 0 }
 0x15c   : > { %v936_v34 = vpop.f32.mrb[59].mxu0  ;;  %v1678_v42 = vor.u32 %v1677_v10, %v1673_v50  ;;  %v1682_v39 = vrot.slane %v1680_v16, 1  ;;  %v1017_v53 = vmax.f32 %v921_v56, 0.0  ;;  %v1234_v43 = vor.u32 %v1232_v24, %v1231_v46 }
 0x15d   : > { %v1055_v26 = vpack.c.bf16 %v1019_v62, %v1018_v8  ;;  %v1687_v2 = vshll.u32 %v17425_v29, 16  ;;  %v1692_v59 = vshll.u32 %v17429_v33, 16  ;;  %v17468_v20 = vsel %vm17040_vm4, %v1231_v46, 0 }
 0x15e   : > { %v17471_v31 = vsel %vm1423_vm5, %v1678_v42, %v1682_v39  ;;  %v1054_v7 = vpack.c.bf16 %v1017_v53, %v1016_v45  ;;  %v1699_v0 = vshll.u32 %v17433_v28, 16  ;;  %v1685_v8 = vshrl.u32 %v17425_v29, 16  ;;  %v16693_v39 = vld [vmem:[%s22048_s3 + $0x48] sm:$0xff]  }
 0x15f   : > { %22346 = vst [vmem:[#allocation42_spill] sm:$0xff] %v17471_v31  ;;  %14764 = vmatprep.mubr.msk.bf16.mxu0 %vm1825_vm1, %v17471_v31  ;;  %v1250_v35 = vshrl.u32 %v1055_v26, 16  ;;  %v1689_v16 = vrot.slane %v1687_v2, 1  ;;  %v934_v56 = vadd.f32 %v17450_v3, %v933_v52  ;;  %v1694_v10 = vrot.slane %v1692_v59, 1 }
 0x160   : > { %v1243_v50 = vshrl.u32 %v1054_v7, 16  ;;  %v1697_v46 = vshrl.u32 %v17433_v28, 16  ;;  %v1701_v62 = vrot.slane %v1699_v0, 1  ;;  %v1704_v31 = vshll.u32 %v17416_v22, 16 }
 0x161   : > { %v14710_v24 = vpop.f32.mrb[60].mxu0  ;;  %v1252_v42 = vrot.slane %v1250_v35, 7  ;;  %v1690_v53 = vor.u32 %v1689_v16, %v1685_v8  ;;  %v17485_v2 = vsel %vm17040_vm4, 0, %v1234_v43  ;;  %v945_v59 = vadd.f32 %v17450_v3, %v14707_v9 }
 0x162   : > { %v949_v45 = vpop.f32.mrb[61].mxu0  ;;  %v1245_v25 = vrot.slane %v1243_v50, 7  ;;  %v1702_v47 = vor.u32 %v1701_v62, %v1697_v46  ;;  %14841 = vmatmul.mubr.msk.bf16.vlgmr.msra.gmra.mrb[0].mxu1 %vm1825_vm1, %v17485_v2  ;;  %v17492_v0 = vsel %vm17040_vm4, 0, %v1241_v6  ;;  %v1253_v8 = vshll.u32 %v1055_v26, 16  ;;  %v16829_v50 = vld [vmem:[%s22048_s3 + $0x40] sm:$0xff]  }
 0x163   : > { %v14711_v52 = vpop.f32.mrb[62].mxu0  ;;  %v1022_v16 = vmax.f32 %v942_v55, 0.0  ;;  %v17495_v38 = vsel %vm1423_vm5, %v1690_v53, %v1694_v10  ;;  %v1706_v43 = vrot.slane %v1704_v31, 1  ;;  %14857 = vmatpush3.bf16.msra.mxu1 %v16829_v50  ;;  %14844 = vmatprep.mubr.msk.bf16.mxu1 %vm1825_vm1, %v17492_v0  ;;  %v1246_v9 = vshll.u32 %v1054_v7, 16  ;;  %v16694_v55 = vld [vmem:[%s22048_s3 + $0x50] sm:$0xff]  }
 0x164   : > { %v952_v35 = vpop.f32.mrb[63].mxu0  ;;  %22347 = vst [vmem:[#allocation43_spill] sm:$0xff] %v17495_v38  ;;  %14765 = vmatmul.mubr.msk.bf16.gmra.mrb[108].mxu0 %vm1825_vm1, %v17495_v38  ;;  %v1020_v6 = vmax.f32 %v934_v56, 0.0  ;;  %v1023_v46 = vmax.f32 %v945_v59, 0.0  ;;  %v937_v26 = vadd.f32 %v17450_v3, %v936_v34  ;;  %14858 = vmatprep.subr.bf16.mxu1 %v16693_v39  ;;  %v1255_v31 = vor.u32 %v1253_v8, %v1252_v42 }
 0x165   : > { %v17510_v10 = vsel %vm17040_vm4, %v1252_v42, 0  ;;  %v17513_v62 = vsel %vm1423_vm5, %v1702_v47, %v1706_v43  ;;  %v1711_v7 = vshll.u32 %v17485_v2, 16  ;;  %v1248_v53 = vor.u32 %v1246_v9, %v1245_v25 }
 0x166   : > { %22348 = vst [vmem:[#allocation44_spill] sm:$0xff] %v17513_v62  ;;  %14768 = vmatprep.mubr.msk.bf16.mxu0 %vm1825_vm1, %v17513_v62  ;;  %v1057_v34 = vpack.c.bf16 %v1023_v46, %v1022_v16  ;;  %v1021_v56 = vmax.f32 %v937_v26, 0.0  ;;  %v1716_v59 = vshll.u32 %v17468_v20, 16  ;;  %v17521_v8 = vsel %vm17040_vm4, %v1245_v25, 0  ;;  %v16695_v25 = vld [vmem:[%s22048_s3 + $0x58] sm:$0xff]  }
 0x167   : > { %v1709_v42 = vshrl.u32 %v17485_v2, 16  ;;  %v1713_v50 = vrot.slane %v1711_v7, 1  ;;  %v1723_v47 = vshll.u32 %v17492_v0, 16  ;;  %14859 = vmatpush3.bf16.msra.mxu1 %v16693_v39  ;;  %v958_v9 = vadd.f32 %v17450_v3, %v14710_v24 }
 0x168   : > { %v1264_v43 = vshrl.u32 %v1057_v34, 16  ;;  %v1056_v38 = vpack.c.bf16 %v1021_v56, %v1020_v6  ;;  %v1721_v62 = vshrl.u32 %v17492_v0, 16  ;;  %14860 = vmatprep.subr.bf16.mxu1 %v16694_v55  ;;  %v1718_v46 = vrot.slane %v1716_v59, 1 }
 0x169   : > { %v1714_v16 = vor.u32 %v1713_v50, %v1709_v42  ;;  %v1725_v26 = vrot.slane %v1723_v47, 1  ;;  %v1728_v23 = vshll.u32 %v17462_v18, 16  ;;  %v950_v39 = vadd.f32 %v17450_v3, %v949_v45 }
 0x16a   : > { %v1266_v7 = vrot.slane %v1264_v43, 7  ;;  %v1257_v27 = vshrl.u32 %v1056_v38, 16  ;;  %v17534_v6 = vsel %vm17040_vm4, 0, %v1248_v53  ;;  %v961_v42 = vadd.f32 %v17450_v3, %v14711_v52 }
 0x16b   : > { %v17537_v24 = vsel %vm1423_vm5, %v1714_v16, %v1718_v46  ;;  %v1726_v56 = vor.u32 %v1725_v26, %v1721_v62  ;;  %v1730_v59 = vrot.slane %v1728_v23, 1  ;;  %14845 = vmatmul.mubr.msk.bf16.gmra.mrb[4].mxu1 %vm1825_vm1, %v17534_v6  ;;  %v1260_v47 = vshll.u32 %v1056_v38, 16  ;;  %v17557_v38 = vld [vmem:[%s22048_s3 + $0x60] sm:$0xff]  }
 0x16c   : > { %22349 = vst [vmem:[#allocation45_spill] sm:$0xff] %v17537_v24  ;;  %v1259_v50 = vrot.slane %v1257_v27, 7  ;;  %v1026_v43 = vmax.f32 %v958_v9, 0.0  ;;  %14769 = vmatmul.mubr.msk.bf16.gmra.mrb[112].mxu0 %vm1825_vm1, %v17537_v24  ;;  %v17546_v45 = vsel %vm17040_vm4, 0, %v1255_v31  ;;  %14861 = vmatpush3.bf16.msra.mxu1 %v16694_v55  ;;  %v1267_v53 = vshll.u32 %v1057_v34, 16 }
 0x16d   : > { %22350 = vst [vmem:[#allocation46_spill] sm:$0xff] %v17546_v45  ;;  %v17549_v62 = vsel %vm1423_vm5, %v1726_v56, %v1730_v59  ;;  %v1027_v23 = vmax.f32 %v961_v42, 0.0  ;;  %14848 = vmatprep.mubr.msk.bf16.mxu1 %vm1825_vm1, %v17546_v45  ;;  %v953_v27 = vadd.f32 %v17450_v3, %v952_v35  ;;  %14862 = vmatprep.subr.bf16.mxu1 %v16695_v25  ;;  %v1024_v31 = vmax.f32 %v950_v39, 0.0 }
 0x16e   : > { %22351 = vst [vmem:[#allocation47_spill] sm:$0xff] %v17549_v62  ;;  %v1262_v52 = vor.u32 %v1260_v47, %v1259_v50  ;;  %14772 = vmatprep.mubr.msk.bf16.mxu0 %vm1825_vm1, %v17549_v62  ;;  %v1735_v55 = vshll.u32 %v17534_v6, 16  ;;  %v1740_v34 = vshll.u32 %v17521_v8, 16  ;;  %v1269_v9 = vor.u32 %v1267_v53, %v1266_v7 }
 0x16f   : > { %v17563_v16 = vpack.c.bf16 %v1027_v23, %v1026_v43  ;;  %v1025_v46 = vmax.f32 %v953_v27, 0.0  ;;  %v1747_v3 = vshll.u32 %v17546_v45, 16  ;;  %v1733_v35 = vshrl.u32 %v17534_v6, 16 }
 0x170   : > { %v1737_v26 = vrot.slane %v1735_v55, 1  ;;  %v1752_v56 = vshll.u32 %v17510_v10, 16  ;;  %v17570_v39 = vsel %vm17040_vm4, 0, %v1262_v52  ;;  %14863 = vmatpush3.bf16.msra.mxu1 %v16695_v25  ;;  %v17574_v59 = vsel %vm17040_vm4, %v1259_v50, 0 }
 0x171   : > { %22352 = vst [vmem:[#allocation48_spill] sm:$0xff] %v17570_v39  ;;  %v1058_v42 = vpack.c.bf16 %v1025_v46, %v1024_v31  ;;  %v1745_v47 = vshrl.u32 %v17546_v45, 16  ;;  %v1749_v43 = vrot.slane %v1747_v3, 1  ;;  %14928 = vmatprep.subr.bf16.mxu1 %v17557_v38  ;;  %v1742_v23 = vrot.slane %v1740_v34, 1 }
 0x172   : > { %v1738_v53 = vor.u32 %v1737_v26, %v1733_v35  ;;  %v1754_v62 = vrot.slane %v1752_v56, 1  ;;  %v17582_v25 = vsel %vm17040_vm4, 0, %v1269_v9  ;;  %v17586_v50 = vsel %vm17040_vm4, %v1266_v7, 0 }
 0x173   : > { %v1271_v27 = vshrl.u32 %v1058_v42, 16  ;;  %v1750_v55 = vor.u32 %v1749_v43, %v1745_v47  ;;  %14849 = vmatmul.mubr.msk.bf16.gmra.mrb[8].mxu1 %vm1825_vm1, %v17570_v39  ;;  %22353 = vst [vmem:[#allocation49_spill] sm:$0xff] %v17582_v25  ;;  %v1759_v31 = vshll.u32 %v17570_v39, 16  ;;  %v1764_v34 = vshll.u32 %v17574_v59, 16 }
 0x174   : > { %v17589_v52 = vsel %vm1423_vm5, %v1738_v53, %v1742_v23  ;;  %14852 = vmatprep.mubr.msk.bf16.mxu1 %vm1825_vm1, %v17582_v25  ;;  %v1274_v3 = vshll.u32 %v1058_v42, 16  ;;  %v1757_v7 = vshrl.u32 %v17570_v39, 16  ;;  %v1771_v26 = vshll.u32 %v17582_v25, 16 }
 0x175   : > { %22354 = vst [vmem:[#allocation50_spill] sm:$0xff] %v17589_v52  ;;  %v1273_v46 = vrot.slane %v1271_v27, 7  ;;  %14773 = vmatmul.mubr.msk.bf16.gmra.mrb[116].mxu0 %vm1825_vm1, %v17589_v52  ;;  %v17598_v9 = vsel %vm1423_vm5, %v1750_v55, %v1754_v62  ;;  %v1761_v35 = vrot.slane %v1759_v31, 1  ;;  %v1776_v47 = vshll.u32 %v17586_v50, 16 }
 0x176   : > { %22355 = vst [vmem:[#allocation51_spill] sm:$0xff] %v17598_v9  ;;  %14776 = vmatprep.mubr.msk.bf16.mxu0 %vm1825_vm1, %v17598_v9  ;;  %v1766_v53 = vrot.slane %v1764_v34, 1  ;;  %v1769_v42 = vshrl.u32 %v17582_v25, 16  ;;  %v1773_v23 = vrot.slane %v1771_v26, 1  ;;  %v1166_v34 = vshrl.u32 %v17243_v30, 16 }
 0x177   : > { %v1276_v56 = vor.u32 %v1274_v3, %v1273_v46  ;;  %v1762_v43 = vor.u32 %v1761_v35, %v1757_v7  ;;  %v17608_v62 = vsel %vm17040_vm4, %v1273_v46, 0  ;;  %v1778_v9 = vrot.slane %v1776_v47, 1 }
 0x178   : > { %v1774_v31 = vor.u32 %v1773_v23, %v1769_v42  ;;  %v1788_v35 = vshll.u32 %v17608_v62, 16  ;;  %v1278_v26 = vshrl.u32 %v17563_v16, 16  ;;  %v2648_v42 = vrot.slane %v17052_v17, 1 }
 0x179   : > { %v17612_v27 = vsel %vm17040_vm4, 0, %v1276_v56  ;;  %v17615_v55 = vsel %vm1423_vm5, %v1762_v43, %v1766_v53  ;;  %v2647_v43 = vrot.slane %v17060_v21, 1  ;;  %v2650_v53 = vrot.slane %v17056_v19, 1 }
 0x17a   : > { %22356 = vst [vmem:[#allocation52_spill] sm:$0xff] %v17612_v27  ;;  %22357 = vst [vmem:[#allocation53_spill] sm:$0xff] %v17615_v55  ;;  %v1783_v3 = vshll.u32 %v17612_v27, 16  ;;  %v1781_v7 = vshrl.u32 %v17612_v27, 16  ;;  %v17629_v56 = vsel %vm1423_vm5, %v1774_v31, %v1778_v9  ;;  %v1168_v23 = vrot.slane %v1166_v34, 7  ;;  %v16697_v31 = vld [vmem:[%s22048_s3 + $0x68] sm:$0xff]  }
 0x17b   : > { %14853 = vmatmul.mubr.msk.bf16.gmra.mrb[12].mxu1 %vm1825_vm1, %v17612_v27  ;;  %22358 = vst [vmem:[#allocation54_spill] sm:$0xff] %v17629_v56  ;;  %v17636_v52 = vrot.slane %v1278_v26, 7  ;;  %v2653_v9 = vrot.slane %v17081_v63, 1  ;;  %v1281_v17 = vshll.u32 %v17563_v16, 16  ;;  %v2654_v34 = vrot.slane %v17074_v60, 1 }
 0x17c   : > { %v1785_v46 = vrot.slane %v1783_v3, 1  ;;  %14864 = vmatprep.mubr.msk.bf16.mxu1 %vm1825_vm1, %v16988_v37  ;;  %v1790_v3 = vrot.slane %v1788_v35, 1  ;;  %v2656_v35 = vrot.slane %v17095_v13, 1 }
 0x17d   : > { %14777 = vmatmul.mubr.msk.bf16.gmra.mrb[120].mxu0 %vm1825_vm1, %v17615_v55  ;;  %v2651_v55 = vrot.slane %v17048_v15, 1  ;;  %v17668_v16 = vor.u32 %v1281_v17, %v17636_v52  ;;  %v17673_v60 = vsel %vm2644_vm6, %v2653_v9, %v2654_v34  ;;  %v2701_v17 = vrot.slane %v17378_v61, 1 }
 0x17e   : > { %14780 = vmatprep.mubr.msk.bf16.mxu0 %vm1825_vm1, %v17629_v56  ;;  %v1786_v47 = vor.u32 %v1785_v46, %v1781_v7  ;;  %v1169_v7 = vshll.u32 %v17243_v30, 16  ;;  %v17648_v56 = vsel %vm2644_vm6, %v2647_v43, %v2648_v42  ;;  %v17662_v30 = vsel %vm17040_vm4, %v1168_v23, 0 }
 0x17f   : > { %v17654_v15 = vsel %vm2644_vm6, %v2650_v53, %v2651_v55  ;;  %v2657_v55 = vrot.slane %v17099_v14, 1  ;;  %v22361_v43 = vmov 0   ;;  %v2660_v53 = vrot.slane %v17131_v58, 1 }
 0x180   : > { %v17645_v46 = vsel %vm1423_vm5, %v1786_v47, %v1790_v3  ;;  %22360 = vst [vmem:[#allocation56_spill] sm:$0xff] %v17654_v15  ;;  %v17658_v26 = vor.u32 %v1169_v7, %v1168_v23  ;;  %v2695_v42 = vrot.slane %v17338_v1, 1  ;;  %v2696_v23 = vrot.slane %v17320_v44, 1 }
 0x181   : > { %22359 = vst [vmem:[#allocation55_spill] sm:$0xff] %v17645_v46  ;;  %v2698_v3 = vrot.slane %v17372_v32, 1  ;;  %v17686_v9 = vsel %vm2644_vm6, %v2656_v35, %v2657_v55  ;;  %v2662_v14 = vrot.slane %v17137_v4, 1  ;;  %v2699_v7 = vrot.slane %v17358_v51, 1 }
 0x182   : > { %22362 = vst [vmem:[#allocation57_spill] sm:$0xff] %v17686_v9  ;;  %v17692_v34 = vsel %vm2644_vm6, %v2695_v42, %v2696_v23  ;;  %v2702_v58 = vrot.slane %v17354_v12, 1  ;;  %v2704_v47 = vrot.slane %v17408_v36, 1  ;;  %v2705_v44 = vrot.slane %v17394_v40, 1 }
 0x183   : > { %14865 = vmatmul.mubr.msk.bf16.vlgmr.msra.gmra.mrb[16].mxu1 %vm1825_vm1, %v17648_v56  ;;  %v17698_v35 = vsel %vm2644_vm6, %v2698_v3, %v2699_v7  ;;  %v2707_v55 = vrot.slane %v17387_v11, 1  ;;  %v2708_v51 = vrot.slane %v17382_v41, 1  ;;  %v2711_v40 = vrot.slane %v17429_v33, 1 }
 0x184   : > { %14929 = vmatpush3.bf16.msra.mxu1 %v17557_v38  ;;  %14868 = vmatprep.mubr.msk.bf16.mxu1 %vm1825_vm1, %v17654_v15  ;;  %v16698_v38 = vld [vmem:[%s22048_s3 + $0x70] sm:$0xff]   ;;  %v2710_v15 = vrot.slane %v17425_v29, 1  ;;  %v17707_v12 = vsel %vm2644_vm6, %v2701_v17, %v2702_v58  ;;  %v17710_v42 = vsel %vm2644_vm6, %v2704_v47, %v2705_v44  ;;  %v2713_v23 = vrot.slane %v17433_v28, 1 }
 0x185   : > { %14781 = vmatmul.mubr.msk.bf16.gmra.mrb[124].mxu0 %vm1825_vm1, %v17645_v46  ;;  %14930 = vmatprep.subr.bf16.mxu1 %v16697_v31  ;;  %v17717_v41 = vsel %vm2644_vm6, %v2707_v55, %v2708_v51  ;;  %v2714_v3 = vrot.slane %v17416_v22, 1  ;;  %v2716_v7 = vrot.slane %v17485_v2, 1  ;;  %v2717_v17 = vrot.slane %v17468_v20, 1 }
 0x186   : > { %14792 = vmatprep.mubr.bf16.mxu0 %v22361_v43  ;;  %v17725_v33 = vsel %vm2644_vm6, %v2710_v15, %v2711_v40  ;;  %v2719_v47 = vrot.slane %v17492_v0, 1  ;;  %v2720_v58 = vrot.slane %v17462_v18, 1  ;;  %v2722_v44 = vrot.slane %v17534_v6, 1  ;;  %v17743_v18 = vld [vmem:[%s22048_s3 + $0x80] sm:$0xff]  }
 0x187   : > { %v17733_v22 = vsel %vm2644_vm6, %v2713_v23, %v2714_v3  ;;  %v17736_v20 = vsel %vm2644_vm6, %v2716_v7, %v2717_v17  ;;  %v2725_v15 = vrot.slane %v17546_v45, 1  ;;  %v2726_v51 = vrot.slane %v17510_v10, 1 }
 0x188   : > { %14931 = vmatpush3.bf16.msra.mxu1 %v16697_v31  ;;  %v16699_v31 = vld [vmem:[%s22048_s3 + $0x78] sm:$0xff]   ;;  %v17748_v55 = vsel %vm2644_vm6, %v2719_v47, %v2720_v58  ;;  %v2728_v40 = vrot.slane %v17570_v39, 1  ;;  %v2729_v23 = vrot.slane %v17574_v59, 1  ;;  %v2731_v3 = vrot.slane %v17582_v25, 1 }
 0x189   : > { %14932 = vmatprep.subr.bf16.mxu1 %v16698_v38  ;;  %v2732_v7 = vrot.slane %v17586_v50, 1  ;;  %v2734_v17 = vrot.slane %v17612_v27, 1  ;;  %v2735_v10 = vrot.slane %v17608_v62, 1  ;;  %v17769_v59 = vsel %vm17040_vm4, 0, %v17658_v26 }
 0x18a   : > { %v17763_v47 = vsel %vm2644_vm6, %v2728_v40, %v2729_v23  ;;  %v17774_v50 = vsel %vm17040_vm4, %v17636_v52, 0  ;;  %v17784_v62 = vsel %vm17040_vm4, 0, %v17668_v16  ;;  %v22364_v26 = vrot.slane %v17127_v57, 1 }
 0x18b   : > { %14869 = vmatmul.mubr.msk.bf16.gmra.mrb[20].mxu1 %vm1825_vm1, %v17673_v60  ;;  %v17778_v58 = vsel %vm2644_vm6, %v2731_v3, %v2732_v7  ;;  %v17792_v52 = vsel %vm2644_vm6, %v2734_v17, %v2735_v10  ;;  %v4029_v16 = vrot.slane %v17784_v62, 1  ;;  %v2668_v23 = vrot.slane %v17168_v54, 1  ;;  %v22369_v3 = vld [vmem:[#allocation9_spill] sm:$0xff]  ;;  %v22370_v17 = vld [vmem:[#allocation8_spill] sm:$0xff] }
 0x18c   : > { %14872 = vmatprep.mubr.msk.bf16.mxu1 %vm1825_vm1, %v17686_v9  ;;  %14933 = vmatpush3.bf16.msra.mxu1 %v16698_v38  ;;  %v2723_v38 = vrot.slane %v17521_v8, 1  ;;  %v17760_v9 = vsel %vm2644_vm6, %v2725_v15, %v2726_v51  ;;  %22365 = vst [vmem:[#allocation59_spill] sm:$0xff] %v17792_v52  ;;  %v4027_v15 = vrot.slane %v17662_v30, 1  ;;  %v2666_v7 = vrot.slane %v22369_v3, 1 }
 0x18d   : > { %14793 = vmatmul.mubr.msk.bf16.vlgmr.msra.gmra.mrb[64].mxu0 %vm1825_vm1, %v17060_v21  ;;  %14934 = vmatprep.subr.bf16.mxu1 %v16699_v31  ;;  %v2669_v10 = vrot.slane %v22370_v17, 1 }
 0x18e   : > { %14796 = vmatprep.mubr.msk.bf16.mxu0 %vm1825_vm1, %v17056_v19  ;;  %v17754_v8 = vsel %vm2644_vm6, %v2722_v44, %v2723_v38  ;;  %v17789_v44 = vsel %vm2644_vm6, %v22364_v26, %v2660_v53  ;;  %v4026_v38 = vrot.slane %v17769_v59, 1  ;;  %v4030_v53 = vrot.slane %v17774_v50, 1 }
 0x18f   : > { %22363 = vst [vmem:[#allocation58_spill] sm:$0xff] %v17754_v8  ;;  %v17825_v26 = vsel %vm2644_vm6, %v2668_v23, %v2669_v10 }
 0x190   : > { %14935 = vmatpush3.bf16.msra.mxu1 %v16699_v31  ;;  %v2663_v31 = vrot.slane %v17113_v48, 1  ;;  %v17808_v51 = vsel %vm2644_vm6, %v4026_v38, %v4027_v15  ;;  %v17814_v40 = vsel %vm2644_vm6, %v4029_v16, %v4030_v53  ;;  %22372 = vst [vmem:[#allocation8_spill] sm:$0xff] %v17825_v26  ;;  %v22373_v38 = vld [vmem:[#allocation13_spill] sm:$0xff]  ;;  %v22374_v16 = vld [vmem:[#allocation14_spill] sm:$0xff] }
 0x191   : > { %15000 = vmatprep.subr.bf16.mxu1 %v17743_v18  ;;  %22367 = vst [vmem:[#allocation61_spill] sm:$0xff] %v17808_v51  ;;  %22368 = vst [vmem:[#allocation62_spill] sm:$0xff] %v17814_v40  ;;  %v2671_v15 = vrot.slane %v22373_v38, 1  ;;  %v2674_v53 = vrot.slane %v22374_v16, 1  ;;  %v22382_v51 = vld [vmem:[#allocation23_spill] sm:$0xff] }
 0x192   : > { %v17797_v48 = vsel %vm2644_vm6, %v2662_v14, %v2663_v31  ;;  %v2665_v14 = vrot.slane %v17163_v49, 1 }
 0x193   : > { %14873 = vmatmul.mubr.msk.bf16.gmra.mrb[24].mxu1 %vm1825_vm1, %v17789_v44  ;;  %22366 = vst [vmem:[#allocation60_spill] sm:$0xff] %v17797_v48 }
 0x194   : > { %14876 = vmatprep.mubr.msk.bf16.mxu1 %vm1825_vm1, %v17797_v48  ;;  %v17820_v31 = vsel %vm2644_vm6, %v2665_v14, %v2666_v7  ;;  %v22375_v14 = vld [vmem:[#allocation12_spill] sm:$0xff]  ;;  %v22376_v7 = vld [vmem:[#allocation17_spill] sm:$0xff] }
 0x195   : > { %14797 = vmatmul.mubr.msk.bf16.gmra.mrb[68].mxu0 %vm1825_vm1, %v17081_v63  ;;  %22371 = vst [vmem:[#allocation9_spill] sm:$0xff] %v17820_v31  ;;  %v2672_v3 = vrot.slane %v22375_v14, 1  ;;  %v2675_v17 = vrot.slane %v22376_v7, 1  ;;  %v22379_v14 = vld [vmem:[#allocation19_spill] sm:$0xff] }
 0x196   : > { %14800 = vmatprep.mubr.msk.bf16.mxu0 %vm1825_vm1, %v17095_v13  ;;  %v2677_v7 = vrot.slane %v22379_v14, 1 }
 0x197   : > { %v17838_v23 = vsel %vm2644_vm6, %v2671_v15, %v2672_v3  ;;  %v17843_v10 = vsel %vm2644_vm6, %v2674_v53, %v2675_v17  ;;  %v2680_v15 = vrot.slane %v22380_v5, 1  ;;  %v22381_v3 = vld [vmem:[#allocation18_spill] sm:$0xff] }
 0x198   : > { %22377 = vst [vmem:[#allocation13_spill] sm:$0xff] %v17838_v23  ;;  %22378 = vst [vmem:[#allocation14_spill] sm:$0xff] %v17843_v10  ;;  %v2678_v40 = vrot.slane %v22381_v3, 1  ;;  %v22385_v3 = vld [vmem:[#allocation25_spill] sm:$0xff] }
 0x19a   : > { %v17856_v53 = vsel %vm2644_vm6, %v2677_v7, %v2678_v40  ;;  %v22387_v7 = vld [vmem:[#allocation27_spill] sm:$0xff] }
 0x19b   : > { %14877 = vmatmul.mubr.msk.bf16.gmra.mrb[28].mxu1 %vm1825_vm1, %v17820_v31  ;;  %22383 = vst [vmem:[#allocation12_spill] sm:$0xff] %v17856_v53  ;;  %v22388_v31 = vld [vmem:[#allocation24_spill] sm:$0xff] }
 0x19c   : > { %14880 = vmatprep.mubr.msk.bf16.mxu1 %vm1825_vm1, %v17825_v26  ;;  %v2684_v26 = vrot.slane %v22387_v7, 1  ;;  %v22391_v7 = vld [vmem:[#allocation30_spill] sm:$0xff] }
 0x19d   : > { %14801 = vmatmul.mubr.msk.bf16.gmra.mrb[72].mxu0 %vm1825_vm1, %v17127_v57 }
 0x19e   : > { %14804 = vmatprep.mubr.msk.bf16.mxu0 %vm1825_vm1, %v17137_v4 }
 0x1a3   : > { %14881 = vmatmul.mubr.msk.bf16.gmra.mrb[32].mxu1 %vm1825_vm1, %v17838_v23  ;;  %v2681_v23 = vrot.slane %v22382_v51, 1  ;;  %v2683_v51 = vrot.slane %v22385_v3, 1 }
 0x1a4   : > { %14884 = vmatprep.mubr.msk.bf16.mxu1 %vm1825_vm1, %v17843_v10  ;;  %v22386_v10 = vld [vmem:[#allocation26_spill] sm:$0xff] }
 0x1a5   : > { %14805 = vmatmul.mubr.msk.bf16.gmra.mrb[76].mxu0 %vm1825_vm1, %v17163_v49  ;;  %v17861_v17 = vsel %vm2644_vm6, %v2680_v15, %v2681_v23  ;;  %v2686_v40 = vrot.slane %v22386_v10, 1  ;;  %v17874_v23 = vsel %vm2644_vm6, %v2683_v51, %v2684_v26 }
 0x1a6   : > { %14808 = vmatprep.mubr.msk.bf16.mxu0 %vm1825_vm1, %v17168_v54  ;;  %22384 = vst [vmem:[#allocation17_spill] sm:$0xff] %v17861_v17  ;;  %22389 = vst [vmem:[#allocation19_spill] sm:$0xff] %v17874_v23 }
 0x1ab   : > { %14885 = vmatmul.mubr.msk.bf16.gmra.mrb[36].mxu1 %vm1825_vm1, %v17856_v53  ;;  %v2687_v53 = vrot.slane %v22388_v31, 1  ;;  %v2689_v31 = vrot.slane %v22391_v7, 1 }
 0x1ac   : > { %14888 = vmatprep.mubr.msk.bf16.mxu1 %vm1825_vm1, %v17861_v17  ;;  %v22392_v17 = vld [vmem:[#allocation29_spill] sm:$0xff] }
 0x1ad   : > { %14809 = vmatmul.mubr.msk.bf16.gmra.mrb[80].mxu0 %vm1825_vm1, %v22373_v38  ;;  %v17879_v15 = vsel %vm2644_vm6, %v2686_v40, %v2687_v53  ;;  %v2690_v26 = vrot.slane %v22392_v17, 1  ;;  %v22393_v53 = vld [vmem:[#allocation35_spill] sm:$0xff] }
 0x1ae   : > { %14812 = vmatprep.mubr.msk.bf16.mxu0 %vm1825_vm1, %v22374_v16  ;;  %22390 = vst [vmem:[#allocation22_spill] sm:$0xff] %v17879_v15  ;;  %v2692_v40 = vrot.slane %v22393_v53, 1 }
 0x1af   : > { %v17890_v51 = vsel %vm2644_vm6, %v2689_v31, %v2690_v26 }
 0x1b3   : > { %14889 = vmatmul.mubr.msk.bf16.gmra.mrb[40].mxu1 %vm1825_vm1, %v17874_v23 }
 0x1b4   : > { %14892 = vmatprep.mubr.msk.bf16.mxu1 %vm1825_vm1, %v17879_v15  ;;  %v22394_v15 = vld [vmem:[#allocation33_spill] sm:$0xff] }
 0x1b5   : > { %14813 = vmatmul.mubr.msk.bf16.gmra.mrb[84].mxu0 %vm1825_vm1, %v22379_v14  ;;  %v2693_v23 = vrot.slane %v22394_v15, 1  ;;  %v16702_v15 = vld [vmem:[%s22048_s3 + $0x90] sm:$0xff]  }
 0x1b6   : > { %14816 = vmatprep.mubr.msk.bf16.mxu0 %vm1825_vm1, %v22380_v5 }
 0x1b7   : > { %v17903_v17 = vsel %vm2644_vm6, %v2692_v40, %v2693_v23  ;;  %v16701_v23 = vld [vmem:[%s22048_s3 + $0x88] sm:$0xff]   ;;  %vm9281_vm6 = vcmask 1042432  }
 0x1bb   : > { %14893 = vmatmul.mubr.msk.bf16.gmra.mrb[44].mxu1 %vm1825_vm1, %v17890_v51 }
 0x1bc   : > { %14896 = vmatprep.mubr.msk.bf16.mxu1 %vm1825_vm1, %v16988_v37 }
 0x1bd   : > { %14817 = vmatmul.mubr.msk.bf16.gmra.mrb[88].mxu0 %vm1825_vm1, %v22385_v3 }
 0x1be   : > { %14820 = vmatprep.mubr.msk.bf16.mxu0 %vm1825_vm1, %v22386_v10 }
 0x1c3   : > { %14897 = vmatmul.mubr.msk.bf16.gmra.mrb[48].mxu1 %vm1825_vm1, %v17903_v17 }
 0x1c4   : > { %14900 = vmatprep.mubr.msk.bf16.mxu1 %vm1825_vm1, %v17692_v34 }
 0x1c5   : > { %14821 = vmatmul.mubr.msk.bf16.gmra.mrb[92].mxu0 %vm1825_vm1, %v22391_v7 }
 0x1c6   : > { %14824 = vmatprep.mubr.bf16.mxu0 %v22361_v43 }
 0x1cb   : > { %14901 = vmatmul.mubr.msk.bf16.gmra.mrb[52].mxu1 %vm1825_vm1, %v17698_v35 }
 0x1cc   : > { %14904 = vmatprep.mubr.msk.bf16.mxu1 %vm1825_vm1, %v17707_v12 }
 0x1cd   : > { %14825 = vmatmul.mubr.msk.bf16.gmra.mrb[96].mxu0 %vm1825_vm1, %v22393_v53 }
 0x1ce   : > { %14828 = vmatprep.mubr.msk.bf16.mxu0 %vm1825_vm1, %v17338_v1 }
 0x1d3   : > { %14905 = vmatmul.mubr.msk.bf16.gmra.mrb[56].mxu1 %vm1825_vm1, %v17710_v42 }
 0x1d4   : > { %14908 = vmatprep.mubr.msk.bf16.mxu1 %vm1825_vm1, %v17717_v41 }
 0x1d5   : > { %14829 = vmatmul.mubr.msk.bf16.gmra.mrb[100].mxu0 %vm1825_vm1, %v17372_v32 }
 0x1d6   : > { %14832 = vmatprep.mubr.msk.bf16.mxu0 %vm1825_vm1, %v17378_v61 }
 0x1db   : > { %14909 = vmatmul.mubr.msk.bf16.gmra.mrb[60].mxu1 %vm1825_vm1, %v17725_v33 }
 0x1dc   : > { %14912 = vmatprep.mubr.msk.bf16.mxu1 %vm1825_vm1, %v17733_v22 }
 0x1dd   : > { %14833 = vmatmul.mubr.msk.bf16.gmra.mrb[104].mxu0 %vm1825_vm1, %v17408_v36 }
 0x1de   : > { %14836 = vmatprep.mubr.msk.bf16.mxu0 %vm1825_vm1, %v17387_v11 }
 0x1e3   : > { %14913 = vmatmul.mubr.msk.bf16.gmra.mrb[0].mxu1 %vm1825_vm1, %v17736_v20 }
 0x1e4   : > { %14916 = vmatprep.mubr.msk.bf16.mxu1 %vm1825_vm1, %v17748_v55 }
 0x1e5   : > { %14837 = vmatmul.mubr.msk.bf16.gmra.mrb[108].mxu0 %vm1825_vm1, %v17425_v29 }
 0x1eb   : > { %14917 = vmatmul.mubr.msk.bf16.gmra.mrb[4].mxu1 %vm1825_vm1, %v17754_v8 }
 0x1ec   : > { %14920 = vmatprep.mubr.msk.bf16.mxu1 %vm1825_vm1, %v17760_v9 }
 0x1f3   : > { %14921 = vmatmul.mubr.msk.bf16.gmra.mrb[8].mxu1 %vm1825_vm1, %v17763_v47 }
 0x1f4   : > { %14924 = vmatprep.mubr.msk.bf16.mxu1 %vm1825_vm1, %v17778_v58 }
 0x1fb   : > { %14925 = vmatmul.mubr.msk.bf16.gmra.mrb[12].mxu1 %vm1825_vm1, %v17792_v52 }
 0x1fc   : > { %14936 = vmatprep.mubr.msk.bf16.mxu1 %vm1825_vm1, %v17060_v21  ;;  %v16703_v21 = vld [vmem:[%s22048_s3 + $0x98] sm:$0xff]  }
 0x203   : > { %14937 = vmatmul.mubr.msk.bf16.vlgmr.msra.gmra.mrb[16].mxu1 %vm1825_vm1, %v17056_v19 }
 0x204   : > { %15001 = vmatpush3.bf16.msra.mxu1 %v17743_v18  ;;  %14940 = vmatprep.mubr.msk.bf16.mxu1 %vm1825_vm1, %v17081_v63  ;;  %v17975_v18 = vld [vmem:[%s22048_s3 + $0xa0] sm:$0xff]  }
 0x205   : > { %15002 = vmatprep.subr.bf16.mxu1 %v16701_v23 }
 0x208   : > { %15003 = vmatpush3.bf16.msra.mxu1 %v16701_v23 }
 0x209   : > { %15004 = vmatprep.subr.bf16.mxu1 %v16702_v15 }
 0x20b   : > { %14941 = vmatmul.mubr.msk.bf16.gmra.mrb[20].mxu1 %vm1825_vm1, %v17095_v13 }
 0x20c   : > { %14944 = vmatprep.mubr.msk.bf16.mxu1 %vm1825_vm1, %v17127_v57  ;;  %15005 = vmatpush3.bf16.msra.mxu1 %v16702_v15 }
 0x20d   : > { %15006 = vmatprep.subr.bf16.mxu1 %v16703_v21 }
 0x210   : > { %15007 = vmatpush3.bf16.msra.mxu1 %v16703_v21 }
 0x211   : > { %15072 = vmatprep.subr.bf16.mxu1 %v17975_v18 }
 0x213   : > { %14945 = vmatmul.mubr.msk.bf16.gmra.mrb[24].mxu1 %vm1825_vm1, %v17137_v4 }
 0x214   : > { %14948 = vmatprep.mubr.msk.bf16.mxu1 %vm1825_vm1, %v17163_v49 }
 0x21b   : > { %14949 = vmatmul.mubr.msk.bf16.gmra.mrb[28].mxu1 %vm1825_vm1, %v17168_v54 }
 0x21c   : > { %14952 = vmatprep.mubr.msk.bf16.mxu1 %vm1825_vm1, %v22373_v38 }
 0x223   : > { %14953 = vmatmul.mubr.msk.bf16.gmra.mrb[32].mxu1 %vm1825_vm1, %v22374_v16 }
 0x224   : > { %14956 = vmatprep.mubr.msk.bf16.mxu1 %vm1825_vm1, %v22379_v14 }
 0x22b   : > { %14957 = vmatmul.mubr.msk.bf16.gmra.mrb[36].mxu1 %vm1825_vm1, %v22380_v5 }
 0x22c   : > { %14960 = vmatprep.mubr.msk.bf16.mxu1 %vm1825_vm1, %v22385_v3 }
 0x233   : > { %14961 = vmatmul.mubr.msk.bf16.gmra.mrb[40].mxu1 %vm1825_vm1, %v22386_v10 }
 0x234   : > { %14964 = vmatprep.mubr.msk.bf16.mxu1 %vm1825_vm1, %v22391_v7 }
 0x23b   : > { %14965 = vmatmul.mubr.msk.bf16.gmra.mrb[44].mxu1 %vm1825_vm1, %v17769_v59 }
 0x23c   : > { %14968 = vmatprep.mubr.msk.bf16.mxu1 %vm1825_vm1, %v22393_v53 }
 0x23f   : > { %v18002_v31 = vpop.f32.mrb[112].mxu0 }
 0x240   : > { %22395 = vst [vmem:[#allocation18_spill] sm:$0xff] %v18002_v31  ;;  %v18004_v26 = vpop.f32.mrb[113].mxu0 }
 0x241   : > { %22396 = vst [vmem:[#allocation23_spill] sm:$0xff] %v18004_v26  ;;  %v18006_v40 = vpop.f32.mrb[114].mxu0 }
 0x242   : > { %22397 = vst [vmem:[#allocation25_spill] sm:$0xff] %v18006_v40  ;;  %v18008_v23 = vpop.f32.mrb[115].mxu0 }
 0x243   : > { %22398 = vst [vmem:[#allocation26_spill] sm:$0xff] %v18008_v23  ;;  %14969 = vmatmul.mubr.msk.bf16.gmra.mrb[48].mxu1 %vm1825_vm1, %v17338_v1 }
 0x244   : > { %14972 = vmatprep.mubr.msk.bf16.mxu1 %vm1825_vm1, %v17372_v32 }
 0x248   : > { %v18014_v15 = vpop.f32.mrb[116].mxu0 }
 0x249   : > { %22399 = vst [vmem:[#allocation27_spill] sm:$0xff] %v18014_v15  ;;  %v18016_v21 = vpop.f32.mrb[117].mxu0 }
 0x24a   : > { %22400 = vst [vmem:[#allocation24_spill] sm:$0xff] %v18016_v21  ;;  %v18018_v37 = vpop.f32.mrb[118].mxu0 }
 0x24b   : > { %22401 = vst [vmem:[#allocation30_spill] sm:$0xff] %v18018_v37  ;;  %v18020_v53 = vpop.f32.mrb[119].mxu0  ;;  %14973 = vmatmul.mubr.msk.bf16.gmra.mrb[52].mxu1 %vm1825_vm1, %v17378_v61 }
 0x24c   : > { %22402 = vst [vmem:[#allocation29_spill] sm:$0xff] %v18020_v53  ;;  %14976 = vmatprep.mubr.msk.bf16.mxu1 %vm1825_vm1, %v17408_v36 }
 0x250   : > { %v18026_v23 = vpop.f32.mrb[120].mxu0 }
 0x251   : > { %22403 = vst [vmem:[#allocation35_spill] sm:$0xff] %v18026_v23  ;;  %v18028_v40 = vpop.f32.mrb[121].mxu0 }
 0x252   : > { %22404 = vst [vmem:[#allocation33_spill] sm:$0xff] %v18028_v40  ;;  %v18030_v26 = vpop.f32.mrb[122].mxu0 }
 0x253   : > { %22405 = vst [vmem:[#allocation63_spill] sm:$0xff] %v18030_v26  ;;  %v18032_v31 = vpop.f32.mrb[123].mxu0  ;;  %14977 = vmatmul.mubr.msk.bf16.gmra.mrb[56].mxu1 %vm1825_vm1, %v17387_v11 }
 0x254   : > { %22406 = vst [vmem:[#allocation64_spill] sm:$0xff] %v18032_v31  ;;  %14980 = vmatprep.mubr.msk.bf16.mxu1 %vm1825_vm1, %v17425_v29 }
 0x258   : > { %v18038_v53 = vpop.f32.mrb[124].mxu0 }
 0x259   : > { %22407 = vst [vmem:[#allocation65_spill] sm:$0xff] %v18038_v53  ;;  %v18040_v37 = vpop.f32.mrb[125].mxu0 }
 0x25a   : > { %22408 = vst [vmem:[#allocation66_spill] sm:$0xff] %v18040_v37  ;;  %v18042_v21 = vpop.f32.mrb[126].mxu0 }
 0x25b   : > { %22409 = vst [vmem:[#allocation67_spill] sm:$0xff] %v18042_v21  ;;  %v18044_v15 = vpop.f32.mrb[127].mxu0  ;;  %14981 = vmatmul.mubr.msk.bf16.gmra.mrb[60].mxu1 %vm1825_vm1, %v17433_v28 }
 0x25c   : > { %22410 = vst [vmem:[#allocation68_spill] sm:$0xff] %v18044_v15  ;;  %14984 = vmatprep.mubr.msk.bf16.mxu1 %vm1825_vm1, %v17485_v2 }
 0x260   : > { %v18050_v31 = vpop.f32.mrb[64].mxu0 }
 0x261   : > { %22411 = vst [vmem:[#allocation69_spill] sm:$0xff] %v18050_v31  ;;  %v18052_v26 = vpop.f32.mrb[65].mxu0 }
 0x262   : > { %22412 = vst [vmem:[#allocation70_spill] sm:$0xff] %v18052_v26  ;;  %v18054_v40 = vpop.f32.mrb[66].mxu0 }
 0x263   : > { %22413 = vst [vmem:[#allocation71_spill] sm:$0xff] %v18054_v40  ;;  %v18056_v23 = vpop.f32.mrb[67].mxu0  ;;  %14985 = vmatmul.mubr.msk.bf16.gmra.mrb[0].mxu1 %vm1825_vm1, %v17492_v0 }
 0x264   : > { %22414 = vst [vmem:[#allocation72_spill] sm:$0xff] %v18056_v23  ;;  %14988 = vmatprep.mubr.msk.bf16.mxu1 %vm1825_vm1, %v17534_v6 }
 0x268   : > { %v18062_v15 = vpop.f32.mrb[68].mxu0 }
 0x269   : > { %22415 = vst [vmem:[#allocation73_spill] sm:$0xff] %v18062_v15  ;;  %v18064_v21 = vpop.f32.mrb[69].mxu0 }
 0x26a   : > { %22416 = vst [vmem:[#allocation74_spill] sm:$0xff] %v18064_v21  ;;  %v18066_v37 = vpop.f32.mrb[70].mxu0 }
 0x26b   : > { %22417 = vst [vmem:[#allocation75_spill] sm:$0xff] %v18066_v37  ;;  %v18068_v53 = vpop.f32.mrb[71].mxu0  ;;  %14989 = vmatmul.mubr.msk.bf16.gmra.mrb[4].mxu1 %vm1825_vm1, %v17546_v45 }
 0x26c   : > { %22418 = vst [vmem:[#allocation76_spill] sm:$0xff] %v18068_v53  ;;  %14992 = vmatprep.mubr.msk.bf16.mxu1 %vm1825_vm1, %v17570_v39 }
 0x270   : > { %v18074_v23 = vpop.f32.mrb[72].mxu0 }
 0x271   : > { %22419 = vst [vmem:[#allocation77_spill] sm:$0xff] %v18074_v23  ;;  %v18076_v40 = vpop.f32.mrb[73].mxu0 }
 0x272   : > { %22420 = vst [vmem:[#allocation78_spill] sm:$0xff] %v18076_v40  ;;  %v18078_v26 = vpop.f32.mrb[74].mxu0 }
 0x273   : > { %22421 = vst [vmem:[#allocation79_spill] sm:$0xff] %v18078_v26  ;;  %v18080_v31 = vpop.f32.mrb[75].mxu0  ;;  %14993 = vmatmul.mubr.msk.bf16.gmra.mrb[8].mxu1 %vm1825_vm1, %v17582_v25  ;;  %v22427_v26 = vld [vmem:[#allocation4_spill] sm:$0xff] }
 0x274   : > { %22422 = vst [vmem:[#allocation80_spill] sm:$0xff] %v18080_v31  ;;  %14996 = vmatprep.mubr.msk.bf16.mxu1 %vm1825_vm1, %v17612_v27 }
 0x278   : > { %v18086_v53 = vpop.f32.mrb[76].mxu0 }
 0x279   : > { %22423 = vst [vmem:[#allocation81_spill] sm:$0xff] %v18086_v53  ;;  %v18088_v37 = vpop.f32.mrb[77].mxu0  ;;  %v16705_v53 = vld [vmem:[%s22048_s3 + $0xa8] sm:$0xff]  }
 0x27a   : > { %22424 = vst [vmem:[#allocation82_spill] sm:$0xff] %v18088_v37  ;;  %v18090_v21 = vpop.f32.mrb[78].mxu0 }
 0x27b   : > { %22425 = vst [vmem:[#allocation83_spill] sm:$0xff] %v18090_v21  ;;  %v18092_v15 = vpop.f32.mrb[79].mxu0  ;;  %14997 = vmatmul.mubr.msk.bf16.gmra.mrb[12].mxu1 %vm1825_vm1, %v17784_v62  ;;  %v22432_v21 = vld [vmem:[#allocation5_spill] sm:$0xff] }
 0x27c   : > { %22426 = vst [vmem:[#allocation84_spill] sm:$0xff] %v18092_v15  ;;  %15008 = vmatprep.mubr.msk.bf16.mxu1 %vm1825_vm1, %v22427_v26  ;;  %v22433_v15 = vld [vmem:[#allocation6_spill] sm:$0xff]  ;;  %v16706_v26 = vld [vmem:[%s22048_s3 + $0xb0] sm:$0xff]  }
 0x280   : > { %v18098_v31 = vpop.f32.mrb[80].mxu0 }
 0x281   : > { %22428 = vst [vmem:[#allocation4_spill] sm:$0xff] %v18098_v31  ;;  %v18100_v40 = vpop.f32.mrb[81].mxu0 }
 0x282   : > { %22429 = vst [vmem:[#allocation85_spill] sm:$0xff] %v18100_v40  ;;  %v18105_v23 = vpop.f32.mrb[82].mxu0 }
 0x283   : > { %22430 = vst [vmem:[#allocation86_spill] sm:$0xff] %v18105_v23  ;;  %v18107_v37 = vpop.f32.mrb[83].mxu0  ;;  %15009 = vmatmul.mubr.msk.bf16.vlgmr.msra.gmra.mrb[16].mxu1 %vm1825_vm1, %v22432_v21  ;;  %v22439_v21 = vld [vmem:[#allocation10_spill] sm:$0xff] }
 0x284   : > { %22431 = vst [vmem:[#allocation87_spill] sm:$0xff] %v18107_v37  ;;  %15073 = vmatpush3.bf16.msra.mxu1 %v17975_v18  ;;  %15012 = vmatprep.mubr.msk.bf16.mxu1 %vm1825_vm1, %v22433_v15  ;;  %v16707_v37 = vld [vmem:[%s22048_s3 + $0xb8] sm:$0xff]   ;;  %v22438_v15 = vld [vmem:[#allocation7_spill] sm:$0xff] }
 0x285   : > { %15074 = vmatprep.subr.bf16.mxu1 %v16705_v53 }
 0x288   : > { %v18117_v40 = vpop.f32.mrb[84].mxu0  ;;  %15075 = vmatpush3.bf16.msra.mxu1 %v16705_v53  ;;  %v18135_v53 = vld [vmem:[%s22048_s3 + $0xc0] sm:$0xff]  }
 0x289   : > { %22434 = vst [vmem:[#allocation88_spill] sm:$0xff] %v18117_v40  ;;  %v18119_v31 = vpop.f32.mrb[85].mxu0  ;;  %15076 = vmatprep.subr.bf16.mxu1 %v16706_v26 }
 0x28a   : > { %22435 = vst [vmem:[#allocation89_spill] sm:$0xff] %v18119_v31  ;;  %v18124_v23 = vpop.f32.mrb[86].mxu0 }
 0x28b   : > { %22436 = vst [vmem:[#allocation90_spill] sm:$0xff] %v18124_v23  ;;  %v18126_v18 = vpop.f32.mrb[87].mxu0  ;;  %15013 = vmatmul.mubr.msk.bf16.gmra.mrb[20].mxu1 %vm1825_vm1, %v22438_v15  ;;  %v22444_v15 = vld [vmem:[#allocation11_spill] sm:$0xff] }
 0x28c   : > { %22437 = vst [vmem:[#allocation91_spill] sm:$0xff] %v18126_v18  ;;  %15016 = vmatprep.mubr.msk.bf16.mxu1 %vm1825_vm1, %v22439_v21  ;;  %15077 = vmatpush3.bf16.msra.mxu1 %v16706_v26  ;;  %v22445_v26 = vld [vmem:[#allocation15_spill] sm:$0xff] }
 0x28d   : > { %15078 = vmatprep.subr.bf16.mxu1 %v16707_v37 }
 0x290   : > { %v18137_v31 = vpop.f32.mrb[88].mxu0  ;;  %15079 = vmatpush3.bf16.msra.mxu1 %v16707_v37 }
 0x291   : > { %22440 = vst [vmem:[#allocation92_spill] sm:$0xff] %v18137_v31  ;;  %v18139_v40 = vpop.f32.mrb[89].mxu0  ;;  %15144 = vmatprep.subr.bf16.mxu1 %v18135_v53 }
 0x292   : > { %22441 = vst [vmem:[#allocation93_spill] sm:$0xff] %v18139_v40  ;;  %v18142_v18 = vpop.f32.mrb[90].mxu0  ;;  %v22450_v40 = vld [vmem:[#allocation16_spill] sm:$0xff] }
 0x293   : > { %22442 = vst [vmem:[#allocation94_spill] sm:$0xff] %v18142_v18  ;;  %v18144_v23 = vpop.f32.mrb[91].mxu0  ;;  %15017 = vmatmul.mubr.msk.bf16.gmra.mrb[24].mxu1 %vm1825_vm1, %v22444_v15  ;;  %v22451_v18 = vld [vmem:[#allocation20_spill] sm:$0xff] }
 0x294   : > { %22443 = vst [vmem:[#allocation95_spill] sm:$0xff] %v18144_v23  ;;  %15020 = vmatprep.mubr.msk.bf16.mxu1 %vm1825_vm1, %v22445_v26 }
 0x298   : > { %v18150_v21 = vpop.f32.mrb[92].mxu0 }
 0x299   : > { %22446 = vst [vmem:[#allocation96_spill] sm:$0xff] %v18150_v21  ;;  %v18152_v27 = vpop.f32.mrb[93].mxu0  ;;  %v22456_v21 = vld [vmem:[#allocation21_spill] sm:$0xff] }
 0x29a   : > { %22447 = vst [vmem:[#allocation97_spill] sm:$0xff] %v18152_v27  ;;  %v18154_v31 = vpop.f32.mrb[94].mxu0 }
 0x29b   : > { %22448 = vst [vmem:[#allocation98_spill] sm:$0xff] %v18154_v31  ;;  %v18156_v37 = vpop.f32.mrb[95].mxu0  ;;  %15021 = vmatmul.mubr.msk.bf16.gmra.mrb[28].mxu1 %vm1825_vm1, %v22450_v40  ;;  %v22457_v31 = vld [vmem:[#allocation28_spill] sm:$0xff] }
 0x29c   : > { %22449 = vst [vmem:[#allocation99_spill] sm:$0xff] %v18156_v37  ;;  %15024 = vmatprep.mubr.msk.bf16.mxu1 %vm1825_vm1, %v22451_v18 }
 0x2a0   : > { %v18162_v23 = vpop.f32.mrb[96].mxu0 }
 0x2a1   : > { %22452 = vst [vmem:[#allocation100_spill] sm:$0xff] %v18162_v23  ;;  %v18164_v15 = vpop.f32.mrb[97].mxu0  ;;  %v22462_v23 = vld [vmem:[#allocation31_spill] sm:$0xff] }
 0x2a2   : > { %22453 = vst [vmem:[#allocation101_spill] sm:$0xff] %v18164_v15  ;;  %v18166_v25 = vpop.f32.mrb[98].mxu0 }
 0x2a3   : > { %22454 = vst [vmem:[#allocation102_spill] sm:$0xff] %v18166_v25  ;;  %v18168_v26 = vpop.f32.mrb[99].mxu0  ;;  %15025 = vmatmul.mubr.msk.bf16.gmra.mrb[32].mxu1 %vm1825_vm1, %v22456_v21  ;;  %v22463_v25 = vld [vmem:[#allocation32_spill] sm:$0xff] }
 0x2a4   : > { %22455 = vst [vmem:[#allocation103_spill] sm:$0xff] %v18168_v26  ;;  %15028 = vmatprep.mubr.msk.bf16.mxu1 %vm1825_vm1, %v22457_v31  ;;  %v3610_v26 = vshll.u32 %v17769_v59, 16 }
 0x2a8   : > { %v18174_v37 = vpop.f32.mrb[100].mxu0 }
 0x2a9   : > { %22458 = vst [vmem:[#allocation104_spill] sm:$0xff] %v18174_v37  ;;  %v18176_v27 = vpop.f32.mrb[101].mxu0  ;;  %v3612_v37 = vrot.slane %v3610_v26, 1 }
 0x2aa   : > { %22459 = vst [vmem:[#allocation105_spill] sm:$0xff] %v18176_v27  ;;  %v18178_v40 = vpop.f32.mrb[102].mxu0 }
 0x2ab   : > { %22460 = vst [vmem:[#allocation106_spill] sm:$0xff] %v18178_v40  ;;  %v18180_v18 = vpop.f32.mrb[103].mxu0  ;;  %15029 = vmatmul.mubr.msk.bf16.gmra.mrb[36].mxu1 %vm1825_vm1, %v22462_v23  ;;  %v22468_v40 = vld [vmem:[#allocation34_spill] sm:$0xff]  ;;  %v3608_v23 = vshrl.u32 %v17769_v59, 16 }
 0x2ac   : > { %22461 = vst [vmem:[#allocation107_spill] sm:$0xff] %v18180_v18  ;;  %15032 = vmatprep.mubr.msk.bf16.mxu1 %vm1825_vm1, %v22463_v25  ;;  %v22469_v18 = vld [vmem:[#allocation36_spill] sm:$0xff]  ;;  %v3615_v25 = vshll.u32 %v17662_v30, 16  ;;  %v22475_v30 = vld [vmem:[#allocation38_spill] sm:$0xff] }
 0x2ad   : > { %v3613_v39 = vor.u32 %v3612_v37, %v3608_v23  ;;  %v22476_v23 = vld [vmem:[#allocation39_spill] sm:$0xff]  ;;  %v22478_v37 = vld [vmem:[#allocation41_spill] sm:$0xff] }
 0x2b0   : > { %v18187_v15 = vpop.f32.mrb[104].mxu0 }
 0x2b1   : > { %22464 = vst [vmem:[#allocation108_spill] sm:$0xff] %v18187_v15  ;;  %v18189_v21 = vpop.f32.mrb[105].mxu0  ;;  %v3617_v15 = vrot.slane %v3615_v25, 1  ;;  %v22477_v25 = vld [vmem:[#allocation40_spill] sm:$0xff] }
 0x2b2   : > { %22465 = vst [vmem:[#allocation109_spill] sm:$0xff] %v18189_v21  ;;  %v18191_v31 = vpop.f32.mrb[106].mxu0 }
 0x2b3   : > { %22466 = vst [vmem:[#allocation110_spill] sm:$0xff] %v18191_v31  ;;  %v18193_v27 = vpop.f32.mrb[107].mxu0  ;;  %15033 = vmatmul.mubr.msk.bf16.gmra.mrb[40].mxu1 %vm1825_vm1, %v22468_v40  ;;  %v18208_v26 = vsel %vm1423_vm5, %v3613_v39, %v3617_v15  ;;  %v22479_v39 = vld [vmem:[#allocation42_spill] sm:$0xff]  ;;  %v22480_v15 = vld [vmem:[#allocation43_spill] sm:$0xff] }
 0x2b4   : > { %22467 = vst [vmem:[#allocation111_spill] sm:$0xff] %v18193_v27  ;;  %15036 = vmatprep.mubr.msk.bf16.mxu1 %vm1825_vm1, %v22469_v18  ;;  %v22474_v18 = vld [vmem:[#allocation37_spill] sm:$0xff] }
 0x2b8   : > { %v18201_v45 = vpop.f32.mrb[108].mxu0 }
 0x2b9   : > { %22470 = vst [vmem:[#allocation34_spill] sm:$0xff] %v18201_v45  ;;  %v18203_v21 = vpop.f32.mrb[109].mxu0  ;;  %v22485_v45 = vld [vmem:[#allocation53_spill] sm:$0xff] }
 0x2ba   : > { %22471 = vst [vmem:[#allocation112_spill] sm:$0xff] %v18203_v21  ;;  %v18205_v31 = vpop.f32.mrb[110].mxu0  ;;  %v22484_v21 = vld [vmem:[#allocation51_spill] sm:$0xff] }
 0x2bb   : > { %22472 = vst [vmem:[#allocation113_spill] sm:$0xff] %v18205_v31  ;;  %v18210_v27 = vpop.f32.mrb[111].mxu0  ;;  %15037 = vmatmul.mubr.msk.bf16.gmra.mrb[44].mxu1 %vm1825_vm1, %v18208_v26  ;;  %v22483_v31 = vld [vmem:[#allocation50_spill] sm:$0xff] }
 0x2bc   : > { %22473 = vst [vmem:[#allocation114_spill] sm:$0xff] %v18210_v27  ;;  %15040 = vmatprep.mubr.msk.bf16.mxu1 %vm1825_vm1, %v22474_v18  ;;  %v22481_v27 = vld [vmem:[#allocation44_spill] sm:$0xff]  ;;  %v22482_v18 = vld [vmem:[#allocation47_spill] sm:$0xff] }
 0x2c3   : > { %15041 = vmatmul.mubr.msk.bf16.gmra.mrb[48].mxu1 %vm1825_vm1, %v22475_v30 }
 0x2c4   : > { %15044 = vmatprep.mubr.msk.bf16.mxu1 %vm1825_vm1, %v22476_v23 }
 0x2cb   : > { %15045 = vmatmul.mubr.msk.bf16.gmra.mrb[52].mxu1 %vm1825_vm1, %v22477_v25 }
 0x2cc   : > { %15048 = vmatprep.mubr.msk.bf16.mxu1 %vm1825_vm1, %v22478_v37  ;;  %v22486_v37 = vld [vmem:[#allocation54_spill] sm:$0xff] }
 0x2d3   : > { %15049 = vmatmul.mubr.msk.bf16.gmra.mrb[56].mxu1 %vm1825_vm1, %v22479_v39 }
 0x2d4   : > { %15052 = vmatprep.mubr.msk.bf16.mxu1 %vm1825_vm1, %v22480_v15  ;;  %v3621_v15 = vshll.u32 %v17784_v62, 16 }
 0x2d6   : > { %v3623_v39 = vrot.slane %v3621_v15, 1  ;;  %v16709_v15 = vld [vmem:[%s22048_s3 + $0xc8] sm:$0xff]  }
 0x2db   : > { %15053 = vmatmul.mubr.msk.bf16.gmra.mrb[60].mxu1 %vm1825_vm1, %v22481_v27 }
 0x2dc   : > { %15056 = vmatprep.mubr.msk.bf16.mxu1 %vm1825_vm1, %v17537_v24  ;;  %v3626_v24 = vshll.u32 %v17774_v50, 16  ;;  %v16712_v50 = vld [vmem:[%s22048_s3 + $0xe0] sm:$0xff]  }
 0x2de   : > { %v3628_v27 = vrot.slane %v3626_v24, 1  ;;  %v16710_v24 = vld [vmem:[%s22048_s3 + $0xd0] sm:$0xff]  }
 0x2e3   : > { %15057 = vmatmul.mubr.msk.bf16.gmra.mrb[0].mxu1 %vm1825_vm1, %v22482_v18  ;;  %v3619_v18 = vshrl.u32 %v17784_v62, 16 }
 0x2e4   : > { %15060 = vmatprep.mubr.msk.bf16.mxu1 %vm1825_vm1, %v22483_v31 }
 0x2e5   : > { %v3624_v31 = vor.u32 %v3623_v39, %v3619_v18  ;;  %v22491_v39 = vld [vmem:[#allocation13_spill] sm:$0xff]  ;;  %v22492_v18 = vld [vmem:[#allocation14_spill] sm:$0xff] }
 0x2eb   : > { %15061 = vmatmul.mubr.msk.bf16.gmra.mrb[4].mxu1 %vm1825_vm1, %v22484_v21  ;;  %v18248_v21 = vsel %vm1423_vm5, %v3624_v31, %v3628_v27  ;;  %v16711_v27 = vld [vmem:[%s22048_s3 + $0xd8] sm:$0xff]   ;;  %vm19316_vm5 = vmor %vm8738_vm2, %vm8739_vm3 }
 0x2ec   : > { %15064 = vmatprep.mubr.msk.bf16.mxu1 %vm1825_vm1, %v22485_v45  ;;  %v22489_v31 = vld [vmem:[#allocation9_spill] sm:$0xff] }
 0x2f3   : > { %15065 = vmatmul.mubr.msk.bf16.gmra.mrb[8].mxu1 %vm1825_vm1, %v22486_v37 }
 0x2f4   : > { %15068 = vmatprep.mubr.msk.bf16.mxu1 %vm1825_vm1, %v17645_v46  ;;  %v22487_v46 = vld [vmem:[#allocation56_spill] sm:$0xff] }
 0x2fb   : > { %15069 = vmatmul.mubr.msk.bf16.gmra.mrb[12].mxu1 %vm1825_vm1, %v18248_v21 }
 0x2fc   : > { %15080 = vmatprep.mubr.msk.bf16.mxu1 %vm1825_vm1, %v17648_v56  ;;  %v22488_v56 = vld [vmem:[#allocation57_spill] sm:$0xff] }
 0x303   : > { %15081 = vmatmul.mubr.msk.bf16.vlgmr.msra.gmra.mrb[16].mxu1 %vm1825_vm1, %v22487_v46 }
 0x304   : > { %15145 = vmatpush3.bf16.msra.mxu1 %v18135_v53  ;;  %15084 = vmatprep.mubr.msk.bf16.mxu1 %vm1825_vm1, %v17673_v60  ;;  %v22490_v53 = vld [vmem:[#allocation8_spill] sm:$0xff] }
 0x305   : > { %15146 = vmatprep.subr.bf16.mxu1 %v16709_v15 }
 0x308   : > { %15147 = vmatpush3.bf16.msra.mxu1 %v16709_v15  ;;  %v22493_v15 = vld [vmem:[#allocation12_spill] sm:$0xff] }
 0x309   : > { %15148 = vmatprep.subr.bf16.mxu1 %v16710_v24 }
 0x30b   : > { %15085 = vmatmul.mubr.msk.bf16.gmra.mrb[20].mxu1 %vm1825_vm1, %v22488_v56 }
 0x30c   : > { %15088 = vmatprep.mubr.msk.bf16.mxu1 %vm1825_vm1, %v17789_v44  ;;  %15149 = vmatpush3.bf16.msra.mxu1 %v16710_v24  ;;  %v22494_v24 = vld [vmem:[#allocation17_spill] sm:$0xff] }
 0x30d   : > { %15150 = vmatprep.subr.bf16.mxu1 %v16711_v27 }
 0x310   : > { %15151 = vmatpush3.bf16.msra.mxu1 %v16711_v27  ;;  %v22495_v27 = vld [vmem:[#allocation19_spill] sm:$0xff] }
 0x311   : > { %15216 = vmatprep.subr.bf16.mxu1 %v16712_v50 }
 0x313   : > { %15089 = vmatmul.mubr.msk.bf16.gmra.mrb[24].mxu1 %vm1825_vm1, %v17797_v48  ;;  %v22496_v48 = vld [vmem:[#allocation22_spill] sm:$0xff] }
 0x314   : > { %15092 = vmatprep.mubr.msk.bf16.mxu1 %vm1825_vm1, %v22489_v31 }
 0x31b   : > { %15093 = vmatmul.mubr.msk.bf16.gmra.mrb[28].mxu1 %vm1825_vm1, %v22490_v53  ;;  %v22497_v53 = vld [vmem:[#allocation61_spill] sm:$0xff] }
 0x31c   : > { %15096 = vmatprep.mubr.msk.bf16.mxu1 %vm1825_vm1, %v22491_v39 }
 0x323   : > { %15097 = vmatmul.mubr.msk.bf16.gmra.mrb[32].mxu1 %vm1825_vm1, %v22492_v18 }
 0x324   : > { %15100 = vmatprep.mubr.msk.bf16.mxu1 %vm1825_vm1, %v22493_v15 }
 0x32b   : > { %15101 = vmatmul.mubr.msk.bf16.gmra.mrb[36].mxu1 %vm1825_vm1, %v22494_v24 }
 0x32c   : > { %15104 = vmatprep.mubr.msk.bf16.mxu1 %vm1825_vm1, %v22495_v27 }
 0x333   : > { %15105 = vmatmul.mubr.msk.bf16.gmra.mrb[40].mxu1 %vm1825_vm1, %v22496_v48 }
 0x334   : > { %15108 = vmatprep.mubr.msk.bf16.mxu1 %vm1825_vm1, %v17890_v51 }
 0x33b   : > { %15109 = vmatmul.mubr.msk.bf16.gmra.mrb[44].mxu1 %vm1825_vm1, %v22497_v53 }
 0x33c   : > { %15112 = vmatprep.mubr.msk.bf16.mxu1 %vm1825_vm1, %v17903_v17  ;;  %v22498_v17 = vld [vmem:[#allocation62_spill] sm:$0xff] }
 0x343   : > { %15113 = vmatmul.mubr.msk.bf16.gmra.mrb[48].mxu1 %vm1825_vm1, %v17692_v34 }
 0x344   : > { %15116 = vmatprep.mubr.msk.bf16.mxu1 %vm1825_vm1, %v17698_v35 }
 0x34b   : > { %15117 = vmatmul.mubr.msk.bf16.gmra.mrb[52].mxu1 %vm1825_vm1, %v17707_v12 }
 0x34c   : > { %15120 = vmatprep.mubr.msk.bf16.mxu1 %vm1825_vm1, %v17710_v42 }
 0x353   : > { %15121 = vmatmul.mubr.msk.bf16.gmra.mrb[56].mxu1 %vm1825_vm1, %v17717_v41 }
 0x354   : > { %15124 = vmatprep.mubr.msk.bf16.mxu1 %vm1825_vm1, %v17725_v33 }
 0x35b   : > { %15125 = vmatmul.mubr.msk.bf16.gmra.mrb[60].mxu1 %vm1825_vm1, %v17733_v22 }
 0x35c   : > { %15128 = vmatprep.mubr.msk.bf16.mxu1 %vm1825_vm1, %v17736_v20 }
 0x363   : > { %15129 = vmatmul.mubr.msk.bf16.gmra.mrb[0].mxu1 %vm1825_vm1, %v17748_v55 }
 0x364   : > { %15132 = vmatprep.mubr.msk.bf16.mxu1 %vm1825_vm1, %v17754_v8  ;;  %v16713_v8 = vld [vmem:[%s22048_s3 + $0xe8] sm:$0xff]  }
 0x36b   : > { %15133 = vmatmul.mubr.msk.bf16.gmra.mrb[4].mxu1 %vm1825_vm1, %v17760_v9 }
 0x36c   : > { %15136 = vmatprep.mubr.msk.bf16.mxu1 %vm1825_vm1, %v17763_v47 }
 0x373   : > { %15137 = vmatmul.mubr.msk.bf16.gmra.mrb[8].mxu1 %vm1825_vm1, %v17778_v58 }
 0x374   : > { %15140 = vmatprep.mubr.msk.bf16.mxu1 %vm1825_vm1, %v17792_v52  ;;  %v16714_v52 = vld [vmem:[%s22048_s3 + $0xf0] sm:$0xff]  }
 0x37b   : > { %15141 = vmatmul.mubr.msk.bf16.gmra.mrb[12].mxu1 %vm1825_vm1, %v22498_v17 }
 0x37c   : > { %15152 = vmatprep.mubr.msk.bf16.mxu1 %vm1825_vm1, %v17056_v19  ;;  %v16715_v19 = vld [vmem:[%s22048_s3 + $0xf8] sm:$0xff]  }
 0x383   : > { %15153 = vmatmul.mubr.msk.bf16.vlgmr.msra.gmra.mrb[16].mxu1 %vm1825_vm1, %v17081_v63  ;;  %v16716_v63 = vld [vmem:[%s22048_s3 + $0x100] sm:$0xff]  }
 0x384   : > { %15217 = vmatpush3.bf16.msra.mxu1 %v16712_v50  ;;  %15156 = vmatprep.mubr.msk.bf16.mxu1 %vm1825_vm1, %v17095_v13  ;;  %v22500_v13 = vld [vmem:[#allocation48_spill] sm:$0xff] }
 0x385   : > { %15218 = vmatprep.subr.bf16.mxu1 %v16713_v8 }
 0x388   : > { %15219 = vmatpush3.bf16.msra.mxu1 %v16713_v8  ;;  %v22512_v8 = vld [vmem:[#allocation28_spill] sm:$0xff] }
 0x389   : > { %15220 = vmatprep.subr.bf16.mxu1 %v16714_v52 }
 0x38b   : > { %15157 = vmatmul.mubr.msk.bf16.gmra.mrb[20].mxu1 %vm1825_vm1, %v17127_v57  ;;  %v22501_v57 = vld [vmem:[#allocation49_spill] sm:$0xff] }
 0x38c   : > { %15160 = vmatprep.mubr.msk.bf16.mxu1 %vm1825_vm1, %v17137_v4  ;;  %15221 = vmatpush3.bf16.msra.mxu1 %v16714_v52  ;;  %v22502_v4 = vld [vmem:[#allocation52_spill] sm:$0xff] }
 0x38d   : > { %15222 = vmatprep.subr.bf16.mxu1 %v16715_v19  ;;  %v22515_v52 = vld [vmem:[#allocation36_spill] sm:$0xff] }
 0x390   : > { %15223 = vmatpush3.bf16.msra.mxu1 %v16715_v19 }
 0x391   : > { %15288 = vmatprep.subr.bf16.mxu1 %v16716_v63 }
 0x393   : > { %15161 = vmatmul.mubr.msk.bf16.gmra.mrb[24].mxu1 %vm1825_vm1, %v17163_v49  ;;  %v22503_v49 = vld [vmem:[#allocation5_spill] sm:$0xff] }
 0x394   : > { %15164 = vmatprep.mubr.msk.bf16.mxu1 %vm1825_vm1, %v17168_v54  ;;  %v16717_v54 = vld [vmem:[%s22048_s3 + $0x108] sm:$0xff]  }
 0x39b   : > { %15165 = vmatmul.mubr.msk.bf16.gmra.mrb[28].mxu1 %vm1825_vm1, %v22373_v38  ;;  %v22516_v38 = vld [vmem:[#allocation2_spill] sm:$0xff] }
 0x39c   : > { %15168 = vmatprep.mubr.msk.bf16.mxu1 %vm1825_vm1, %v22374_v16  ;;  %v22517_v16 = vld [vmem:[#allocation41_spill] sm:$0xff] }
 0x3a3   : > { %15169 = vmatmul.mubr.msk.bf16.gmra.mrb[32].mxu1 %vm1825_vm1, %v22379_v14  ;;  %v22519_v14 = vld [vmem:[#allocation43_spill] sm:$0xff] }
 0x3a4   : > { %15172 = vmatprep.mubr.msk.bf16.mxu1 %vm1825_vm1, %v22380_v5  ;;  %v22499_v5 = vld [vmem:[#allocation46_spill] sm:$0xff] }
 0x3ab   : > { %15173 = vmatmul.mubr.msk.bf16.gmra.mrb[36].mxu1 %vm1825_vm1, %v22385_v3  ;;  %v22520_v3 = vld [vmem:[#allocation44_spill] sm:$0xff] }
 0x3ac   : > { %15176 = vmatprep.mubr.msk.bf16.mxu1 %vm1825_vm1, %v22386_v10  ;;  %v22518_v10 = vld [vmem:[#allocation42_spill] sm:$0xff] }
 0x3b3   : > { %15177 = vmatmul.mubr.msk.bf16.gmra.mrb[40].mxu1 %vm1825_vm1, %v22391_v7  ;;  %v22521_v7 = vld [vmem:[#allocation45_spill] sm:$0xff] }
 0x3b4   : > { %15180 = vmatprep.mubr.msk.bf16.mxu1 %vm1825_vm1, %v17769_v59  ;;  %v22513_v59 = vld [vmem:[#allocation31_spill] sm:$0xff] }
 0x3bb   : > { %15181 = vmatmul.mubr.bf16.gmra.mrb[44].mxu1 %v22361_v43 }
 0x3bc   : > { %15184 = vmatprep.mubr.msk.bf16.mxu1 %vm1825_vm1, %v17338_v1  ;;  %v22504_v1 = vld [vmem:[#allocation6_spill] sm:$0xff] }
 0x3c3   : > { %15185 = vmatmul.mubr.msk.bf16.gmra.mrb[48].mxu1 %vm1825_vm1, %v17372_v32  ;;  %v22505_v32 = vld [vmem:[#allocation7_spill] sm:$0xff] }
 0x3c4   : > { %15188 = vmatprep.mubr.msk.bf16.mxu1 %vm1825_vm1, %v17378_v61  ;;  %v16718_v61 = vld [vmem:[%s22048_s3 + $0x110] sm:$0xff]  }
 0x3cb   : > { %15189 = vmatmul.mubr.msk.bf16.gmra.mrb[52].mxu1 %vm1825_vm1, %v17408_v36  ;;  %v22506_v36 = vld [vmem:[#allocation10_spill] sm:$0xff] }
 0x3cc   : > { %15192 = vmatprep.mubr.msk.bf16.mxu1 %vm1825_vm1, %v17387_v11  ;;  %v16719_v11 = vld [vmem:[%s22048_s3 + $0x118] sm:$0xff]  }
 0x3d3   : > { %15193 = vmatmul.mubr.msk.bf16.gmra.mrb[56].mxu1 %vm1825_vm1, %v17425_v29  ;;  %v22507_v29 = vld [vmem:[#allocation11_spill] sm:$0xff] }
 0x3d4   : > { %15196 = vmatprep.mubr.msk.bf16.mxu1 %vm1825_vm1, %v17433_v28  ;;  %v22508_v28 = vld [vmem:[#allocation15_spill] sm:$0xff] }
 0x3db   : > { %15197 = vmatmul.mubr.msk.bf16.gmra.mrb[60].mxu1 %vm1825_vm1, %v17485_v2  ;;  %v22509_v2 = vld [vmem:[#allocation16_spill] sm:$0xff] }
 0x3dc   : > { %15200 = vmatprep.mubr.msk.bf16.mxu1 %vm1825_vm1, %v17492_v0  ;;  %v22510_v0 = vld [vmem:[#allocation20_spill] sm:$0xff] }
 0x3e3   : > { %15201 = vmatmul.mubr.msk.bf16.gmra.mrb[0].mxu1 %vm1825_vm1, %v17534_v6  ;;  %v22511_v6 = vld [vmem:[#allocation21_spill] sm:$0xff] }
 0x3e4   : > { %15204 = vmatprep.mubr.msk.bf16.mxu1 %vm1825_vm1, %v22499_v5 }
 0x3eb   : > { %15205 = vmatmul.mubr.msk.bf16.gmra.mrb[4].mxu1 %vm1825_vm1, %v22500_v13 }
 0x3ec   : > { %15208 = vmatprep.mubr.msk.bf16.mxu1 %vm1825_vm1, %v22501_v57 }
 0x3f3   : > { %15209 = vmatmul.mubr.msk.bf16.gmra.mrb[8].mxu1 %vm1825_vm1, %v22502_v4 }
 0x3f4   : > { %15212 = vmatprep.mubr.msk.bf16.mxu1 %vm1825_vm1, %v17784_v62  ;;  %v22514_v62 = vld [vmem:[#allocation32_spill] sm:$0xff] }
 0x3fb   : > { %15213 = vmatmul.mubr.bf16.gmra.mrb[12].mxu1 %v22361_v43 }
 0x3fc   : > { %15224 = vmatprep.mubr.msk.bf16.mxu1 %vm1825_vm1, %v22503_v49  ;;  %v22535_v49 = vld [vmem:[#allocation74_spill] sm:$0xff] }
 0x403   : > { %15225 = vmatmul.mubr.msk.bf16.vlgmr.msra.gmra.mrb[16].mxu1 %vm1825_vm1, %v22504_v1 }
 0x404   : > { %15289 = vmatpush3.bf16.msra.mxu1 %v16716_v63  ;;  %15228 = vmatprep.mubr.msk.bf16.mxu1 %vm1825_vm1, %v22505_v32  ;;  %v22534_v63 = vld [vmem:[#allocation73_spill] sm:$0xff] }
 0x405   : > { %15290 = vmatprep.subr.bf16.mxu1 %v16717_v54 }
 0x408   : > { %15291 = vmatpush3.bf16.msra.mxu1 %v16717_v54 }
 0x409   : > { %15292 = vmatprep.subr.bf16.mxu1 %v16718_v61 }
 0x40b   : > { %15229 = vmatmul.mubr.msk.bf16.gmra.mrb[20].mxu1 %vm1825_vm1, %v22506_v36 }
 0x40c   : > { %15232 = vmatprep.mubr.msk.bf16.mxu1 %vm1825_vm1, %v22507_v29  ;;  %15293 = vmatpush3.bf16.msra.mxu1 %v16718_v61  ;;  %v22536_v61 = vld [vmem:[#allocation75_spill] sm:$0xff] }
 0x40d   : > { %15294 = vmatprep.subr.bf16.mxu1 %v16719_v11 }
 0x410   : > { %15295 = vmatpush3.bf16.msra.mxu1 %v16719_v11 }
 0x413   : > { %15233 = vmatmul.mubr.msk.bf16.gmra.mrb[24].mxu1 %vm1825_vm1, %v22508_v28  ;;  %v22537_v28 = vld [vmem:[#allocation76_spill] sm:$0xff] }
 0x414   : > { %15236 = vmatprep.mubr.msk.bf16.mxu1 %vm1825_vm1, %v22509_v2 }
 0x41b   : > { %15237 = vmatmul.mubr.msk.bf16.gmra.mrb[28].mxu1 %vm1825_vm1, %v22510_v0 }
 0x41c   : > { %15240 = vmatprep.mubr.msk.bf16.mxu1 %vm1825_vm1, %v22511_v6 }
 0x423   : > { %15241 = vmatmul.mubr.msk.bf16.gmra.mrb[32].mxu1 %vm1825_vm1, %v22512_v8 }
 0x424   : > { %15244 = vmatprep.mubr.msk.bf16.mxu1 %vm1825_vm1, %v22513_v59 }
 0x42b   : > { %15245 = vmatmul.mubr.msk.bf16.gmra.mrb[36].mxu1 %vm1825_vm1, %v22514_v62 }
 0x42c   : > { %15248 = vmatprep.mubr.msk.bf16.mxu1 %vm1825_vm1, %v22468_v40  ;;  %v22522_v40 = vld [vmem:[#allocation47_spill] sm:$0xff] }
 0x433   : > { %15249 = vmatmul.mubr.msk.bf16.gmra.mrb[40].mxu1 %vm1825_vm1, %v22515_v52 }
 0x434   : > { %15252 = vmatprep.mubr.msk.bf16.mxu1 %vm1825_vm1, %v18208_v26  ;;  %v22523_v26 = vld [vmem:[#allocation50_spill] sm:$0xff] }
 0x43b   : > { %15253 = vmatmul.mubr.msk.bf16.gmra.mrb[44].mxu1 %vm1825_vm1, %v22516_v38 }
 0x43c   : > { %15256 = vmatprep.mubr.msk.bf16.mxu1 %vm1825_vm1, %v22475_v30  ;;  %v22524_v30 = vld [vmem:[#allocation51_spill] sm:$0xff] }
 0x443   : > { %15257 = vmatmul.mubr.msk.bf16.gmra.mrb[48].mxu1 %vm1825_vm1, %v22476_v23  ;;  %v22525_v23 = vld [vmem:[#allocation55_spill] sm:$0xff] }
 0x444   : > { %15260 = vmatprep.mubr.msk.bf16.mxu1 %vm1825_vm1, %v22477_v25 }
 0x44b   : > { %15261 = vmatmul.mubr.msk.bf16.gmra.mrb[52].mxu1 %vm1825_vm1, %v22517_v16 }
 0x44c   : > { %15264 = vmatprep.mubr.msk.bf16.mxu1 %vm1825_vm1, %v22518_v10 }
 0x453   : > { %15265 = vmatmul.mubr.msk.bf16.gmra.mrb[56].mxu1 %vm1825_vm1, %v22519_v14 }
 0x454   : > { %15268 = vmatprep.mubr.msk.bf16.mxu1 %vm1825_vm1, %v22520_v3 }
 0x45b   : > { %15269 = vmatmul.mubr.msk.bf16.gmra.mrb[60].mxu1 %vm1825_vm1, %v22521_v7 }
 0x45c   : > { %15272 = vmatprep.mubr.msk.bf16.mxu1 %vm1825_vm1, %v22522_v40 }
 0x463   : > { %15273 = vmatmul.mubr.msk.bf16.gmra.mrb[0].mxu1 %vm1825_vm1, %v22523_v26 }
 0x464   : > { %15276 = vmatprep.mubr.msk.bf16.mxu1 %vm1825_vm1, %v22524_v30  ;;  %v22538_v30 = vld [vmem:[#allocation77_spill] sm:$0xff] }
 0x46b   : > { %15277 = vmatmul.mubr.msk.bf16.gmra.mrb[4].mxu1 %vm1825_vm1, %v22485_v45  ;;  %v22526_v45 = vld [vmem:[#allocation60_spill] sm:$0xff] }
 0x46c   : > { %15280 = vmatprep.mubr.msk.bf16.mxu1 %vm1825_vm1, %v22486_v37  ;;  %v22533_v37 = vld [vmem:[#allocation72_spill] sm:$0xff] }
 0x473   : > { %15281 = vmatmul.mubr.msk.bf16.gmra.mrb[8].mxu1 %vm1825_vm1, %v22525_v23 }
 0x474   : > { %15284 = vmatprep.mubr.msk.bf16.mxu1 %vm1825_vm1, %v18248_v21  ;;  %v22527_v21 = vld [vmem:[#allocation8_spill] sm:$0xff] }
 0x47b   : > { %15285 = vmatmul.mubr.msk.bf16.gmra.mrb[12].mxu1 %vm1825_vm1, %v22516_v38 }
 0x47c   : > { %15296 = vmatprep.mubr.msk.bf16.mxu1 %vm1825_vm1, %v22487_v46  ;;  %v22528_v46 = vld [vmem:[#allocation58_spill] sm:$0xff] }
 0x483   : > { %15297 = vmatmul.mubr.msk.bf16.vlgmr.msra.gmra.mrb[16].mxu1 %vm1825_vm1, %v17673_v60  ;;  %v22529_v60 = vld [vmem:[#allocation59_spill] sm:$0xff] }
 0x484   : > { %15300 = vmatprep.mubr.msk.bf16.mxu1 %vm1825_vm1, %v22488_v56 }
 0x48b   : > { %15301 = vmatmul.mubr.msk.bf16.gmra.mrb[20].mxu1 %vm1825_vm1, %v17789_v44  ;;  %v22532_v44 = vld [vmem:[#allocation71_spill] sm:$0xff] }
 0x48c   : > { %15304 = vmatprep.mubr.msk.bf16.mxu1 %vm1825_vm1, %v22526_v45 }
 0x493   : > { %15305 = vmatmul.mubr.msk.bf16.gmra.mrb[24].mxu1 %vm1825_vm1, %v22489_v31 }
 0x494   : > { %15308 = vmatprep.mubr.msk.bf16.mxu1 %vm1825_vm1, %v22527_v21 }
 0x49b   : > { %15309 = vmatmul.mubr.msk.bf16.gmra.mrb[28].mxu1 %vm1825_vm1, %v22491_v39 }
 0x49c   : > { %15312 = vmatprep.mubr.msk.bf16.mxu1 %vm1825_vm1, %v22492_v18 }
 0x4a3   : > { %15313 = vmatmul.mubr.msk.bf16.gmra.mrb[32].mxu1 %vm1825_vm1, %v22493_v15 }
 0x4a4   : > { %15316 = vmatprep.mubr.msk.bf16.mxu1 %vm1825_vm1, %v22494_v24 }
 0x4ab   : > { %15317 = vmatmul.mubr.msk.bf16.gmra.mrb[36].mxu1 %vm1825_vm1, %v22495_v27 }
 0x4ac   : > { %15320 = vmatprep.mubr.msk.bf16.mxu1 %vm1825_vm1, %v22496_v48 }
 0x4b3   : > { %15321 = vmatmul.mubr.msk.bf16.gmra.mrb[40].mxu1 %vm1825_vm1, %v17890_v51 }
 0x4b4   : > { %15324 = vmatprep.mubr.msk.bf16.mxu1 %vm1825_vm1, %v22497_v53 }
 0x4bb   : > { %15325 = vmatmul.mubr.msk.bf16.gmra.mrb[44].mxu1 %vm1825_vm1, %v22516_v38 }
 0x4bc   : > { %15328 = vmatprep.mubr.msk.bf16.mxu1 %vm1825_vm1, %v17692_v34 }
 0x4c3   : > { %15329 = vmatmul.mubr.msk.bf16.gmra.mrb[48].mxu1 %vm1825_vm1, %v17698_v35  ;;  %v22530_v35 = vld [vmem:[#allocation69_spill] sm:$0xff] }
 0x4c4   : > { %15332 = vmatprep.mubr.msk.bf16.mxu1 %vm1825_vm1, %v17707_v12 }
 0x4cb   : > { %15333 = vmatmul.mubr.msk.bf16.gmra.mrb[52].mxu1 %vm1825_vm1, %v17710_v42 }
 0x4cc   : > { %15336 = vmatprep.mubr.msk.bf16.mxu1 %vm1825_vm1, %v17717_v41  ;;  %v22531_v41 = vld [vmem:[#allocation70_spill] sm:$0xff] }
 0x4d3   : > { %15337 = vmatmul.mubr.msk.bf16.gmra.mrb[56].mxu1 %vm1825_vm1, %v17725_v33 }
 0x4d4   : > { %15340 = vmatprep.mubr.msk.bf16.mxu1 %vm1825_vm1, %v17733_v22 }
 0x4db   : > { %15341 = vmatmul.mubr.msk.bf16.gmra.mrb[60].mxu1 %vm1825_vm1, %v17736_v20  ;;  %v16843_v20 = vmov 1966171168  }
 0x4dc   : > { %15344 = vmatprep.mubr.msk.bf16.mxu1 %vm1825_vm1, %v17748_v55  ;;  %v5783_v55 = vunpack.c.l.s4 %v16843_v20 }
 0x4de   : > { %v5784_v53 = vunpack.c.0.s8 %v5783_v55 }
 0x4e3   : > { %15345 = vmatmul.mubr.msk.bf16.gmra.mrb[0].mxu1 %vm1825_vm1, %v22528_v46 }
 0x4e4   : > { %15348 = vmatprep.mubr.msk.bf16.mxu1 %vm1825_vm1, %v17760_v9  ;;  %v18543_v9 = vld [vmem:[%s22049_s4] ss:$0 sm:$0xff] }
 0x4eb   : > { %15349 = vmatmul.mubr.msk.bf16.gmra.mrb[4].mxu1 %vm1825_vm1, %v17763_v47  ;;  %v5785_v47 = vlaneseq }
 0x4ec   : > { %15352 = vmatprep.mubr.msk.bf16.mxu1 %vm1825_vm1, %v17778_v58 }
 0x4ed   : > { %v5786_v39 = vshrl.u32 %v5785_v47, 7 }
 0x4ef   : > { %v18554_v4 = vsub.s32 %v5784_v53, %v5786_v39 }
 0x4f3   : > { %15353 = vmatmul.mubr.msk.bf16.gmra.mrb[8].mxu1 %vm1825_vm1, %v22529_v60 }
 0x4f4   : > { %15356 = vmatprep.mubr.msk.bf16.mxu1 %vm1825_vm1, %v22498_v17 }
 0x4fb   : > { %15357 = vmatmul.mubr.msk.bf16.gmra.mrb[12].mxu1 %vm1825_vm1, %v22516_v38 }
 0x556   : > { %v15298_v34 = vpop.f32.mrb[16].mxu1 }
 0x557   : > { %v15872_v12 = vadd.f32 %v15298_v34, %v22530_v35  ;;  %v5263_v42 = vpop.f32.mrb[17].mxu1 }
 0x558   : > { %v15873_v33 = vadd.f32 %v5263_v42, %v22531_v41  ;;  %v15299_v22 = vpop.f32.mrb[18].mxu1  ;;  %v22539_v41 = vld [vmem:[#allocation78_spill] sm:$0xff] }
 0x559   : > { %v5591_v58 = vadd.f32 %v15872_v12, %v18543_v9  ;;  %v15874_v48 = vadd.f32 %v15299_v22, %v22532_v44  ;;  %v5266_v51 = vpop.f32.mrb[19].mxu1 }
 0x55a   : > { %v5589_v25 = vadd.f32 %v15873_v33, %v18543_v9  ;;  %v15875_v56 = vadd.f32 %v5266_v51, %v22533_v37 }
 0x55b   : > { %v5592_v50 = vadd.f32 %v15874_v48, %v18543_v9  ;;  %v5655_v18 = vmax.f32 %v5591_v58, 0.0 }
 0x55c   : > { %v5590_v31 = vadd.f32 %v15875_v56, %v18543_v9  ;;  %v5653_v24 = vmax.f32 %v5589_v25, 0.0 }
 0x55d   : > { %v5656_v15 = vmax.f32 %v5592_v50, 0.0 }
 0x55e   : > { %v5654_v27 = vmax.f32 %v5590_v31, 0.0  ;;  %v15302_v17 = vpop.f32.mrb[20].mxu1 }
 0x55f   : > { %v5718_v19 = vpack.c.bf16 %v5656_v15, %v5655_v18  ;;  %v15876_v5 = vadd.f32 %v15302_v17, %v22534_v63  ;;  %v5279_v13 = vpop.f32.mrb[21].mxu1 }
 0x560   : > { %v5717_v57 = vpack.c.bf16 %v5654_v27, %v5653_v24  ;;  %v15877_v54 = vadd.f32 %v5279_v13, %v22535_v49  ;;  %v15303_v1 = vpop.f32.mrb[22].mxu1 }
 0x561   : > { %v5595_v32 = vadd.f32 %v15876_v5, %v18543_v9  ;;  %v15878_v11 = vadd.f32 %v15303_v1, %v22536_v61  ;;  %v5282_v36 = vpop.f32.mrb[23].mxu1 }
 0x562   : > { %v5749_v29 = vmax.bf16 %v5718_v19, %v5717_v57  ;;  %v15879_v2 = vadd.f32 %v5282_v36, %v22537_v28  ;;  %v5593_v0 = vadd.f32 %v15877_v54, %v18543_v9 }
 0x563   : > { %v5596_v6 = vadd.f32 %v15878_v11, %v18543_v9  ;;  %v5659_v52 = vmax.f32 %v5595_v32, 0.0 }
 0x564   : > { %v5781_v8 = vcombine.high %v5749_v29, %v5749_v29  ;;  %v5788_v59 = vrot.slane %v5749_v29, %v18554_v4  ;;  %v5594_v62 = vadd.f32 %v15879_v2, %v18543_v9  ;;  %v5657_v40 = vmax.f32 %v5593_v0, 0.0 }
 0x565   : > { %v5660_v38 = vmax.f32 %v5596_v6, 0.0 }
 0x566   : > { %v5795_v16 = vrot.slane %v5781_v8, %v18554_v4  ;;  %v5796_v10 = vcombine.high %v5788_v59, %v5788_v59  ;;  %v5804_v14 = vrot.slane %v5788_v59, %v18554_v4  ;;  %v5658_v3 = vmax.f32 %v5594_v62, 0.0  ;;  %v15306_v7 = vpop.f32.mrb[24].mxu1 }
 0x567   : > { %v18566_v26 = vpack.c.bf16 %v5660_v38, %v5659_v52  ;;  %v18569_v23 = vadd.f32 %v15306_v7, %v22538_v30  ;;  %v5295_v45 = vpop.f32.mrb[25].mxu1 }
 0x568   : > { %v5797_v21 = vcombine.high %v5795_v16, %v5795_v16  ;;  %v5811_v46 = vrot.slane %v5795_v16, %v18554_v4  ;;  %v5818_v60 = vrot.slane %v5796_v10, %v18554_v4  ;;  %v5826_v34 = vcombine.high %v5804_v14, %v5804_v14  ;;  %v18573_v35 = vpop.f32.mrb[26].mxu1 }
 0x569   : > { %v6568_v12 = vsel %vm6565_vm7, %v5804_v14, 4286644096  ;;  %v18576_v42 = vpack.c.bf16 %v5658_v3, %v5657_v40  ;;  %v18579_v33 = vadd.f32 %v5295_v45, %v22539_v41  ;;  %v18581_v22 = vpop.f32.mrb[27].mxu1 }
 0x56a   : > { %v5825_v20 = vrot.slane %v5797_v21, %v18554_v4  ;;  %v5827_v55 = vcombine.high %v5811_v46, %v5811_v46  ;;  %v5828_v47 = vcombine.high %v5818_v60, %v5818_v60  ;;  %v6570_v58 = vunpack.i.l.bf16 %v6568_v12 }
 0x56b   : > { %v6571_v44 = vunpack.i.h.bf16 %v6568_v12  ;;  %v6581_v48 = vsel %vm6565_vm7, %v5818_v60, 4286644096  ;;  %v6594_v51 = vsel %vm6565_vm7, %v5826_v34, 4286644096  ;;  %v6620_v25 = vsel %vm6565_vm7, %v5811_v46, 4286644096 }
 0x56c   : > { %v5829_v37 = vcombine.high %v5825_v20, %v5825_v20  ;;  %v6583_v56 = vunpack.i.l.bf16 %v6581_v48  ;;  %v6584_v50 = vunpack.i.h.bf16 %v6581_v48  ;;  %v6596_v31 = vunpack.i.l.bf16 %v6594_v51 }
 0x56d   : > { %v6572_v53 = vmax.f32 %v6570_v58, %v6571_v44  ;;  %v6597_v39 = vunpack.i.h.bf16 %v6594_v51  ;;  %v6607_v18 = vsel %vm6565_vm7, %v5828_v47, 4286644096  ;;  %v6622_v15 = vunpack.i.l.bf16 %v6620_v25 }
 0x56e   : > { %v6585_v24 = vmax.f32 %v6583_v56, %v6584_v50  ;;  %v6609_v27 = vunpack.i.l.bf16 %v6607_v18  ;;  %v6610_v17 = vunpack.i.h.bf16 %v6607_v18  ;;  %v6623_v19 = vunpack.i.h.bf16 %v6620_v25  ;;  %v18588_v63 = vpop.f32.mrb[28].mxu1 }
 0x56f   : > { %v6573_v5 = vrot.slane %v6572_v53, 4  ;;  %v6598_v13 = vmax.f32 %v6596_v31, %v6597_v39  ;;  %v6633_v57 = vsel %vm6565_vm7, %v5825_v20, 4286644096  ;;  %v6646_v49 = vsel %vm6565_vm7, %v5827_v55, 4286644096  ;;  %v18592_v54 = vpop.f32.mrb[29].mxu1 }
 0x570   : > { %v6586_v1 = vrot.slane %v6585_v24, 4  ;;  %v6611_v32 = vmax.f32 %v6609_v27, %v6610_v17  ;;  %v6624_v61 = vmax.f32 %v6622_v15, %v6623_v19  ;;  %v6635_v11 = vunpack.i.l.bf16 %v6633_v57  ;;  %v18594_v36 = vpop.f32.mrb[30].mxu1 }
 0x571   : > { %v6574_v29 = vmax.f32 %v6572_v53, %v6573_v5  ;;  %v6599_v28 = vrot.slane %v6598_v13, 4  ;;  %v6636_v2 = vunpack.i.h.bf16 %v6633_v57  ;;  %v6648_v0 = vunpack.i.l.bf16 %v6646_v49  ;;  %v18596_v6 = vpop.f32.mrb[31].mxu1 }
 0x572   : > { %v6587_v8 = vmax.f32 %v6585_v24, %v6586_v1  ;;  %v6612_v59 = vrot.slane %v6611_v32, 4  ;;  %v6625_v62 = vrot.slane %v6624_v61, 4  ;;  %v6649_v52 = vunpack.i.h.bf16 %v6646_v49 }
 0x573   : > { %v6575_v38 = vrot.slane %v6574_v29, 2  ;;  %v6600_v16 = vmax.f32 %v6598_v13, %v6599_v28  ;;  %v6637_v10 = vmax.f32 %v6635_v11, %v6636_v2  ;;  %v6659_v46 = vsel %vm6565_vm7, %v5829_v37, 4286644096 }
 0x574   : > { %v6588_v14 = vrot.slane %v6587_v8, 2  ;;  %v6613_v3 = vmax.f32 %v6611_v32, %v6612_v59  ;;  %v6626_v7 = vmax.f32 %v6624_v61, %v6625_v62  ;;  %v6650_v40 = vmax.f32 %v6648_v0, %v6649_v52 }
 0x575   : > { %v6576_v30 = vmax.f32 %v6574_v29, %v6575_v38  ;;  %v6601_v45 = vrot.slane %v6600_v16, 2  ;;  %v6638_v21 = vrot.slane %v6637_v10, 4  ;;  %v6661_v48 = vunpack.i.l.bf16 %v6659_v46 }
 0x576   : > { %v6589_v60 = vmax.f32 %v6587_v8, %v6588_v14  ;;  %v6614_v34 = vrot.slane %v6613_v3, 2  ;;  %v6627_v12 = vrot.slane %v6626_v7, 2  ;;  %v6651_v41 = vrot.slane %v6650_v40, 4  ;;  %v18599_v20 = vpop.f32.mrb[32].mxu1  ;;  %v22541_v14 = vld [vmem:[#allocation80_spill] sm:$0xff] }
 0x577   : > { %v6602_v55 = vmax.f32 %v6600_v16, %v6601_v45  ;;  %v6639_v47 = vmax.f32 %v6637_v10, %v6638_v21  ;;  %v18601_v58 = vpop.f32.mrb[33].mxu1  ;;  %v6577_v44 = vrot.slane %v6576_v30, 1  ;;  %v6662_v51 = vunpack.i.h.bf16 %v6659_v46  ;;  %v22540_v10 = vld [vmem:[#allocation79_spill] sm:$0xff] }
 0x578   : > { %v18603_v25 = vpop.f32.mrb[34].mxu1  ;;  %v6615_v56 = vmax.f32 %v6613_v3, %v6614_v34  ;;  %v6652_v50 = vmax.f32 %v6650_v40, %v6651_v41  ;;  %v6590_v37 = vrot.slane %v6589_v60, 1  ;;  %v6628_v39 = vmax.f32 %v6626_v7, %v6627_v12  ;;  %v22542_v41 = vld [vmem:[#allocation81_spill] sm:$0xff] }
 0x579   : > { %v18605_v31 = vpop.f32.mrb[35].mxu1  ;;  %v6603_v53 = vrot.slane %v6602_v55, 1  ;;  %v6640_v18 = vrot.slane %v6639_v47, 2  ;;  %v6578_v15 = vmax.f32 %v6576_v30, %v6577_v44  ;;  %v6663_v24 = vmax.f32 %v6661_v48, %v6662_v51 }
 0x57a   : > { %v6616_v27 = vrot.slane %v6615_v56, 1  ;;  %v6653_v17 = vrot.slane %v6652_v50, 2  ;;  %v18607_v19 = vmax.f32 %v6589_v60, %v6590_v37  ;;  %v6629_v13 = vrot.slane %v6628_v39, 1 }
 0x57b   : > { %v18609_v5 = vmax.f32 %v6602_v55, %v6603_v53  ;;  %v18613_v49 = vmax.f32 %v6639_v47, %v6640_v18  ;;  %v5750_v1 = vmax.bf16 %v18566_v26, %v18576_v42  ;;  %v6579_v61 = vpack.i.bf16 %v6578_v15, %v6578_v15 }
 0x57c   : > { %v6664_v11 = vrot.slane %v6663_v24, 4  ;;  %v18621_v28 = vmax.f32 %v6615_v56, %v6616_v27  ;;  %v18623_v2 = vmax.f32 %v6652_v50, %v6653_v17  ;;  %v18627_v8 = vadd.f32 %v18569_v23, %v18543_v9 }
 0x57d   : > { %v5830_v0 = vcombine.high %v5750_v1, %v5750_v1  ;;  %v6592_v26 = vpack.i.bf16 %v18607_v19, %v18607_v19  ;;  %v18635_v62 = vmax.f32 %v6628_v39, %v6629_v13  ;;  %v5837_v52 = vrot.slane %v5750_v1, %v18554_v4 }
 0x57e   : > { %v18611_v57 = vpop.f32.mrb[36].mxu1  ;;  %v6642_v38 = vrot.slane %v18613_v49, 1  ;;  %v18642_v23 = vadd.f32 %v18573_v35, %v22540_v10  ;;  %v18646_v3 = vadd.f32 %v18581_v22, %v22541_v14  ;;  %v18648_v7 = vmax.f32 %v6663_v24, %v6664_v11 }
 0x57f   : > { %v18617_v32 = vpop.f32.mrb[37].mxu1  ;;  %v5844_v16 = vrot.slane %v5830_v0, %v18554_v4  ;;  %v18650_v40 = vunpack.c.l.b16 %v6579_v61  ;;  %v5845_v30 = vcombine.high %v5837_v52, %v5837_v52  ;;  %v5853_v45 = vrot.slane %v5837_v52, %v18554_v4 }
 0x580   : > { %v18619_v29 = vpop.f32.mrb[38].mxu1  ;;  %v18661_v55 = vadd.f32 %v18588_v63, %v22542_v41  ;;  %v5600_v19 = vadd.f32 %v18642_v23, %v18543_v9 }
 0x581   : > { %v18629_v59 = vpop.f32.mrb[39].mxu1  ;;  %v5846_v60 = vcombine.high %v5844_v16, %v5844_v16  ;;  %v5860_v35 = vrot.slane %v5844_v16, %v18554_v4  ;;  %v5867_v34 = vrot.slane %v5845_v30, %v18554_v4  ;;  %v5875_v12 = vcombine.high %v5853_v45, %v5853_v45 }
 0x582   : > { %v6672_v22 = vsel %vm6565_vm7, %v5853_v45, 4286644096 }
 0x583   : > { %v5874_v44 = vrot.slane %v5846_v60, %v18554_v4  ;;  %v5876_v48 = vcombine.high %v5860_v35, %v5860_v35  ;;  %v6674_v51 = vunpack.i.l.bf16 %v6672_v22  ;;  %v6675_v56 = vunpack.i.h.bf16 %v6672_v22 }
 0x584   : > { %v5877_v37 = vcombine.high %v5867_v34, %v5867_v34  ;;  %v6685_v53 = vsel %vm6565_vm7, %v5867_v34, 4286644096  ;;  %v6698_v39 = vsel %vm6565_vm7, %v5875_v12, 4286644096  ;;  %v6724_v18 = vsel %vm6565_vm7, %v5860_v35, 4286644096 }
 0x585   : > { %v5878_v15 = vcombine.high %v5874_v44, %v5874_v44  ;;  %v6676_v24 = vmax.f32 %v6674_v51, %v6675_v56  ;;  %v6687_v63 = vunpack.i.l.bf16 %v6685_v53  ;;  %v6688_v27 = vunpack.i.h.bf16 %v6685_v53 }
 0x586   : > { %v18663_v47 = vpop.f32.mrb[40].mxu1  ;;  %v6700_v13 = vunpack.i.l.bf16 %v6698_v39  ;;  %v6701_v1 = vunpack.i.h.bf16 %v6698_v39  ;;  %v6711_v61 = vsel %vm6565_vm7, %v5877_v37, 4286644096  ;;  %v6726_v11 = vunpack.i.l.bf16 %v6724_v18 }
 0x587   : > { %v18666_v50 = vpop.f32.mrb[41].mxu1  ;;  %v6677_v52 = vrot.slane %v6676_v24, 4  ;;  %v6689_v16 = vmax.f32 %v6687_v63, %v6688_v27  ;;  %v6713_v10 = vunpack.i.l.bf16 %v6711_v61  ;;  %v6714_v14 = vunpack.i.h.bf16 %v6711_v61 }
 0x588   : > { %v18671_v17 = vpop.f32.mrb[42].mxu1  ;;  %v6702_v30 = vmax.f32 %v6700_v13, %v6701_v1  ;;  %v6727_v45 = vunpack.i.h.bf16 %v6724_v18  ;;  %v6737_v60 = vsel %vm6565_vm7, %v5874_v44, 4286644096  ;;  %v6750_v35 = vsel %vm6565_vm7, %v5876_v48, 4286644096 }
 0x589   : > { %v18674_v0 = vpop.f32.mrb[43].mxu1  ;;  %v6678_v34 = vmax.f32 %v6676_v24, %v6677_v52  ;;  %v6690_v12 = vrot.slane %v6689_v16, 4  ;;  %v6715_v22 = vmax.f32 %v6713_v10, %v6714_v14  ;;  %v6739_v41 = vunpack.i.l.bf16 %v6737_v60 }
 0x58a   : > { %v6703_v51 = vrot.slane %v6702_v30, 4  ;;  %v6728_v56 = vmax.f32 %v6726_v11, %v6727_v45  ;;  %v6740_v37 = vunpack.i.h.bf16 %v6737_v60  ;;  %v6752_v53 = vunpack.i.l.bf16 %v6750_v35 }
 0x58b   : > { %v6679_v39 = vrot.slane %v6678_v34, 2  ;;  %v6691_v21 = vmax.f32 %v6689_v16, %v6690_v12  ;;  %v6716_v63 = vrot.slane %v6715_v22, 4  ;;  %v6753_v27 = vunpack.i.h.bf16 %v6750_v35 }
 0x58c   : > { %v6704_v61 = vmax.f32 %v6702_v30, %v6703_v51  ;;  %v6729_v13 = vrot.slane %v6728_v56, 4  ;;  %v6741_v18 = vmax.f32 %v6739_v41, %v6740_v37  ;;  %v6763_v44 = vsel %vm6565_vm7, %v5878_v15, 4286644096 }
 0x58d   : > { %v6680_v1 = vmax.f32 %v6678_v34, %v6679_v39  ;;  %v6692_v48 = vrot.slane %v6691_v21, 2  ;;  %v6717_v24 = vmax.f32 %v6715_v22, %v6716_v63  ;;  %v6754_v52 = vmax.f32 %v6752_v53, %v6753_v27 }
 0x58e   : > { %v6705_v10 = vrot.slane %v6704_v61, 2  ;;  %v6730_v14 = vmax.f32 %v6728_v56, %v6729_v13  ;;  %v6742_v42 = vrot.slane %v6741_v18, 4  ;;  %v6765_v46 = vunpack.i.l.bf16 %v6763_v44 }
 0x58f   : > { %v6681_v11 = vrot.slane %v6680_v1, 1  ;;  %v6693_v45 = vmax.f32 %v6691_v21, %v6692_v48  ;;  %v6718_v60 = vrot.slane %v6717_v24, 2  ;;  %v6755_v16 = vrot.slane %v6754_v52, 4 }
 0x590   : > { %v6706_v12 = vmax.f32 %v6704_v61, %v6705_v10  ;;  %v6731_v35 = vrot.slane %v6730_v14, 2  ;;  %v6743_v30 = vmax.f32 %v6741_v18, %v6742_v42  ;;  %v6766_v51 = vunpack.i.h.bf16 %v6763_v44 }
 0x591   : > { %v8360_v15 = vunpack.c.l.b16 %v6592_v26  ;;  %v6694_v34 = vrot.slane %v6693_v45, 1  ;;  %v6719_v22 = vmax.f32 %v6717_v24, %v6718_v60  ;;  %v6756_v41 = vmax.f32 %v6754_v52, %v6755_v16 }
 0x592   : > { %v6631_v56 = vpack.i.bf16 %v18635_v62, %v18635_v62  ;;  %v6732_v37 = vmax.f32 %v6730_v14, %v6731_v35  ;;  %v6744_v53 = vrot.slane %v6743_v30, 2  ;;  %v6767_v39 = vmax.f32 %v6765_v46, %v6766_v51 }
 0x593   : > { %v18687_v21 = vmax.f32 %v18613_v49, %v6642_v38  ;;  %v6682_v42 = vmax.f32 %v6680_v1, %v6681_v11  ;;  %v6707_v63 = vrot.slane %v6706_v12, 1  ;;  %v6666_v26 = vrot.slane %v18648_v7, 2 }
 0x594   : > { %v6695_v27 = vmax.f32 %v6693_v45, %v6694_v34  ;;  %v6720_v61 = vrot.slane %v6719_v22, 1  ;;  %v6757_v13 = vrot.slane %v6756_v41, 2  ;;  %v22543_v62 = vrot.slane %v18623_v2, 1 }
 0x595   : > { %v22544_v46 = vpack.i.bf16 %v18609_v5, %v18609_v5  ;;  %v8488_v38 = vsel %vm8487_vm8, %v8360_v15, %v18650_v40  ;;  %v6733_v44 = vrot.slane %v6732_v37, 1  ;;  %v6745_v1 = vmax.f32 %v6743_v30, %v6744_v53 }
 0x596   : > { %v18695_v18 = vmax.f32 %v18623_v2, %v22543_v62  ;;  %v6768_v23 = vrot.slane %v6767_v39, 4  ;;  %v5663_v48 = vmax.f32 %v18627_v8, 0.0  ;;  %v5597_v24 = vadd.f32 %v18579_v33, %v18543_v9 }
 0x597   : > { %v8361_v49 = vunpack.c.l.b16 %v22544_v46  ;;  %v6683_v52 = vpack.i.bf16 %v6682_v42, %v6682_v42  ;;  %v6708_v10 = vmax.f32 %v6706_v12, %v6707_v63  ;;  %v5664_v14 = vmax.f32 %v5600_v19, 0.0  ;;  %v22547_v63 = vld [vmem:[#allocation82_spill] sm:$0xff] }
 0x598   : > { %v5598_v2 = vadd.f32 %v18646_v3, %v18543_v9  ;;  %v22545_v5 = vpack.i.bf16 %v18621_v28, %v18621_v28  ;;  %v6696_v40 = vpack.i.bf16 %v6695_v27, %v6695_v27  ;;  %v6721_v45 = vmax.f32 %v6719_v22, %v6720_v61 }
 0x599   : > { %v6758_v60 = vmax.f32 %v6756_v41, %v6757_v13  ;;  %v18714_v16 = vunpack.c.l.b16 %v6631_v56  ;;  %v6734_v33 = vmax.f32 %v6732_v37, %v6733_v44  ;;  %v5722_v35 = vpack.c.bf16 %v5664_v14, %v5663_v48  ;;  %v18722_v41 = vpop.f32.mrb[44].mxu1  ;;  %v22550_v48 = vld [vmem:[#allocation4_spill] sm:$0xff] }
 0x59a   : > { %v18710_v11 = vunpack.c.l.b16 %v22545_v5  ;;  %v18717_v12 = vmax.f32 %v18648_v7, %v6666_v26  ;;  %v18720_v3 = vsel %vm8489_vm9, %v8361_v49, %v8488_v38  ;;  %v6746_v30 = vrot.slane %v6745_v1, 1  ;;  %v18726_v19 = vpop.f32.mrb[45].mxu1  ;;  %v22549_v49 = vld [vmem:[#allocation84_spill] sm:$0xff] }
 0x59b   : > { %22546 = vst [vmem:[#allocation37_spill] sm:$0xff] %v18714_v16  ;;  %v6769_v28 = vmax.f32 %v6767_v39, %v6768_v23  ;;  %v6709_v51 = vpack.i.bf16 %v6708_v10, %v6708_v10  ;;  %v8367_v15 = vunpack.c.l.b16 %v6683_v52  ;;  %v5661_v34 = vmax.f32 %v5597_v24, 0.0  ;;  %v22548_v39 = vld [vmem:[#allocation83_spill] sm:$0xff] }
 0x59c   : > { %v5662_v22 = vmax.f32 %v5598_v2, 0.0  ;;  %v6722_v53 = vpack.i.bf16 %v6721_v45, %v6721_v45  ;;  %v6759_v42 = vrot.slane %v6758_v60, 1  ;;  %v8368_v56 = vunpack.c.l.b16 %v6696_v40 }
 0x59d   : > { %v15885_v37 = vadd.f32 %v18592_v54, %v22547_v63  ;;  %v6735_v7 = vpack.i.bf16 %v6734_v33, %v6734_v33  ;;  %v5603_v27 = vadd.f32 %v18661_v55, %v18543_v9  ;;  %v15886_v61 = vadd.f32 %v18594_v36, %v22548_v39  ;;  %v22552_v33 = vld [vmem:[#allocation86_spill] sm:$0xff] }
 0x59e   : > { %v5721_v26 = vpack.c.bf16 %v5662_v22, %v5661_v34  ;;  %v18732_v13 = vmax.f32 %v6745_v1, %v6746_v30  ;;  %v6770_v62 = vrot.slane %v6769_v28, 2  ;;  %v15887_v38 = vadd.f32 %v18596_v6, %v22549_v49  ;;  %v22551_v1 = vld [vmem:[#allocation85_spill] sm:$0xff] }
 0x59f   : > { %v5601_v46 = vadd.f32 %v15885_v37, %v18543_v9  ;;  %v8369_v44 = vunpack.c.l.b16 %v6709_v51  ;;  %v5604_v23 = vadd.f32 %v15886_v61, %v18543_v9  ;;  %v18740_v24 = vadd.f32 %v18599_v20, %v22550_v48  ;;  %v16720_v20 = vld [vmem:[%s22050_s5 + $0x20] sm:$0xff]   ;;  %v22553_v61 = vld [vmem:[#allocation87_spill] sm:$0xff] }
 0x5a0   : > { %v5751_v54 = vmax.bf16 %v5722_v35, %v5721_v26  ;;  %v18742_v55 = vmax.f32 %v6758_v60, %v6759_v42  ;;  %v18744_v52 = vunpack.c.l.b16 %v6722_v53  ;;  %v5602_v36 = vadd.f32 %v15887_v38, %v18543_v9  ;;  %15360 = vmatprep.subr.bf16.mxu0 %v16720_v20 }
 0x5a1   : > { %v18749_v10 = vadd.f32 %v18601_v58, %v22551_v1  ;;  %v5667_v2 = vmax.f32 %v5603_v27, 0.0  ;;  %v5668_v5 = vmax.f32 %v5604_v23, 0.0  ;;  %v8499_v40 = vsel %vm8487_vm8, %v8368_v56, %v8367_v15  ;;  %15361 = vmatpush3.bf16.msra.mxu0 %v16720_v20 }
 0x5a2   : > { %v5879_v14 = vcombine.high %v5751_v54, %v5751_v54  ;;  %v5886_v6 = vrot.slane %v5751_v54, %v18554_v4  ;;  %v5665_v45 = vmax.f32 %v5601_v46, 0.0  ;;  %v5666_v60 = vmax.f32 %v5602_v36, 0.0 }
 0x5a3   : > { %v18758_v35 = vadd.f32 %v18603_v25, %v22552_v33  ;;  %v5724_v34 = vpack.c.bf16 %v5668_v5, %v5667_v2  ;;  %v18764_v53 = vmax.f32 %v6769_v28, %v6770_v62  ;;  %v18766_v42 = vunpack.c.l.b16 %v6735_v7 }
 0x5a4   : > { %v5893_v58 = vrot.slane %v5879_v14, %v18554_v4  ;;  %v5894_v30 = vcombine.high %v5886_v6, %v5886_v6  ;;  %v5902_v51 = vrot.slane %v5886_v6, %v18554_v4  ;;  %v5723_v15 = vpack.c.bf16 %v5666_v60, %v5665_v45 }
 0x5a5   : > { %v18771_v26 = vsel %vm8489_vm9, %v8369_v44, %v8499_v40  ;;  %v18778_v28 = vadd.f32 %v18605_v31, %v22553_v61 }
 0x5a6   : > { %v5895_v56 = vcombine.high %v5893_v58, %v5893_v58  ;;  %v5909_v25 = vrot.slane %v5893_v58, %v18554_v4  ;;  %v5916_v63 = vrot.slane %v5894_v30, %v18554_v4  ;;  %v5924_v37 = vcombine.high %v5902_v51, %v5902_v51 }
 0x5a7   : > { %v6776_v27 = vsel %vm6565_vm7, %v5902_v51, 4286644096  ;;  %v18774_v39 = vmax.bf16 %v5724_v34, %v5723_v15 }
 0x5a8   : > { %v5923_v7 = vrot.slane %v5895_v56, %v18554_v4  ;;  %v5925_v62 = vcombine.high %v5909_v25, %v5909_v25  ;;  %v5926_v46 = vcombine.high %v5916_v63, %v5916_v63  ;;  %v6778_v49 = vunpack.i.l.bf16 %v6776_v27 }
 0x5a9   : > { %v6779_v38 = vunpack.i.h.bf16 %v6776_v27  ;;  %v6789_v54 = vsel %vm6565_vm7, %v5916_v63, 4286644096  ;;  %v6802_v23 = vsel %vm6565_vm7, %v5924_v37, 4286644096  ;;  %v6828_v44 = vsel %vm6565_vm7, %v5909_v25, 4286644096 }
 0x5aa   : > { %v5927_v48 = vcombine.high %v5923_v7, %v5923_v7  ;;  %v6791_v36 = vunpack.i.l.bf16 %v6789_v54  ;;  %v6792_v1 = vunpack.i.h.bf16 %v6789_v54  ;;  %v6804_v14 = vunpack.i.l.bf16 %v6802_v23 }
 0x5ab   : > { %v6780_v6 = vmax.f32 %v6778_v49, %v6779_v38  ;;  %v6805_v2 = vunpack.i.h.bf16 %v6802_v23  ;;  %v6815_v31 = vsel %vm6565_vm7, %v5926_v46, 4286644096  ;;  %v6830_v5 = vunpack.i.l.bf16 %v6828_v44 }
 0x5ac   : > { %v6793_v20 = vmax.f32 %v6791_v36, %v6792_v1  ;;  %v6817_v40 = vunpack.i.l.bf16 %v6815_v31  ;;  %v6818_v45 = vunpack.i.h.bf16 %v6815_v31  ;;  %v6831_v60 = vunpack.i.h.bf16 %v6828_v44  ;;  %v18788_v1 = vpop.f32.mrb[46].mxu1 }
 0x5ad   : > { %v6781_v33 = vrot.slane %v6780_v6, 4  ;;  %v6806_v58 = vmax.f32 %v6804_v14, %v6805_v2  ;;  %v6841_v30 = vsel %vm6565_vm7, %v5923_v7, 4286644096  ;;  %v6854_v51 = vsel %vm6565_vm7, %v5925_v62, 4286644096 }
 0x5ae   : > { %v6794_v34 = vrot.slane %v6793_v20, 4  ;;  %v6819_v15 = vmax.f32 %v6817_v40, %v6818_v45  ;;  %v6832_v56 = vmax.f32 %v6830_v5, %v6831_v60  ;;  %v6843_v25 = vunpack.i.l.bf16 %v6841_v30 }
 0x5af   : > { %v6782_v63 = vmax.f32 %v6780_v6, %v6781_v33  ;;  %v6807_v37 = vrot.slane %v6806_v58, 4  ;;  %v6844_v27 = vunpack.i.h.bf16 %v6841_v30  ;;  %v6856_v61 = vunpack.i.l.bf16 %v6854_v51 }
 0x5b0   : > { %v6795_v46 = vmax.f32 %v6793_v20, %v6794_v34  ;;  %v6820_v49 = vrot.slane %v6819_v15, 4  ;;  %v6833_v38 = vrot.slane %v6832_v56, 4  ;;  %v6857_v54 = vunpack.i.h.bf16 %v6854_v51  ;;  %v18790_v20 = vpop.f32.mrb[47].mxu1 }
 0x5b1   : > { %v6783_v23 = vrot.slane %v6782_v63, 2  ;;  %v6808_v44 = vmax.f32 %v6806_v58, %v6807_v37  ;;  %v6845_v36 = vmax.f32 %v6843_v25, %v6844_v27  ;;  %v6867_v7 = vsel %vm6565_vm7, %v5927_v48, 4286644096 }
 0x5b2   : > { %v6796_v62 = vrot.slane %v6795_v46, 2  ;;  %v6821_v14 = vmax.f32 %v6819_v15, %v6820_v49  ;;  %v6834_v2 = vmax.f32 %v6832_v56, %v6833_v38  ;;  %v6858_v31 = vmax.f32 %v6856_v61, %v6857_v54 }
 0x5b3   : > { %v6784_v6 = vmax.f32 %v6782_v63, %v6783_v23  ;;  %v6809_v5 = vrot.slane %v6808_v44, 2  ;;  %v6846_v40 = vrot.slane %v6845_v36, 4  ;;  %v6869_v45 = vunpack.i.l.bf16 %v6867_v7 }
 0x5b4   : > { %v6797_v60 = vmax.f32 %v6795_v46, %v6796_v62  ;;  %v6822_v33 = vrot.slane %v6821_v14, 2  ;;  %v6835_v30 = vrot.slane %v6834_v2, 2  ;;  %v6859_v51 = vrot.slane %v6858_v31, 4 }
 0x5b5   : > { %v6785_v58 = vrot.slane %v6784_v6, 1  ;;  %v6810_v34 = vmax.f32 %v6808_v44, %v6809_v5  ;;  %v6847_v25 = vmax.f32 %v6845_v36, %v6846_v40  ;;  %v6870_v48 = vunpack.i.h.bf16 %v6867_v7 }
 0x5b6   : > { %v6798_v37 = vrot.slane %v6797_v60, 1  ;;  %v6823_v27 = vmax.f32 %v6821_v14, %v6822_v33  ;;  %v6836_v15 = vmax.f32 %v6834_v2, %v6835_v30  ;;  %v6860_v56 = vmax.f32 %v6858_v31, %v6859_v51 }
 0x5b7   : > { %v6786_v61 = vmax.f32 %v6784_v6, %v6785_v58  ;;  %v6811_v63 = vrot.slane %v6810_v34, 1  ;;  %v6848_v49 = vrot.slane %v6847_v25, 2  ;;  %v6871_v38 = vmax.f32 %v6869_v45, %v6870_v48 }
 0x5b8   : > { %v6799_v54 = vmax.f32 %v6797_v60, %v6798_v37  ;;  %v6824_v23 = vrot.slane %v6823_v27, 1  ;;  %v6837_v8 = vrot.slane %v6836_v15, 1  ;;  %v6861_v46 = vrot.slane %v6860_v56, 2 }
 0x5b9   : > { %v6787_v62 = vpack.i.bf16 %v6786_v61, %v6786_v61  ;;  %v6812_v22 = vmax.f32 %v6810_v34, %v6811_v63  ;;  %v6849_v43 = vmax.f32 %v6847_v25, %v6848_v49  ;;  %v6872_v16 = vrot.slane %v6871_v38, 4 }
 0x5ba   : > { %v8501_v44 = vsel %vm8491_vm10, %v18744_v52, %v18771_v26  ;;  %v6800_v36 = vpack.i.bf16 %v6799_v54, %v6799_v54  ;;  %v6825_v7 = vmax.f32 %v6823_v27, %v6824_v23  ;;  %v5608_v14 = vadd.f32 %v18758_v35, %v18543_v9 }
 0x5bb   : > { %v6813_v2 = vpack.i.bf16 %v6812_v22, %v6812_v22  ;;  %v6838_v31 = vmax.f32 %v6836_v15, %v6837_v8  ;;  %v6862_v6 = vmax.f32 %v6860_v56, %v6861_v46  ;;  %v6873_v5 = vmax.f32 %v6871_v38, %v6872_v16 }
 0x5bc   : > { %v6826_v40 = vpack.i.bf16 %v6825_v7, %v6825_v7  ;;  %v6850_v45 = vrot.slane %v6849_v43, 1  ;;  %v8375_v60 = vunpack.c.l.b16 %v6787_v62  ;;  %v8376_v33 = vunpack.c.l.b16 %v6800_v36  ;;  %v18835_v36 = vpop.f32.mrb[48].mxu1 }
 0x5bd   : > { %v6761_v30 = vpack.i.bf16 %v18742_v55, %v18742_v55  ;;  %v8377_v51 = vunpack.c.l.b16 %v6813_v2  ;;  %v5928_v52 = vcombine.high %v18774_v39, %v18774_v39  ;;  %v5607_v26 = vadd.f32 %v18740_v24, %v18543_v9 }
 0x5be   : > { %v6772_v35 = vrot.slane %v18764_v53, 1  ;;  %v22554_v8 = vpack.i.bf16 %v18732_v13, %v18732_v13  ;;  %v6874_v22 = vrot.slane %v6873_v5, 2  ;;  %v8505_v58 = vsel %vm8487_vm8, %v8376_v33, %v8375_v60 }
 0x5bf   : > { %v18812_v55 = vsel %vm8493_vm11, %v18766_v42, %v8501_v44  ;;  %v6839_v34 = vpack.i.bf16 %v6838_v31, %v6838_v31  ;;  %v6863_v25 = vrot.slane %v6862_v6, 1  ;;  %v5935_v48 = vrot.slane %v18774_v39, %v18554_v4 }
 0x5c0   : > { %v18807_v16 = vunpack.c.l.b16 %v22554_v8  ;;  %v18816_v9 = vmax.f32 %v6849_v43, %v6850_v45  ;;  %v8378_v24 = vunpack.c.l.b16 %v6826_v40  ;;  %v5942_v37 = vrot.slane %v5928_v52, %v18554_v4 }
 0x5c1   : > { %v5672_v13 = vmax.f32 %v5608_v14, 0.0  ;;  %v18819_v27 = vunpack.c.l.b16 %v6761_v30  ;;  %v8506_v15 = vsel %vm8489_vm9, %v8377_v51, %v8505_v58  ;;  %v5943_v56 = vcombine.high %v5935_v48, %v5935_v48 }
 0x5c2   : > { %v5671_v61 = vmax.f32 %v5607_v26, 0.0  ;;  %v18823_v42 = vmax.f32 %v18764_v53, %v6772_v35  ;;  %v6875_v63 = vmax.f32 %v6873_v5, %v6874_v22  ;;  %v5944_v49 = vcombine.high %v5942_v37, %v5942_v37 }
 0x5c3   : > { %v5951_v38 = vrot.slane %v5935_v48, %v18554_v4  ;;  %v18826_v39 = vmax.f32 %v6862_v6, %v6863_v25  ;;  %v5958_v43 = vrot.slane %v5942_v37, %v18554_v4  ;;  %v5965_v54 = vrot.slane %v5943_v56, %v18554_v4 }
 0x5c4   : > { %v18830_v23 = vpack.c.bf16 %v5672_v13, %v5671_v61  ;;  %v6852_v46 = vpack.i.bf16 %v18816_v9, %v18816_v9  ;;  %v8379_v62 = vunpack.c.l.b16 %v6839_v34  ;;  %v8507_v44 = vsel %vm8491_vm10, %v8378_v24, %v8506_v15 }
 0x5c5   : > { %v5973_v53 = vcombine.high %v5951_v38, %v5951_v38  ;;  %v5972_v7 = vrot.slane %v5944_v49, %v18554_v4  ;;  %v5975_v14 = vcombine.high %v5965_v54, %v5965_v54  ;;  %v6880_v2 = vsel %vm6565_vm7, %v5951_v38, 4286644096 }
 0x5c6   : > { %v6893_v31 = vsel %vm6565_vm7, %v5965_v54, 4286644096  ;;  %v6876_v6 = vrot.slane %v6875_v63, 1  ;;  %v6882_v5 = vunpack.i.l.bf16 %v6880_v2  ;;  %v6883_v40 = vunpack.i.h.bf16 %v6880_v2 }
 0x5c7   : > { %v6895_v45 = vunpack.i.l.bf16 %v6893_v31  ;;  %v5974_v60 = vcombine.high %v5958_v43, %v5958_v43  ;;  %v6896_v33 = vunpack.i.h.bf16 %v6893_v31  ;;  %v6906_v30 = vsel %vm6565_vm7, %v5973_v53, 4286644096 }
 0x5c8   : > { %v6919_v51 = vsel %vm6565_vm7, %v5975_v14, 4286644096  ;;  %v6884_v52 = vmax.f32 %v6882_v5, %v6883_v40  ;;  %v6908_v26 = vunpack.i.l.bf16 %v6906_v30  ;;  %v6909_v35 = vunpack.i.h.bf16 %v6906_v30 }
 0x5c9   : > { %v6921_v8 = vunpack.i.l.bf16 %v6919_v51  ;;  %v5976_v22 = vcombine.high %v5972_v7, %v5972_v7  ;;  %v6897_v58 = vmax.f32 %v6895_v45, %v6896_v33  ;;  %v6922_v34 = vunpack.i.h.bf16 %v6919_v51 }
 0x5ca   : > { %v6932_v25 = vsel %vm6565_vm7, %v5958_v43, 4286644096  ;;  %v6885_v48 = vrot.slane %v6884_v52, 4  ;;  %v6910_v9 = vmax.f32 %v6908_v26, %v6909_v35  ;;  %v6945_v56 = vsel %vm6565_vm7, %v5972_v7, 4286644096 }
 0x5cb   : > { %v6934_v24 = vunpack.i.l.bf16 %v6932_v25  ;;  %v6935_v37 = vunpack.i.h.bf16 %v6932_v25  ;;  %v6898_v13 = vrot.slane %v6897_v58, 4  ;;  %v6923_v15 = vmax.f32 %v6921_v8, %v6922_v34 }
 0x5cc   : > { %v6958_v61 = vsel %vm6565_vm7, %v5974_v60, 4286644096  ;;  %v6886_v49 = vmax.f32 %v6884_v52, %v6885_v48  ;;  %v6911_v38 = vrot.slane %v6910_v9, 4  ;;  %v6947_v53 = vunpack.i.l.bf16 %v6945_v56 }
 0x5cd   : > { %v6936_v54 = vmax.f32 %v6934_v24, %v6935_v37  ;;  %v6899_v14 = vmax.f32 %v6897_v58, %v6898_v13  ;;  %v6924_v2 = vrot.slane %v6923_v15, 4  ;;  %v6948_v31 = vunpack.i.h.bf16 %v6945_v56 }
 0x5ce   : > { %v6960_v43 = vunpack.i.l.bf16 %v6958_v61  ;;  %v6887_v5 = vrot.slane %v6886_v49, 2  ;;  %v6912_v40 = vmax.f32 %v6910_v9, %v6911_v38  ;;  %v6961_v33 = vunpack.i.h.bf16 %v6958_v61 }
 0x5cf   : > { %v6937_v45 = vrot.slane %v6936_v54, 4  ;;  %v8508_v30 = vsel %vm8493_vm11, %v8379_v62, %v8507_v44  ;;  %v6900_v51 = vrot.slane %v6899_v14, 2  ;;  %v6925_v26 = vmax.f32 %v6923_v15, %v6924_v2 }
 0x5d0   : > { %v6949_v7 = vmax.f32 %v6947_v53, %v6948_v31  ;;  %v6888_v35 = vmax.f32 %v6886_v49, %v6887_v5  ;;  %v6913_v60 = vrot.slane %v6912_v40, 2  ;;  %v6962_v8 = vmax.f32 %v6960_v43, %v6961_v33  ;;  %v18866_v31 = vld [vmem:[%s22049_s4] ss:$0 sm:$0xff] }
 0x5d1   : > { %v6938_v52 = vmax.f32 %v6936_v54, %v6937_v45  ;;  %v6877_v34 = vmax.f32 %v6875_v63, %v6876_v6  ;;  %v6901_v25 = vmax.f32 %v6899_v14, %v6900_v51  ;;  %v6926_v48 = vrot.slane %v6925_v26, 2 }
 0x5d2   : > { %v6950_v58 = vrot.slane %v6949_v7, 4  ;;  %v6865_v24 = vpack.i.bf16 %v18826_v39, %v18826_v39  ;;  %v8380_v37 = vunpack.c.l.b16 %v6852_v46  ;;  %v6914_v9 = vmax.f32 %v6912_v40, %v6913_v60 }
 0x5d3   : > { %v6971_v13 = vsel %vm6565_vm7, %v5976_v22, 4286644096  ;;  %v6774_v62 = vpack.i.bf16 %v18823_v42, %v18823_v42  ;;  %v8503_v44 = vsel %vm8495_vm12, %v18807_v16, %v18812_v55  ;;  %v6889_v15 = vrot.slane %v6888_v35, 1 }
 0x5d4   : > { %v6939_v56 = vrot.slane %v6938_v52, 2  ;;  %v8509_v63 = vsel %vm8495_vm12, %v8380_v37, %v8508_v30  ;;  %v6902_v6 = vrot.slane %v6901_v25, 1  ;;  %v6927_v61 = vmax.f32 %v6925_v26, %v6926_v48 }
 0x5d5   : > { %v6963_v49 = vrot.slane %v6962_v8, 4  ;;  %v6878_v38 = vpack.i.bf16 %v6877_v34, %v6877_v34  ;;  %v6951_v39 = vmax.f32 %v6949_v7, %v6950_v58  ;;  %v6973_v46 = vunpack.i.l.bf16 %v6971_v13 }
 0x5d6   : > { %v6974_v54 = vunpack.i.h.bf16 %v6971_v13  ;;  %v6657_v22 = vpack.i.bf16 %v18695_v18, %v18695_v18  ;;  %v18859_v42 = vsel %vm8497_vm13, %v18819_v27, %v8503_v44  ;;  %v8381_v53 = vunpack.c.l.b16 %v6865_v24  ;;  %v22559_v44 = vld [vmem:[#allocation89_spill] sm:$0xff] }
 0x5d7   : > { %v6915_v16 = vrot.slane %v6914_v9, 1  ;;  %v18861_v55 = vunpack.c.l.b16 %v6774_v62  ;;  %v6890_v14 = vmax.f32 %v6888_v35, %v6889_v15  ;;  %v6940_v2 = vmax.f32 %v6938_v52, %v6939_v56  ;;  %v22558_v62 = vld [vmem:[#allocation88_spill] sm:$0xff] }
 0x5d8   : > { %v5605_v43 = vadd.f32 %v18866_v31, %v18749_v10  ;;  %v18871_v18 = vsel %vm8497_vm13, %v8381_v53, %v8509_v63  ;;  %v6903_v5 = vmax.f32 %v6901_v25, %v6902_v6  ;;  %v6928_v27 = vrot.slane %v6927_v61, 1  ;;  %v22560_v63 = vld [vmem:[#allocation90_spill] sm:$0xff] }
 0x5d9   : > { %22555 = vst [vmem:[#allocation38_spill] sm:$0xff] %v18871_v18  ;;  %v6964_v40 = vmax.f32 %v6962_v8, %v6963_v49  ;;  %v22556_v45 = vpack.i.bf16 %v18687_v21, %v18687_v21  ;;  %v18878_v30 = vunpack.c.l.b16 %v6878_v38  ;;  %v6952_v51 = vrot.slane %v6951_v39, 2  ;;  %v22561_v49 = vld [vmem:[#allocation91_spill] sm:$0xff] }
 0x5da   : > { %v6975_v26 = vmax.f32 %v6973_v46, %v6974_v54  ;;  %v18880_v7 = vunpack.c.l.b16 %v6657_v22  ;;  %v6916_v35 = vmax.f32 %v6914_v9, %v6915_v16  ;;  %v5606_v60 = vadd.f32 %v18866_v31, %v18778_v28  ;;  %v22562_v54 = vld [vmem:[#allocation92_spill] sm:$0xff] }
 0x5db   : > { %v18876_v33 = vunpack.c.l.b16 %v22556_v45  ;;  %22557 = vst [vmem:[#allocation39_spill] sm:$0xff] %v18878_v30  ;;  %v6891_v8 = vpack.i.bf16 %v6890_v14, %v6890_v14  ;;  %v6941_v21 = vrot.slane %v6940_v2, 1  ;;  %v5669_v34 = vmax.f32 %v5605_v43, 0.0 }
 0x5dc   : > { %v6904_v25 = vpack.i.bf16 %v6903_v5, %v6903_v5  ;;  %v18888_v48 = vmax.f32 %v6927_v61, %v6928_v27  ;;  %v6965_v58 = vrot.slane %v6964_v40, 2  ;;  %v5670_v24 = vmax.f32 %v5606_v60, 0.0  ;;  %v22565_v60 = vld [vmem:[#allocation95_spill] sm:$0xff] }
 0x5dd   : > { %v18890_v37 = vmax.f32 %v6951_v39, %v6952_v51  ;;  %v6976_v13 = vrot.slane %v6975_v26, 4  ;;  %v15892_v9 = vadd.f32 %v18611_v57, %v22558_v62  ;;  %v15893_v28 = vadd.f32 %v18617_v32, %v22559_v44  ;;  %v22564_v51 = vld [vmem:[#allocation94_spill] sm:$0xff] }
 0x5de   : > { %v6917_v15 = vpack.i.bf16 %v6916_v35, %v6916_v35  ;;  %v5725_v56 = vpack.c.bf16 %v5670_v24, %v5669_v34  ;;  %v15894_v6 = vadd.f32 %v18619_v29, %v22560_v63  ;;  %v15895_v61 = vadd.f32 %v18629_v59, %v22561_v49 }
 0x5df   : > { %v18900_v38 = vmax.f32 %v6940_v2, %v6941_v21  ;;  %v5611_v39 = vadd.f32 %v18866_v31, %v15892_v9  ;;  %v5609_v46 = vadd.f32 %v18866_v31, %v15893_v28  ;;  %v18906_v57 = vadd.f32 %v18663_v47, %v22562_v54  ;;  %v22563_v2 = vld [vmem:[#allocation93_spill] sm:$0xff]  ;;  %v18931_v21 = vpop.f32.mrb[49].mxu1 }
 0x5e0   : > { %v18908_v22 = vmax.f32 %v6964_v40, %v6965_v58  ;;  %v5753_v32 = vmax.bf16 %v18830_v23, %v5725_v56  ;;  %v5612_v53 = vadd.f32 %v18866_v31, %v15894_v6  ;;  %v5610_v29 = vadd.f32 %v18866_v31, %v15895_v61  ;;  %v18935_v62 = vpop.f32.mrb[50].mxu1 }
 0x5e1   : > { %v18915_v16 = vunpack.c.l.b16 %v6891_v8  ;;  %v5675_v14 = vmax.f32 %v5611_v39, 0.0  ;;  %v18919_v43 = vadd.f32 %v18666_v50, %v22563_v2  ;;  %v6954_v23 = vrot.slane %v18890_v37, 1 }
 0x5e2   : > { %v5977_v47 = vcombine.high %v5753_v32, %v5753_v32  ;;  %v5984_v5 = vrot.slane %v5753_v32, %v18554_v4  ;;  %v5676_v27 = vmax.f32 %v5612_v53, 0.0  ;;  %v5674_v40 = vmax.f32 %v5610_v29, 0.0  ;;  %v16721_v53 = vld [vmem:[%s22050_s5 + $0x28] sm:$0xff]  }
 0x5e3   : > { %v5673_v45 = vmax.f32 %v5609_v46, 0.0  ;;  %v18925_v35 = vadd.f32 %v18671_v17, %v22564_v51  ;;  %v18929_v8 = vadd.f32 %v18674_v0, %v22565_v60  ;;  %v18939_v44 = vmax.f32 %v6975_v26, %v6976_v13  ;;  %v18943_v0 = vpop.f32.mrb[51].mxu1  ;;  %15362 = vmatprep.subr.bf16.mxu0 %v16721_v53 }
 0x5e4   : > { %v5991_v50 = vrot.slane %v5977_v47, %v18554_v4  ;;  %v5992_v34 = vcombine.high %v5984_v5, %v5984_v5  ;;  %v6000_v58 = vrot.slane %v5984_v5, %v18554_v4  ;;  %v5728_v24 = vpack.c.bf16 %v5676_v27, %v5675_v14  ;;  %15363 = vmatpush3.bf16.msra.mxu0 %v16721_v53 }
 0x5e5   : > { %v18941_v17 = vunpack.c.l.b16 %v6904_v25  ;;  %v5727_v28 = vpack.c.bf16 %v5674_v40, %v5673_v45  ;;  %v18948_v39 = vunpack.c.l.b16 %v6917_v15 }
 0x5e6   : > { %v5993_v56 = vcombine.high %v5991_v50, %v5991_v50  ;;  %v6007_v63 = vrot.slane %v5991_v50, %v18554_v4  ;;  %v6014_v6 = vrot.slane %v5992_v34, %v18554_v4  ;;  %v6022_v49 = vcombine.high %v6000_v58, %v6000_v58 }
 0x5e7   : > { %v6984_v46 = vsel %vm6565_vm7, %v6000_v58, 4286644096  ;;  %v18951_v54 = vmax.bf16 %v5728_v24, %v5727_v28 }
 0x5e8   : > { %v6021_v26 = vrot.slane %v5993_v56, %v18554_v4  ;;  %v6023_v25 = vcombine.high %v6007_v63, %v6007_v63  ;;  %v6024_v13 = vcombine.high %v6014_v6, %v6014_v6  ;;  %v6986_v32 = vunpack.i.l.bf16 %v6984_v46  ;;  %v16722_v56 = vld [vmem:[%s22050_s5 + $0x30] sm:$0xff]  }
 0x5e9   : > { %v6987_v29 = vunpack.i.h.bf16 %v6984_v46  ;;  %v6997_v14 = vsel %vm6565_vm7, %v6014_v6, 4286644096  ;;  %v7010_v2 = vsel %vm6565_vm7, %v6022_v49, 4286644096  ;;  %v7036_v15 = vsel %vm6565_vm7, %v6007_v63, 4286644096  ;;  %15364 = vmatprep.subr.bf16.mxu0 %v16722_v56 }
 0x5ea   : > { %v6025_v47 = vcombine.high %v6021_v26, %v6021_v26  ;;  %v6999_v5 = vunpack.i.l.bf16 %v6997_v14  ;;  %v7000_v27 = vunpack.i.h.bf16 %v6997_v14  ;;  %v7012_v40 = vunpack.i.l.bf16 %v7010_v2  ;;  %15365 = vmatpush3.bf16.msra.mxu0 %v16722_v56 }
 0x5eb   : > { %v6988_v45 = vmax.f32 %v6986_v32, %v6987_v29  ;;  %v7013_v51 = vunpack.i.h.bf16 %v7010_v2  ;;  %v7023_v60 = vsel %vm6565_vm7, %v6024_v13, 4286644096  ;;  %v7038_v50 = vunpack.i.l.bf16 %v7036_v15  ;;  %v18966_v2 = vpop.f32.mrb[52].mxu1 }
 0x5ec   : > { %v7001_v34 = vmax.f32 %v6999_v5, %v7000_v27  ;;  %v7025_v58 = vunpack.i.l.bf16 %v7023_v60  ;;  %v7026_v24 = vunpack.i.h.bf16 %v7023_v60  ;;  %v7039_v28 = vunpack.i.h.bf16 %v7036_v15  ;;  %v18968_v60 = vpop.f32.mrb[53].mxu1 }
 0x5ed   : > { %v6989_v63 = vrot.slane %v6988_v45, 4  ;;  %v7014_v6 = vmax.f32 %v7012_v40, %v7013_v51  ;;  %v7049_v49 = vsel %vm6565_vm7, %v6021_v26, 4286644096  ;;  %v7062_v46 = vsel %vm6565_vm7, %v6023_v25, 4286644096  ;;  %v18970_v10 = vpop.f32.mrb[54].mxu1 }
 0x5ee   : > { %v7002_v32 = vrot.slane %v7001_v34, 4  ;;  %v7027_v29 = vmax.f32 %v7025_v58, %v7026_v24  ;;  %v7040_v14 = vmax.f32 %v7038_v50, %v7039_v28  ;;  %v7051_v13 = vunpack.i.l.bf16 %v7049_v49  ;;  %v18975_v9 = vpop.f32.mrb[55].mxu1 }
 0x5ef   : > { %v6990_v53 = vmax.f32 %v6988_v45, %v6989_v63  ;;  %v7015_v5 = vrot.slane %v7014_v6, 4  ;;  %v7052_v15 = vunpack.i.h.bf16 %v7049_v49  ;;  %v7064_v27 = vunpack.i.l.bf16 %v7062_v46 }
 0x5f0   : > { %v7003_v52 = vmax.f32 %v7001_v34, %v7002_v32  ;;  %v7028_v40 = vrot.slane %v7027_v29, 4  ;;  %v7041_v51 = vrot.slane %v7040_v14, 4  ;;  %v7065_v26 = vunpack.i.h.bf16 %v7062_v46 }
 0x5f1   : > { %v6955_v25 = vmax.f32 %v18890_v37, %v6954_v23  ;;  %v6991_v50 = vrot.slane %v6990_v53, 2  ;;  %v7016_v58 = vmax.f32 %v7014_v6, %v7015_v5  ;;  %v7053_v24 = vmax.f32 %v7051_v13, %v7052_v15 }
 0x5f2   : > { %v7004_v45 = vrot.slane %v7003_v52, 2  ;;  %v7029_v28 = vmax.f32 %v7027_v29, %v7028_v40  ;;  %v7042_v63 = vmax.f32 %v7040_v14, %v7041_v51  ;;  %v7066_v49 = vmax.f32 %v7064_v27, %v7065_v26 }
 0x5f3   : > { %v6978_v34 = vrot.slane %v18939_v44, 2  ;;  %v6992_v56 = vmax.f32 %v6990_v53, %v6991_v50  ;;  %v7017_v32 = vrot.slane %v7016_v58, 2  ;;  %v7054_v46 = vrot.slane %v7053_v24, 4 }
 0x5f4   : > { %v7005_v59 = vmax.f32 %v7003_v52, %v7004_v45  ;;  %v7030_v61 = vrot.slane %v7029_v28, 2  ;;  %v7043_v18 = vrot.slane %v7042_v63, 2  ;;  %v7075_v30 = vsel %vm6565_vm7, %v6025_v47, 4286644096 }
 0x5f5   : > { %v22566_v37 = vrot.slane %v18908_v22, 1  ;;  %v22567_v6 = vpack.i.bf16 %v18888_v48, %v18888_v48  ;;  %v8511_v14 = vsel %vm8487_vm8, %v18941_v17, %v18915_v16  ;;  %v7067_v13 = vrot.slane %v7066_v49, 4 }
 0x5f6   : > { %v22569_v52 = vpack.i.bf16 %v18900_v38, %v18900_v38  ;;  %v6993_v47 = vrot.slane %v6992_v56, 1  ;;  %v7018_v5 = vmax.f32 %v7016_v58, %v7017_v32  ;;  %v7055_v15 = vmax.f32 %v7053_v24, %v7054_v46 }
 0x5f7   : > { %v6968_v23 = vmax.f32 %v18908_v22, %v22566_v37  ;;  %v18985_v29 = vunpack.c.l.b16 %v22567_v6  ;;  %v7006_v27 = vrot.slane %v7005_v59, 1  ;;  %v7031_v22 = vmax.f32 %v7029_v28, %v7030_v61 }
 0x5f8   : > { %v18993_v53 = vunpack.c.l.b16 %v22569_v52  ;;  %v7077_v40 = vunpack.i.l.bf16 %v7075_v30  ;;  %v7078_v51 = vunpack.i.h.bf16 %v7075_v30  ;;  %v6956_v48 = vpack.i.bf16 %v6955_v25, %v6955_v25 }
 0x5f9   : > { %22568 = vst [vmem:[#allocation40_spill] sm:$0xff] %v18985_v29  ;;  %v7044_v26 = vmax.f32 %v7042_v63, %v7043_v18  ;;  %v5616_v50 = vadd.f32 %v18866_v31, %v18925_v35  ;;  %v5614_v16 = vadd.f32 %v18866_v31, %v18929_v8  ;;  %v6969_v17 = vpack.i.bf16 %v6968_v23, %v6968_v23  ;;  %v16723_v23 = vld [vmem:[%s22050_s5 + $0x38] sm:$0xff]  }
 0x5fa   : > { %22570 = vst [vmem:[#allocation53_spill] sm:$0xff] %v18993_v53  ;;  %v19001_v38 = vsel %vm8489_vm9, %v18948_v39, %v8511_v14  ;;  %v7068_v45 = vmax.f32 %v7066_v49, %v7067_v13  ;;  %v5615_v58 = vadd.f32 %v18866_v31, %v18906_v57  ;;  %v19005_v61 = vmax.f32 %v6992_v56, %v6993_v47 }
 0x5fb   : > { %22571 = vst [vmem:[#allocation54_spill] sm:$0xff] %v19001_v38  ;;  %v7019_v30 = vrot.slane %v7018_v5, 1  ;;  %v7056_v25 = vrot.slane %v7055_v15, 2  ;;  %v5613_v18 = vadd.f32 %v18866_v31, %v18919_v43  ;;  %v19010_v35 = vmax.f32 %v18939_v44, %v6978_v34  ;;  %15366 = vmatprep.subr.bf16.mxu0 %v16723_v23 }
 0x5fc   : > { %v19012_v8 = vmax.f32 %v7005_v59, %v7006_v27  ;;  %v7032_v24 = vrot.slane %v7031_v22, 1  ;;  %v19014_v28 = vmax.f32 %v7077_v40, %v7078_v51  ;;  %v19016_v39 = vunpack.c.l.b16 %v6956_v48  ;;  %15367 = vmatpush3.bf16.msra.mxu0 %v16723_v23 }
 0x5fd   : > { %22572 = vst [vmem:[#allocation56_spill] sm:$0xff] %v19010_v35  ;;  %v7045_v63 = vrot.slane %v7044_v26, 1  ;;  %v5680_v49 = vmax.f32 %v5616_v50, 0.0  ;;  %v5678_v57 = vmax.f32 %v5614_v16, 0.0  ;;  %v19018_v56 = vunpack.c.l.b16 %v6969_v17  ;;  %v22575_v50 = vld [vmem:[#allocation96_spill] sm:$0xff] }
 0x5fe   : > { %22573 = vst [vmem:[#allocation57_spill] sm:$0xff] %v19016_v39  ;;  %v7069_v32 = vrot.slane %v7068_v45, 2  ;;  %v6026_v46 = vcombine.high %v18951_v54, %v18951_v54  ;;  %v5679_v43 = vmax.f32 %v5615_v58, 0.0  ;;  %v19024_v59 = vmax.f32 %v7018_v5, %v7019_v30 }
 0x5ff   : > { %22574 = vst [vmem:[#allocation9_spill] sm:$0xff] %v19018_v56  ;;  %v19026_v34 = vmax.f32 %v7055_v15, %v7056_v25  ;;  %v5677_v37 = vmax.f32 %v5613_v18, 0.0  ;;  %v19033_v14 = vmax.f32 %v7031_v22, %v7032_v24  ;;  %v6033_v52 = vrot.slane %v18951_v54, %v18554_v4 }
 0x600   : > { %v19038_v47 = vmax.f32 %v7044_v26, %v7045_v63  ;;  %v6040_v5 = vrot.slane %v6026_v46, %v18554_v4  ;;  %v5730_v15 = vpack.c.bf16 %v5680_v49, %v5679_v43  ;;  %v19041_v40 = vmax.f32 %v7068_v45, %v7069_v32  ;;  %v19057_v49 = vpop.f32.mrb[56].mxu1 }
 0x601   : > { %v5729_v27 = vpack.c.bf16 %v5678_v57, %v5677_v37  ;;  %v6041_v51 = vcombine.high %v6033_v52, %v6033_v52  ;;  %v6049_v48 = vrot.slane %v6033_v52, %v18554_v4  ;;  %v19046_v22 = vadd.f32 %v18722_v41, %v22575_v50 }
 0x602   : > { %v6042_v26 = vcombine.high %v6040_v5, %v6040_v5  ;;  %v6056_v16 = vrot.slane %v6040_v5, %v18554_v4  ;;  %v7058_v58 = vrot.slane %v19026_v34, 1 }
 0x603   : > { %v19051_v17 = vmax.bf16 %v5730_v15, %v5729_v27  ;;  %v6063_v45 = vrot.slane %v6041_v51, %v18554_v4  ;;  %v6071_v30 = vcombine.high %v6049_v48, %v6049_v48  ;;  %v7088_v25 = vsel %vm6565_vm7, %v6049_v48, 4286644096 }
 0x604   : > { %v6070_v18 = vrot.slane %v6042_v26, %v18554_v4  ;;  %v6072_v41 = vcombine.high %v6056_v16, %v6056_v16  ;;  %v7090_v24 = vunpack.i.l.bf16 %v7088_v25  ;;  %v7091_v63 = vunpack.i.h.bf16 %v7088_v25 }
 0x605   : > { %v6073_v57 = vcombine.high %v6063_v45, %v6063_v45  ;;  %v7101_v32 = vsel %vm6565_vm7, %v6063_v45, 4286644096  ;;  %v7114_v46 = vsel %vm6565_vm7, %v6071_v30, 4286644096  ;;  %v7140_v43 = vsel %vm6565_vm7, %v6056_v16, 4286644096 }
 0x606   : > { %v6074_v37 = vcombine.high %v6070_v18, %v6070_v18  ;;  %v7092_v23 = vmax.f32 %v7090_v24, %v7091_v63  ;;  %v7103_v52 = vunpack.i.l.bf16 %v7101_v32  ;;  %v7104_v5 = vunpack.i.h.bf16 %v7101_v32 }
 0x607   : > { %v7116_v15 = vunpack.i.l.bf16 %v7114_v46  ;;  %v7117_v27 = vunpack.i.h.bf16 %v7114_v46  ;;  %v7127_v51 = vsel %vm6565_vm7, %v6073_v57, 4286644096  ;;  %v7142_v48 = vunpack.i.l.bf16 %v7140_v43 }
 0x608   : > { %v7093_v50 = vrot.slane %v7092_v23, 4  ;;  %v7105_v26 = vmax.f32 %v7103_v52, %v7104_v5  ;;  %v7129_v25 = vunpack.i.l.bf16 %v7127_v51  ;;  %v7130_v54 = vunpack.i.h.bf16 %v7127_v51 }
 0x609   : > { %v7118_v44 = vmax.f32 %v7116_v15, %v7117_v27  ;;  %v7143_v6 = vunpack.i.h.bf16 %v7140_v43  ;;  %v7153_v45 = vsel %vm6565_vm7, %v6070_v18, 4286644096  ;;  %v7166_v30 = vsel %vm6565_vm7, %v6072_v41, 4286644096 }
 0x60a   : > { %v7094_v16 = vmax.f32 %v7092_v23, %v7093_v50  ;;  %v7106_v13 = vrot.slane %v7105_v26, 4  ;;  %v7131_v24 = vmax.f32 %v7129_v25, %v7130_v54  ;;  %v7155_v63 = vunpack.i.l.bf16 %v7153_v45 }
 0x60b   : > { %v7119_v32 = vrot.slane %v7118_v44, 4  ;;  %v7144_v56 = vmax.f32 %v7142_v48, %v7143_v6  ;;  %v7156_v46 = vunpack.i.h.bf16 %v7153_v45  ;;  %v7168_v39 = vunpack.i.l.bf16 %v7166_v30 }
 0x60c   : > { %v7095_v57 = vrot.slane %v7094_v16, 2  ;;  %v7107_v53 = vmax.f32 %v7105_v26, %v7106_v13  ;;  %v7132_v29 = vrot.slane %v7131_v24, 4  ;;  %v7169_v52 = vunpack.i.h.bf16 %v7166_v30 }
 0x60d   : > { %v7071_v5 = vrot.slane %v19041_v40, 1  ;;  %v7120_v15 = vmax.f32 %v7118_v44, %v7119_v32  ;;  %v7145_v43 = vrot.slane %v7144_v56, 4  ;;  %v7157_v27 = vmax.f32 %v7155_v63, %v7156_v46 }
 0x60e   : > { %v7108_v18 = vrot.slane %v7107_v53, 2  ;;  %v7133_v51 = vmax.f32 %v7131_v24, %v7132_v29  ;;  %v7170_v41 = vmax.f32 %v7168_v39, %v7169_v52  ;;  %v7179_v23 = vsel %vm6565_vm7, %v6074_v37, 4286644096 }
 0x60f   : > { %v7096_v54 = vmax.f32 %v7094_v16, %v7095_v57  ;;  %v7121_v50 = vrot.slane %v7120_v15, 2  ;;  %v7146_v25 = vmax.f32 %v7144_v56, %v7145_v43  ;;  %v7158_v6 = vrot.slane %v7157_v27, 4 }
 0x610   : > { %v22576_v48 = vrot.slane %v19014_v28, 4  ;;  %v7109_v26 = vmax.f32 %v7107_v53, %v7108_v18  ;;  %v7134_v45 = vrot.slane %v7133_v51, 2  ;;  %v7171_v30 = vrot.slane %v7170_v41, 4 }
 0x611   : > { %v22577_v44 = vpack.i.bf16 %v19012_v8, %v19012_v8  ;;  %v7122_v32 = vmax.f32 %v7120_v15, %v7121_v50  ;;  %v7147_v29 = vrot.slane %v7146_v25, 2  ;;  %v7159_v39 = vmax.f32 %v7157_v27, %v7158_v6 }
 0x612   : > { %v7081_v13 = vmax.f32 %v19014_v28, %v22576_v48  ;;  %v7059_v37 = vmax.f32 %v19026_v34, %v7058_v58  ;;  %v7072_v16 = vmax.f32 %v19041_v40, %v7071_v5  ;;  %v7181_v56 = vunpack.i.l.bf16 %v7179_v23 }
 0x613   : > { %v8392_v63 = vunpack.c.l.b16 %v22577_v44  ;;  %v7182_v24 = vunpack.i.h.bf16 %v7179_v23  ;;  %v7097_v46 = vrot.slane %v7096_v54, 1  ;;  %v7110_v57 = vrot.slane %v7109_v26, 1 }
 0x614   : > { %v7135_v52 = vmax.f32 %v7133_v51, %v7134_v45  ;;  %v7172_v28 = vmax.f32 %v7170_v41, %v7171_v30  ;;  %v7034_v53 = vpack.i.bf16 %v19033_v14, %v19033_v14  ;;  %v7047_v8 = vpack.i.bf16 %v19038_v47, %v19038_v47 }
 0x615   : > { %v22578_v15 = vpack.i.bf16 %v19005_v61, %v19005_v61  ;;  %v7123_v27 = vrot.slane %v7122_v32, 1  ;;  %v7082_v34 = vrot.slane %v7081_v13, 2  ;;  %v22579_v40 = vpack.i.bf16 %v19024_v59, %v19024_v59 }
 0x616   : > { %v7148_v5 = vmax.f32 %v7146_v25, %v7147_v29  ;;  %v7160_v18 = vrot.slane %v7159_v39, 2  ;;  %v7060_v51 = vpack.i.bf16 %v7059_v37, %v7059_v37  ;;  %v7073_v41 = vpack.i.bf16 %v7072_v16, %v7072_v16 }
 0x617   : > { %v8391_v43 = vunpack.c.l.b16 %v22578_v15  ;;  %v8393_v58 = vunpack.c.l.b16 %v22579_v40  ;;  %v7183_v14 = vmax.f32 %v7181_v56, %v7182_v24  ;;  %v19086_v50 = vmax.f32 %v7096_v54, %v7097_v46  ;;  %v22586_v15 = vld [vmem:[#allocation97_spill] sm:$0xff] }
 0x618   : > { %v7111_v47 = vmax.f32 %v7109_v26, %v7110_v57  ;;  %v7136_v6 = vrot.slane %v7135_v52, 1  ;;  %v7173_v48 = vrot.slane %v7172_v28, 2  ;;  %v19088_v61 = vunpack.c.l.b16 %v7034_v53 }
 0x619   : > { %v8517_v23 = vsel %vm8487_vm8, %v8392_v63, %v8391_v43  ;;  %v19090_v45 = vunpack.c.l.b16 %v7047_v8  ;;  %v19092_v30 = vmax.f32 %v7122_v32, %v7123_v27  ;;  %v6075_v59 = vcombine.high %v19051_v17, %v19051_v17 }
 0x61a   : > { %22580 = vst [vmem:[#allocation13_spill] sm:$0xff] %v19088_v61  ;;  %v19096_v25 = vmax.f32 %v7081_v13, %v7082_v34  ;;  %v19099_v44 = vsel %vm8489_vm9, %v8393_v58, %v8517_v23  ;;  %v7149_v63 = vrot.slane %v7148_v5, 1  ;;  %v19101_v54 = vmax.f32 %v7159_v39, %v7160_v18 }
 0x61b   : > { %22581 = vst [vmem:[#allocation14_spill] sm:$0xff] %v19090_v45  ;;  %22583 = vst [vmem:[#allocation17_spill] sm:$0xff] %v19099_v44  ;;  %v19103_v26 = vunpack.c.l.b16 %v7060_v51  ;;  %v19105_v29 = vunpack.c.l.b16 %v7073_v41  ;;  %v7184_v37 = vrot.slane %v7183_v14, 4  ;;  %v6082_v32 = vrot.slane %v19051_v17, %v18554_v4 }
 0x61c   : > { %22582 = vst [vmem:[#allocation12_spill] sm:$0xff] %v19096_v25  ;;  %v7112_v56 = vpack.i.bf16 %v7111_v47, %v7111_v47  ;;  %v19111_v13 = vmax.f32 %v7135_v52, %v7136_v6  ;;  %v19113_v24 = vmax.f32 %v7172_v28, %v7173_v48  ;;  %v6089_v46 = vrot.slane %v6075_v59, %v18554_v4  ;;  %v22587_v52 = vld [vmem:[#allocation98_spill] sm:$0xff] }
 0x61d   : > { %22584 = vst [vmem:[#allocation19_spill] sm:$0xff] %v19103_v26  ;;  %22585 = vst [vmem:[#allocation22_spill] sm:$0xff] %v19105_v29  ;;  %v6090_v57 = vcombine.high %v6082_v32, %v6082_v32  ;;  %v6098_v53 = vrot.slane %v6082_v32, %v18554_v4  ;;  %v19119_v8 = vmax.f32 %v7148_v5, %v7149_v63  ;;  %v7162_v17 = vrot.slane %v19101_v54, 1 }
 0x61e   : > { %v19124_v43 = vadd.f32 %v18726_v19, %v22586_v15  ;;  %v19128_v28 = vadd.f32 %v18788_v1, %v22587_v52  ;;  %v19130_v27 = vmax.f32 %v7183_v14, %v7184_v37  ;;  %v6091_v34 = vcombine.high %v6089_v46, %v6089_v46 }
 0x61f   : > { %v6105_v40 = vrot.slane %v6089_v46, %v18554_v4  ;;  %v6112_v58 = vrot.slane %v6090_v57, %v18554_v4  ;;  %v19135_v18 = vunpack.c.l.b16 %v7112_v56  ;;  %v6120_v51 = vcombine.high %v6098_v53, %v6098_v53  ;;  %v19142_v46 = vpop.f32.mrb[57].mxu1 }
 0x620   : > { %v7192_v41 = vsel %vm6565_vm7, %v6098_v53, 4286644096  ;;  %v6119_v19 = vrot.slane %v6091_v34, %v18554_v4  ;;  %v19145_v34 = vpop.f32.mrb[58].mxu1 }
 0x621   : > { %v6121_v23 = vcombine.high %v6105_v40, %v6105_v40  ;;  %v6122_v47 = vcombine.high %v6112_v58, %v6112_v58  ;;  %v7194_v1 = vunpack.i.l.bf16 %v7192_v41  ;;  %v7195_v6 = vunpack.i.h.bf16 %v7192_v41 }
 0x622   : > { %v7205_v14 = vsel %vm6565_vm7, %v6112_v58, 4286644096  ;;  %v7218_v48 = vsel %vm6565_vm7, %v6120_v51, 4286644096  ;;  %v7244_v59 = vsel %vm6565_vm7, %v6105_v40, 4286644096  ;;  %v6123_v63 = vcombine.high %v6119_v19, %v6119_v19 }
 0x623   : > { %v7207_v37 = vunpack.i.l.bf16 %v7205_v14  ;;  %v7208_v32 = vunpack.i.h.bf16 %v7205_v14  ;;  %v7220_v56 = vunpack.i.l.bf16 %v7218_v48  ;;  %v7196_v57 = vmax.f32 %v7194_v1, %v7195_v6  ;;  %v19147_v51 = vpop.f32.mrb[59].mxu1 }
 0x624   : > { %v7221_v53 = vunpack.i.h.bf16 %v7218_v48  ;;  %v7231_v15 = vsel %vm6565_vm7, %v6122_v47, 4286644096  ;;  %v7246_v52 = vunpack.i.l.bf16 %v7244_v59  ;;  %v7247_v5 = vunpack.i.h.bf16 %v7244_v59  ;;  %22588 = vst [vmem:[#allocation61_spill] sm:$0xff] %v19147_v51 }
 0x625   : > { %v7209_v41 = vmax.f32 %v7207_v37, %v7208_v32  ;;  %v7233_v39 = vunpack.i.l.bf16 %v7231_v15  ;;  %v7234_v58 = vunpack.i.h.bf16 %v7231_v15  ;;  %v7197_v40 = vrot.slane %v7196_v57, 4 }
 0x626   : > { %v7222_v16 = vmax.f32 %v7220_v56, %v7221_v53  ;;  %v7257_v14 = vsel %vm6565_vm7, %v6119_v19, 4286644096  ;;  %v7270_v29 = vsel %vm6565_vm7, %v6121_v23, 4286644096  ;;  %v7248_v6 = vmax.f32 %v7246_v52, %v7247_v5 }
 0x627   : > { %v7210_v26 = vrot.slane %v7209_v41, 4  ;;  %v7235_v1 = vmax.f32 %v7233_v39, %v7234_v58  ;;  %v7259_v48 = vunpack.i.l.bf16 %v7257_v14  ;;  %v7198_v47 = vmax.f32 %v7196_v57, %v7197_v40  ;;  %v19152_v39 = vpop.f32.mrb[60].mxu1 }
 0x628   : > { %v7223_v45 = vrot.slane %v7222_v16, 4  ;;  %v7260_v61 = vunpack.i.h.bf16 %v7257_v14  ;;  %v7272_v44 = vunpack.i.l.bf16 %v7270_v29  ;;  %v7249_v15 = vrot.slane %v7248_v6, 4 }
 0x629   : > { %v7211_v37 = vmax.f32 %v7209_v41, %v7210_v26  ;;  %v7236_v32 = vrot.slane %v7235_v1, 4  ;;  %v7273_v59 = vunpack.i.h.bf16 %v7270_v29  ;;  %v7199_v38 = vrot.slane %v7198_v47, 2  ;;  %v19155_v26 = vpop.f32.mrb[61].mxu1 }
 0x62a   : > { %v7224_v25 = vmax.f32 %v7222_v16, %v7223_v45  ;;  %v7261_v35 = vmax.f32 %v7259_v48, %v7260_v61  ;;  %v7283_v56 = vsel %vm6565_vm7, %v6123_v63, 4286644096  ;;  %v7250_v23 = vmax.f32 %v7248_v6, %v7249_v15  ;;  %v19157_v61 = vpop.f32.mrb[62].mxu1 }
 0x62b   : > { %v7212_v19 = vrot.slane %v7211_v37, 2  ;;  %v7237_v53 = vmax.f32 %v7235_v1, %v7236_v32  ;;  %v7274_v51 = vmax.f32 %v7272_v44, %v7273_v59  ;;  %v7163_v5 = vmax.f32 %v19101_v54, %v7162_v17  ;;  %v19159_v44 = vpop.f32.mrb[63].mxu1 }
 0x62c   : > { %v7200_v57 = vmax.f32 %v7198_v47, %v7199_v38  ;;  %v7225_v52 = vrot.slane %v7224_v25, 2  ;;  %v7262_v58 = vrot.slane %v7261_v35, 4  ;;  %v7251_v40 = vrot.slane %v7250_v23, 2 }
 0x62d   : > { %v7213_v41 = vmax.f32 %v7211_v37, %v7212_v19  ;;  %v7238_v29 = vrot.slane %v7237_v53, 2  ;;  %v7275_v45 = vrot.slane %v7274_v51, 4  ;;  %v7285_v14 = vunpack.i.l.bf16 %v7283_v56 }
 0x62e   : > { %v7226_v16 = vmax.f32 %v7224_v25, %v7225_v52  ;;  %v7263_v63 = vmax.f32 %v7261_v35, %v7262_v58  ;;  %v7286_v1 = vunpack.i.h.bf16 %v7283_v56  ;;  %v7138_v54 = vpack.i.bf16 %v19111_v13, %v19111_v13 }
 0x62f   : > { %v22589_v38 = vpack.i.bf16 %v19086_v50, %v19086_v50  ;;  %v7201_v6 = vrot.slane %v7200_v57, 1  ;;  %v7276_v48 = vmax.f32 %v7274_v51, %v7275_v45  ;;  %v7151_v47 = vpack.i.bf16 %v19119_v8, %v19119_v8 }
 0x630   : > { %v7214_v37 = vrot.slane %v7213_v41, 1  ;;  %v7239_v32 = vmax.f32 %v7237_v53, %v7238_v29  ;;  %v7252_v25 = vmax.f32 %v7250_v23, %v7251_v40  ;;  %v22590_v35 = vrot.slane %v19113_v24, 1 }
 0x631   : > { %v8399_v17 = vunpack.c.l.b16 %v22589_v38  ;;  %v7186_v59 = vrot.slane %v19130_v27, 2  ;;  %v22591_v13 = vpack.i.bf16 %v19092_v30, %v19092_v30  ;;  %v7227_v50 = vrot.slane %v7226_v16, 1 }
 0x632   : > { %v7176_v15 = vmax.f32 %v19113_v24, %v22590_v35  ;;  %v7164_v19 = vpack.i.bf16 %v7163_v5, %v7163_v5  ;;  %v7264_v52 = vrot.slane %v7263_v63, 2  ;;  %v7287_v8 = vmax.f32 %v7285_v14, %v7286_v1 }
 0x633   : > { %v8401_v56 = vunpack.c.l.b16 %v22591_v13  ;;  %v8523_v51 = vsel %vm8487_vm8, %v19135_v18, %v8399_v17  ;;  %v19177_v58 = vunpack.c.l.b16 %v7138_v54  ;;  %v7202_v53 = vmax.f32 %v7200_v57, %v7201_v6  ;;  %v22597_v13 = vld [vmem:[#allocation99_spill] sm:$0xff] }
 0x634   : > { %v7277_v23 = vrot.slane %v7276_v48, 2  ;;  %v5619_v24 = vadd.f32 %v18866_v31, %v19046_v22  ;;  %v7215_v29 = vmax.f32 %v7213_v41, %v7214_v37  ;;  %v7240_v40 = vrot.slane %v7239_v32, 1 }
 0x635   : > { %22592 = vst [vmem:[#allocation62_spill] sm:$0xff] %v19177_v58  ;;  %v7253_v45 = vrot.slane %v7252_v25, 1  ;;  %v5620_v30 = vadd.f32 %v18866_v31, %v19128_v28  ;;  %v19184_v5 = vmax.f32 %v19130_v27, %v7186_v59  ;;  %v19186_v38 = vunpack.c.l.b16 %v7151_v47 }
 0x636   : > { %v19189_v18 = vsel %vm8489_vm9, %v8401_v56, %v8523_v51  ;;  %v7228_v14 = vmax.f32 %v7226_v16, %v7227_v50  ;;  %v7177_v57 = vpack.i.bf16 %v7176_v15, %v7176_v15  ;;  %v19191_v1 = vunpack.c.l.b16 %v7164_v19  ;;  %v22598_v16 = vld [vmem:[#allocation100_spill] sm:$0xff] }
 0x637   : > { %22593 = vst [vmem:[#allocation46_spill] sm:$0xff] %v19184_v5  ;;  %22594 = vst [vmem:[#allocation48_spill] sm:$0xff] %v19186_v38  ;;  %v7265_v54 = vmax.f32 %v7263_v63, %v7264_v52  ;;  %v7288_v22 = vrot.slane %v7287_v8, 4  ;;  %v7203_v41 = vpack.i.bf16 %v7202_v53, %v7202_v53  ;;  %v7278_v17 = vmax.f32 %v7276_v48, %v7277_v23  ;;  %v22600_v23 = vld [vmem:[#allocation37_spill] sm:$0xff] }
 0x638   : > { %22595 = vst [vmem:[#allocation49_spill] sm:$0xff] %v19189_v18  ;;  %22596 = vst [vmem:[#allocation52_spill] sm:$0xff] %v19191_v1  ;;  %v5683_v6 = vmax.f32 %v5619_v24, 0.0  ;;  %v5617_v28 = vadd.f32 %v18866_v31, %v19124_v43  ;;  %v7216_v37 = vpack.i.bf16 %v7215_v29, %v7215_v29  ;;  %v7241_v27 = vmax.f32 %v7239_v32, %v7240_v40 }
 0x639   : > { %v7254_v35 = vmax.f32 %v7252_v25, %v7253_v45  ;;  %v5684_v47 = vmax.f32 %v5620_v30, 0.0  ;;  %v7229_v59 = vpack.i.bf16 %v7228_v14, %v7228_v14  ;;  %v15903_v56 = vadd.f32 %v18790_v20, %v22597_v13 }
 0x63a   : > { %v15904_v15 = vadd.f32 %v18835_v36, %v22598_v16  ;;  %v6668_v63 = vrot.slane %v18717_v12, 1  ;;  %v7266_v50 = vrot.slane %v7265_v54, 1  ;;  %v19200_v19 = vmax.f32 %v7287_v8, %v7288_v22 }
 0x63b   : > { %v5732_v48 = vpack.c.bf16 %v5684_v47, %v5683_v6  ;;  %v8492_v43 = vsel %vm8491_vm10, %v18710_v11, %v18720_v3  ;;  %v19205_v32 = vunpack.c.l.b16 %v7177_v57  ;;  %v7279_v25 = vrot.slane %v7278_v17, 1  ;;  %v22606_v47 = vld [vmem:[#allocation103_spill] sm:$0xff] }
 0x63c   : > { %v5618_v51 = vadd.f32 %v18866_v31, %v15903_v56  ;;  %v6669_v20 = vmax.f32 %v18717_v12, %v6668_v63  ;;  %v7242_v52 = vpack.i.bf16 %v7241_v27, %v7241_v27  ;;  %v7255_v53 = vpack.i.bf16 %v7254_v35, %v7254_v35  ;;  %v22605_v27 = vld [vmem:[#allocation102_spill] sm:$0xff] }
 0x63d   : > { %22599 = vst [vmem:[#allocation5_spill] sm:$0xff] %v19205_v32  ;;  %v8407_v36 = vunpack.c.l.b16 %v7203_v41  ;;  %v8494_v24 = vsel %vm8493_vm11, %v22600_v23, %v8492_v43  ;;  %v8408_v8 = vunpack.c.l.b16 %v7216_v37  ;;  %v5681_v29 = vmax.f32 %v5617_v28, 0.0  ;;  %v22604_v37 = vld [vmem:[#allocation101_spill] sm:$0xff] }
 0x63e   : > { %v5682_v40 = vmax.f32 %v5618_v51, 0.0  ;;  %v5623_v45 = vadd.f32 %v18866_v31, %v15904_v15  ;;  %v19212_v30 = vmax.f32 %v7265_v54, %v7266_v50  ;;  %v7290_v11 = vrot.slane %v19200_v19, 2 }
 0x63f   : > { %v19215_v3 = vunpack.c.l.b16 %v7229_v59  ;;  %v8496_v12 = vsel %vm8495_vm12, %v18876_v33, %v8494_v24  ;;  %v19219_v14 = vmax.f32 %v7278_v17, %v7279_v25  ;;  %v6670_v22 = vpack.i.bf16 %v6669_v20, %v6669_v20  ;;  %v19249_v24 = vpop.f32.mrb[0].mxu1 }
 0x640   : > { %v5731_v57 = vpack.c.bf16 %v5682_v40, %v5681_v29  ;;  %v22601_v41 = vmov 0   ;;  %v19225_v28 = vunpack.c.l.b16 %v7242_v52  ;;  %v15905_v54 = vadd.f32 %v18931_v21, %v22604_v37  ;;  %v22608_v21 = vld [vmem:[#allocation104_spill] sm:$0xff] }
 0x641   : > { %v19223_v6 = vcombine.low %v22601_v41, %v22601_v41  ;;  %v15906_v35 = vadd.f32 %v18935_v62, %v22605_v27  ;;  %v15907_v59 = vadd.f32 %v18943_v0, %v22606_v47  ;;  %v19233_v33 = vunpack.c.l.b16 %v7255_v53 }
 0x642   : > { %22603 = vst [vmem:[#allocation7_spill] sm:$0xff] %v19225_v28  ;;  %v5756_v17 = vmax.bf16 %v5732_v48, %v5731_v57  ;;  %v5687_v13 = vmax.f32 %v5623_v45, 0.0  ;;  %v8498_v56 = vsel %vm8497_vm13, %v18880_v7, %v8496_v12  ;;  %v5621_v16 = vadd.f32 %v18866_v31, %v15905_v54 }
 0x643   : > { %22602 = vst [vmem:[#allocation6_spill] sm:$0xff] %v19223_v6  ;;  %22607 = vst [vmem:[#allocation10_spill] sm:$0xff] %v19233_v33  ;;  %v5624_v15 = vadd.f32 %v18866_v31, %v15906_v35  ;;  %v5622_v63 = vadd.f32 %v18866_v31, %v15907_v59  ;;  %v19242_v50 = vadd.f32 %v18966_v2, %v22608_v21  ;;  %v8366_v43 = vunpack.c.l.b16 %v6670_v22 }
 0x644   : > { %v6124_v62 = vcombine.high %v5756_v17, %v5756_v17  ;;  %v6131_v0 = vrot.slane %v5756_v17, %v18554_v4  ;;  %v8742_v48 = vshrl.u32 %v19223_v6, 16  ;;  %v8745_v25 = vshll.u32 %v19223_v6, 16 }
 0x645   : > { %v5685_v51 = vmax.f32 %v5621_v16, 0.0  ;;  %v5688_v7 = vmax.f32 %v5624_v15, 0.0  ;;  %v5686_v20 = vmax.f32 %v5622_v63, 0.0  ;;  %v8589_v23 = vpack.c.b16 %v8366_v43, %v8498_v56 }
 0x646   : > { %v6138_v52 = vrot.slane %v6124_v62, %v18554_v4  ;;  %v6139_v53 = vcombine.high %v6131_v0, %v6131_v0  ;;  %v6147_v31 = vrot.slane %v6131_v0, %v18554_v4  ;;  %v19252_v2 = vsel %vm8487_vm8, %v8408_v8, %v8407_v36 }
 0x647   : > { %v19254_v29 = vpack.c.bf16 %v5688_v7, %v5687_v13  ;;  %v19256_v40 = vpack.c.bf16 %v5686_v20, %v5685_v51  ;;  %v8744_v54 = vrot.slane %v8742_v48, 4  ;;  %v8747_v27 = vrot.slane %v8745_v25, 5 }
 0x648   : > { %v6140_v45 = vcombine.high %v6138_v52, %v6138_v52  ;;  %v6154_v12 = vrot.slane %v6138_v52, %v18554_v4  ;;  %v6161_v57 = vrot.slane %v6139_v53, %v18554_v4  ;;  %v6169_v22 = vcombine.high %v6147_v31, %v6147_v31 }
 0x649   : > { %v7296_v37 = vsel %vm6565_vm7, %v6147_v31, 4286644096  ;;  %v8621_v59 = vsel %vm17040_vm4, 0, %v8589_v23  ;;  %v22610_v0 = vmov 0 }
 0x64a   : > { %v19262_v35 = vrot.slane %v6140_v45, %v18554_v4  ;;  %v6171_v36 = vcombine.high %v6161_v57, %v6161_v57  ;;  %v7298_v8 = vunpack.i.l.bf16 %v7296_v37  ;;  %v7299_v17 = vunpack.i.h.bf16 %v7296_v37 }
 0x64b   : > { %v7309_v13 = vsel %vm6565_vm7, %v6161_v57, 4286644096  ;;  %v7322_v56 = vsel %vm6565_vm7, %v6169_v22, 4286644096  ;;  %v7348_v16 = vsel %vm6565_vm7, %v6154_v12, 4286644096  ;;  %v6170_v15 = vcombine.high %v6154_v12, %v6154_v12 }
 0x64c   : > { %v7311_v63 = vunpack.i.l.bf16 %v7309_v13  ;;  %v7312_v21 = vunpack.i.h.bf16 %v7309_v13  ;;  %v7324_v62 = vunpack.i.l.bf16 %v7322_v56  ;;  %v22611_v0 = vsel %vm19271_vm0, 4294967295, %v22610_v0 }
 0x64d   : > { %22612 = vst [vmem:[#allocation11_spill] sm:$0xff] %v22611_v0  ;;  %v7300_v43 = vmax.f32 %v7298_v8, %v7299_v17  ;;  %v7325_v48 = vunpack.i.h.bf16 %v7322_v56  ;;  %v7335_v25 = vsel %vm6565_vm7, %v6171_v36, 4286644096  ;;  %v7350_v51 = vunpack.i.l.bf16 %v7348_v16 }
 0x64e   : > { %v7313_v7 = vmax.f32 %v7311_v63, %v7312_v21  ;;  %v7337_v20 = vunpack.i.l.bf16 %v7335_v25  ;;  %v7338_v52 = vunpack.i.h.bf16 %v7335_v25  ;;  %v7351_v53 = vunpack.i.h.bf16 %v7348_v16 }
 0x64f   : > { %v7301_v31 = vrot.slane %v7300_v43, 4  ;;  %v7326_v23 = vmax.f32 %v7324_v62, %v7325_v48  ;;  %v7361_v45 = vsel %vm6565_vm7, %v19262_v35, 4286644096  ;;  %v19280_v12 = vsel %vm19271_vm0, %v8621_v59, 0 }
 0x650   : > { %22613 = vst [vmem:[#allocation15_spill] sm:$0xff] %v19280_v12  ;;  %v7314_v57 = vrot.slane %v7313_v7, 4  ;;  %v7339_v22 = vmax.f32 %v7337_v20, %v7338_v52  ;;  %v7352_v37 = vmax.f32 %v7350_v51, %v7351_v53  ;;  %v7374_v8 = vsel %vm6565_vm7, %v6170_v15, 4286644096 }
 0x651   : > { %v7302_v36 = vmax.f32 %v7300_v43, %v7301_v31  ;;  %v7327_v17 = vrot.slane %v7326_v23, 4  ;;  %v7363_v13 = vunpack.i.l.bf16 %v7361_v45  ;;  %v7364_v56 = vunpack.i.h.bf16 %v7361_v45 }
 0x652   : > { %v7315_v63 = vmax.f32 %v7313_v7, %v7314_v57  ;;  %v7340_v16 = vrot.slane %v7339_v22, 4  ;;  %v7353_v21 = vrot.slane %v7352_v37, 4  ;;  %v19285_v62 = vcombine.high %v22601_v41, %v22601_v41 }
 0x653   : > { %v7303_v48 = vrot.slane %v7302_v36, 2  ;;  %v7376_v25 = vunpack.i.l.bf16 %v7374_v8  ;;  %v7377_v59 = vunpack.i.h.bf16 %v7374_v8  ;;  %v19289_v20 = vcombine.low %v19280_v12, %v19280_v12 }
 0x654   : > { %22614 = vst [vmem:[#allocation16_spill] sm:$0xff] %v19285_v62  ;;  %v7268_v15 = vpack.i.bf16 %v19212_v30, %v19212_v30  ;;  %v7328_v43 = vmax.f32 %v7326_v23, %v7327_v17  ;;  %v8748_v51 = vor.u32 %v8747_v27, %v8744_v54  ;;  %v8751_v7 = vshll.u32 %v19285_v62, 16 }
 0x655   : > { %22615 = vst [vmem:[#allocation20_spill] sm:$0xff] %v19289_v20  ;;  %v19297_v52 = vmax.f32 %v19200_v19, %v7290_v11  ;;  %v6172_v53 = vcombine.high %v19262_v35, %v19262_v35  ;;  %v7365_v31 = vmax.f32 %v7363_v13, %v7364_v56  ;;  %v7316_v45 = vrot.slane %v7315_v63, 2 }
 0x656   : > { %v7341_v57 = vmax.f32 %v7339_v22, %v7340_v16  ;;  %v7354_v8 = vmax.f32 %v7352_v37, %v7353_v21  ;;  %v7281_v30 = vpack.i.bf16 %v19219_v14, %v19219_v14  ;;  %v7304_v54 = vmax.f32 %v7302_v36, %v7303_v48  ;;  %v16778_v36 = vld [vmem:[%s22052_s7 + $0xb0] sm:$0xff]  }
 0x657   : > { %22616 = vst [vmem:[#allocation21_spill] sm:$0xff] %v19297_v52  ;;  %v7378_v27 = vmax.f32 %v7376_v25, %v7377_v59  ;;  %v8756_v23 = vshrl.u32 %v19289_v20, 16  ;;  %v7329_v17 = vrot.slane %v7328_v43, 2  ;;  %v8749_v62 = vrot.slane %v8748_v51, 4 }
 0x658   : > { %v8753_v19 = vrot.slane %v8751_v7, 5  ;;  %v8759_v11 = vshll.u32 %v19289_v20, 16  ;;  %v19308_v35 = vsel %vm8489_vm9, %v19215_v3, %v19252_v2  ;;  %v7366_v22 = vrot.slane %v7365_v31, 4 }
 0x659   : > { %22617 = vst [vmem:[#allocation28_spill] sm:$0xff] %v19308_v35  ;;  %v7387_v37 = vsel %vm6565_vm7, %v6172_v53, 4286644096  ;;  %v19313_v14 = vcombine.high %v19280_v12, %v19280_v12  ;;  %v19320_v13 = vunpack.c.l.b16 %v7268_v15  ;;  %v7317_v56 = vmax.f32 %v7315_v63, %v7316_v45 }
 0x65a   : > { %v7342_v16 = vrot.slane %v7341_v57, 2  ;;  %v7355_v21 = vrot.slane %v7354_v8, 2  ;;  %v19322_v48 = vunpack.c.l.b16 %v7281_v30  ;;  %v7305_v3 = vrot.slane %v7304_v54, 1 }
 0x65b   : > { %22618 = vst [vmem:[#allocation31_spill] sm:$0xff] %v19313_v14  ;;  %22621 = vst [vmem:[#allocation32_spill] sm:$0xff] %v19320_v13  ;;  %v7379_v2 = vrot.slane %v7378_v27, 4  ;;  %v8758_v25 = vrot.slane %v8756_v23, 4  ;;  %v19324_v59 = vmax.f32 %v7328_v43, %v7329_v17  ;;  %v7389_v51 = vunpack.i.l.bf16 %v7387_v37 }
 0x65c   : > { %22622 = vst [vmem:[#allocation36_spill] sm:$0xff] %v19322_v48  ;;  %v19328_v7 = vsel %vm19316_vm5, %v8749_v62, %v8753_v19  ;;  %v8761_v53 = vrot.slane %v8759_v11, 5  ;;  %v19330_v6 = vmax.f32 %v7365_v31, %v7366_v22  ;;  %v7390_v15 = vunpack.i.h.bf16 %v7387_v37  ;;  %v22625_v22 = vld [vmem:[#allocation105_spill] sm:$0xff] }
 0x65d   : > { %22623 = vst [vmem:[#allocation2_spill] sm:$0xff] %v19328_v7  ;;  %v8765_v63 = vshll.u32 %v19313_v14, 16  ;;  %v5757_v45 = vmax.bf16 %v19254_v29, %v19256_v40  ;;  %v7318_v30 = vrot.slane %v7317_v56, 1  ;;  %v19335_v20 = vmax.f32 %v7341_v57, %v7342_v16  ;;  %v22626_v29 = vld [vmem:[#allocation106_spill] sm:$0xff] }
 0x65e   : > { %v19337_v23 = vmax.f32 %v7354_v8, %v7355_v21  ;;  %v8762_v43 = vor.u32 %v8761_v53, %v8758_v25  ;;  %v19339_v17 = vmax.f32 %v7304_v54, %v7305_v3  ;;  %v19341_v41 = vmax.f32 %v7378_v27, %v7379_v2  ;;  %v22627_v27 = vld [vmem:[#allocation107_spill] sm:$0xff] }
 0x65f   : > { %v6173_v62 = vcombine.high %v5757_v45, %v5757_v45  ;;  %v6180_v31 = vrot.slane %v5757_v45, %v18554_v4  ;;  %v8767_v11 = vrot.slane %v8765_v63, 5  ;;  %v19346_v37 = vadd.f32 %v18968_v60, %v22625_v22 }
 0x660   : > { %22624 = vst [vmem:[#allocation41_spill] sm:$0xff] %v19341_v41  ;;  %v8763_v19 = vrot.slane %v8762_v43, 4  ;;  %v19350_v40 = vadd.f32 %v18970_v10, %v22626_v29  ;;  %v19356_v16 = vadd.f32 %v18975_v9, %v22627_v27  ;;  %v19360_v2 = vmax.f32 %v7389_v51, %v7390_v15 }
 0x661   : > { %v6187_v57 = vrot.slane %v6173_v62, %v18554_v4  ;;  %v6188_v8 = vcombine.high %v6180_v31, %v6180_v31  ;;  %v6196_v54 = vrot.slane %v6180_v31, %v18554_v4  ;;  %v19370_v9 = vmax.f32 %v7317_v56, %v7318_v30 }
 0x662   : > { %22628 = vst [vmem:[#allocation42_spill] sm:$0xff] %v19360_v2  ;;  %v19364_v60 = vsel %vm19316_vm5, %v8763_v19, %v8767_v11 }
 0x663   : > { %22629 = vst [vmem:[#allocation43_spill] sm:$0xff] %v19364_v60  ;;  %v13488_v10 = vcombine.low %v19328_v7, %v19364_v60  ;;  %v6189_v25 = vcombine.high %v6187_v57, %v6187_v57  ;;  %v6203_v53 = vrot.slane %v6187_v57, %v18554_v4  ;;  %v6210_v63 = vrot.slane %v6188_v8, %v18554_v4 }
 0x664   : > { %v6218_v43 = vcombine.high %v6196_v54, %v6196_v54  ;;  %v7400_v51 = vsel %vm6565_vm7, %v6196_v54, 4286644096 }
 0x665   : > { %15368 = vmatprep.mubr.msk.bf16.mxu0 %vm1825_vm1, %v13488_v10  ;;  %v6217_v15 = vrot.slane %v6189_v25, %v18554_v4  ;;  %v6219_v62 = vcombine.high %v6203_v53, %v6203_v53  ;;  %v6220_v31 = vcombine.high %v6210_v63, %v6210_v63  ;;  %v7402_v19 = vunpack.i.l.bf16 %v7400_v51 }
 0x666   : > { %v7403_v11 = vunpack.i.h.bf16 %v7400_v51  ;;  %v7413_v22 = vsel %vm6565_vm7, %v6210_v63, 4286644096  ;;  %v7426_v29 = vsel %vm6565_vm7, %v6218_v43, 4286644096  ;;  %v7452_v56 = vsel %vm6565_vm7, %v6203_v53, 4286644096 }
 0x667   : > { %v6221_v30 = vcombine.high %v6217_v15, %v6217_v15  ;;  %v7415_v57 = vunpack.i.l.bf16 %v7413_v22  ;;  %v7416_v8 = vunpack.i.h.bf16 %v7413_v22  ;;  %v7428_v27 = vunpack.i.l.bf16 %v7426_v29 }
 0x668   : > { %v7404_v3 = vmax.f32 %v7402_v19, %v7403_v11  ;;  %v7429_v54 = vunpack.i.h.bf16 %v7426_v29  ;;  %v7439_v10 = vsel %vm6565_vm7, %v6220_v31, 4286644096  ;;  %v7454_v45 = vunpack.i.l.bf16 %v7452_v56 }
 0x669   : > { %v7417_v25 = vmax.f32 %v7415_v57, %v7416_v8  ;;  %v7441_v21 = vunpack.i.l.bf16 %v7439_v10  ;;  %v7442_v60 = vunpack.i.h.bf16 %v7439_v10  ;;  %v7455_v2 = vunpack.i.h.bf16 %v7452_v56 }
 0x66a   : > { %v7405_v51 = vrot.slane %v7404_v3, 4  ;;  %v7430_v14 = vmax.f32 %v7428_v27, %v7429_v54  ;;  %v7465_v63 = vsel %vm6565_vm7, %v6217_v15, 4286644096  ;;  %v7478_v43 = vsel %vm6565_vm7, %v6219_v62, 4286644096 }
 0x66b   : > { %v7418_v53 = vrot.slane %v7417_v25, 4  ;;  %v7443_v12 = vmax.f32 %v7441_v21, %v7442_v60  ;;  %v7456_v7 = vmax.f32 %v7454_v45, %v7455_v2  ;;  %v7467_v22 = vunpack.i.l.bf16 %v7465_v63 }
 0x66c   : > { %v7406_v48 = vmax.f32 %v7404_v3, %v7405_v51  ;;  %v7431_v19 = vrot.slane %v7430_v14, 4  ;;  %v7468_v11 = vunpack.i.h.bf16 %v7465_v63  ;;  %v7480_v29 = vunpack.i.l.bf16 %v7478_v43 }
 0x66d   : > { %v7419_v31 = vmax.f32 %v7417_v25, %v7418_v53  ;;  %v7444_v13 = vrot.slane %v7443_v12, 4  ;;  %v7457_v57 = vrot.slane %v7456_v7, 4  ;;  %v7481_v8 = vunpack.i.h.bf16 %v7478_v43 }
 0x66e   : > { %v7407_v10 = vrot.slane %v7406_v48, 2  ;;  %v7432_v56 = vmax.f32 %v7430_v14, %v7431_v19  ;;  %v7469_v33 = vmax.f32 %v7467_v22, %v7468_v11  ;;  %v7491_v27 = vsel %vm6565_vm7, %v6221_v30, 4286644096  ;;  %v19386_v14 = vld [vmem:[%s22049_s4] ss:$0 sm:$0xff] }
 0x66f   : > { %v7420_v15 = vrot.slane %v7419_v31, 2  ;;  %v7445_v54 = vmax.f32 %v7443_v12, %v7444_v13  ;;  %v7458_v62 = vmax.f32 %v7456_v7, %v7457_v57  ;;  %v7482_v32 = vmax.f32 %v7480_v29, %v7481_v8  ;;  %v19390_v13 = vpop.f32.mrb[1].mxu1 }
 0x670   : > { %v7408_v21 = vmax.f32 %v7406_v48, %v7407_v10  ;;  %v7433_v2 = vrot.slane %v7432_v56, 2  ;;  %v7470_v60 = vrot.slane %v7469_v33, 4  ;;  %v7493_v3 = vunpack.i.l.bf16 %v7491_v27  ;;  %v19392_v19 = vpop.f32.mrb[2].mxu1 }
 0x671   : > { %v7421_v45 = vmax.f32 %v7419_v31, %v7420_v15  ;;  %v7446_v51 = vrot.slane %v7445_v54, 2  ;;  %v7459_v63 = vrot.slane %v7458_v62, 2  ;;  %v7483_v25 = vrot.slane %v7482_v32, 4  ;;  %v19397_v57 = vpop.f32.mrb[3].mxu1 }
 0x672   : > { %v7434_v53 = vmax.f32 %v7432_v56, %v7433_v2  ;;  %v7471_v28 = vmax.f32 %v7469_v33, %v7470_v60  ;;  %v7494_v43 = vunpack.i.h.bf16 %v7491_v27  ;;  %v5628_v12 = vadd.f32 %v19386_v14, %v19350_v40 }
 0x673   : > { %v7422_v48 = vrot.slane %v7421_v45, 1  ;;  %v7447_v7 = vmax.f32 %v7445_v54, %v7446_v51  ;;  %v7460_v30 = vmax.f32 %v7458_v62, %v7459_v63  ;;  %v7484_v22 = vmax.f32 %v7482_v32, %v7483_v25 }
 0x674   : > { %v7357_v11 = vrot.slane %v19337_v23, 1  ;;  %v7472_v33 = vrot.slane %v7471_v28, 2  ;;  %v7495_v29 = vmax.f32 %v7493_v3, %v7494_v43  ;;  %v5627_v31 = vadd.f32 %v19386_v14, %v19242_v50 }
 0x675   : > { %v7307_v40 = vpack.i.bf16 %v19339_v17, %v19339_v17  ;;  %v22630_v8 = vrot.slane %v19324_v59, 1  ;;  %v7409_v56 = vrot.slane %v7408_v21, 1  ;;  %v22631_v27 = vrot.slane %v19335_v20, 1 }
 0x676   : > { %v22633_v54 = vrot.slane %v19330_v6, 2  ;;  %v7435_v62 = vrot.slane %v7434_v53, 1  ;;  %v5692_v2 = vmax.f32 %v5628_v12, 0.0  ;;  %v7423_v17 = vmax.f32 %v7421_v45, %v7422_v48 }
 0x677   : > { %v7332_v10 = vmax.f32 %v19324_v59, %v22630_v8  ;;  %v19408_v15 = vmax.f32 %v19335_v20, %v22631_v27  ;;  %v7448_v60 = vrot.slane %v7447_v7, 1  ;;  %v7461_v3 = vrot.slane %v7460_v30, 1 }
 0x678   : > { %v19413_v50 = vmax.f32 %v19330_v6, %v22633_v54  ;;  %v7485_v51 = vrot.slane %v7484_v22, 2  ;;  %v7473_v59 = vmax.f32 %v7471_v28, %v7472_v33  ;;  %v7496_v63 = vrot.slane %v7495_v29, 4 }
 0x679   : > { %22632 = vst [vmem:[#allocation44_spill] sm:$0xff] %v19408_v15  ;;  %v5691_v25 = vmax.f32 %v5627_v31, 0.0  ;;  %v5625_v43 = vadd.f32 %v19386_v14, %v19346_v37  ;;  %v7320_v20 = vpack.i.bf16 %v19370_v9, %v19370_v9  ;;  %v7333_v8 = vpack.i.bf16 %v7332_v10, %v7332_v10 }
 0x67a   : > { %22634 = vst [vmem:[#allocation45_spill] sm:$0xff] %v19413_v50  ;;  %v19420_v27 = vmax.f32 %v19337_v23, %v7357_v11  ;;  %v7410_v6 = vmax.f32 %v7408_v21, %v7409_v56  ;;  %v19424_v12 = vunpack.c.l.b16 %v7307_v40  ;;  %v7436_v48 = vmax.f32 %v7434_v53, %v7435_v62  ;;  %v22637_v11 = vld [vmem:[#allocation108_spill] sm:$0xff] }
 0x67b   : > { %v5736_v28 = vpack.c.bf16 %v5692_v2, %v5691_v25  ;;  %v7424_v33 = vpack.i.bf16 %v7423_v17, %v7423_v17  ;;  %v7449_v31 = vmax.f32 %v7447_v7, %v7448_v60  ;;  %v7462_v54 = vmax.f32 %v7460_v30, %v7461_v3  ;;  %v22639_v7 = vld [vmem:[#allocation39_spill] sm:$0xff]  ;;  %v22640_v30 = vld [vmem:[#allocation38_spill] sm:$0xff] }
 0x67c   : > { %22635 = vst [vmem:[#allocation47_spill] sm:$0xff] %v19420_v27  ;;  %22636 = vst [vmem:[#allocation50_spill] sm:$0xff] %v19424_v12  ;;  %v7486_v32 = vmax.f32 %v7484_v22, %v7485_v51  ;;  %v7474_v37 = vrot.slane %v7473_v59, 1  ;;  %v7497_v41 = vmax.f32 %v7495_v29, %v7496_v63  ;;  %v5689_v50 = vmax.f32 %v5625_v43, 0.0  ;;  %v22644_v51 = vld [vmem:[#allocation109_spill] sm:$0xff] }
 0x67d   : > { %v5626_v9 = vadd.f32 %v19386_v14, %v19356_v16  ;;  %v7411_v23 = vpack.i.bf16 %v7410_v6, %v7410_v6  ;;  %v19430_v21 = vadd.f32 %v19057_v49, %v22637_v11  ;;  %v22638_v40 = vpack.c.b16 %v18861_v55, %v18859_v42 }
 0x67e   : > { %v22641_v22 = vpack.c.b16 %v22639_v7, %v22640_v30  ;;  %v7437_v10 = vpack.i.bf16 %v7436_v48, %v7436_v48  ;;  %v7450_v42 = vpack.i.bf16 %v7449_v31, %v7449_v31  ;;  %v7463_v55 = vpack.i.bf16 %v7462_v54, %v7462_v54 }
 0x67f   : > { %v8622_v53 = vsel %vm17040_vm4, 0, %v22638_v40  ;;  %v5690_v56 = vmax.f32 %v5626_v9, 0.0  ;;  %v7487_v62 = vrot.slane %v7486_v32, 1  ;;  %v8424_v2 = vunpack.c.l.b16 %v7424_v33 }
 0x680   : > { %v8623_v29 = vsel %vm17040_vm4, 0, %v22641_v22  ;;  %v19444_v16 = vsel %vm19271_vm0, %v8622_v53, 0  ;;  %v19450_v17 = vmax.f32 %v7473_v59, %v7474_v37  ;;  %v7498_v60 = vrot.slane %v7497_v41, 2  ;;  %v19466_v59 = vpop.f32.mrb[4].mxu1 }
 0x681   : > { %22642 = vst [vmem:[#allocation51_spill] sm:$0xff] %v19444_v16  ;;  %v19448_v49 = vsel %vm19271_vm0, %v8623_v29, 0  ;;  %v5735_v3 = vpack.c.bf16 %v5690_v56, %v5689_v50  ;;  %v19454_v63 = vadd.f32 %v19142_v46, %v22644_v51  ;;  %v8423_v43 = vunpack.c.l.b16 %v7411_v23  ;;  %v19474_v54 = vpop.f32.mrb[5].mxu1  ;;  %v22652_v29 = vld [vmem:[#allocation110_spill] sm:$0xff] }
 0x682   : > { %22643 = vst [vmem:[#allocation55_spill] sm:$0xff] %v19448_v49  ;;  %v19460_v6 = vcombine.low %v19444_v16, %v19444_v16  ;;  %v19464_v48 = vcombine.low %v19448_v49, %v19448_v49  ;;  %v19468_v33 = vunpack.c.l.b16 %v7320_v20  ;;  %v19470_v50 = vunpack.c.l.b16 %v7333_v8  ;;  %v19485_v40 = vpop.f32.mrb[6].mxu1 }
 0x683   : > { %v19472_v46 = vunpack.c.l.b16 %v7437_v10  ;;  %v5758_v31 = vmax.bf16 %v5736_v28, %v5735_v3  ;;  %v19476_v37 = vmax.f32 %v7486_v32, %v7487_v62  ;;  %v19478_v9 = vunpack.c.l.b16 %v7450_v42  ;;  %v19492_v7 = vpop.f32.mrb[7].mxu1  ;;  %v22656_v3 = vld [vmem:[#allocation61_spill] sm:$0xff] }
 0x684   : > { %22645 = vst [vmem:[#allocation60_spill] sm:$0xff] %v19460_v6  ;;  %22646 = vst [vmem:[#allocation8_spill] sm:$0xff] %v19464_v48  ;;  %v19480_v23 = vunpack.c.l.b16 %v7463_v55  ;;  %v19483_v11 = vsel %vm8487_vm8, %v8424_v2, %v8423_v43  ;;  %v19489_v8 = vmax.f32 %v7497_v41, %v7498_v60  ;;  %v8770_v32 = vshrl.u32 %v19460_v6, 16  ;;  %v22655_v60 = vld [vmem:[#allocation111_spill] sm:$0xff] }
 0x685   : > { %22647 = vst [vmem:[#allocation58_spill] sm:$0xff] %v19468_v33  ;;  %22648 = vst [vmem:[#allocation59_spill] sm:$0xff] %v19470_v50  ;;  %v6222_v53 = vcombine.high %v5758_v31, %v5758_v31  ;;  %v6229_v28 = vrot.slane %v5758_v31, %v18554_v4  ;;  %v8773_v30 = vshll.u32 %v19460_v6, 16  ;;  %v8784_v22 = vshrl.u32 %v19464_v48, 16 }
 0x686   : > { %22649 = vst [vmem:[#allocation69_spill] sm:$0xff] %v19478_v9  ;;  %22650 = vst [vmem:[#allocation70_spill] sm:$0xff] %v19480_v23  ;;  %v19499_v10 = vadd.f32 %v19145_v34, %v22652_v29  ;;  %v19505_v55 = vcombine.high %v19444_v16, %v19444_v16  ;;  %v19509_v62 = vcombine.high %v19448_v49, %v19448_v49  ;;  %v8787_v2 = vshll.u32 %v19464_v48, 16  ;;  %v22657_v34 = vld [vmem:[#allocation34_spill] sm:$0xff] }
 0x687   : > { %22651 = vst [vmem:[#allocation71_spill] sm:$0xff] %v19489_v8  ;;  %v6236_v56 = vrot.slane %v6222_v53, %v18554_v4  ;;  %v6237_v42 = vcombine.high %v6229_v28, %v6229_v28  ;;  %v6245_v41 = vrot.slane %v6229_v28, %v18554_v4  ;;  %v19514_v51 = vadd.f32 %v22656_v3, %v22655_v60 }
 0x688   : > { %22653 = vst [vmem:[#allocation72_spill] sm:$0xff] %v19505_v55  ;;  %22654 = vst [vmem:[#allocation73_spill] sm:$0xff] %v19509_v62  ;;  %v19518_v43 = vadd.f32 %v19152_v39, %v22657_v34  ;;  %v19523_v45 = vrot.slane %v8770_v32, 4  ;;  %v19525_v20 = vrot.slane %v8773_v30, 5  ;;  %v19527_v50 = vrot.slane %v8784_v22, 4  ;;  %v19533_v30 = vpop.f32.mrb[8].mxu1 }
 0x689   : > { %v6238_v31 = vcombine.high %v6236_v56, %v6236_v56  ;;  %v6252_v53 = vrot.slane %v6236_v56, %v18554_v4  ;;  %v6259_v28 = vrot.slane %v6237_v42, %v18554_v4  ;;  %v6267_v29 = vcombine.high %v6245_v41, %v6245_v41 }
 0x68a   : > { %v7504_v25 = vsel %vm6565_vm7, %v6245_v41, 4286644096 }
 0x68b   : > { %v6266_v60 = vrot.slane %v6238_v31, %v18554_v4  ;;  %v6268_v3 = vcombine.high %v6252_v53, %v6252_v53  ;;  %v6269_v33 = vcombine.high %v6259_v28, %v6259_v28  ;;  %v7506_v39 = vunpack.i.l.bf16 %v7504_v25 }
 0x68c   : > { %v7507_v34 = vunpack.i.h.bf16 %v7504_v25  ;;  %v7517_v12 = vsel %vm6565_vm7, %v6259_v28, 4286644096  ;;  %v7530_v56 = vsel %vm6565_vm7, %v6267_v29, 4286644096  ;;  %v7556_v42 = vsel %vm6565_vm7, %v6252_v53, 4286644096 }
 0x68d   : > { %v6270_v27 = vcombine.high %v6266_v60, %v6266_v60  ;;  %v7519_v41 = vunpack.i.l.bf16 %v7517_v12  ;;  %v7520_v32 = vunpack.i.h.bf16 %v7517_v12  ;;  %v7532_v15 = vunpack.i.l.bf16 %v7530_v56 }
 0x68e   : > { %v7508_v22 = vmax.f32 %v7506_v39, %v7507_v34  ;;  %v7533_v6 = vunpack.i.h.bf16 %v7530_v56  ;;  %v7543_v31 = vsel %vm6565_vm7, %v6269_v33, 4286644096  ;;  %v7558_v16 = vunpack.i.l.bf16 %v7556_v42 }
 0x68f   : > { %v7521_v49 = vmax.f32 %v7519_v41, %v7520_v32  ;;  %v7545_v48 = vunpack.i.l.bf16 %v7543_v31  ;;  %v7546_v25 = vunpack.i.h.bf16 %v7543_v31  ;;  %v7559_v23 = vunpack.i.h.bf16 %v7556_v42 }
 0x690   : > { %v7509_v28 = vrot.slane %v7508_v22, 4  ;;  %v7534_v9 = vmax.f32 %v7532_v15, %v7533_v6  ;;  %v7569_v29 = vsel %vm6565_vm7, %v6266_v60, 4286644096  ;;  %v7582_v53 = vsel %vm6565_vm7, %v6268_v3, 4286644096 }
 0x691   : > { %v7522_v8 = vrot.slane %v7521_v49, 4  ;;  %v7547_v12 = vmax.f32 %v7545_v48, %v7546_v25  ;;  %v7560_v35 = vmax.f32 %v7558_v16, %v7559_v23  ;;  %v7571_v1 = vunpack.i.l.bf16 %v7569_v29 }
 0x692   : > { %v7510_v38 = vmax.f32 %v7508_v22, %v7509_v28  ;;  %v7535_v39 = vrot.slane %v7534_v9, 4  ;;  %v7572_v34 = vunpack.i.h.bf16 %v7569_v29  ;;  %v7584_v56 = vunpack.i.l.bf16 %v7582_v53 }
 0x693   : > { %v7523_v33 = vmax.f32 %v7521_v49, %v7522_v8  ;;  %v7548_v58 = vrot.slane %v7547_v12, 4  ;;  %v7561_v41 = vrot.slane %v7560_v35, 4  ;;  %v7585_v32 = vunpack.i.h.bf16 %v7582_v53 }
 0x694   : > { %v7511_v31 = vrot.slane %v7510_v38, 2  ;;  %v7536_v42 = vmax.f32 %v7534_v9, %v7535_v39  ;;  %v7573_v18 = vmax.f32 %v7571_v1, %v7572_v34  ;;  %v8789_v15 = vrot.slane %v8787_v2, 5 }
 0x695   : > { %v7524_v6 = vrot.slane %v7523_v33, 2  ;;  %v7549_v60 = vmax.f32 %v7547_v12, %v7548_v58  ;;  %v7562_v52 = vmax.f32 %v7560_v35, %v7561_v41  ;;  %v7586_v3 = vmax.f32 %v7584_v56, %v7585_v32 }
 0x696   : > { %v7512_v5 = vmax.f32 %v7510_v38, %v7511_v31  ;;  %v7537_v48 = vrot.slane %v7536_v42, 2  ;;  %v7574_v16 = vrot.slane %v7573_v18, 4  ;;  %v7595_v23 = vsel %vm6565_vm7, %v6270_v27, 4286644096 }
 0x697   : > { %v7525_v22 = vmax.f32 %v7523_v33, %v7524_v6  ;;  %v7550_v25 = vrot.slane %v7549_v60, 2  ;;  %v7563_v28 = vrot.slane %v7562_v52, 2  ;;  %v7587_v49 = vrot.slane %v7586_v3, 4 }
 0x698   : > { %v19542_v8 = vsel %vm8489_vm9, %v19472_v46, %v19483_v11  ;;  %v7538_v1 = vmax.f32 %v7536_v42, %v7537_v48  ;;  %v8776_v58 = vor.u32 %v19525_v20, %v19523_v45  ;;  %v8790_v35 = vor.u32 %v8789_v15, %v19527_v50 }
 0x699   : > { %22658 = vst [vmem:[#allocation74_spill] sm:$0xff] %v19542_v8  ;;  %v7513_v38 = vrot.slane %v7512_v5, 1  ;;  %v7575_v9 = vmax.f32 %v7573_v18, %v7574_v16  ;;  %v7597_v2 = vunpack.i.l.bf16 %v7595_v23  ;;  %v7598_v29 = vunpack.i.h.bf16 %v7595_v23 }
 0x69a   : > { %v7526_v27 = vrot.slane %v7525_v22, 1  ;;  %v7551_v53 = vmax.f32 %v7549_v60, %v7550_v25  ;;  %v7588_v12 = vmax.f32 %v7586_v3, %v7587_v49  ;;  %v8793_v39 = vshll.u32 %v19509_v62, 16 }
 0x69b   : > { %v7539_v34 = vrot.slane %v7538_v1, 1  ;;  %v7564_v56 = vmax.f32 %v7562_v52, %v7563_v28  ;;  %v8779_v46 = vshll.u32 %v19505_v55, 16  ;;  %v5632_v11 = vadd.f32 %v19386_v14, %v19499_v10 }
 0x69c   : > { %v7489_v45 = vpack.i.bf16 %v19476_v37, %v19476_v37  ;;  %v5631_v18 = vadd.f32 %v19386_v14, %v19430_v21  ;;  %v8791_v50 = vrot.slane %v8790_v35, 4  ;;  %v5629_v20 = vadd.f32 %v19386_v14, %v19454_v63 }
 0x69d   : > { %v7514_v33 = vmax.f32 %v7512_v5, %v7513_v38  ;;  %v7576_v41 = vrot.slane %v7575_v9, 2  ;;  %v7599_v32 = vmax.f32 %v7597_v2, %v7598_v29  ;;  %v8777_v31 = vrot.slane %v8776_v58, 4 }
 0x69e   : > { %v7527_v52 = vmax.f32 %v7525_v22, %v7526_v27  ;;  %v7552_v42 = vrot.slane %v7551_v53, 1  ;;  %v7589_v15 = vrot.slane %v7588_v12, 2  ;;  %v8795_v6 = vrot.slane %v8793_v39, 5  ;;  %v22664_v27 = vld [vmem:[#allocation112_spill] sm:$0xff] }
 0x69f   : > { %v7540_v60 = vmax.f32 %v7538_v1, %v7539_v34  ;;  %v7565_v10 = vrot.slane %v7564_v56, 1  ;;  %v8781_v3 = vrot.slane %v8779_v46, 5  ;;  %v5696_v48 = vmax.f32 %v5632_v11, 0.0  ;;  %v22666_v34 = vld [vmem:[#allocation114_spill] sm:$0xff] }
 0x6a0   : > { %v22659_v37 = vpack.i.bf16 %v19450_v17, %v19450_v17  ;;  %v5695_v16 = vmax.f32 %v5631_v18, 0.0  ;;  %v19564_v5 = vsel %vm19316_vm5, %v8791_v50, %v8795_v6  ;;  %v5693_v63 = vmax.f32 %v5629_v20, 0.0  ;;  %v22667_v50 = vld [vmem:[#allocation18_spill] sm:$0xff] }
 0x6a1   : > { %22661 = vst [vmem:[#allocation76_spill] sm:$0xff] %v19564_v5  ;;  %v7515_v23 = vpack.i.bf16 %v7514_v33, %v7514_v33  ;;  %v7577_v22 = vmax.f32 %v7575_v9, %v7576_v41  ;;  %v7600_v25 = vrot.slane %v7599_v32, 4  ;;  %v19568_v28 = vsel %vm19316_vm5, %v8777_v31, %v8781_v3 }
 0x6a2   : > { %v19560_v21 = vunpack.c.l.b16 %v22659_v37  ;;  %22662 = vst [vmem:[#allocation77_spill] sm:$0xff] %v19568_v28  ;;  %v7528_v49 = vpack.i.bf16 %v7527_v52, %v7527_v52  ;;  %v7553_v1 = vmax.f32 %v7551_v53, %v7552_v42  ;;  %v7590_v58 = vmax.f32 %v7588_v12, %v7589_v15  ;;  %v22665_v12 = vld [vmem:[#allocation113_spill] sm:$0xff] }
 0x6a3   : > { %v19572_v17 = vcombine.low %v19568_v28, %v19564_v5  ;;  %v7541_v35 = vpack.i.bf16 %v7540_v60, %v7540_v60  ;;  %v7566_v38 = vmax.f32 %v7564_v56, %v7565_v10  ;;  %v5738_v2 = vpack.c.bf16 %v5696_v48, %v5695_v16 }
 0x6a4   : > { %22660 = vst [vmem:[#allocation75_spill] sm:$0xff] %v19560_v21  ;;  %v5630_v29 = vadd.f32 %v19386_v14, %v19514_v51  ;;  %v5635_v9 = vadd.f32 %v19386_v14, %v19518_v43  ;;  %v15917_v53 = vadd.f32 %v19155_v26, %v22664_v27  ;;  %v15918_v39 = vadd.f32 %v19157_v61, %v22665_v12 }
 0x6a5   : > { %22663 = vst [vmem:[#allocation78_spill] sm:$0xff] %v19572_v17  ;;  %15369 = vmatmul.mubr.msk.bf16.vlgmr.msra.gmra.mrb[128].mxu0 %vm1825_vm1, %v19572_v17  ;;  %v15919_v46 = vadd.f32 %v19159_v44, %v22666_v34  ;;  %v7578_v56 = vrot.slane %v7577_v22, 1  ;;  %v7601_v11 = vmax.f32 %v7599_v32, %v7600_v25  ;;  %v15920_v51 = vadd.f32 %v19249_v24, %v22667_v50 }
 0x6a6   : > { %v5694_v18 = vmax.f32 %v5630_v29, 0.0  ;;  %v7591_v20 = vrot.slane %v7590_v58, 1  ;;  %v5633_v33 = vadd.f32 %v19386_v14, %v15917_v53  ;;  %v5636_v43 = vadd.f32 %v19386_v14, %v15918_v39  ;;  %v22674_v39 = vld [vmem:[#allocation56_spill] sm:$0xff] }
 0x6a7   : > { %v5634_v41 = vadd.f32 %v19386_v14, %v15919_v46  ;;  %v7554_v26 = vpack.i.bf16 %v7553_v1, %v7553_v1  ;;  %v7567_v31 = vpack.i.bf16 %v7566_v38, %v7566_v38  ;;  %v8432_v52 = vunpack.c.l.b16 %v7528_v49 }
 0x6a8   : > { %v5737_v61 = vpack.c.bf16 %v5694_v18, %v5693_v63  ;;  %v5699_v42 = vmax.f32 %v5635_v9, 0.0  ;;  %v5697_v15 = vmax.f32 %v5633_v33, 0.0  ;;  %v5700_v44 = vmax.f32 %v5636_v43, 0.0  ;;  %v22675_v33 = vld [vmem:[#allocation12_spill] sm:$0xff] }
 0x6a9   : > { %v5698_v6 = vmax.f32 %v5634_v41, 0.0  ;;  %v19591_v32 = vmax.f32 %v7577_v22, %v7578_v56  ;;  %v7602_v60 = vrot.slane %v7601_v11, 2  ;;  %v8431_v10 = vunpack.c.l.b16 %v7515_v23  ;;  %v22671_v23 = vld [vmem:[#allocation23_spill] sm:$0xff]  ;;  %v22677_v41 = vld [vmem:[#allocation40_spill] sm:$0xff] }
 0x6aa   : > { %v5759_v24 = vmax.bf16 %v5738_v2, %v5737_v61  ;;  %v19593_v3 = vmax.f32 %v7590_v58, %v7591_v20  ;;  %v8433_v48 = vunpack.c.l.b16 %v7541_v35  ;;  %v5740_v37 = vpack.c.bf16 %v5700_v44, %v5699_v42 }
 0x6ab   : > { %v5739_v16 = vpack.c.bf16 %v5698_v6, %v5697_v15  ;;  %v19595_v25 = vunpack.c.l.b16 %v7489_v45  ;;  %v8547_v1 = vsel %vm8487_vm8, %v8432_v52, %v8431_v10  ;;  %v19599_v38 = vunpack.c.l.b16 %v7554_v26 }
 0x6ac   : > { %v6271_v49 = vcombine.high %v5759_v24, %v5759_v24  ;;  %v6278_v63 = vrot.slane %v5759_v24, %v18554_v4  ;;  %v19601_v29 = vunpack.c.l.b16 %v7567_v31  ;;  %v19607_v58 = vadd.f32 %v19390_v13, %v22671_v23 }
 0x6ad   : > { %22668 = vst [vmem:[#allocation79_spill] sm:$0xff] %v19595_v25  ;;  %22669 = vst [vmem:[#allocation80_spill] sm:$0xff] %v19599_v38  ;;  %v19603_v22 = vmax.bf16 %v5740_v37, %v5739_v16  ;;  %v19615_v53 = vmax.f32 %v7601_v11, %v7602_v60  ;;  %v19618_v12 = vsel %vm8489_vm9, %v8433_v48, %v8547_v1  ;;  %v6980_v34 = vrot.slane %v22674_v39, 1  ;;  %v22676_v11 = vld [vmem:[#allocation54_spill] sm:$0xff] }
 0x6ae   : > { %22670 = vst [vmem:[#allocation81_spill] sm:$0xff] %v19601_v29  ;;  %v6285_v45 = vrot.slane %v6271_v49, %v18554_v4  ;;  %v6286_v2 = vcombine.high %v6278_v63, %v6278_v63  ;;  %v6294_v9 = vrot.slane %v6278_v63, %v18554_v4  ;;  %22673 = vst [vmem:[#allocation83_spill] sm:$0xff] %v19618_v12  ;;  %v7084_v43 = vrot.slane %v22675_v33, 1 }
 0x6af   : > { %22672 = vst [vmem:[#allocation82_spill] sm:$0xff] %v19615_v53  ;;  %v19625_v20 = vadd.f32 %v19386_v14, %v15920_v51  ;;  %v8513_v26 = vsel %vm8491_vm10, %v22677_v41, %v22676_v11 }
 0x6b0   : > { %v6287_v13 = vcombine.high %v6285_v45, %v6285_v45  ;;  %v6301_v46 = vrot.slane %v6285_v45, %v18554_v4  ;;  %v6308_v56 = vrot.slane %v6286_v2, %v18554_v4  ;;  %v6316_v18 = vcombine.high %v6294_v9, %v6294_v9 }
 0x6b1   : > { %v7608_v50 = vsel %vm6565_vm7, %v6294_v9, 4286644096 }
 0x6b2   : > { %v6315_v31 = vrot.slane %v6287_v13, %v18554_v4  ;;  %v6317_v52 = vcombine.high %v6301_v46, %v6301_v46  ;;  %v6318_v61 = vcombine.high %v6308_v56, %v6308_v56  ;;  %v7610_v42 = vunpack.i.l.bf16 %v7608_v50 }
 0x6b3   : > { %v7611_v15 = vunpack.i.h.bf16 %v7608_v50  ;;  %v7621_v44 = vsel %vm6565_vm7, %v6308_v56, 4286644096  ;;  %v7634_v6 = vsel %vm6565_vm7, %v6316_v18, 4286644096  ;;  %v7660_v60 = vsel %vm6565_vm7, %v6301_v46, 4286644096 }
 0x6b4   : > { %v6319_v51 = vcombine.high %v6315_v31, %v6315_v31  ;;  %v7623_v10 = vunpack.i.l.bf16 %v7621_v44  ;;  %v7624_v24 = vunpack.i.h.bf16 %v7621_v44  ;;  %v7636_v48 = vunpack.i.l.bf16 %v7634_v6 }
 0x6b5   : > { %v7612_v37 = vmax.f32 %v7610_v42, %v7611_v15  ;;  %v7637_v16 = vunpack.i.h.bf16 %v7634_v6  ;;  %v7647_v1 = vsel %vm6565_vm7, %v6318_v61, 4286644096  ;;  %v7662_v49 = vunpack.i.l.bf16 %v7660_v60 }
 0x6b6   : > { %v7625_v63 = vmax.f32 %v7623_v10, %v7624_v24  ;;  %v7649_v23 = vunpack.i.l.bf16 %v7647_v1  ;;  %v7650_v45 = vunpack.i.h.bf16 %v7647_v1  ;;  %v7663_v2 = vunpack.i.h.bf16 %v7660_v60 }
 0x6b7   : > { %v7613_v9 = vrot.slane %v7612_v37, 4  ;;  %v7638_v13 = vmax.f32 %v7636_v48, %v7637_v16  ;;  %v7673_v56 = vsel %vm6565_vm7, %v6315_v31, 4286644096  ;;  %v7686_v18 = vsel %vm6565_vm7, %v6317_v52, 4286644096 }
 0x6b8   : > { %v7626_v46 = vrot.slane %v7625_v63, 4  ;;  %v7651_v50 = vmax.f32 %v7649_v23, %v7650_v45  ;;  %v7664_v11 = vmax.f32 %v7662_v49, %v7663_v2  ;;  %v7675_v41 = vunpack.i.l.bf16 %v7673_v56 }
 0x6b9   : > { %v7614_v44 = vmax.f32 %v7612_v37, %v7613_v9  ;;  %v7639_v42 = vrot.slane %v7638_v13, 4  ;;  %v7676_v15 = vunpack.i.h.bf16 %v7673_v56  ;;  %v7688_v6 = vunpack.i.l.bf16 %v7686_v18 }
 0x6ba   : > { %v7627_v61 = vmax.f32 %v7625_v63, %v7626_v46  ;;  %v7652_v27 = vrot.slane %v7651_v50, 4  ;;  %v7665_v10 = vrot.slane %v7664_v11, 4  ;;  %v7689_v24 = vunpack.i.h.bf16 %v7686_v18 }
 0x6bb   : > { %v7615_v1 = vrot.slane %v7614_v44, 2  ;;  %v7640_v60 = vmax.f32 %v7638_v13, %v7639_v42  ;;  %v7677_v35 = vmax.f32 %v7675_v41, %v7676_v15  ;;  %v6981_v48 = vmax.f32 %v22674_v39, %v6980_v34  ;;  %v19643_v34 = vpop.f32.mrb[9].mxu1  ;;  %v22678_v41 = vld [vmem:[#allocation53_spill] sm:$0xff] }
 0x6bc   : > { %v7628_v31 = vrot.slane %v7627_v61, 2  ;;  %v7653_v16 = vmax.f32 %v7651_v50, %v7652_v27  ;;  %v7666_v52 = vmax.f32 %v7664_v11, %v7665_v10  ;;  %v7690_v17 = vmax.f32 %v7688_v6, %v7689_v24 }
 0x6bd   : > { %v7616_v23 = vmax.f32 %v7614_v44, %v7615_v1  ;;  %v7641_v49 = vrot.slane %v7640_v60, 2  ;;  %v7678_v45 = vrot.slane %v7677_v35, 4  ;;  %v7699_v37 = vsel %vm6565_vm7, %v6319_v51, 4286644096  ;;  %v19647_v51 = vpop.f32.mrb[10].mxu1 }
 0x6be   : > { %v7629_v2 = vmax.f32 %v7627_v61, %v7628_v31  ;;  %v7654_v9 = vrot.slane %v7653_v16, 2  ;;  %v7667_v63 = vrot.slane %v7666_v52, 2  ;;  %v7691_v56 = vrot.slane %v7690_v17, 4  ;;  %v19654_v10 = vpop.f32.mrb[11].mxu1 }
 0x6bf   : > { %v7642_v46 = vmax.f32 %v7640_v60, %v7641_v49  ;;  %v7679_v18 = vmax.f32 %v7677_v35, %v7678_v45  ;;  %v6320_v13 = vcombine.high %v19603_v22, %v19603_v22  ;;  %v7085_v39 = vmax.f32 %v22675_v33, %v7084_v43  ;;  %v22683_v49 = vld [vmem:[#allocation57_spill] sm:$0xff] }
 0x6c0   : > { %v7617_v27 = vrot.slane %v7616_v23, 1  ;;  %v7701_v50 = vunpack.i.l.bf16 %v7699_v37  ;;  %v7702_v11 = vunpack.i.h.bf16 %v7699_v37  ;;  %v8514_v44 = vsel %vm8493_vm11, %v22678_v41, %v8513_v26 }
 0x6c1   : > { %v22679_v42 = vpack.i.bf16 %v19591_v32, %v19591_v32  ;;  %v7630_v35 = vrot.slane %v7629_v2, 1  ;;  %v7655_v6 = vmax.f32 %v7653_v16, %v7654_v9  ;;  %v7668_v61 = vmax.f32 %v7666_v52, %v7667_v63 }
 0x6c2   : > { %v22681_v33 = vpack.i.bf16 %v19593_v3, %v19593_v3  ;;  %v7692_v24 = vmax.f32 %v7690_v17, %v7691_v56  ;;  %v6327_v26 = vrot.slane %v19603_v22, %v18554_v4  ;;  %v6982_v1 = vpack.i.bf16 %v6981_v48, %v6981_v48  ;;  %v22684_v22 = vld [vmem:[#allocation17_spill] sm:$0xff] }
 0x6c3   : > { %v19652_v15 = vunpack.c.l.b16 %v22679_v42  ;;  %v7643_v60 = vrot.slane %v7642_v46, 1  ;;  %v7680_v31 = vrot.slane %v7679_v18, 2  ;;  %v6334_v32 = vrot.slane %v6320_v13, %v18554_v4  ;;  %v22685_v48 = vld [vmem:[#allocation13_spill] sm:$0xff] }
 0x6c4   : > { %v19659_v43 = vunpack.c.l.b16 %v22681_v33  ;;  %v8515_v16 = vsel %vm8495_vm12, %v22683_v49, %v8514_v44  ;;  %v19666_v52 = vmax.f32 %v7616_v23, %v7617_v27  ;;  %v19668_v45 = vmax.f32 %v7701_v50, %v7702_v11  ;;  %v22686_v44 = vld [vmem:[#allocation9_spill] sm:$0xff]  ;;  %v22687_v49 = vld [vmem:[#allocation14_spill] sm:$0xff]  ;;  %v19714_v11 = vpop.f32.mrb[12].mxu1 }
 0x6c5   : > { %22680 = vst [vmem:[#allocation84_spill] sm:$0xff] %v19652_v15  ;;  %v7086_v37 = vpack.i.bf16 %v7085_v39, %v7085_v39  ;;  %v19671_v9 = vmax.f32 %v7629_v2, %v7630_v35  ;;  %v7656_v17 = vrot.slane %v7655_v6, 1  ;;  %v7669_v63 = vrot.slane %v7668_v61, 1  ;;  %v19718_v28 = vpop.f32.mrb[13].mxu1 }
 0x6c6   : > { %22682 = vst [vmem:[#allocation4_spill] sm:$0xff] %v19659_v43  ;;  %v8519_v56 = vsel %vm8491_vm10, %v22685_v48, %v22684_v22  ;;  %v7693_v41 = vrot.slane %v7692_v24, 2  ;;  %v6335_v13 = vcombine.high %v6327_v26, %v6327_v26  ;;  %v6343_v42 = vrot.slane %v6327_v26, %v18554_v4 }
 0x6c7   : > { %v19679_v23 = vsel %vm8497_vm13, %v22686_v44, %v8515_v16  ;;  %v19681_v27 = vmax.f32 %v7642_v46, %v7643_v60  ;;  %v19683_v50 = vmax.f32 %v7679_v18, %v7680_v31  ;;  %v6336_v2 = vcombine.high %v6334_v32, %v6334_v32 }
 0x6c8   : > { %v19685_v39 = vunpack.c.l.b16 %v6982_v1  ;;  %v19690_v33 = vunpack.c.l.b16 %v7086_v37  ;;  %v19694_v26 = vsel %vm8493_vm11, %v22687_v49, %v8519_v56  ;;  %v19698_v60 = vmax.f32 %v7655_v6, %v7656_v17 }
 0x6c9   : > { %v19700_v18 = vmax.f32 %v7668_v61, %v7669_v63  ;;  %v6350_v1 = vrot.slane %v6334_v32, %v18554_v4  ;;  %v19703_v31 = vmax.f32 %v7692_v24, %v7693_v41  ;;  %v6357_v16 = vrot.slane %v6335_v13, %v18554_v4 }
 0x6ca   : > { %v6364_v37 = vrot.slane %v6336_v2, %v18554_v4  ;;  %v6365_v22 = vcombine.high %v6343_v42, %v6343_v42  ;;  %v7682_v56 = vrot.slane %v19683_v50, 1  ;;  %v7712_v44 = vsel %vm6565_vm7, %v6343_v42, 4286644096 }
 0x6cb   : > { %v7764_v6 = vsel %vm6565_vm7, %v6350_v1, 4286644096  ;;  %v6366_v61 = vcombine.high %v6350_v1, %v6350_v1  ;;  %v6367_v17 = vcombine.high %v6357_v16, %v6357_v16  ;;  %v7714_v32 = vunpack.i.l.bf16 %v7712_v44 }
 0x6cc   : > { %v6368_v63 = vcombine.high %v6364_v37, %v6364_v37  ;;  %v7715_v24 = vunpack.i.h.bf16 %v7712_v44  ;;  %v7725_v41 = vsel %vm6565_vm7, %v6357_v16, 4286644096  ;;  %v7738_v13 = vsel %vm6565_vm7, %v6365_v22, 4286644096  ;;  %v19720_v22 = vpop.f32.mrb[14].mxu1 }
 0x6cd   : > { %v7766_v2 = vunpack.i.l.bf16 %v7764_v6  ;;  %v7727_v49 = vunpack.i.l.bf16 %v7725_v41  ;;  %v7728_v3 = vunpack.i.h.bf16 %v7725_v41  ;;  %v7740_v46 = vunpack.i.l.bf16 %v7738_v13  ;;  %v19722_v29 = vpop.f32.mrb[15].mxu1 }
 0x6ce   : > { %v7741_v48 = vunpack.i.h.bf16 %v7738_v13  ;;  %v7716_v35 = vmax.f32 %v7714_v32, %v7715_v24  ;;  %v7751_v42 = vsel %vm6565_vm7, %v6367_v17, 4286644096  ;;  %v7767_v5 = vunpack.i.h.bf16 %v7764_v6  ;;  %22688 = vst [vmem:[#allocation85_spill] sm:$0xff] %v19722_v29 }
 0x6cf   : > { %v7777_v1 = vsel %vm6565_vm7, %v6364_v37, 4286644096  ;;  %v7729_v44 = vmax.f32 %v7727_v49, %v7728_v3  ;;  %v7753_v16 = vunpack.i.l.bf16 %v7751_v42  ;;  %v7754_v62 = vunpack.i.h.bf16 %v7751_v42 }
 0x6d0   : > { %v7742_v55 = vmax.f32 %v7740_v46, %v7741_v48  ;;  %v7717_v43 = vrot.slane %v7716_v35, 4  ;;  %v7768_v41 = vmax.f32 %v7766_v2, %v7767_v5  ;;  %v7779_v15 = vunpack.i.l.bf16 %v7777_v1 }
 0x6d1   : > { %v7780_v13 = vunpack.i.h.bf16 %v7777_v1  ;;  %v7730_v32 = vrot.slane %v7729_v44, 4  ;;  %v7755_v17 = vmax.f32 %v7753_v16, %v7754_v62  ;;  %v7790_v6 = vsel %vm6565_vm7, %v6366_v61, 4286644096 }
 0x6d2   : > { %v7743_v24 = vrot.slane %v7742_v55, 4  ;;  %v7718_v37 = vmax.f32 %v7716_v35, %v7717_v43  ;;  %v7769_v38 = vrot.slane %v7768_v41, 4  ;;  %v7792_v3 = vunpack.i.l.bf16 %v7790_v6 }
 0x6d3   : > { %v7781_v12 = vmax.f32 %v7779_v15, %v7780_v13  ;;  %v7731_v46 = vmax.f32 %v7729_v44, %v7730_v32  ;;  %v7756_v49 = vrot.slane %v7755_v17, 4  ;;  %v7793_v42 = vunpack.i.h.bf16 %v7790_v6 }
 0x6d4   : > { %v7744_v48 = vmax.f32 %v7742_v55, %v7743_v24  ;;  %v7695_v53 = vrot.slane %v19703_v31, 1  ;;  %v7719_v5 = vrot.slane %v7718_v37, 2  ;;  %v7770_v2 = vmax.f32 %v7768_v41, %v7769_v38 }
 0x6d5   : > { %v7782_v1 = vrot.slane %v7781_v12, 4  ;;  %v7732_v25 = vrot.slane %v7731_v46, 2  ;;  %v7757_v8 = vmax.f32 %v7755_v17, %v7756_v49  ;;  %v7794_v29 = vmax.f32 %v7792_v3, %v7793_v42 }
 0x6d6   : > { %v7745_v21 = vrot.slane %v7744_v48, 2  ;;  %v22689_v62 = vrot.slane %v19668_v45, 4  ;;  %v7720_v35 = vmax.f32 %v7718_v37, %v7719_v5  ;;  %v7771_v15 = vrot.slane %v7770_v2, 2 }
 0x6d7   : > { %v7783_v61 = vmax.f32 %v7781_v12, %v7782_v1  ;;  %v22690_v55 = vpack.i.bf16 %v19666_v52, %v19666_v52  ;;  %v7733_v16 = vmax.f32 %v7731_v46, %v7732_v25  ;;  %v7803_v38 = vsel %vm6565_vm7, %v6368_v63, 4286644096 }
 0x6d8   : > { %v7705_v43 = vmax.f32 %v19668_v45, %v22689_v62  ;;  %v7746_v13 = vmax.f32 %v7744_v48, %v7745_v21  ;;  %v7683_v41 = vmax.f32 %v19683_v50, %v7682_v56  ;;  %v7696_v32 = vmax.f32 %v19703_v31, %v7695_v53 }
 0x6d9   : > { %v8439_v44 = vunpack.c.l.b16 %v22690_v55  ;;  %v22691_v24 = vpack.i.bf16 %v19671_v9, %v19671_v9  ;;  %v7758_v45 = vrot.slane %v7757_v8, 2  ;;  %v7658_v12 = vpack.i.bf16 %v19698_v60, %v19698_v60 }
 0x6da   : > { %v7721_v6 = vrot.slane %v7720_v35, 1  ;;  %v7772_v37 = vmax.f32 %v7770_v2, %v7771_v15  ;;  %v7795_v52 = vrot.slane %v7794_v29, 4  ;;  %v7734_v3 = vrot.slane %v7733_v16, 1 }
 0x6db   : > { %v8440_v17 = vunpack.c.l.b16 %v22691_v24  ;;  %v7784_v25 = vrot.slane %v7783_v61, 2  ;;  %v7805_v21 = vunpack.i.l.bf16 %v7803_v38  ;;  %v7806_v46 = vunpack.i.h.bf16 %v7803_v38 }
 0x6dc   : > { %v7671_v50 = vpack.i.bf16 %v19700_v18, %v19700_v18  ;;  %v7706_v56 = vrot.slane %v7705_v43, 2  ;;  %v22692_v53 = vpack.i.bf16 %v19681_v27, %v19681_v27  ;;  %v7747_v31 = vrot.slane %v7746_v13, 1 }
 0x6dd   : > { %v7684_v63 = vpack.i.bf16 %v7683_v41, %v7683_v41  ;;  %v7697_v48 = vpack.i.bf16 %v7696_v32, %v7696_v32  ;;  %v8553_v60 = vsel %vm8487_vm8, %v8440_v17, %v8439_v44  ;;  %v7759_v49 = vmax.f32 %v7757_v8, %v7758_v45  ;;  %v22693_v44 = vld [vmem:[#allocation19_spill] sm:$0xff]  ;;  %v22694_v32 = vld [vmem:[#allocation22_spill] sm:$0xff] }
 0x6de   : > { %v8441_v9 = vunpack.c.l.b16 %v22692_v53  ;;  %v19746_v42 = vmax.f32 %v7720_v35, %v7721_v6  ;;  %v7773_v5 = vrot.slane %v7772_v37, 1  ;;  %v7796_v2 = vmax.f32 %v7794_v29, %v7795_v52  ;;  %v22695_v52 = vld [vmem:[#allocation25_spill] sm:$0xff] }
 0x6df   : > { %v8592_v1 = vpack.c.b16 %v19685_v39, %v19679_v23  ;;  %v19750_v62 = vunpack.c.l.b16 %v7658_v12  ;;  %v19752_v18 = vmax.f32 %v7733_v16, %v7734_v3  ;;  %v19754_v15 = vmax.f32 %v7783_v61, %v7784_v25 }
 0x6e0   : > { %v19756_v27 = vmax.f32 %v7805_v21, %v7806_v46  ;;  %v19758_v55 = vmax.f32 %v7705_v43, %v7706_v56  ;;  %v19760_v38 = vunpack.c.l.b16 %v7671_v50  ;;  %v19763_v8 = vsel %vm8489_vm9, %v8441_v9, %v8553_v60  ;;  %v22698_v50 = vld [vmem:[#allocation27_spill] sm:$0xff] }
 0x6e1   : > { %v19765_v35 = vmax.f32 %v7746_v13, %v7747_v31  ;;  %v19767_v29 = vunpack.c.l.b16 %v7684_v63  ;;  %v19769_v23 = vunpack.c.l.b16 %v7697_v48  ;;  %v7760_v39 = vrot.slane %v7759_v49, 1  ;;  %v22705_v48 = vld [vmem:[#allocation24_spill] sm:$0xff] }
 0x6e2   : > { %v8521_v61 = vsel %vm8495_vm12, %v22693_v44, %v19694_v26  ;;  %v19776_v16 = vmax.f32 %v7772_v37, %v7773_v5  ;;  %v7797_v41 = vrot.slane %v7796_v2, 2  ;;  %v7736_v13 = vpack.i.bf16 %v19752_v18, %v19752_v18  ;;  %v22707_v26 = vld [vmem:[#allocation29_spill] sm:$0xff] }
 0x6e3   : > { %v8522_v24 = vsel %vm8497_vm13, %v22694_v32, %v8521_v61  ;;  %v7786_v17 = vrot.slane %v19754_v15, 1  ;;  %v7808_v45 = vrot.slane %v19756_v27, 4  ;;  %v8624_v6 = vsel %vm17040_vm4, 0, %v8592_v1 }
 0x6e4   : > { %v8593_v12 = vpack.c.b16 %v19690_v33, %v8522_v24  ;;  %v5637_v37 = vadd.f32 %v19386_v14, %v19607_v58  ;;  %v15922_v3 = vadd.f32 %v19392_v19, %v22695_v52  ;;  %v19797_v21 = vsel %vm19271_vm0, %v8624_v6, 0  ;;  %v22697_v33 = vld [vmem:[#allocation26_spill] sm:$0xff] }
 0x6e5   : > { %22696 = vst [vmem:[#allocation86_spill] sm:$0xff] %v19797_v21  ;;  %v15923_v46 = vadd.f32 %v19397_v57, %v22697_v33  ;;  %v15924_v56 = vadd.f32 %v19466_v59, %v22698_v50  ;;  %v19803_v53 = vmax.f32 %v7759_v49, %v7760_v39  ;;  %v19811_v19 = vcombine.low %v19797_v21, %v19797_v21 }
 0x6e6   : > { %v8625_v25 = vsel %vm17040_vm4, 0, %v8593_v12  ;;  %v19815_v9 = vcombine.high %v19797_v21, %v19797_v21  ;;  %v19817_v31 = vmax.f32 %v7796_v2, %v7797_v41  ;;  %v5640_v63 = vadd.f32 %v19386_v14, %v15922_v3 }
 0x6e7   : > { %v19807_v58 = vsel %vm19271_vm0, %v8625_v25, 0  ;;  %22700 = vst [vmem:[#allocation88_spill] sm:$0xff] %v19811_v19  ;;  %v8798_v60 = vshrl.u32 %v19811_v19, 16  ;;  %v8801_v49 = vshll.u32 %v19811_v19, 16  ;;  %v5638_v5 = vadd.f32 %v19386_v14, %v15923_v46 }
 0x6e8   : > { %22699 = vst [vmem:[#allocation87_spill] sm:$0xff] %v19807_v58  ;;  %22701 = vst [vmem:[#allocation89_spill] sm:$0xff] %v19815_v9  ;;  %v19821_v57 = vcombine.low %v19807_v58, %v19807_v58  ;;  %v19825_v59 = vcombine.high %v19807_v58, %v19807_v58  ;;  %v5701_v39 = vmax.f32 %v5637_v37, 0.0  ;;  %v5704_v44 = vmax.f32 %v5640_v63, 0.0 }
 0x6e9   : > { %v8800_v61 = vrot.slane %v8798_v60, 4  ;;  %v8803_v41 = vrot.slane %v8801_v49, 5  ;;  %v8807_v32 = vshll.u32 %v19815_v9, 16  ;;  %v5702_v24 = vmax.f32 %v5638_v5, 0.0  ;;  %v22706_v60 = vld [vmem:[#allocation30_spill] sm:$0xff] }
 0x6ea   : > { %22702 = vst [vmem:[#allocation90_spill] sm:$0xff] %v19821_v57  ;;  %22703 = vst [vmem:[#allocation91_spill] sm:$0xff] %v19825_v59  ;;  %v8812_v2 = vshrl.u32 %v19821_v57, 16  ;;  %v8815_v1 = vshll.u32 %v19821_v57, 16  ;;  %v8821_v52 = vshll.u32 %v19825_v59, 16  ;;  %v22704_v3 = vmax.f32 %v19625_v20, 0.0 }
 0x6eb   : > { %v8804_v33 = vor.u32 %v8803_v41, %v8800_v61  ;;  %v5741_v46 = vpack.c.bf16 %v5702_v24, %v5701_v39  ;;  %v5643_v50 = vadd.f32 %v19386_v14, %v15924_v56  ;;  %v15925_v37 = vadd.f32 %v19474_v54, %v22705_v48 }
 0x6ec   : > { %v8814_v12 = vrot.slane %v8812_v2, 4  ;;  %v8817_v6 = vrot.slane %v8815_v1, 5  ;;  %v5742_v25 = vpack.c.bf16 %v5704_v44, %v22704_v3  ;;  %v15926_v49 = vadd.f32 %v19485_v40, %v22706_v60  ;;  %v22708_v2 = vld [vmem:[#allocation35_spill] sm:$0xff] }
 0x6ed   : > { %v15927_v5 = vadd.f32 %v19492_v7, %v22707_v26  ;;  %v19848_v1 = vadd.f32 %v19533_v30, %v22708_v2  ;;  %v8805_v20 = vrot.slane %v8804_v33, 4  ;;  %v8809_v44 = vrot.slane %v8807_v32, 5 }
 0x6ee   : > { %v8818_v63 = vor.u32 %v8817_v6, %v8814_v12  ;;  %v5761_v61 = vmax.bf16 %v5742_v25, %v5741_v46  ;;  %v5641_v39 = vadd.f32 %v19386_v14, %v15925_v37  ;;  %v8823_v41 = vrot.slane %v8821_v52, 5 }
 0x6ef   : > { %v5644_v54 = vadd.f32 %v19386_v14, %v15926_v49  ;;  %v5642_v48 = vadd.f32 %v19386_v14, %v15927_v5  ;;  %v19855_v40 = vsel %vm19316_vm5, %v8805_v20, %v8809_v44  ;;  %v5707_v30 = vmax.f32 %v5643_v50, 0.0 }
 0x6f0   : > { %v8819_v56 = vrot.slane %v8818_v63, 4  ;;  %22709 = vst [vmem:[#allocation92_spill] sm:$0xff] %v19855_v40  ;;  %v6369_v7 = vcombine.high %v5761_v61, %v5761_v61  ;;  %v6376_v26 = vrot.slane %v5761_v61, %v18554_v4  ;;  %v5705_v24 = vmax.f32 %v5641_v39, 0.0 }
 0x6f1   : > { %v5708_v12 = vmax.f32 %v5644_v54, 0.0  ;;  %v5706_v6 = vmax.f32 %v5642_v48, 0.0  ;;  %v19871_v33 = vmax.f32 %v19754_v15, %v7786_v17  ;;  %v19876_v46 = vmax.f32 %v19756_v27, %v7808_v45 }
 0x6f2   : > { %v19860_v32 = vsel %vm19316_vm5, %v8819_v56, %v8823_v41  ;;  %v6383_v14 = vrot.slane %v6369_v7, %v18554_v4  ;;  %v6384_v3 = vcombine.high %v6376_v26, %v6376_v26  ;;  %v6392_v25 = vrot.slane %v6376_v26, %v18554_v4 }
 0x6f3   : > { %22710 = vst [vmem:[#allocation93_spill] sm:$0xff] %v19860_v32  ;;  %v19864_v52 = vcombine.low %v19855_v40, %v19860_v32  ;;  %v5744_v50 = vpack.c.bf16 %v5708_v12, %v5707_v30  ;;  %v5743_v37 = vpack.c.bf16 %v5706_v6, %v5705_v24  ;;  %v7799_v2 = vrot.slane %v19817_v31, 1 }
 0x6f4   : > { %v6385_v63 = vcombine.high %v6383_v14, %v6383_v14  ;;  %v6399_v60 = vrot.slane %v6383_v14, %v18554_v4  ;;  %v6406_v49 = vrot.slane %v6384_v3, %v18554_v4  ;;  %v6414_v5 = vcombine.high %v6392_v25, %v6392_v25 }
 0x6f5   : > { %22711 = vst [vmem:[#allocation94_spill] sm:$0xff] %v19864_v52  ;;  %15372 = vmatprep.mubr.msk.bf16.mxu0 %vm1825_vm1, %v19864_v52  ;;  %v19886_v15 = vunpack.c.l.b16 %v7736_v13  ;;  %v7816_v27 = vsel %vm6565_vm7, %v6392_v25, 4286644096  ;;  %v19889_v17 = vmax.bf16 %v5744_v50, %v5743_v37 }
 0x6f6   : > { %v6413_v45 = vrot.slane %v6385_v63, %v18554_v4  ;;  %v6415_v20 = vcombine.high %v6399_v60, %v6399_v60  ;;  %v6416_v44 = vcombine.high %v6406_v49, %v6406_v49  ;;  %v7818_v61 = vunpack.i.l.bf16 %v7816_v27 }
 0x6f7   : > { %v7819_v39 = vunpack.i.h.bf16 %v7816_v27  ;;  %v7829_v56 = vsel %vm6565_vm7, %v6406_v49, 4286644096  ;;  %v7842_v41 = vsel %vm6565_vm7, %v6414_v5, 4286644096  ;;  %v7868_v54 = vsel %vm6565_vm7, %v6399_v60, 4286644096 }
 0x6f8   : > { %v6417_v48 = vcombine.high %v6413_v45, %v6413_v45  ;;  %v7831_v18 = vunpack.i.l.bf16 %v7829_v56  ;;  %v7832_v13 = vunpack.i.h.bf16 %v7829_v56  ;;  %v7844_v7 = vunpack.i.l.bf16 %v7842_v41 }
 0x6f9   : > { %v7820_v26 = vmax.f32 %v7818_v61, %v7819_v39  ;;  %v7845_v30 = vunpack.i.h.bf16 %v7842_v41  ;;  %v7855_v24 = vsel %vm6565_vm7, %v6416_v44, 4286644096  ;;  %v7870_v12 = vunpack.i.l.bf16 %v7868_v54 }
 0x6fa   : > { %v7833_v6 = vmax.f32 %v7831_v18, %v7832_v13  ;;  %v7857_v14 = vunpack.i.l.bf16 %v7855_v24  ;;  %v7858_v3 = vunpack.i.h.bf16 %v7855_v24  ;;  %v7871_v25 = vunpack.i.h.bf16 %v7868_v54 }
 0x6fb   : > { %v7821_v50 = vrot.slane %v7820_v26, 4  ;;  %v7846_v37 = vmax.f32 %v7844_v7, %v7845_v30  ;;  %v7881_v63 = vsel %vm6565_vm7, %v6413_v45, 4286644096  ;;  %v7894_v49 = vsel %vm6565_vm7, %v6415_v20, 4286644096 }
 0x6fc   : > { %v7834_v60 = vrot.slane %v7833_v6, 4  ;;  %v7859_v5 = vmax.f32 %v7857_v14, %v7858_v3  ;;  %v7872_v27 = vmax.f32 %v7870_v12, %v7871_v25  ;;  %v7883_v56 = vunpack.i.l.bf16 %v7881_v63 }
 0x6fd   : > { %v7822_v43 = vmax.f32 %v7820_v26, %v7821_v50  ;;  %v7847_v61 = vrot.slane %v7846_v37, 4  ;;  %v7884_v39 = vunpack.i.h.bf16 %v7881_v63  ;;  %v7896_v41 = vunpack.i.l.bf16 %v7894_v49 }
 0x6fe   : > { %v7835_v44 = vmax.f32 %v7833_v6, %v7834_v60  ;;  %v7860_v52 = vrot.slane %v7859_v5, 4  ;;  %v7873_v18 = vrot.slane %v7872_v27, 4  ;;  %v7897_v13 = vunpack.i.h.bf16 %v7894_v49 }
 0x6ff   : > { %v7823_v24 = vrot.slane %v7822_v43, 2  ;;  %v7848_v54 = vmax.f32 %v7846_v37, %v7847_v61  ;;  %v7885_v32 = vmax.f32 %v7883_v56, %v7884_v39  ;;  %v7907_v7 = vsel %vm6565_vm7, %v6417_v48, 4286644096 }
 0x700   : > { %v7836_v45 = vrot.slane %v7835_v44, 2  ;;  %v7861_v30 = vmax.f32 %v7859_v5, %v7860_v52  ;;  %v7874_v20 = vmax.f32 %v7872_v27, %v7873_v18  ;;  %v7898_v40 = vmax.f32 %v7896_v41, %v7897_v13 }
 0x701   : > { %v7824_v14 = vmax.f32 %v7822_v43, %v7823_v24  ;;  %v7849_v12 = vrot.slane %v7848_v54, 2  ;;  %v7886_v3 = vrot.slane %v7885_v32, 4  ;;  %v7909_v26 = vunpack.i.l.bf16 %v7907_v7 }
 0x702   : > { %v7837_v25 = vmax.f32 %v7835_v44, %v7836_v45  ;;  %v7862_v50 = vrot.slane %v7861_v30, 2  ;;  %v7875_v63 = vrot.slane %v7874_v20, 2  ;;  %v7899_v6 = vrot.slane %v7898_v40, 4 }
 0x703   : > { %v7825_v60 = vrot.slane %v7824_v14, 1  ;;  %v7850_v59 = vmax.f32 %v7848_v54, %v7849_v12  ;;  %v7887_v49 = vmax.f32 %v7885_v32, %v7886_v3  ;;  %v7910_v57 = vunpack.i.h.bf16 %v7907_v7 }
 0x704   : > { %v7800_v37 = vmax.f32 %v19817_v31, %v7799_v2  ;;  %v22712_v48 = vpack.i.bf16 %v19746_v42, %v19746_v42  ;;  %v7863_v5 = vmax.f32 %v7861_v30, %v7862_v50  ;;  %v7876_v27 = vmax.f32 %v7874_v20, %v7875_v63  ;;  %v22716_v20 = vld [vmem:[#allocation46_spill] sm:$0xff] }
 0x705   : > { %v7762_v43 = vpack.i.bf16 %v19803_v53, %v19803_v53  ;;  %v7810_v56 = vrot.slane %v19876_v46, 2  ;;  %v22713_v61 = vpack.i.bf16 %v19765_v35, %v19765_v35  ;;  %v7900_v41 = vmax.f32 %v7898_v40, %v7899_v6  ;;  %v16724_v35 = vld [vmem:[%s22050_s5] sm:$0xff]   ;;  %v16725_v40 = vld [vmem:[%s22050_s5 + $0x8] sm:$0xff]  }
 0x706   : > { %v8447_v52 = vunpack.c.l.b16 %v22712_v48  ;;  %v7788_v32 = vpack.i.bf16 %v19871_v33, %v19871_v33  ;;  %v7838_v31 = vrot.slane %v7837_v25, 1  ;;  %v7851_v2 = vrot.slane %v7850_v59, 1  ;;  %15384 = vmatprep.subr.bf16.mxu0 %v16724_v35 }
 0x707   : > { %v8449_v39 = vunpack.c.l.b16 %v22713_v61  ;;  %v7888_v44 = vrot.slane %v7887_v49, 2  ;;  %v22714_v42 = vpack.i.bf16 %v19776_v16, %v19776_v16  ;;  %v7826_v13 = vmax.f32 %v7824_v14, %v7825_v60  ;;  %v19927_v16 = vld [vmem:[%s22049_s4] ss:$0 sm:$0xff]  ;;  %15385 = vmatpush3.bf16.msra.mxu0 %v16724_v35 }
 0x708   : > { %v8559_v53 = vsel %vm8487_vm8, %v19886_v15, %v8447_v52  ;;  %v7911_v24 = vmax.f32 %v7909_v26, %v7910_v57  ;;  %v7801_v33 = vpack.i.bf16 %v7800_v37, %v7800_v37  ;;  %v7864_v54 = vrot.slane %v7863_v5, 1  ;;  %15386 = vmatprep.subr.bf16.mxu0 %v16725_v40 }
 0x709   : > { %v19914_v18 = vunpack.c.l.b16 %v22714_v42  ;;  %v7877_v7 = vrot.slane %v7876_v27, 1  ;;  %v19931_v15 = vadd.f32 %v19927_v16, %v19848_v1  ;;  %v19934_v57 = vmax.f32 %v19876_v46, %v7810_v56 }
 0x70a   : > { %v19936_v45 = vunpack.c.l.b16 %v7762_v43  ;;  %v7901_v30 = vrot.slane %v7900_v41, 2  ;;  %v7188_v14 = vrot.slane %v22716_v20, 1  ;;  %v19939_v12 = vunpack.c.l.b16 %v7788_v32  ;;  %v22719_v43 = vld [vmem:[#allocation21_spill] sm:$0xff] }
 0x70b   : > { %22715 = vst [vmem:[#allocation95_spill] sm:$0xff] %v19914_v18  ;;  %v19941_v3 = vmax.f32 %v7837_v25, %v7838_v31  ;;  %v19943_v26 = vmax.f32 %v7850_v59, %v7851_v2  ;;  %v19945_v50 = vmax.f32 %v7887_v49, %v7888_v44  ;;  %v19948_v1 = vsel %vm8489_vm9, %v8449_v39, %v8559_v53 }
 0x70c   : > { %22717 = vst [vmem:[#allocation96_spill] sm:$0xff] %v19939_v12  ;;  %v7827_v46 = vpack.i.bf16 %v7826_v13, %v7826_v13  ;;  %v7912_v63 = vrot.slane %v7911_v24, 4  ;;  %v6418_v6 = vcombine.high %v19889_v17, %v19889_v17  ;;  %v19952_v60 = vunpack.c.l.b16 %v7801_v33  ;;  %15387 = vmatpush3.bf16.msra.mxu0 %v16725_v40  ;;  %v16726_v13 = vld [vmem:[%s22050_s5 + $0x10] sm:$0xff]  }
 0x70d   : > { %v19954_v37 = vmax.f32 %v7863_v5, %v7864_v54  ;;  %v19956_v25 = vmax.f32 %v7876_v27, %v7877_v7  ;;  %v19959_v49 = vmax.f32 %v7900_v41, %v7901_v30  ;;  %v6425_v48 = vrot.slane %v19889_v17, %v18554_v4  ;;  %15388 = vmatprep.subr.bf16.mxu0 %v16726_v13 }
 0x70e   : > { %22718 = vst [vmem:[#allocation97_spill] sm:$0xff] %v19952_v60  ;;  %v19964_v52 = vmax.f32 %v22716_v20, %v7188_v14  ;;  %v7840_v61 = vpack.i.bf16 %v19941_v3, %v19941_v3  ;;  %v6432_v39 = vrot.slane %v6418_v6, %v18554_v4  ;;  %v19973_v41 = vmax.f32 %v7911_v24, %v7912_v63  ;;  %v16727_v24 = vld [vmem:[%s22050_s5 + $0x18] sm:$0xff]  }
 0x70f   : > { %v19975_v32 = vunpack.c.l.b16 %v7827_v46  ;;  %v6433_v17 = vcombine.high %v6425_v48, %v6425_v48  ;;  %v6441_v31 = vrot.slane %v6425_v48, %v18554_v4  ;;  %v7903_v35 = vrot.slane %v19959_v49, 1 }
 0x710   : > { %v6434_v42 = vcombine.high %v6432_v39, %v6432_v39  ;;  %v6448_v53 = vrot.slane %v6432_v39, %v18554_v4  ;;  %15389 = vmatpush3.bf16.msra.mxu0 %v16726_v13 }
 0x711   : > { %v6455_v40 = vrot.slane %v6433_v17, %v18554_v4  ;;  %v6463_v33 = vcombine.high %v6441_v31, %v6441_v31  ;;  %v7920_v54 = vsel %vm6565_vm7, %v6441_v31, 4286644096  ;;  %15390 = vmatprep.subr.bf16.mxu0 %v16727_v24 }
 0x712   : > { %v6462_v7 = vrot.slane %v6434_v42, %v18554_v4  ;;  %v6464_v30 = vcombine.high %v6448_v53, %v6448_v53  ;;  %v7922_v20 = vunpack.i.l.bf16 %v7920_v54  ;;  %v7923_v14 = vunpack.i.h.bf16 %v7920_v54 }
 0x713   : > { %v6465_v3 = vcombine.high %v6455_v40, %v6455_v40  ;;  %v7933_v46 = vsel %vm6565_vm7, %v6455_v40, 4286644096  ;;  %v7946_v63 = vsel %vm6565_vm7, %v6463_v33, 4286644096  ;;  %v7972_v6 = vsel %vm6565_vm7, %v6448_v53, 4286644096 }
 0x714   : > { %v6466_v48 = vcombine.high %v6462_v7, %v6462_v7  ;;  %v7924_v39 = vmax.f32 %v7922_v20, %v7923_v14  ;;  %v7935_v17 = vunpack.i.l.bf16 %v7933_v46  ;;  %v7936_v59 = vunpack.i.h.bf16 %v7933_v46  ;;  %15391 = vmatpush3.bf16.msra.mxu0 %v16727_v24 }
 0x715   : > { %v7948_v31 = vunpack.i.l.bf16 %v7946_v63  ;;  %v7949_v44 = vunpack.i.h.bf16 %v7946_v63  ;;  %v7959_v42 = vsel %vm6565_vm7, %v6465_v3, 4286644096  ;;  %v7974_v56 = vunpack.i.l.bf16 %v7972_v6 }
 0x716   : > { %v7925_v54 = vrot.slane %v7924_v39, 4  ;;  %v7937_v2 = vmax.f32 %v7935_v17, %v7936_v59  ;;  %v7961_v5 = vunpack.i.l.bf16 %v7959_v42  ;;  %v7962_v27 = vunpack.i.h.bf16 %v7959_v42 }
 0x717   : > { %v7950_v40 = vmax.f32 %v7948_v31, %v7949_v44  ;;  %v7975_v21 = vunpack.i.h.bf16 %v7972_v6  ;;  %v7985_v33 = vsel %vm6565_vm7, %v6462_v7, 4286644096  ;;  %v7998_v53 = vsel %vm6565_vm7, %v6464_v30, 4286644096 }
 0x718   : > { %v7926_v13 = vmax.f32 %v7924_v39, %v7925_v54  ;;  %v7938_v20 = vrot.slane %v7937_v2, 4  ;;  %v7963_v14 = vmax.f32 %v7961_v5, %v7962_v27  ;;  %v7987_v46 = vunpack.i.l.bf16 %v7985_v33 }
 0x719   : > { %v7951_v58 = vrot.slane %v7950_v40, 4  ;;  %v7976_v63 = vmax.f32 %v7974_v56, %v7975_v21  ;;  %v7988_v9 = vunpack.i.h.bf16 %v7985_v33  ;;  %v8000_v3 = vunpack.i.l.bf16 %v7998_v53 }
 0x71a   : > { %v7927_v19 = vrot.slane %v7926_v13, 2  ;;  %v7939_v60 = vmax.f32 %v7937_v2, %v7938_v20  ;;  %v7964_v59 = vrot.slane %v7963_v14, 4  ;;  %v8001_v17 = vunpack.i.h.bf16 %v7998_v53 }
 0x71b   : > { %v8456_v42 = vunpack.c.l.b16 %v7840_v61  ;;  %v7952_v44 = vmax.f32 %v7950_v40, %v7951_v58  ;;  %v7977_v6 = vrot.slane %v7976_v63, 4  ;;  %v7989_v31 = vmax.f32 %v7987_v46, %v7988_v9  ;;  %v16728_v40 = vld [vmem:[%s22050_s5 + $0x40] sm:$0xff]  }
 0x71c   : > { %v7928_v7 = vmax.f32 %v7926_v13, %v7927_v19  ;;  %v7940_v12 = vrot.slane %v7939_v60, 2  ;;  %v7965_v30 = vmax.f32 %v7963_v14, %v7964_v59  ;;  %v8002_v24 = vmax.f32 %v8000_v3, %v8001_v17  ;;  %15408 = vmatprep.subr.bf16.mxu0 %v16728_v40 }
 0x71d   : > { %v7953_v39 = vrot.slane %v7952_v44, 2  ;;  %v7978_v54 = vmax.f32 %v7976_v63, %v7977_v6  ;;  %v7990_v5 = vrot.slane %v7989_v31, 4  ;;  %v8011_v27 = vsel %vm6565_vm7, %v6466_v48, 4286644096 }
 0x71e   : > { %v7929_v21 = vrot.slane %v7928_v7, 1  ;;  %v7941_v56 = vmax.f32 %v7939_v60, %v7940_v12  ;;  %v7966_v33 = vrot.slane %v7965_v30, 2  ;;  %v8003_v18 = vrot.slane %v8002_v24, 4 }
 0x71f   : > { %v22720_v2 = vrot.slane %v19945_v50, 1  ;;  %v7904_v58 = vmax.f32 %v19959_v49, %v7903_v35  ;;  %v7954_v9 = vmax.f32 %v7952_v44, %v7953_v39  ;;  %v7979_v19 = vrot.slane %v7978_v54, 2 }
 0x720   : > { %v7914_v53 = vrot.slane %v19973_v41, 2  ;;  %v7991_v13 = vmax.f32 %v7989_v31, %v7990_v5  ;;  %v8013_v48 = vunpack.i.l.bf16 %v8011_v27  ;;  %v8014_v20 = vunpack.i.h.bf16 %v8011_v27 }
 0x721   : > { %v7891_v61 = vmax.f32 %v19945_v50, %v22720_v2  ;;  %v7930_v12 = vmax.f32 %v7928_v7, %v7929_v21  ;;  %v7942_v60 = vrot.slane %v7941_v56, 1  ;;  %v7967_v14 = vmax.f32 %v7965_v30, %v7966_v33 }
 0x722   : > { %v8004_v46 = vmax.f32 %v8002_v24, %v8003_v18  ;;  %v22721_v50 = vpack.i.bf16 %v19943_v26, %v19943_v26  ;;  %v22722_v35 = vpack.i.bf16 %v19954_v37, %v19954_v37  ;;  %v8565_v3 = vsel %vm8487_vm8, %v8456_v42, %v19975_v32  ;;  %v22724_v24 = vld [vmem:[#allocation49_spill] sm:$0xff]  ;;  %v22725_v37 = vld [vmem:[#allocation62_spill] sm:$0xff] }
 0x723   : > { %v7955_v59 = vrot.slane %v7954_v9, 1  ;;  %v7892_v17 = vpack.i.bf16 %v7891_v61, %v7891_v61  ;;  %v7905_v44 = vpack.i.bf16 %v7904_v58, %v7904_v58  ;;  %v7980_v6 = vmax.f32 %v7978_v54, %v7979_v19 }
 0x724   : > { %v8457_v49 = vunpack.c.l.b16 %v22721_v50  ;;  %v20014_v63 = vunpack.c.l.b16 %v22722_v35  ;;  %v22723_v31 = vrot.slane %v22719_v43, 1  ;;  %v7992_v7 = vrot.slane %v7991_v13, 2  ;;  %v22728_v50 = vld [vmem:[#allocation52_spill] sm:$0xff]  ;;  %v22730_v35 = vld [vmem:[#allocation7_spill] sm:$0xff] }
 0x725   : > { %v8015_v30 = vmax.f32 %v8013_v48, %v8014_v20  ;;  %v7190_v26 = vpack.i.bf16 %v19964_v52, %v19964_v52  ;;  %v8525_v39 = vsel %vm8491_vm10, %v22725_v37, %v22724_v24  ;;  %v7931_v5 = vpack.i.bf16 %v7930_v12, %v7930_v12  ;;  %v22735_v37 = vld [vmem:[#allocation32_spill] sm:$0xff] }
 0x726   : > { %v7293_v18 = vmax.f32 %v22719_v43, %v22723_v31  ;;  %v20026_v27 = vmax.f32 %v7941_v56, %v7942_v60  ;;  %v7968_v32 = vrot.slane %v7967_v14, 1  ;;  %v8005_v42 = vrot.slane %v8004_v46, 2  ;;  %v22733_v31 = vld [vmem:[#allocation10_spill] sm:$0xff] }
 0x727   : > { %v20029_v54 = vmax.f32 %v19973_v41, %v7914_v53  ;;  %v22726_v43 = vpack.i.bf16 %v19956_v25, %v19956_v25  ;;  %v20037_v33 = vsel %vm8489_vm9, %v8457_v49, %v8565_v3  ;;  %v20039_v52 = vmax.f32 %v7954_v9, %v7955_v59  ;;  %v22727_v53 = vld [vmem:[#allocation48_spill] sm:$0xff]  ;;  %v22731_v59 = vld [vmem:[#allocation33_spill] sm:$0xff] }
 0x728   : > { %v20041_v2 = vunpack.c.l.b16 %v7892_v17  ;;  %v20043_v61 = vunpack.c.l.b16 %v7905_v44  ;;  %v7981_v56 = vrot.slane %v7980_v6, 1  ;;  %v7294_v58 = vpack.i.bf16 %v7293_v18, %v7293_v18  ;;  %v22729_v49 = vld [vmem:[#allocation28_spill] sm:$0xff] }
 0x729   : > { %v20034_v21 = vunpack.c.l.b16 %v22726_v43  ;;  %v20045_v19 = vmax.f32 %v7991_v13, %v7992_v7  ;;  %v8016_v41 = vrot.slane %v8015_v30, 4  ;;  %v8406_v40 = vunpack.c.l.b16 %v7190_v26  ;;  %v22734_v7 = vld [vmem:[#allocation63_spill] sm:$0xff]  ;;  %v22737_v43 = vld [vmem:[#allocation64_spill] sm:$0xff] }
 0x72a   : > { %v8526_v25 = vsel %vm8493_vm11, %v22727_v53, %v8525_v39  ;;  %v20051_v20 = vmax.f32 %v7967_v14, %v7968_v32  ;;  %v20053_v9 = vmax.f32 %v8004_v46, %v8005_v42  ;;  %v20055_v12 = vunpack.c.l.b16 %v7931_v5  ;;  %v22732_v14 = vld [vmem:[#allocation5_spill] sm:$0xff]  ;;  %v22736_v42 = vld [vmem:[#allocation36_spill] sm:$0xff] }
 0x72b   : > { %v8527_v13 = vsel %vm8495_vm12, %v22728_v50, %v8526_v25  ;;  %v8531_v3 = vsel %vm8491_vm10, %v22730_v35, %v22729_v49  ;;  %v15929_v17 = vadd.f32 %v19643_v34, %v22731_v59  ;;  %v20066_v44 = vmax.f32 %v7980_v6, %v7981_v56  ;;  %v22738_v53 = vld [vmem:[#allocation65_spill] sm:$0xff] }
 0x72c   : > { %v8528_v46 = vsel %vm8497_vm13, %v22732_v14, %v8527_v13  ;;  %v8532_v18 = vsel %vm8493_vm11, %v22733_v31, %v8531_v3  ;;  %v15930_v26 = vadd.f32 %v19647_v51, %v22734_v7  ;;  %v8414_v24 = vunpack.c.l.b16 %v7294_v58 }
 0x72d   : > { %v8533_v39 = vsel %vm8495_vm12, %v22735_v37, %v8532_v18  ;;  %v8594_v5 = vpack.c.b16 %v8406_v40, %v8528_v46  ;;  %v5645_v32 = vadd.f32 %v19927_v16, %v15929_v17  ;;  %v15931_v56 = vadd.f32 %v19654_v10, %v22737_v43  ;;  %v22739_v40 = vld [vmem:[#allocation66_spill] sm:$0xff] }
 0x72e   : > { %v8534_v34 = vsel %vm8497_vm13, %v22736_v42, %v8533_v39  ;;  %v5648_v6 = vadd.f32 %v19927_v16, %v15930_v26  ;;  %v15932_v25 = vadd.f32 %v19714_v11, %v22738_v53  ;;  %v15933_v13 = vadd.f32 %v19718_v28, %v22739_v40 }
 0x72f   : > { %v8595_v58 = vpack.c.b16 %v8414_v24, %v8534_v34  ;;  %v8626_v50 = vsel %vm17040_vm4, 0, %v8594_v5  ;;  %v20089_v49 = vmax.f32 %v8015_v30, %v8016_v41  ;;  %v5646_v10 = vadd.f32 %v19927_v16, %v15931_v56 }
 0x730   : > { %v20093_v35 = vsel %vm19271_vm0, %v8626_v50, 0  ;;  %v5712_v3 = vmax.f32 %v5648_v6, 0.0  ;;  %v5709_v28 = vmax.f32 %v5645_v32, 0.0  ;;  %v22744_v14 = vmax.f32 %v19931_v15, 0.0  ;;  %v22747_v15 = vld [vmem:[#allocation67_spill] sm:$0xff] }
 0x731   : > { %22740 = vst [vmem:[#allocation98_spill] sm:$0xff] %v20093_v35  ;;  %v8627_v59 = vsel %vm17040_vm4, 0, %v8595_v58  ;;  %v20102_v17 = vcombine.low %v20093_v35, %v20093_v35  ;;  %v20110_v41 = vcombine.high %v20093_v35, %v20093_v35  ;;  %v5710_v31 = vmax.f32 %v5646_v10, 0.0  ;;  %v22749_v10 = vld [vmem:[#allocation85_spill] sm:$0xff] }
 0x732   : > { %v20106_v30 = vsel %vm19271_vm0, %v8627_v59, 0  ;;  %v5746_v46 = vpack.c.bf16 %v5712_v3, %v22744_v14  ;;  %v5651_v39 = vadd.f32 %v19927_v16, %v15932_v25  ;;  %v5649_v5 = vadd.f32 %v19927_v16, %v15933_v13  ;;  %v22748_v13 = vld [vmem:[#allocation68_spill] sm:$0xff] }
 0x733   : > { %22741 = vst [vmem:[#allocation99_spill] sm:$0xff] %v20102_v17  ;;  %22742 = vst [vmem:[#allocation100_spill] sm:$0xff] %v20106_v30  ;;  %v20116_v18 = vcombine.low %v20106_v30, %v20106_v30  ;;  %v20120_v7 = vcombine.high %v20106_v30, %v20106_v30  ;;  %v8826_v26 = vshrl.u32 %v20102_v17, 16  ;;  %v8829_v24 = vshll.u32 %v20102_v17, 16 }
 0x734   : > { %22743 = vst [vmem:[#allocation37_spill] sm:$0xff] %v20110_v41  ;;  %v5745_v37 = vpack.c.bf16 %v5710_v31, %v5709_v28  ;;  %v15934_v32 = vadd.f32 %v19720_v22, %v22747_v15  ;;  %v8835_v56 = vshll.u32 %v20110_v41, 16  ;;  %v15935_v59 = vadd.f32 %v22749_v10, %v22748_v13 }
 0x735   : > { %22745 = vst [vmem:[#allocation101_spill] sm:$0xff] %v20116_v18  ;;  %22746 = vst [vmem:[#allocation102_spill] sm:$0xff] %v20120_v7  ;;  %v8828_v42 = vrot.slane %v8826_v26, 4  ;;  %v8831_v34 = vrot.slane %v8829_v24, 5  ;;  %v8840_v6 = vshrl.u32 %v20116_v18, 16  ;;  %v8843_v43 = vshll.u32 %v20116_v18, 16 }
 0x736   : > { %v8849_v53 = vshll.u32 %v20120_v7, 16  ;;  %v5763_v58 = vmax.bf16 %v5746_v46, %v5745_v37  ;;  %v5652_v50 = vadd.f32 %v19927_v16, %v15934_v32  ;;  %v5715_v14 = vmax.f32 %v5651_v39, 0.0 }
 0x737   : > { %v8832_v40 = vor.u32 %v8831_v34, %v8828_v42  ;;  %v8842_v25 = vrot.slane %v8840_v6, 4  ;;  %v8845_v3 = vrot.slane %v8843_v43, 5  ;;  %v5713_v15 = vmax.f32 %v5649_v5, 0.0 }
 0x738   : > { %v6467_v22 = vcombine.high %v5763_v58, %v5763_v58  ;;  %v6474_v28 = vrot.slane %v5763_v58, %v18554_v4  ;;  %v5716_v31 = vmax.f32 %v5652_v50, 0.0  ;;  %v5650_v11 = vadd.f32 %v19927_v16, %v15935_v59 }
 0x739   : > { %v8833_v26 = vrot.slane %v8832_v40, 4  ;;  %v8846_v24 = vor.u32 %v8845_v3, %v8842_v25  ;;  %v8837_v34 = vrot.slane %v8835_v56, 5  ;;  %v8851_v43 = vrot.slane %v8849_v53, 5 }
 0x73a   : > { %v6481_v46 = vrot.slane %v6467_v22, %v18554_v4  ;;  %v6482_v37 = vcombine.high %v6474_v28, %v6474_v28  ;;  %v6490_v32 = vrot.slane %v6474_v28, %v18554_v4  ;;  %v20139_v42 = vpack.c.bf16 %v5716_v31, %v5715_v14 }
 0x73b   : > { %v8847_v6 = vrot.slane %v8846_v24, 4  ;;  %v5714_v13 = vmax.f32 %v5650_v11, 0.0  ;;  %v20145_v16 = vsel %vm19316_vm5, %v8833_v26, %v8837_v34 }
 0x73c   : > { %v6483_v10 = vcombine.high %v6481_v46, %v6481_v46  ;;  %v6497_v39 = vrot.slane %v6481_v46, %v18554_v4  ;;  %v6504_v58 = vrot.slane %v6482_v37, %v18554_v4  ;;  %v6512_v50 = vcombine.high %v6490_v32, %v6490_v32  ;;  %22750 = vst [vmem:[#allocation103_spill] sm:$0xff] %v20145_v16 }
 0x73d   : > { %v20149_v5 = vsel %vm19316_vm5, %v8847_v6, %v8851_v43  ;;  %v8024_v40 = vsel %vm6565_vm7, %v6490_v32, 4286644096  ;;  %v20152_v56 = vpack.c.bf16 %v5714_v13, %v5713_v15 }
 0x73e   : > { %22751 = vst [vmem:[#allocation104_spill] sm:$0xff] %v20149_v5  ;;  %v20156_v11 = vcombine.low %v20145_v16, %v20149_v5  ;;  %v6511_v53 = vrot.slane %v6483_v10, %v18554_v4  ;;  %v6513_v25 = vcombine.high %v6497_v39, %v6497_v39  ;;  %v6514_v3 = vcombine.high %v6504_v58, %v6504_v58 }
 0x73f   : > { %v8026_v59 = vunpack.i.l.bf16 %v8024_v40  ;;  %v8027_v22 = vunpack.i.h.bf16 %v8024_v40  ;;  %v8037_v28 = vsel %vm6565_vm7, %v6504_v58, 4286644096  ;;  %v8050_v14 = vsel %vm6565_vm7, %v6512_v50, 4286644096 }
 0x740   : > { %22752 = vst [vmem:[#allocation3_spill] sm:$0xff] %v20156_v11  ;;  %15373 = vmatmul.mubr.msk.bf16.gmra.mrb[132].mxu0 %vm1825_vm1, %v20156_v11  ;;  %v6515_v31 = vcombine.high %v6511_v53, %v6511_v53  ;;  %v8039_v26 = vunpack.i.l.bf16 %v8037_v28  ;;  %v8040_v24 = vunpack.i.h.bf16 %v8037_v28  ;;  %v8052_v15 = vunpack.i.l.bf16 %v8050_v14 }
 0x741   : > { %v8028_v46 = vmax.f32 %v8026_v59, %v8027_v22  ;;  %v8053_v37 = vunpack.i.h.bf16 %v8050_v14  ;;  %v8063_v32 = vsel %vm6565_vm7, %v6514_v3, 4286644096  ;;  %v8076_v34 = vsel %vm6565_vm7, %v6497_v39, 4286644096 }
 0x742   : > { %v8041_v6 = vmax.f32 %v8039_v26, %v8040_v24  ;;  %v8065_v43 = vunpack.i.l.bf16 %v8063_v32  ;;  %v8066_v13 = vunpack.i.h.bf16 %v8063_v32  ;;  %v8078_v10 = vunpack.i.l.bf16 %v8076_v34 }
 0x743   : > { %v8029_v58 = vrot.slane %v8028_v46, 4  ;;  %v8054_v40 = vmax.f32 %v8052_v15, %v8053_v37  ;;  %v8079_v50 = vunpack.i.h.bf16 %v8076_v34  ;;  %v8089_v60 = vsel %vm6565_vm7, %v6511_v53, 4286644096 }
 0x744   : > { %v8042_v48 = vrot.slane %v8041_v6, 4  ;;  %v8067_v51 = vmax.f32 %v8065_v43, %v8066_v13  ;;  %v8091_v11 = vunpack.i.l.bf16 %v8089_v60  ;;  %v8092_v28 = vunpack.i.h.bf16 %v8089_v60 }
 0x745   : > { %v8030_v5 = vmax.f32 %v8028_v46, %v8029_v58  ;;  %v8055_v59 = vrot.slane %v8054_v40, 4  ;;  %v8080_v22 = vmax.f32 %v8078_v10, %v8079_v50  ;;  %v8102_v3 = vsel %vm6565_vm7, %v6513_v25, 4286644096 }
 0x746   : > { %v8043_v14 = vmax.f32 %v8041_v6, %v8042_v48  ;;  %v8068_v39 = vrot.slane %v8067_v51, 4  ;;  %v8093_v26 = vmax.f32 %v8091_v11, %v8092_v28  ;;  %v8104_v24 = vunpack.i.l.bf16 %v8102_v3 }
 0x747   : > { %v8031_v32 = vrot.slane %v8030_v5, 2  ;;  %v8056_v16 = vmax.f32 %v8054_v40, %v8055_v59  ;;  %v8081_v7 = vrot.slane %v8080_v22, 4  ;;  %v8105_v15 = vunpack.i.h.bf16 %v8102_v3 }
 0x748   : > { %v8044_v37 = vrot.slane %v8043_v14, 2  ;;  %v8069_v34 = vmax.f32 %v8067_v51, %v8068_v39  ;;  %v8094_v53 = vrot.slane %v8093_v26, 4  ;;  %v8115_v43 = vsel %vm6565_vm7, %v6515_v31, 4286644096 }
 0x749   : > { %v8032_v13 = vmax.f32 %v8030_v5, %v8031_v32  ;;  %v8057_v60 = vrot.slane %v8056_v16, 2  ;;  %v8082_v46 = vmax.f32 %v8080_v22, %v8081_v7  ;;  %v8106_v58 = vmax.f32 %v8104_v24, %v8105_v15  ;;  %v22755_v32 = vld [vmem:[#allocation71_spill] sm:$0xff] }
 0x74a   : > { %v8007_v10 = vrot.slane %v20053_v9, 1  ;;  %v8045_v25 = vmax.f32 %v8043_v14, %v8044_v37  ;;  %v8070_v48 = vrot.slane %v8069_v34, 2  ;;  %v8095_v6 = vmax.f32 %v8093_v26, %v8094_v53 }
 0x74b   : > { %v8033_v11 = vrot.slane %v8032_v13, 1  ;;  %v8058_v50 = vmax.f32 %v8056_v16, %v8057_v60  ;;  %v8083_v28 = vrot.slane %v8082_v46, 2  ;;  %v8107_v40 = vrot.slane %v8106_v58, 4 }
 0x74c   : > { %v8071_v59 = vmax.f32 %v8069_v34, %v8070_v48  ;;  %v8096_v3 = vrot.slane %v8095_v6, 2  ;;  %v8117_v18 = vunpack.i.l.bf16 %v8115_v43  ;;  %v8118_v51 = vunpack.i.h.bf16 %v8115_v43 }
 0x74d   : > { %v22753_v39 = vrot.slane %v20045_v19, 1  ;;  %v22754_v7 = vpack.i.bf16 %v20026_v27, %v20026_v27  ;;  %v8046_v22 = vrot.slane %v8045_v25, 1  ;;  %v8084_v14 = vmax.f32 %v8082_v46, %v8083_v28 }
 0x74e   : > { %v8008_v26 = vmax.f32 %v20053_v9, %v8007_v10  ;;  %v8018_v16 = vrot.slane %v20089_v49, 2  ;;  %v8108_v24 = vmax.f32 %v8106_v58, %v8107_v40  ;;  %v7500_v15 = vrot.slane %v22755_v32, 1 }
 0x74f   : > { %v7995_v5 = vmax.f32 %v20045_v19, %v22753_v39  ;;  %v8464_v31 = vunpack.c.l.b16 %v22754_v7  ;;  %v7983_v37 = vpack.i.bf16 %v20066_v44, %v20066_v44  ;;  %v8034_v34 = vmax.f32 %v8032_v13, %v8033_v11 }
 0x750   : > { %v8059_v53 = vrot.slane %v8058_v50, 1  ;;  %v8072_v43 = vrot.slane %v8071_v59, 1  ;;  %v22756_v19 = vpack.i.bf16 %v20039_v52, %v20039_v52  ;;  %v22757_v60 = vpack.i.bf16 %v20051_v20, %v20051_v20 }
 0x751   : > { %v8097_v9 = vmax.f32 %v8095_v6, %v8096_v3  ;;  %v8119_v10 = vmax.f32 %v8117_v18, %v8118_v51  ;;  %v7996_v58 = vpack.i.bf16 %v7995_v5, %v7995_v5  ;;  %v8571_v48 = vsel %vm8487_vm8, %v8464_v31, %v20055_v12 }
 0x752   : > { %v8465_v27 = vunpack.c.l.b16 %v22756_v19  ;;  %v20186_v46 = vunpack.c.l.b16 %v22757_v60  ;;  %v8047_v28 = vmax.f32 %v8045_v25, %v8046_v22  ;;  %v8085_v44 = vrot.slane %v8084_v14, 1 }
 0x753   : > { %v8009_v13 = vpack.i.bf16 %v8008_v26, %v8008_v26  ;;  %v20191_v11 = vmax.f32 %v20089_v49, %v8018_v16  ;;  %v8109_v40 = vrot.slane %v8108_v24, 2  ;;  %v20194_v52 = vmax.f32 %v22755_v32, %v7500_v15 }
 0x754   : > { %v8035_v39 = vpack.i.bf16 %v8034_v34, %v8034_v34  ;;  %v8060_v20 = vmax.f32 %v8058_v50, %v8059_v53  ;;  %v20196_v7 = vmax.f32 %v8071_v59, %v8072_v43  ;;  %v5764_v18 = vmax.bf16 %v20139_v42, %v20152_v56 }
 0x755   : > { %v20200_v6 = vunpack.c.l.b16 %v7983_v37  ;;  %v20203_v12 = vsel %vm8489_vm9, %v8465_v27, %v8571_v48  ;;  %v8098_v25 = vrot.slane %v8097_v9, 1  ;;  %v8120_v3 = vrot.slane %v8119_v10, 4 }
 0x756   : > { %v20205_v49 = vunpack.c.l.b16 %v7996_v58  ;;  %v8048_v51 = vpack.i.bf16 %v8047_v28, %v8047_v28  ;;  %v20207_v5 = vmax.f32 %v8084_v14, %v8085_v44  ;;  %v6516_v31 = vcombine.high %v5764_v18, %v5764_v18 }
 0x757   : > { %v20209_v22 = vunpack.c.l.b16 %v8009_v13  ;;  %v8110_v50 = vmax.f32 %v8108_v24, %v8109_v40  ;;  %v6523_v59 = vrot.slane %v5764_v18, %v18554_v4  ;;  %v8061_v56 = vpack.i.bf16 %v8060_v20, %v8060_v20 }
 0x758   : > { %v8471_v16 = vunpack.c.l.b16 %v8035_v39  ;;  %v6530_v32 = vrot.slane %v6516_v31, %v18554_v4  ;;  %v20217_v15 = vmax.f32 %v8097_v9, %v8098_v25  ;;  %v20219_v14 = vmax.f32 %v8119_v10, %v8120_v3 }
 0x759   : > { %v6531_v37 = vcombine.high %v6523_v59, %v6523_v59  ;;  %v6539_v34 = vrot.slane %v6523_v59, %v18554_v4  ;;  %v8087_v24 = vpack.i.bf16 %v20207_v5, %v20207_v5  ;;  %v8472_v53 = vunpack.c.l.b16 %v8048_v51  ;;  %v22758_v51 = vld [vmem:[#allocation74_spill] sm:$0xff]  ;;  %v22759_v5 = vld [vmem:[#allocation69_spill] sm:$0xff] }
 0x75a   : > { %v6532_v43 = vcombine.high %v6530_v32, %v6530_v32  ;;  %v6546_v19 = vrot.slane %v6530_v32, %v18554_v4  ;;  %v8111_v27 = vrot.slane %v8110_v50, 1  ;;  %v8543_v31 = vsel %vm8491_vm10, %v22759_v5, %v22758_v51 }
 0x75b   : > { %v6553_v60 = vrot.slane %v6531_v37, %v18554_v4  ;;  %v6561_v58 = vcombine.high %v6539_v34, %v6539_v34  ;;  %v8128_v48 = vsel %vm6565_vm7, %v6539_v34, 4286644096  ;;  %v8473_v51 = vunpack.c.l.b16 %v8061_v56 }
 0x75c   : > { %v6560_v9 = vrot.slane %v6532_v43, %v18554_v4  ;;  %v6562_v10 = vcombine.high %v6546_v19, %v6546_v19  ;;  %v8130_v28 = vunpack.i.l.bf16 %v8128_v48  ;;  %v8131_v44 = vunpack.i.h.bf16 %v8128_v48 }
 0x75d   : > { %v6563_v13 = vcombine.high %v6553_v60, %v6553_v60  ;;  %v8141_v40 = vsel %vm6565_vm7, %v6553_v60, 4286644096  ;;  %v8154_v39 = vsel %vm6565_vm7, %v6561_v58, 4286644096  ;;  %v8180_v20 = vsel %vm6565_vm7, %v6546_v19, 4286644096 }
 0x75e   : > { %v8132_v18 = vmax.f32 %v8130_v28, %v8131_v44  ;;  %v8143_v25 = vunpack.i.l.bf16 %v8141_v40  ;;  %v8144_v3 = vunpack.i.h.bf16 %v8141_v40  ;;  %v8156_v59 = vunpack.i.l.bf16 %v8154_v39 }
 0x75f   : > { %v8157_v32 = vunpack.i.h.bf16 %v8154_v39  ;;  %v8167_v4 = vsel %vm6565_vm7, %v6563_v13, 4286644096  ;;  %v8182_v37 = vunpack.i.l.bf16 %v8180_v20  ;;  %v8183_v58 = vunpack.i.h.bf16 %v8180_v20 }
 0x760   : > { %v8133_v34 = vrot.slane %v8132_v18, 4  ;;  %v8145_v43 = vmax.f32 %v8143_v25, %v8144_v3  ;;  %v8169_v48 = vunpack.i.l.bf16 %v8167_v4  ;;  %v8170_v60 = vunpack.i.h.bf16 %v8167_v4  ;;  %v22760_v25 = vld [vmem:[#allocation70_spill] sm:$0xff] }
 0x761   : > { %v8158_v42 = vmax.f32 %v8156_v59, %v8157_v32  ;;  %v8193_v19 = vsel %vm6565_vm7, %v6560_v9, 4286644096  ;;  %v8206_v28 = vsel %vm6565_vm7, %v6562_v10, 4286644096  ;;  %v8184_v39 = vmax.f32 %v8182_v37, %v8183_v58 }
 0x762   : > { %v8134_v44 = vmax.f32 %v8132_v18, %v8133_v34  ;;  %v8146_v40 = vrot.slane %v8145_v43, 4  ;;  %v8171_v26 = vmax.f32 %v8169_v48, %v8170_v60  ;;  %v8195_v41 = vunpack.i.l.bf16 %v8193_v19 }
 0x763   : > { %v8159_v5 = vrot.slane %v8158_v42, 4  ;;  %v8196_v17 = vunpack.i.h.bf16 %v8193_v19  ;;  %v8544_v3 = vsel %vm8493_vm11, %v22760_v25, %v8543_v31  ;;  %v8112_v59 = vmax.f32 %v8110_v50, %v8111_v27 }
 0x764   : > { %v8135_v13 = vrot.slane %v8134_v44, 2  ;;  %v8147_v35 = vmax.f32 %v8145_v43, %v8146_v40  ;;  %v8172_v30 = vrot.slane %v8171_v26, 4  ;;  %v8208_v32 = vunpack.i.l.bf16 %v8206_v28  ;;  %v22761_v43 = vld [vmem:[#allocation75_spill] sm:$0xff]  ;;  %v22764_v40 = vld [vmem:[#allocation82_spill] sm:$0xff] }
 0x765   : > { %v8160_v20 = vmax.f32 %v8158_v42, %v8159_v5  ;;  %v8209_v4 = vunpack.i.h.bf16 %v8206_v28  ;;  %v8100_v10 = vpack.i.bf16 %v20217_v15, %v20217_v15  ;;  %v8577_v18 = vsel %vm8487_vm8, %v8472_v53, %v8471_v16  ;;  %v22763_v28 = vld [vmem:[#allocation79_spill] sm:$0xff] }
 0x766   : > { %v8185_v34 = vrot.slane %v8184_v39, 4  ;;  %v8197_v56 = vmax.f32 %v8195_v41, %v8196_v17  ;;  %v8122_v37 = vrot.slane %v20219_v14, 2  ;;  %v6564_v48 = vcombine.high %v6560_v9, %v6560_v9 }
 0x767   : > { %v8136_v60 = vmax.f32 %v8134_v44, %v8135_v13  ;;  %v8545_v58 = vsel %vm8495_vm12, %v22761_v43, %v8544_v3  ;;  %v22762_v50 = vpack.i.bf16 %v20196_v7, %v20196_v7  ;;  %v20250_v27 = vunpack.c.l.b16 %v8087_v24 }
 0x768   : > { %v8148_v31 = vrot.slane %v8147_v35, 2  ;;  %v8173_v15 = vmax.f32 %v8171_v26, %v8172_v30  ;;  %v8113_v19 = vpack.i.bf16 %v8112_v59, %v8112_v59  ;;  %v20253_v16 = vsel %vm8489_vm9, %v8473_v51, %v8577_v18 }
 0x769   : > { %v20248_v42 = vunpack.c.l.b16 %v22762_v50  ;;  %v8161_v17 = vrot.slane %v8160_v20, 2  ;;  %v8210_v41 = vmax.f32 %v8208_v32, %v8209_v4  ;;  %v8186_v53 = vmax.f32 %v8184_v39, %v8185_v34 }
 0x76a   : > { %v8198_v9 = vrot.slane %v8197_v56, 4  ;;  %v8546_v44 = vsel %vm8497_vm13, %v22763_v28, %v8545_v58  ;;  %v7604_v5 = vrot.slane %v22764_v40, 1  ;;  %v8137_v7 = vrot.slane %v8136_v60, 1  ;;  %v22767_v28 = vld [vmem:[#allocation80_spill] sm:$0xff] }
 0x76b   : > { %v20259_v13 = vsel %vm6565_vm7, %v6564_v48, 4286644096  ;;  %v22765_v30 = vpack.i.bf16 %v20194_v52, %v20194_v52  ;;  %v7708_v24 = vrot.slane %v19758_v55, 1  ;;  %v20266_v51 = vmax.f32 %v20219_v14, %v8122_v37 }
 0x76c   : > { %v20268_v39 = vunpack.c.l.b16 %v8100_v10  ;;  %v20270_v25 = vmax.f32 %v8147_v35, %v8148_v31  ;;  %v8174_v3 = vrot.slane %v8173_v15, 2  ;;  %v20272_v59 = vunpack.c.l.b16 %v8113_v19 }
 0x76d   : > { %v8430_v26 = vunpack.c.l.b16 %v22765_v30  ;;  %v20274_v32 = vmax.f32 %v8160_v20, %v8161_v17  ;;  %v8211_v4 = vrot.slane %v8210_v41, 4  ;;  %v8187_v34 = vrot.slane %v8186_v53, 2  ;;  %v22768_v30 = vld [vmem:[#allocation81_spill] sm:$0xff] }
 0x76e   : > { %v20276_v48 = vmax.f32 %v8197_v56, %v8198_v9  ;;  %v8221_v52 = vunpack.i.l.bf16 %v20259_v13  ;;  %v7605_v43 = vmax.f32 %v22764_v40, %v7604_v5  ;;  %v20280_v14 = vmax.f32 %v8136_v60, %v8137_v7  ;;  %v22766_v9 = vld [vmem:[#allocation83_spill] sm:$0xff] }
 0x76f   : > { %v8597_v18 = vpack.c.b16 %v8430_v26, %v8546_v44  ;;  %v8222_v10 = vunpack.i.h.bf16 %v20259_v13  ;;  %v7709_v37 = vmax.f32 %v19758_v55, %v7708_v24  ;;  %v8150_v20 = vrot.slane %v20270_v25, 1  ;;  %v22769_v24 = vld [vmem:[#allocation84_spill] sm:$0xff] }
 0x770   : > { %v20287_v58 = vmax.f32 %v8173_v15, %v8174_v3  ;;  %v7606_v50 = vpack.i.bf16 %v7605_v43, %v7605_v43  ;;  %v8163_v31 = vrot.slane %v20274_v32, 1  ;;  %v20294_v60 = vmax.f32 %v8210_v41, %v8211_v4  ;;  %v22770_v43 = vld [vmem:[#allocation4_spill] sm:$0xff] }
 0x771   : > { %v8629_v35 = vsel %vm17040_vm4, 0, %v8597_v18  ;;  %v20304_v17 = vmax.f32 %v8186_v53, %v8187_v34  ;;  %v7710_v15 = vpack.i.bf16 %v7709_v37, %v7709_v37  ;;  %v8549_v44 = vsel %vm8491_vm10, %v22767_v28, %v22766_v9 }
 0x772   : > { %v20291_v56 = vsel %vm19271_vm0, %v8629_v35, 0  ;;  %v8555_v41 = vsel %vm8491_vm10, %v19750_v62, %v19763_v8  ;;  %v8438_v7 = vunpack.c.l.b16 %v7606_v50  ;;  %v8550_v26 = vsel %vm8493_vm11, %v22768_v30, %v8549_v44 }
 0x773   : > { %v20298_v19 = vcombine.low %v20291_v56, %v20291_v56  ;;  %v20302_v55 = vcombine.high %v20291_v56, %v20291_v56  ;;  %v8551_v3 = vsel %vm8495_vm12, %v22769_v24, %v8550_v26  ;;  %v8556_v4 = vsel %vm8493_vm11, %v19760_v38, %v8555_v41  ;;  %v22771_v26 = vld [vmem:[#allocation95_spill] sm:$0xff] }
 0x774   : > { %v7812_v18 = vrot.slane %v19934_v57, 1  ;;  %v8446_v8 = vunpack.c.l.b16 %v7710_v15  ;;  %v8552_v35 = vsel %vm8497_vm13, %v22770_v43, %v8551_v3  ;;  %v8557_v37 = vsel %vm8495_vm12, %v19767_v29, %v8556_v4  ;;  %v22772_v4 = vld [vmem:[#allocation96_spill] sm:$0xff] }
 0x775   : > { %v8854_v40 = vshrl.u32 %v20298_v19, 16  ;;  %v8857_v5 = vshll.u32 %v20298_v19, 16  ;;  %v8863_v53 = vshll.u32 %v20302_v55, 16  ;;  %v8598_v50 = vpack.c.b16 %v8438_v7, %v8552_v35 }
 0x776   : > { %v7813_v9 = vmax.f32 %v19934_v57, %v7812_v18  ;;  %v7916_v28 = vrot.slane %v20029_v54, 1  ;;  %v8558_v38 = vsel %vm8497_vm13, %v19769_v23, %v8557_v37  ;;  %v8561_v41 = vsel %vm8491_vm10, %v19936_v45, %v19948_v1 }
 0x777   : > { %v8856_v34 = vrot.slane %v8854_v40, 4  ;;  %v8859_v62 = vrot.slane %v8857_v5, 5  ;;  %v8567_v15 = vsel %vm8491_vm10, %v20014_v63, %v20037_v33  ;;  %v8865_v40 = vrot.slane %v8863_v53, 5 }
 0x778   : > { %v8599_v5 = vpack.c.b16 %v8446_v8, %v8558_v38  ;;  %v8630_v29 = vsel %vm17040_vm4, 0, %v8598_v50  ;;  %v7917_v57 = vmax.f32 %v20029_v54, %v7916_v28  ;;  %v7814_v23 = vpack.i.bf16 %v7813_v9, %v7813_v9  ;;  %v22774_v9 = vld [vmem:[#allocation97_spill] sm:$0xff] }
 0x779   : > { %v8860_v44 = vor.u32 %v8859_v62, %v8856_v34  ;;  %v20341_v30 = vsel %vm19271_vm0, %v8630_v29, 0  ;;  %v8562_v45 = vsel %vm8493_vm11, %v22771_v26, %v8561_v41  ;;  %v8568_v54 = vsel %vm8493_vm11, %v20034_v21, %v8567_v15  ;;  %v22773_v34 = vld [vmem:[#allocation2_spill] sm:$0xff] }
 0x77a   : > { %v8631_v1 = vsel %vm17040_vm4, 0, %v8599_v5  ;;  %v20349_v63 = vcombine.low %v20341_v30, %v20341_v30  ;;  %v20353_v33 = vcombine.high %v20341_v30, %v20341_v30  ;;  %v7918_v3 = vpack.i.bf16 %v7917_v57, %v7917_v57 }
 0x77b   : > { %v8861_v7 = vrot.slane %v8860_v44, 4  ;;  %v20363_v24 = vsel %vm19271_vm0, %v8631_v1, 0  ;;  %v8563_v18 = vsel %vm8495_vm12, %v22772_v4, %v8562_v45  ;;  %v8454_v50 = vunpack.c.l.b16 %v7814_v23 }
 0x77c   : > { %v20371_v8 = vcombine.low %v20363_v24, %v20363_v24  ;;  %v20375_v21 = vcombine.high %v20363_v24, %v20363_v24  ;;  %v8868_v43 = vshrl.u32 %v20349_v63, 16  ;;  %v8871_v35 = vshll.u32 %v20349_v63, 16 }
 0x77d   : > { %v20359_v53 = vsel %vm19316_vm5, %v8861_v7, %v8865_v40  ;;  %v8877_v37 = vshll.u32 %v20353_v33, 16  ;;  %v8564_v28 = vsel %vm8497_vm13, %v22774_v9, %v8563_v18  ;;  %v8462_v5 = vunpack.c.l.b16 %v7918_v3 }
 0x77e   : > { %v13492_v62 = vcombine.low %v22773_v34, %v20359_v53  ;;  %v8870_v44 = vrot.slane %v8868_v43, 4  ;;  %v8882_v38 = vshrl.u32 %v20371_v8, 16  ;;  %v8885_v41 = vshll.u32 %v20371_v8, 16  ;;  %v22795_v34 = vld [vmem:[#allocation98_spill] sm:$0xff] }
 0x77f   : > { %v8891_v15 = vshll.u32 %v20375_v21, 16  ;;  %v8873_v40 = vrot.slane %v8871_v35, 5  ;;  %v8569_v29 = vsel %vm8495_vm12, %v20041_v2, %v8568_v54  ;;  %v8600_v57 = vpack.c.b16 %v8454_v50, %v8564_v28 }
 0x780   : > { %15376 = vmatprep.mubr.msk.bf16.mxu0 %vm1825_vm1, %v13492_v62  ;;  %v8879_v7 = vrot.slane %v8877_v37, 5  ;;  %v8884_v23 = vrot.slane %v8882_v38, 4  ;;  %v8887_v26 = vrot.slane %v8885_v41, 5  ;;  %v8570_v45 = vsel %vm8497_vm13, %v20043_v61, %v8569_v29 }
 0x781   : > { %v8874_v1 = vor.u32 %v8873_v40, %v8870_v44  ;;  %v8601_v4 = vpack.c.b16 %v8462_v5, %v8570_v45  ;;  %v8632_v18 = vsel %vm17040_vm4, 0, %v8600_v57  ;;  %v8020_v62 = vrot.slane %v20191_v11, 1 }
 0x782   : > { %v8888_v43 = vor.u32 %v8887_v26, %v8884_v23  ;;  %v8893_v35 = vrot.slane %v8891_v15, 5  ;;  %v20395_v3 = vsel %vm19271_vm0, %v8632_v18, 0  ;;  %v8124_v2 = vrot.slane %v20266_v51, 1 }
 0x783   : > { %22775 = vst [vmem:[#allocation105_spill] sm:$0xff] %v20395_v3  ;;  %v8875_v54 = vrot.slane %v8874_v1, 4  ;;  %v8633_v37 = vsel %vm17040_vm4, 0, %v8601_v4  ;;  %v20402_v61 = vcombine.low %v20395_v3, %v20395_v3  ;;  %v8573_v50 = vsel %vm8491_vm10, %v20186_v46, %v20203_v12 }
 0x784   : > { %v8889_v9 = vrot.slane %v8888_v43, 4  ;;  %v20409_v28 = vsel %vm19271_vm0, %v8633_v37, 0  ;;  %v20413_v44 = vcombine.high %v20395_v3, %v20395_v3  ;;  %v8021_v38 = vmax.f32 %v20191_v11, %v8020_v62 }
 0x785   : > { %22776 = vst [vmem:[#allocation106_spill] sm:$0xff] %v20409_v28  ;;  %v20418_v41 = vcombine.low %v20409_v28, %v20409_v28  ;;  %v20422_v15 = vcombine.high %v20409_v28, %v20409_v28  ;;  %v8896_v46 = vshrl.u32 %v20402_v61, 16  ;;  %v8125_v12 = vmax.f32 %v20266_v51, %v8124_v2 }
 0x786   : > { %v20428_v40 = vsel %vm19316_vm5, %v8875_v54, %v8879_v7  ;;  %v20432_v5 = vsel %vm19316_vm5, %v8889_v9, %v8893_v35  ;;  %v8899_v11 = vshll.u32 %v20402_v61, 16  ;;  %v8022_v29 = vpack.i.bf16 %v8021_v38, %v8021_v38 }
 0x787   : > { %v20437_v57 = vcombine.low %v20428_v40, %v20432_v5  ;;  %v8898_v23 = vrot.slane %v8896_v46, 4  ;;  %v8910_v26 = vshrl.u32 %v20418_v41, 16  ;;  %v8913_v51 = vshll.u32 %v20418_v41, 16 }
 0x788   : > { %v8200_v45 = vrot.slane %v20276_v48, 2  ;;  %v8901_v7 = vrot.slane %v8899_v11, 5  ;;  %v8905_v1 = vshll.u32 %v20413_v44, 16  ;;  %v8919_v4 = vshll.u32 %v20422_v15, 16 }
 0x789   : > { %22777 = vst [vmem:[#allocation107_spill] sm:$0xff] %v20437_v57  ;;  %15377 = vmatmul.mubr.msk.bf16.gmra.mrb[136].mxu0 %vm1825_vm1, %v20437_v57  ;;  %v8912_v18 = vrot.slane %v8910_v26, 4  ;;  %v8915_v62 = vrot.slane %v8913_v51, 5  ;;  %v8126_v43 = vpack.i.bf16 %v8125_v12, %v8125_v12  ;;  %v8574_v35 = vsel %vm8493_vm11, %v20200_v6, %v8573_v50  ;;  %v22794_v57 = vld [vmem:[#allocation100_spill] sm:$0xff] }
 0x78a   : > { %v20452_v2 = vmax.f32 %v8221_v52, %v8222_v10  ;;  %v8902_v54 = vor.u32 %v8901_v7, %v8898_v23  ;;  %v8470_v37 = vunpack.c.l.b16 %v8022_v29  ;;  %v8575_v9 = vsel %vm8495_vm12, %v20205_v49, %v8574_v35 }
 0x78b   : > { %v8139_v38 = vpack.i.bf16 %v20280_v14, %v20280_v14  ;;  %v8916_v46 = vor.u32 %v8915_v62, %v8912_v18  ;;  %v8576_v12 = vsel %vm8497_vm13, %v20209_v22, %v8575_v9  ;;  %v8579_v6 = vsel %vm8491_vm10, %v20248_v42, %v20253_v16  ;;  %v22784_v18 = vld [vmem:[#allocation15_spill] sm:$0xff] }
 0x78c   : > { %v8903_v50 = vrot.slane %v8902_v54, 4  ;;  %v8907_v13 = vrot.slane %v8905_v1, 5  ;;  %v8580_v52 = vsel %vm8493_vm11, %v20250_v27, %v8579_v6  ;;  %v8602_v10 = vpack.c.b16 %v8470_v37, %v8576_v12 }
 0x78d   : > { %v8917_v11 = vrot.slane %v8916_v46, 4  ;;  %v8921_v29 = vrot.slane %v8919_v4, 5  ;;  %v8478_v49 = vunpack.c.l.b16 %v8126_v43  ;;  %v8581_v14 = vsel %vm8495_vm12, %v20268_v39, %v8580_v52 }
 0x78e   : > { %v8151_v22 = vmax.f32 %v20270_v25, %v8150_v20  ;;  %v20472_v23 = vsel %vm19316_vm5, %v8903_v50, %v8907_v13  ;;  %v8582_v42 = vsel %vm8497_vm13, %v20272_v59, %v8581_v14  ;;  %v8634_v27 = vsel %vm17040_vm4, 0, %v8602_v10 }
 0x78f   : > { %v20480_v16 = vsel %vm19316_vm5, %v8917_v11, %v8921_v29  ;;  %v8603_v26 = vpack.c.b16 %v8478_v49, %v8582_v42  ;;  %v20484_v39 = vsel %vm19271_vm0, %v8634_v27, 0  ;;  %v20488_v25 = vcombine.low %v20341_v30, %v20363_v24 }
 0x790   : > { %22778 = vst [vmem:[#allocation108_spill] sm:$0xff] %v20484_v39  ;;  %v8176_v20 = vrot.slane %v20287_v58, 1  ;;  %v20493_v59 = vcombine.low %v20472_v23, %v20480_v16  ;;  %v20497_v51 = vcombine.low %v20484_v39, %v20484_v39  ;;  %v20501_v7 = vcombine.low %v20395_v3, %v20409_v28 }
 0x791   : > { %v8164_v1 = vmax.f32 %v20274_v32, %v8163_v31  ;;  %v8189_v4 = vrot.slane %v20304_v17, 1  ;;  %v8635_v62 = vsel %vm17040_vm4, 0, %v8603_v26  ;;  %v20518_v35 = vcombine.high %v20484_v39, %v20484_v39 }
 0x792   : > { %22779 = vst [vmem:[#allocation39_spill] sm:$0xff] %v20493_v59  ;;  %15380 = vmatprep.mubr.msk.bf16.mxu0 %vm1825_vm1, %v20493_v59  ;;  %v20514_v43 = vsel %vm19271_vm0, %v8635_v62, 0  ;;  %v8924_v32 = vshrl.u32 %v20497_v51, 16  ;;  %v8927_v31 = vshll.u32 %v20497_v51, 16  ;;  %v20523_v54 = vmax.f32 %v20276_v48, %v8200_v45 }
 0x793   : > { %v20527_v37 = vcombine.low %v20514_v43, %v20514_v43  ;;  %v20531_v9 = vcombine.high %v20514_v43, %v20514_v43  ;;  %v20535_v46 = vcombine.low %v20484_v39, %v20514_v43  ;;  %v8152_v12 = vpack.i.bf16 %v8151_v22, %v8151_v22  ;;  %v22780_v22 = vld [vmem:[#allocation8_spill] sm:$0xff]  ;;  %v22821_v39 = vld [vmem:[#allocation37_spill] sm:$0xff] }
 0x794   : > { %v20538_v6 = vmax.f32 %v20287_v58, %v8176_v20  ;;  %v8926_v50 = vrot.slane %v8924_v32, 4  ;;  %v8929_v13 = vrot.slane %v8927_v31, 5  ;;  %v8165_v48 = vpack.i.bf16 %v8164_v1, %v8164_v1  ;;  %v22781_v20 = vld [vmem:[#allocation73_spill] sm:$0xff]  ;;  %v22782_v32 = vld [vmem:[#allocation88_spill] sm:$0xff] }
 0x795   : > { %v20541_v45 = vmax.f32 %v20304_v17, %v8189_v4  ;;  %v8938_v52 = vshrl.u32 %v20527_v37, 16  ;;  %v8941_v10 = vshll.u32 %v20527_v37, 16  ;;  %v8933_v29 = vshll.u32 %v20518_v35, 16 }
 0x796   : > { %v8930_v11 = vor.u32 %v8929_v13, %v8926_v50  ;;  %vm9282_vm7 = vcmask 1046532   ;;  %v8947_v58 = vshll.u32 %v20531_v9, 16  ;;  %v13531_v42 = vrot.slane %v22780_v22, 9  ;;  %v22783_v50 = vld [vmem:[#allocation89_spill] sm:$0xff] }
 0x797   : > { %v8940_v49 = vrot.slane %v8938_v52, 4  ;;  %v8943_v14 = vrot.slane %v8941_v10, 5  ;;  %v20550_v17 = vunpack.c.l.b16 %v8139_v38  ;;  %v20552_v26 = vunpack.c.l.b16 %v8152_v12  ;;  %vm20565_vm14 = vmor %vm9281_vm6, %vm9282_vm7  ;;  %v22792_v52 = vld [vmem:[#allocation86_spill] sm:$0xff] }
 0x798   : > { %v9298_v1 = vrot.slane %v22781_v20, 5  ;;  %v8931_v4 = vrot.slane %v8930_v11, 4  ;;  %v13532_v31 = vrot.slane %v22782_v32, 9  ;;  %v9302_v13 = vrot.slane %v22783_v50, 5  ;;  %v22789_v20 = vld [vmem:[#allocation51_spill] sm:$0xff] }
 0x799   : > { %v8944_v62 = vor.u32 %v8943_v14, %v8940_v49  ;;  %v20559_v10 = vunpack.c.l.b16 %v8165_v48  ;;  %v8935_v22 = vrot.slane %v8933_v29, 5  ;;  %v22785_v27 = vmov 0   ;;  %v22788_v29 = vld [vmem:[#allocation55_spill] sm:$0xff] }
 0x79a   : > { %v13508_v38 = vcombine.low %v22785_v27, %v22784_v18  ;;  %v8949_v49 = vrot.slane %v8947_v58, 5  ;;  %v20571_v14 = vsel %vm20565_vm14, %v13531_v42, %v9298_v1  ;;  %v20575_v48 = vsel %vm20565_vm14, %v13532_v31, %v9302_v13  ;;  %v22791_v50 = vld [vmem:[#allocation87_spill] sm:$0xff] }
 0x79b   : > { %v8945_v11 = vrot.slane %v8944_v62, 4  ;;  %v20579_v32 = vcombine.low %v22789_v20, %v22788_v29  ;;  %v20583_v59 = vcombine.low %v22792_v52, %v22791_v50  ;;  %v20587_v62 = vcombine.low %v22795_v34, %v22794_v57  ;;  %v22798_v50 = vld [vmem:[#allocation20_spill] sm:$0xff]  ;;  %v22813_v20 = vld [vmem:[#allocation47_spill] sm:$0xff] }
 0x79c   : > { %v20593_v42 = vsel %vm19316_vm5, %v8931_v4, %v8935_v22  ;;  %v20601_v31 = vcombine.low %v22785_v27, %v20291_v56  ;;  %v13536_v13 = vrot.slane %v20298_v19, 9  ;;  %v13529_v58 = vrot.slane %v22798_v50, 9  ;;  %v22799_v22 = vld [vmem:[#allocation31_spill] sm:$0xff]  ;;  %v22800_v19 = vld [vmem:[#allocation60_spill] sm:$0xff] }
 0x79d   : > { %22790 = vst [vmem:[#allocation38_spill] sm:$0xff] %v20579_v32  ;;  %22793 = vst [vmem:[#allocation109_spill] sm:$0xff] %v20583_v59  ;;  %v20597_v1 = vsel %vm19316_vm5, %v8945_v11, %v8949_v49  ;;  %v9318_v34 = vrot.slane %v20302_v55, 5  ;;  %v13537_v4 = vrot.slane %v20349_v63, 9  ;;  %v9290_v29 = vrot.slane %v22799_v22, 5  ;;  %v22804_v22 = vld [vmem:[#allocation91_spill] sm:$0xff] }
 0x79e   : > { %22796 = vst [vmem:[#allocation110_spill] sm:$0xff] %v20597_v1  ;;  %v20606_v57 = vcombine.low %v20593_v42, %v20597_v1  ;;  %v9322_v11 = vrot.slane %v20353_v33, 5  ;;  %v13538_v49 = vrot.slane %v20371_v8, 9  ;;  %v9326_v27 = vrot.slane %v20375_v21, 5  ;;  %v22801_v33 = vld [vmem:[#allocation72_spill] sm:$0xff] }
 0x79f   : > { %v20620_v50 = vsel %vm20565_vm14, %v13536_v13, %v9318_v34  ;;  %v13539_v55 = vrot.slane %v20402_v61, 9  ;;  %v9330_v63 = vrot.slane %v20413_v44, 5  ;;  %v13540_v52 = vrot.slane %v20418_v41, 9 }
 0x7a0   : > { %22797 = vst [vmem:[#allocation111_spill] sm:$0xff] %v20606_v57  ;;  %15381 = vmatmul.mubr.msk.bf16.gmra.mrb[140].mxu0 %vm1825_vm1, %v20606_v57  ;;  %v20628_v8 = vsel %vm20565_vm14, %v13537_v4, %v9322_v11  ;;  %v20632_v21 = vsel %vm20565_vm14, %v13538_v49, %v9326_v27  ;;  %v9334_v44 = vrot.slane %v20422_v15, 5  ;;  %v20647_v13 = vsel %vm20565_vm14, %v13529_v58, %v9290_v29  ;;  %v22803_v11 = vld [vmem:[#allocation90_spill] sm:$0xff]  ;;  %v22805_v15 = vld [vmem:[#allocation45_spill] sm:$0xff] }
 0x7a1   : > { %15392 = vmatprep.mubr.msk.bf16.mxu0 %vm1825_vm1, %v13508_v38  ;;  %v20637_v34 = vcombine.low %v20628_v8, %v20632_v21  ;;  %v20641_v61 = vsel %vm20565_vm14, %v13539_v55, %v9330_v63  ;;  %v13541_v38 = vrot.slane %v20497_v51, 9  ;;  %v9338_v27 = vrot.slane %v20518_v35, 5 }
 0x7a2   : > { %v13542_v41 = vrot.slane %v20527_v37, 9  ;;  %v9342_v4 = vrot.slane %v20531_v9, 5  ;;  %v13533_v49 = vrot.slane %v22803_v11, 9  ;;  %v9306_v57 = vrot.slane %v22804_v22, 5  ;;  %v22807_v9 = vld [vmem:[#allocation41_spill] sm:$0xff]  ;;  %v22811_v11 = vld [vmem:[#allocation44_spill] sm:$0xff] }
 0x7a3   : > { %22802 = vst [vmem:[#allocation61_spill] sm:$0xff] %v20637_v34  ;;  %v20656_v55 = vsel %vm20565_vm14, %v13540_v52, %v9334_v44  ;;  %v7370_v51 = vrot.slane %v22805_v15, 1  ;;  %v20665_v35 = vsel %vm20565_vm14, %v13541_v38, %v9338_v27  ;;  %v22808_v58 = vrot.slane %v22807_v9, 2  ;;  %v16729_v52 = vld [vmem:[%s22050_s5 + $0x48] sm:$0xff]   ;;  %v22810_v38 = vld [vmem:[#allocation42_spill] sm:$0xff] }
 0x7a4   : > { %v20661_v29 = vcombine.low %v20641_v61, %v20656_v55  ;;  %v20669_v37 = vsel %vm20565_vm14, %v13542_v41, %v9342_v4  ;;  %v7392_v27 = vrot.slane %v22810_v38, 4  ;;  %v22812_v41 = vpack.i.bf16 %v22811_v11, %v22811_v11  ;;  %v22816_v34 = vld [vmem:[#allocation58_spill] sm:$0xff]  ;;  %v22817_v11 = vld [vmem:[#allocation59_spill] sm:$0xff] }
 0x7a5   : > { %v7382_v63 = vmax.f32 %v22807_v9, %v22808_v58  ;;  %v20679_v22 = vcombine.low %v20665_v35, %v20669_v37  ;;  %v7371_v44 = vmax.f32 %v22805_v15, %v7370_v51  ;;  %v22814_v9 = vpack.i.bf16 %v22813_v20, %v22813_v20 }
 0x7a6   : > { %22806 = vst [vmem:[#allocation34_spill] sm:$0xff] %v20661_v29  ;;  %v8418_v4 = vunpack.c.l.b16 %v22812_v41  ;;  %v22815_v29 = vld [vmem:[#allocation50_spill] sm:$0xff]  ;;  %v7393_v51 = vmax.f32 %v22810_v38, %v7392_v27  ;;  %v8202_v38 = vrot.slane %v20523_v54, 1  ;;  %v22818_v20 = vrot.slane %v20294_v60, 2 }
 0x7a7   : > { %22809 = vst [vmem:[#allocation112_spill] sm:$0xff] %v20679_v22  ;;  %v7383_v18 = vrot.slane %v7382_v63, 1  ;;  %v8419_v58 = vunpack.c.l.b16 %v22814_v9  ;;  %v8535_v1 = vsel %vm8487_vm8, %v22816_v34, %v22815_v29  ;;  %v7372_v15 = vpack.i.bf16 %v7371_v44, %v7371_v44  ;;  %v16833_v9 = vld [vmem:[%s22050_s5 + $0x40] sm:$0xff]  }
 0x7a8   : > { %15393 = vmatmul.mubr.msk.bf16.vlgmr.msra.gmra.mrb[128].mxu0 %vm1825_vm1, %v20579_v32  ;;  %v8536_v41 = vsel %vm8489_vm9, %v22817_v11, %v8535_v1  ;;  %v16730_v1 = vld [vmem:[%s22050_s5 + $0x50] sm:$0xff]   ;;  %v7394_v27 = vrot.slane %v7393_v51, 2  ;;  %v22819_v44 = vpack.i.bf16 %v20538_v6, %v20538_v6  ;;  %v9310_v28 = vrot.slane %v22821_v39, 5  ;;  %v16731_v6 = vld [vmem:[%s22050_s5 + $0x58] sm:$0xff]  }
 0x7a9   : > { %15409 = vmatpush3.bf16.msra.mxu0 %v16833_v9  ;;  %15396 = vmatprep.mubr.msk.bf16.mxu0 %vm1825_vm1, %v20583_v59  ;;  %v7384_v34 = vmax.f32 %v7382_v63, %v7383_v18  ;;  %v8537_v29 = vsel %vm8491_vm10, %v8418_v4, %v8536_v41  ;;  %v8420_v11 = vunpack.c.l.b16 %v7372_v15  ;;  %v8214_v18 = vmax.f32 %v20294_v60, %v22818_v20  ;;  %v22820_v59 = vld [vmem:[#allocation99_spill] sm:$0xff] }
 0x7aa   : > { %15410 = vmatprep.subr.bf16.mxu0 %v16729_v52  ;;  %v8538_v9 = vsel %vm8493_vm11, %v8419_v58, %v8537_v29  ;;  %v8203_v4 = vmax.f32 %v20523_v54, %v8202_v38  ;;  %v8224_v41 = vrot.slane %v20452_v2, 4  ;;  %v8482_v22 = vunpack.c.l.b16 %v22819_v44 }
 0x7ab   : > { %v7385_v63 = vpack.i.bf16 %v7384_v34, %v7384_v34  ;;  %v13534_v32 = vrot.slane %v22820_v59, 9  ;;  %v7395_v15 = vmax.f32 %v7393_v51, %v7394_v27  ;;  %v8215_v3 = vrot.slane %v8214_v18, 1 }
 0x7ac   : > { %v8539_v58 = vsel %vm8495_vm12, %v8420_v11, %v8538_v9  ;;  %v8204_v29 = vpack.i.bf16 %v8203_v4, %v8203_v4  ;;  %v8225_v60 = vmax.f32 %v20452_v2, %v8224_v41  ;;  %v8583_v54 = vsel %vm8487_vm8, %v20552_v26, %v20550_v17 }
 0x7ad   : > { %15411 = vmatpush3.bf16.msra.mxu0 %v16729_v52  ;;  %v7396_v59 = vrot.slane %v7395_v15, 1  ;;  %v8421_v20 = vunpack.c.l.b16 %v7385_v63  ;;  %v8216_v39 = vmax.f32 %v8214_v18, %v8215_v3  ;;  %v8584_v52 = vsel %vm8489_vm9, %v20559_v10, %v8583_v54  ;;  %v22838_v63 = vld [vmem:[#allocation98_spill] sm:$0xff] }
 0x7ae   : > { %15412 = vmatprep.subr.bf16.mxu0 %v16730_v1  ;;  %v22822_v51 = vrot.slane %v22801_v33, 5  ;;  %v22823_v34 = vrot.slane %v22800_v19, 9  ;;  %v20744_v17 = vsel %vm20565_vm14, %v13533_v49, %v9306_v57  ;;  %v8226_v26 = vrot.slane %v8225_v60, 2 }
 0x7af   : > { %v8585_v44 = vsel %vm8491_vm10, %v8482_v22, %v8584_v52  ;;  %v20751_v3 = vsel %vm20565_vm14, %v13534_v32, %v9310_v28  ;;  %v7397_v10 = vmax.f32 %v7395_v15, %v7396_v59  ;;  %v8540_v19 = vsel %vm8497_vm13, %v8421_v20, %v8539_v58  ;;  %v16732_v28 = vld [vmem:[%s22050_s5 + $0x60] sm:$0xff]   ;;  %v22835_v15 = vld [vmem:[#allocation112_spill] sm:$0xff] }
 0x7b0   : > { %v20740_v2 = vsel %vm20565_vm14, %v22823_v34, %v22822_v51  ;;  %15397 = vmatmul.mubr.msk.bf16.gmra.mrb[132].mxu0 %vm1825_vm1, %v20587_v62  ;;  %v22824_v33 = vpack.i.bf16 %v20541_v45, %v20541_v45  ;;  %v8217_v57 = vpack.i.bf16 %v8216_v39, %v8216_v39  ;;  %v8227_v49 = vmax.f32 %v8225_v60, %v8226_v26  ;;  %v22825_v59 = vld [vmem:[#allocation6_spill] sm:$0xff]  ;;  %v22826_v39 = vld [vmem:[#allocation16_spill] sm:$0xff] }
 0x7b1   : > { %15400 = vmatprep.mubr.msk.bf16.mxu0 %vm1825_vm1, %v20601_v31  ;;  %15413 = vmatpush3.bf16.msra.mxu0 %v16730_v1  ;;  %v8484_v22 = vunpack.c.l.b16 %v8204_v29  ;;  %v13615_v27 = vcombine.low %v20359_v53, %v20428_v40  ;;  %v7398_v32 = vpack.i.bf16 %v7397_v10, %v7397_v10  ;;  %v13616_v45 = vcombine.low %v20432_v5, %v20472_v23  ;;  %v22827_v10 = vld [vmem:[#allocation101_spill] sm:$0xff]  ;;  %v16745_v53 = vld [vmem:[%s22050_s5 + $0xc8] sm:$0xff]   ;;  %v16746_v23 = vld [vmem:[%s22050_s5 + $0xd0] sm:$0xff]  }
 0x7b2   : > { %v8483_v38 = vunpack.c.l.b16 %v22824_v33  ;;  %15414 = vmatprep.subr.bf16.mxu0 %v16731_v6  ;;  %v13617_v31 = vcombine.low %v20480_v16, %v20593_v42  ;;  %v8228_v1 = vrot.slane %v8227_v49, 1  ;;  %v13641_v9 = vcombine.low %v20647_v13, %v20740_v2  ;;  %v22828_v33 = vld [vmem:[#allocation102_spill] sm:$0xff]  ;;  %v16747_v16 = vld [vmem:[%s22050_s5 + $0xd8] sm:$0xff]  }
 0x7b3   : > { %v8422_v4 = vunpack.c.l.b16 %v7398_v32  ;;  %v8485_v54 = vunpack.c.l.b16 %v8217_v57  ;;  %v13528_v20 = vrot.slane %v22825_v59, 9  ;;  %v9286_v52 = vrot.slane %v22826_v39, 5  ;;  %v16748_v42 = vld [vmem:[%s22050_s5 + $0xe0] sm:$0xff]  }
 0x7b4   : > { %v8586_v11 = vsel %vm8493_vm11, %v8483_v38, %v8585_v44  ;;  %v8229_v58 = vmax.f32 %v8227_v49, %v8228_v1  ;;  %v9314_v38 = vrot.slane %v22828_v33, 5  ;;  %v22854_v40 = vcombine.low %v20571_v14, %v20575_v48 }
 0x7b5   : > { %15415 = vmatpush3.bf16.msra.mxu0 %v16731_v6  ;;  %v8587_v29 = vsel %vm8495_vm12, %v8484_v22, %v8586_v11  ;;  %v8596_v60 = vpack.c.b16 %v8422_v4, %v8540_v19  ;;  %v13535_v19 = vrot.slane %v22827_v10, 9  ;;  %v20805_v22 = vsel %vm20565_vm14, %v13528_v20, %v9286_v52  ;;  %v22839_v52 = vld [vmem:[#allocation87_spill] sm:$0xff] }
 0x7b6   : > { %15432 = vmatprep.subr.bf16.mxu0 %v16732_v28  ;;  %v8230_v51 = vpack.i.bf16 %v8229_v58, %v8229_v58  ;;  %v8588_v26 = vsel %vm8497_vm13, %v8485_v54, %v8587_v29  ;;  %22829 = vst [vmem:[#allocation113_spill] sm:$0xff] %v20805_v22  ;;  %v13551_v58 = vcombine.low %v20805_v22, %v20647_v13 }
 0x7b7   : > { %v8628_v34 = vsel %vm17040_vm4, 0, %v8596_v60  ;;  %v20815_v29 = vsel %vm20565_vm14, %v13535_v19, %v9314_v38  ;;  %v13581_v18 = vcombine.low %v22839_v52, %v22838_v63  ;;  %v22841_v63 = vcombine.low %v20291_v56, %v20341_v30 }
 0x7b8   : > { %15401 = vmatmul.mubr.msk.bf16.gmra.mrb[136].mxu0 %vm1825_vm1, %v20488_v25  ;;  %v20791_v6 = vsel %vm19271_vm0, %v8628_v34, 0  ;;  %v8486_v44 = vunpack.c.l.b16 %v8230_v51  ;;  %v22855_v5 = vcombine.low %v20744_v17, %v20751_v3  ;;  %v22858_v13 = vcombine.low %v20632_v21, %v20641_v61  ;;  %v22862_v21 = vld [vmem:[#allocation109_spill] sm:$0xff]  ;;  %v16750_v61 = vld [vmem:[%s22050_s5 + $0xf0] sm:$0xff]  }
 0x7b9   : > { %15404 = vmatprep.mubr.msk.bf16.mxu0 %vm1825_vm1, %v20501_v7  ;;  %v20797_v57 = vcombine.low %v20791_v6, %v20791_v6  ;;  %v20801_v49 = vcombine.high %v20791_v6, %v20791_v6 }
 0x7ba   : > { %v8604_v32 = vpack.c.b16 %v8486_v44, %v8588_v26 }
 0x7bb   : > { %v13631_v11 = vrot.slane %v20797_v57, 9  ;;  %v9935_v4 = vrot.slane %v20801_v49, 5  ;;  %v9726_v56 = vshrl.u32 %v20797_v57, 16  ;;  %v9729_v30 = vshll.u32 %v20797_v57, 16  ;;  %v16741_v57 = vld [vmem:[%s22050_s5 + $0xa8] sm:$0xff]  }
 0x7bc   : > { %v8636_v1 = vsel %vm17040_vm4, 0, %v8604_v32 }
 0x7bd   : > { %v20819_v60 = vsel %vm19271_vm0, %v8636_v1, 0  ;;  %v20829_v39 = vsel %vm20565_vm14, %v13631_v11, %v9935_v4  ;;  %v20844_v1 = vcombine.low %v20740_v2, %v20571_v14  ;;  %v16733_v4 = vld [vmem:[%s22050_s5 + $0x68] sm:$0xff]   ;;  %v22859_v2 = vcombine.low %v20656_v55, %v20665_v35 }
 0x7be   : > { %v13586_v54 = vcombine.low %v20514_v43, %v20819_v60  ;;  %v13601_v59 = vcombine.low %v20819_v60, %v20819_v60  ;;  %v13602_v20 = vcombine.high %v20819_v60, %v20819_v60  ;;  %v22856_v14 = vcombine.low %v20815_v29, %v20829_v39 }
 0x7bf   : > { %v22863_v55 = vmov 0  }
 0x7c0   : > { %15405 = vmatmul.mubr.msk.bf16.gmra.mrb[140].mxu0 %vm1825_vm1, %v20535_v46  ;;  %v9740_v51 = vshrl.u32 %v13601_v59, 16  ;;  %v9743_v34 = vshll.u32 %v13601_v59, 16  ;;  %v13632_v26 = vrot.slane %v13601_v59, 9  ;;  %v9939_v44 = vrot.slane %v13602_v20, 5 }
 0x7c1   : > { %15416 = vmatprep.mubr.msk.bf16.mxu0 %vm1825_vm1, %v13551_v58  ;;  %v9749_v33 = vshll.u32 %v13602_v20, 16  ;;  %v20851_v58 = vcombine.low %v20575_v48, %v20744_v17  ;;  %v22857_v48 = vcombine.low %v20620_v50, %v20628_v8  ;;  %v22861_v8 = vld [vmem:[#allocation38_spill] sm:$0xff]  ;;  %v16749_v17 = vld [vmem:[%s22050_s5 + $0xe8] sm:$0xff]   ;;  %v13669_v35 = vcombine.low %v20791_v6, %v22863_v55 }
 0x7c2   : > { %v9742_v10 = vrot.slane %v9740_v51, 4  ;;  %v9745_v19 = vrot.slane %v9743_v34, 5  ;;  %v20838_v38 = vsel %vm20565_vm14, %v13632_v26, %v9939_v44  ;;  %v16734_v34 = vld [vmem:[%s22050_s5 + $0x70] sm:$0xff]   ;;  %v22830_v26 = vld [vmem:[#allocation110_spill] sm:$0xff] }
 0x7c3   : > { %v9751_v20 = vrot.slane %v9749_v33, 5  ;;  %v16736_v33 = vld [vmem:[%s22050_s5 + $0x80] sm:$0xff]  }
 0x7c4   : > { %v9746_v32 = vor.u32 %v9745_v19, %v9742_v10  ;;  %v20868_v10 = vcombine.low %v20751_v3, %v20815_v29  ;;  %v13555_v19 = vcombine.low %v20805_v22, %v20620_v50  ;;  %v22860_v50 = vcombine.low %v20669_v37, %v20838_v38  ;;  %v16751_v37 = vld [vmem:[%s22050_s5 + $0xf8] sm:$0xff]   ;;  %v22868_v29 = vld [vmem:[#allocation107_spill] sm:$0xff] }
 0x7c5   : > { %v13670_v3 = vcombine.low %v20819_v60, %v22863_v55  ;;  %v16756_v60 = vld [vmem:[%s22052_s7 + $0x40] sm:$0xff]  }
 0x7c6   : > { %v9747_v59 = vrot.slane %v9746_v32, 4  ;;  %v22831_v32 = vld [vmem:[#allocation61_spill] sm:$0xff] }
 0x7c8   : > { %15417 = vmatmul.mubr.msk.bf16.vlgmr.msra.gmra.mrb[128].mxu0 %vm1825_vm1, %v20844_v1  ;;  %v20859_v51 = vsel %vm19316_vm5, %v9747_v59, %v9751_v20  ;;  %v22833_v59 = vld [vmem:[#allocation51_spill] sm:$0xff] }
 0x7c9   : > { %15433 = vmatpush3.bf16.msra.mxu0 %v16732_v28  ;;  %15420 = vmatprep.mubr.msk.bf16.mxu0 %vm1825_vm1, %v20851_v58  ;;  %v13618_v44 = vcombine.low %v22830_v26, %v20859_v51  ;;  %v16735_v28 = vld [vmem:[%s22050_s5 + $0x78] sm:$0xff]   ;;  %v22834_v20 = vld [vmem:[#allocation15_spill] sm:$0xff] }
 0x7ca   : > { %15434 = vmatprep.subr.bf16.mxu0 %v16733_v4  ;;  %v13579_v11 = vcombine.low %v22834_v20, %v22833_v59  ;;  %v22840_v59 = vld [vmem:[#allocation100_spill] sm:$0xff]  ;;  %v22869_v26 = vld [vmem:[#allocation39_spill] sm:$0xff] }
 0x7cb   : > { %v13582_v20 = vcombine.low %v22840_v59, %v20791_v6  ;;  %v22848_v59 = vld [vmem:[#allocation43_spill] sm:$0xff]  ;;  %v16755_v6 = vld [vmem:[%s22050_s5 + $0x118] sm:$0xff]  }
 0x7cd   : > { %15435 = vmatpush3.bf16.msra.mxu0 %v16733_v4  ;;  %v22832_v4 = vld [vmem:[#allocation34_spill] sm:$0xff] }
 0x7ce   : > { %15436 = vmatprep.subr.bf16.mxu0 %v16734_v34 }
 0x7d0   : > { %15421 = vmatmul.mubr.msk.bf16.gmra.mrb[132].mxu0 %vm1825_vm1, %v20868_v10 }
 0x7d1   : > { %15424 = vmatprep.mubr.msk.bf16.mxu0 %vm1825_vm1, %v13555_v19  ;;  %15437 = vmatpush3.bf16.msra.mxu0 %v16734_v34  ;;  %v22836_v34 = vld [vmem:[#allocation86_spill] sm:$0xff]  ;;  %v22837_v19 = vld [vmem:[#allocation55_spill] sm:$0xff] }
 0x7d2   : > { %15438 = vmatprep.subr.bf16.mxu0 %v16735_v28  ;;  %v13580_v41 = vcombine.low %v22837_v19, %v22836_v34  ;;  %v16739_v34 = vld [vmem:[%s22050_s5 + $0x98] sm:$0xff]   ;;  %v22845_v19 = vld [vmem:[#allocation108_spill] sm:$0xff] }
 0x7d5   : > { %15439 = vmatpush3.bf16.msra.mxu0 %v16735_v28  ;;  %v16737_v28 = vld [vmem:[%s22050_s5 + $0x88] sm:$0xff]  }
 0x7d6   : > { %15456 = vmatprep.subr.bf16.mxu0 %v16736_v33 }
 0x7d8   : > { %15425 = vmatmul.mubr.msk.bf16.gmra.mrb[136].mxu0 %vm1825_vm1, %v22831_v32 }
 0x7d9   : > { %15428 = vmatprep.mubr.msk.bf16.mxu0 %vm1825_vm1, %v22832_v4 }
 0x7e0   : > { %15429 = vmatmul.mubr.msk.bf16.gmra.mrb[140].mxu0 %vm1825_vm1, %v22835_v15 }
 0x7e1   : > { %15440 = vmatprep.mubr.msk.bf16.mxu0 %vm1825_vm1, %v13579_v11  ;;  %v16738_v11 = vld [vmem:[%s22050_s5 + $0x90] sm:$0xff]  }
 0x7e8   : > { %15441 = vmatmul.mubr.msk.bf16.vlgmr.msra.gmra.mrb[128].mxu0 %vm1825_vm1, %v13580_v41  ;;  %v22842_v41 = vld [vmem:[#allocation105_spill] sm:$0xff] }
 0x7e9   : > { %15457 = vmatpush3.bf16.msra.mxu0 %v16736_v33  ;;  %15444 = vmatprep.mubr.msk.bf16.mxu0 %vm1825_vm1, %v13581_v18  ;;  %v16740_v18 = vld [vmem:[%s22050_s5 + $0xa0] sm:$0xff]   ;;  %v22843_v52 = vcombine.low %v20363_v24, %v22842_v41  ;;  %v9735_v41 = vshll.u32 %v20801_v49, 16  ;;  %v16742_v49 = vld [vmem:[%s22050_s5 + $0xb0] sm:$0xff]  }
 0x7ea   : > { %15458 = vmatprep.subr.bf16.mxu0 %v16737_v28  ;;  %v22844_v33 = vld [vmem:[#allocation106_spill] sm:$0xff] }
 0x7eb   : > { %v9737_v43 = vrot.slane %v9735_v41, 5  ;;  %v21126_v41 = vld [vmem:[%s22051_s6] ss:$0 sm:$0xff] }
 0x7ed   : > { %15459 = vmatpush3.bf16.msra.mxu0 %v16737_v28  ;;  %v22846_v28 = vcombine.low %v22844_v33, %v22845_v19  ;;  %v22850_v33 = vld [vmem:[#allocation76_spill] sm:$0xff] }
 0x7ee   : > { %15460 = vmatprep.subr.bf16.mxu0 %v16738_v11 }
 0x7f0   : > { %15445 = vmatmul.mubr.msk.bf16.gmra.mrb[132].mxu0 %vm1825_vm1, %v13582_v20 }
 0x7f1   : > { %15448 = vmatprep.mubr.msk.bf16.mxu0 %vm1825_vm1, %v22841_v63  ;;  %15461 = vmatpush3.bf16.msra.mxu0 %v16738_v11  ;;  %v22847_v11 = vld [vmem:[#allocation77_spill] sm:$0xff]  ;;  %v9728_v63 = vrot.slane %v9726_v56, 4 }
 0x7f2   : > { %15462 = vmatprep.subr.bf16.mxu0 %v16739_v34  ;;  %v13611_v20 = vcombine.low %v22848_v59, %v22847_v11  ;;  %v22852_v56 = vld [vmem:[#allocation93_spill] sm:$0xff]  ;;  %v22853_v59 = vld [vmem:[#allocation104_spill] sm:$0xff] }
 0x7f5   : > { %15463 = vmatpush3.bf16.msra.mxu0 %v16739_v34  ;;  %v9731_v34 = vrot.slane %v9729_v30, 5 }
 0x7f6   : > { %15480 = vmatprep.subr.bf16.mxu0 %v16740_v18 }
 0x7f7   : > { %v9732_v24 = vor.u32 %v9731_v34, %v9728_v63  ;;  %v16744_v63 = vld [vmem:[%s22050_s5 + $0xc0] sm:$0xff]  }
 0x7f8   : > { %15449 = vmatmul.mubr.msk.bf16.gmra.mrb[136].mxu0 %vm1825_vm1, %v22843_v52  ;;  %v22849_v52 = vld [vmem:[#allocation92_spill] sm:$0xff] }
 0x7f9   : > { %15452 = vmatprep.mubr.msk.bf16.mxu0 %vm1825_vm1, %v22846_v28  ;;  %v13612_v19 = vcombine.low %v22850_v33, %v22849_v52  ;;  %v22851_v28 = vld [vmem:[#allocation103_spill] sm:$0xff]  ;;  %v9733_v11 = vrot.slane %v9732_v24, 4  ;;  %v13713_v24 = vcombine.low %v20829_v39, %v20805_v22 }
 0x7fa   : > { %v13613_v30 = vcombine.low %v22852_v56, %v22851_v28  ;;  %v16757_v39 = vld [vmem:[%s22052_s7 + $0x48] sm:$0xff]  }
 0x800   : > { %15453 = vmatmul.mubr.msk.bf16.gmra.mrb[140].mxu0 %vm1825_vm1, %v13586_v54  ;;  %v20947_v54 = vsel %vm19316_vm5, %v9733_v11, %v9737_v43 }
 0x801   : > { %15464 = vmatprep.mubr.msk.bf16.mxu0 %vm1825_vm1, %v13611_v20  ;;  %v13614_v20 = vcombine.low %v22853_v59, %v20947_v54 }
 0x808   : > { %15465 = vmatmul.mubr.msk.bf16.vlgmr.msra.gmra.mrb[128].mxu0 %vm1825_vm1, %v13612_v19 }
 0x809   : > { %15481 = vmatpush3.bf16.msra.mxu0 %v16740_v18  ;;  %15468 = vmatprep.mubr.msk.bf16.mxu0 %vm1825_vm1, %v13613_v30  ;;  %v16743_v18 = vld [vmem:[%s22050_s5 + $0xb8] sm:$0xff]  }
 0x80a   : > { %15482 = vmatprep.subr.bf16.mxu0 %v16741_v57 }
 0x80d   : > { %15483 = vmatpush3.bf16.msra.mxu0 %v16741_v57 }
 0x80e   : > { %15484 = vmatprep.subr.bf16.mxu0 %v16742_v49 }
 0x810   : > { %15469 = vmatmul.mubr.msk.bf16.gmra.mrb[132].mxu0 %vm1825_vm1, %v13614_v20 }
 0x811   : > { %15472 = vmatprep.mubr.msk.bf16.mxu0 %vm1825_vm1, %v13615_v27  ;;  %15485 = vmatpush3.bf16.msra.mxu0 %v16742_v49  ;;  %v16753_v27 = vld [vmem:[%s22050_s5 + $0x108] sm:$0xff]  }
 0x812   : > { %15486 = vmatprep.subr.bf16.mxu0 %v16743_v18 }
 0x815   : > { %15487 = vmatpush3.bf16.msra.mxu0 %v16743_v18 }
 0x816   : > { %15504 = vmatprep.subr.bf16.mxu0 %v16744_v63 }
 0x818   : > { %15473 = vmatmul.mubr.msk.bf16.gmra.mrb[136].mxu0 %vm1825_vm1, %v13616_v45  ;;  %v22865_v45 = vld [vmem:[#allocation94_spill] sm:$0xff] }
 0x819   : > { %15476 = vmatprep.mubr.msk.bf16.mxu0 %vm1825_vm1, %v13617_v31  ;;  %v22867_v31 = vld [vmem:[#allocation2_spill] sm:$0xff] }
 0x81a   : > { %v13692_v34 = vcombine.low %v20859_v51, %v22867_v31  ;;  %v16761_v51 = vld [vmem:[%s22052_s7 + $0x68] sm:$0xff]  }
 0x820   : > { %15477 = vmatmul.mubr.msk.bf16.gmra.mrb[140].mxu0 %vm1825_vm1, %v13618_v44  ;;  %v22870_v44 = vld [vmem:[#allocation111_spill] sm:$0xff] }
 0x821   : > { %15488 = vmatprep.mubr.msk.bf16.mxu0 %vm1825_vm1, %v13641_v9  ;;  %v13691_v9 = vcombine.low %v20947_v54, %v22867_v31 }
 0x828   : > { %15489 = vmatmul.mubr.msk.bf16.vlgmr.msra.gmra.mrb[128].mxu0 %vm1825_vm1, %v22854_v40 }
 0x829   : > { %15505 = vmatpush3.bf16.msra.mxu0 %v16744_v63  ;;  %15492 = vmatprep.mubr.msk.bf16.mxu0 %vm1825_vm1, %v22855_v5 }
 0x82a   : > { %15506 = vmatprep.subr.bf16.mxu0 %v16745_v53 }
 0x82d   : > { %15507 = vmatpush3.bf16.msra.mxu0 %v16745_v53 }
 0x82e   : > { %15508 = vmatprep.subr.bf16.mxu0 %v16746_v23 }
 0x830   : > { %15493 = vmatmul.mubr.msk.bf16.gmra.mrb[132].mxu0 %vm1825_vm1, %v22856_v14 }
 0x831   : > { %15496 = vmatprep.mubr.msk.bf16.mxu0 %vm1825_vm1, %v22857_v48  ;;  %15509 = vmatpush3.bf16.msra.mxu0 %v16746_v23 }
 0x832   : > { %15510 = vmatprep.subr.bf16.mxu0 %v16747_v16 }
 0x835   : > { %15511 = vmatpush3.bf16.msra.mxu0 %v16747_v16 }
 0x836   : > { %15528 = vmatprep.subr.bf16.mxu0 %v16748_v42 }
 0x838   : > { %15497 = vmatmul.mubr.msk.bf16.gmra.mrb[136].mxu0 %vm1825_vm1, %v22858_v13 }
 0x839   : > { %15500 = vmatprep.mubr.msk.bf16.mxu0 %vm1825_vm1, %v22859_v2 }
 0x840   : > { %15501 = vmatmul.mubr.msk.bf16.gmra.mrb[140].mxu0 %vm1825_vm1, %v22860_v50 }
 0x841   : > { %15512 = vmatprep.mubr.msk.bf16.mxu0 %vm1825_vm1, %v22861_v8 }
 0x848   : > { %15513 = vmatmul.mubr.msk.bf16.vlgmr.msra.gmra.mrb[128].mxu0 %vm1825_vm1, %v22862_v21 }
 0x849   : > { %15529 = vmatpush3.bf16.msra.mxu0 %v16748_v42  ;;  %15516 = vmatprep.mubr.msk.bf16.mxu0 %vm1825_vm1, %v20587_v62  ;;  %v16752_v62 = vld [vmem:[%s22050_s5 + $0x100] sm:$0xff]  }
 0x84a   : > { %15530 = vmatprep.subr.bf16.mxu0 %v16749_v17 }
 0x84d   : > { %15531 = vmatpush3.bf16.msra.mxu0 %v16749_v17 }
 0x84e   : > { %15532 = vmatprep.subr.bf16.mxu0 %v16750_v61 }
 0x850   : > { %15517 = vmatmul.mubr.msk.bf16.gmra.mrb[132].mxu0 %vm1825_vm1, %v13669_v35 }
 0x851   : > { %15520 = vmatprep.mubr.msk.bf16.mxu0 %vm1825_vm1, %v20488_v25  ;;  %15533 = vmatpush3.bf16.msra.mxu0 %v16750_v61  ;;  %v22864_v25 = vld [vmem:[#allocation78_spill] sm:$0xff] }
 0x852   : > { %15534 = vmatprep.subr.bf16.mxu0 %v16751_v37 }
 0x855   : > { %15535 = vmatpush3.bf16.msra.mxu0 %v16751_v37 }
 0x856   : > { %15552 = vmatprep.subr.bf16.mxu0 %v16752_v62 }
 0x858   : > { %15521 = vmatmul.mubr.msk.bf16.gmra.mrb[136].mxu0 %vm1825_vm1, %v20501_v7  ;;  %v22866_v7 = vld [vmem:[#allocation3_spill] sm:$0xff] }
 0x859   : > { %15524 = vmatprep.mubr.msk.bf16.mxu0 %vm1825_vm1, %v20535_v46  ;;  %v16754_v46 = vld [vmem:[%s22050_s5 + $0x110] sm:$0xff]  }
 0x860   : > { %15525 = vmatmul.mubr.msk.bf16.gmra.mrb[140].mxu0 %vm1825_vm1, %v13670_v3 }
 0x861   : > { %15536 = vmatprep.mubr.msk.bf16.mxu0 %vm1825_vm1, %v22864_v25 }
 0x868   : > { %15537 = vmatmul.mubr.msk.bf16.vlgmr.msra.gmra.mrb[128].mxu0 %vm1825_vm1, %v22865_v45 }
 0x869   : > { %15553 = vmatpush3.bf16.msra.mxu0 %v16752_v62  ;;  %15540 = vmatprep.mubr.msk.bf16.mxu0 %vm1825_vm1, %v22866_v7 }
 0x86a   : > { %15554 = vmatprep.subr.bf16.mxu0 %v16753_v27 }
 0x86d   : > { %15555 = vmatpush3.bf16.msra.mxu0 %v16753_v27 }
 0x86e   : > { %15556 = vmatprep.subr.bf16.mxu0 %v16754_v46 }
 0x870   : > { %15541 = vmatmul.mubr.msk.bf16.gmra.mrb[132].mxu0 %vm1825_vm1, %v13691_v9 }
 0x871   : > { %15544 = vmatprep.mubr.msk.bf16.mxu0 %vm1825_vm1, %v22868_v29  ;;  %15557 = vmatpush3.bf16.msra.mxu0 %v16754_v46 }
 0x872   : > { %15558 = vmatprep.subr.bf16.mxu0 %v16755_v6 }
 0x875   : > { %15559 = vmatpush3.bf16.msra.mxu0 %v16755_v6 }
 0x876   : > { %15576 = vmatprep.subr.bf16.mxu0 %v16756_v60 }
 0x878   : > { %15545 = vmatmul.mubr.msk.bf16.gmra.mrb[136].mxu0 %vm1825_vm1, %v22869_v26 }
 0x879   : > { %15548 = vmatprep.mubr.msk.bf16.mxu0 %vm1825_vm1, %v22870_v44 }
 0x880   : > { %15549 = vmatmul.mubr.msk.bf16.gmra.mrb[140].mxu0 %vm1825_vm1, %v13692_v34 }
 0x881   : > { %15560 = vmatprep.mubr.msk.bf16.mxu0 %vm1825_vm1, %v20844_v1  ;;  %v13714_v1 = vcombine.low %v20838_v38, %v20805_v22  ;;  %v16760_v38 = vld [vmem:[%s22052_s7 + $0x60] sm:$0xff]  }
 0x888   : > { %15561 = vmatmul.mubr.msk.bf16.vlgmr.msra.gmra.mrb[128].mxu0 %vm1825_vm1, %v20851_v58  ;;  %v16758_v58 = vld [vmem:[%s22052_s7 + $0x50] sm:$0xff]  }
 0x889   : > { %15564 = vmatprep.mubr.msk.bf16.mxu0 %vm1825_vm1, %v20868_v10  ;;  %15577 = vmatpush3.bf16.msra.mxu0 %v16756_v60  ;;  %v16762_v10 = vld [vmem:[%s22052_s7 + $0x70] sm:$0xff]  }
 0x88a   : > { %15578 = vmatprep.subr.bf16.mxu0 %v16757_v39 }
 0x88d   : > { %15579 = vmatpush3.bf16.msra.mxu0 %v16757_v39 }
 0x88e   : > { %15580 = vmatprep.subr.bf16.mxu0 %v16758_v58 }
 0x890   : > { %15565 = vmatmul.mubr.msk.bf16.gmra.mrb[132].mxu0 %vm1825_vm1, %v13713_v24 }
 0x891   : > { %15568 = vmatprep.mubr.msk.bf16.mxu0 %vm1825_vm1, %v22831_v32  ;;  %15581 = vmatpush3.bf16.msra.mxu0 %v16758_v58  ;;  %v16763_v32 = vld [vmem:[%s22052_s7 + $0x78] sm:$0xff]  }
 0x898   : > { %15569 = vmatmul.mubr.msk.bf16.gmra.mrb[136].mxu0 %vm1825_vm1, %v22832_v4  ;;  %v21120_v4 = vld [vmem:[%s22052_s7] sm:$0xff]  }
 0x899   : > { %15572 = vmatprep.mubr.msk.bf16.mxu0 %vm1825_vm1, %v22835_v15  ;;  %v16759_v15 = vld [vmem:[%s22052_s7 + $0x58] sm:$0xff]  }
 0x89a   : > { %15582 = vmatprep.subr.bf16.mxu0 %v16759_v15 }
 0x89b   : > { %15583 = vmatpush3.bf16.msra.mxu0 %v16759_v15 }
 0x89c   : > { %15584 = vmatprep.subr.bf16.mxu0 %v16760_v38 }
 0x89f   : > { %15585 = vmatpush3.bf16.msra.mxu0 %v16760_v38 }
 0x8a0   : > { %15573 = vmatmul.mubr.msk.bf16.gmra.mrb[140].mxu0 %vm1825_vm1, %v13714_v1  ;;  %15586 = vmatprep.subr.bf16.mxu0 %v16761_v51 }
 0x8a3   : > { %15587 = vmatpush3.bf16.msra.mxu0 %v16761_v51 }
 0x8a4   : > { %15588 = vmatprep.subr.bf16.mxu0 %v16762_v10 }
 0x8a7   : > { %15589 = vmatpush3.bf16.msra.mxu0 %v16762_v10 }
 0x8a8   : > { %15590 = vmatprep.subr.bf16.mxu0 %v16763_v32 }
 0x8ab   : > { %15591 = vmatpush3.bf16.msra.mxu0 %v16763_v32 }
 0x8ac   : > { %15608 = vmatprep.subr.bf16.mxu0 %v21120_v4 }
 0x95b   : > { %v15562_v52 = vpop.f32.mrb[128].mxu0 }
 0x95c   : > { %v10592_v33 = vadd.f32 %v15562_v52, %v21126_v41  ;;  %v10504_v19 = vpop.f32.mrb[129].mxu0 }
 0x95d   : > { %v10590_v57 = vadd.f32 %v21126_v41, %v10504_v19  ;;  %v15563_v28 = vpop.f32.mrb[130].mxu0 }
 0x95e   : > { %v10608_v56 = vmax.f32 %v10592_v33, 0.0  ;;  %v10593_v30 = vadd.f32 %v15563_v28, %v21126_v41  ;;  %v10507_v11 = vpop.f32.mrb[131].mxu0 }
 0x95f   : > { %v10606_v43 = vmax.f32 %v10590_v57, 0.0  ;;  %v10591_v49 = vadd.f32 %v21126_v41, %v10507_v11 }
 0x960   : > { %v10624_v54 = vpack.c.bf16 %v10608_v56, %v10608_v56  ;;  %v10609_v59 = vmax.f32 %v10593_v30, 0.0 }
 0x961   : > { %v10622_v20 = vpack.c.bf16 %v10606_v43, %v10606_v43  ;;  %v10607_v18 = vmax.f32 %v10591_v49, 0.0 }
 0x962   : > { %v10653_v63 = vshrl.u32 %v10624_v54, 16  ;;  %v10625_v53 = vpack.c.bf16 %v10609_v59, %v10609_v59  ;;  %v10656_v40 = vshll.u32 %v10624_v54, 16 }
 0x963   : > { %v10639_v5 = vshrl.u32 %v10622_v20, 16  ;;  %v10623_v23 = vpack.c.bf16 %v10607_v18, %v10607_v18  ;;  %v15566_v16 = vpop.f32.mrb[132].mxu0  ;;  %v10642_v48 = vshll.u32 %v10622_v20, 16 }
 0x964   : > { %v10655_v14 = vrot.slane %v10653_v63, 7  ;;  %v10660_v42 = vshrl.u32 %v10625_v53, 16  ;;  %v10596_v13 = vadd.f32 %v15566_v16, %v21126_v41  ;;  %v10520_v2 = vpop.f32.mrb[133].mxu0  ;;  %v10663_v8 = vshll.u32 %v10625_v53, 16 }
 0x965   : > { %v10641_v50 = vrot.slane %v10639_v5, 7  ;;  %v10646_v17 = vshrl.u32 %v10623_v23, 16  ;;  %v10594_v21 = vadd.f32 %v21126_v41, %v10520_v2  ;;  %v15567_v61 = vpop.f32.mrb[134].mxu0  ;;  %v10649_v7 = vshll.u32 %v10623_v23, 16 }
 0x966   : > { %v10658_v35 = vor.u32 %v10656_v40, %v10655_v14  ;;  %v10662_v37 = vrot.slane %v10660_v42, 7  ;;  %v10612_v62 = vmax.f32 %v10596_v13, 0.0  ;;  %v10597_v3 = vadd.f32 %v15567_v61, %v21126_v41  ;;  %v10523_v25 = vpop.f32.mrb[135].mxu0 }
 0x967   : > { %v10644_v27 = vor.u32 %v10642_v48, %v10641_v50  ;;  %v10648_v45 = vrot.slane %v10646_v17, 7  ;;  %v10610_v46 = vmax.f32 %v10594_v21, 0.0  ;;  %v10595_v10 = vadd.f32 %v21126_v41, %v10523_v25 }
 0x968   : > { %v10768_v9 = vsel %vm17040_vm4, 0, %v10658_v35  ;;  %v10665_v6 = vor.u32 %v10663_v8, %v10662_v37  ;;  %v10628_v29 = vpack.c.bf16 %v10612_v62, %v10612_v62  ;;  %v10613_v57 = vmax.f32 %v10597_v3, 0.0 }
 0x969   : > { %v21139_v60 = vsel %vm19271_vm0, %v10768_v9, 0  ;;  %v10766_v26 = vsel %vm17040_vm4, 0, %v10644_v27  ;;  %v10651_v44 = vor.u32 %v10649_v7, %v10648_v45  ;;  %v10626_v15 = vpack.c.bf16 %v10610_v46, %v10610_v46 }
 0x96a   : > { %22871 = vst [vmem:[#allocation114_spill] sm:$0xff] %v21139_v60  ;;  %v21145_v34 = vcombine.low %v21139_v60, %v21139_v60  ;;  %v21149_v24 = vcombine.high %v21139_v60, %v21139_v60  ;;  %v10769_v1 = vsel %vm17040_vm4, 0, %v10665_v6  ;;  %v10681_v58 = vshrl.u32 %v10628_v29, 16 }
 0x96b   : > { %v10767_v39 = vsel %vm17040_vm4, 0, %v10651_v44  ;;  %v15570_v38 = vpop.f32.mrb[136].mxu0  ;;  %v21157_v51 = vsel %vm19271_vm0, %v10766_v26, 0  ;;  %v21162_v52 = vsel %vm19271_vm0, %v10769_v1, 0  ;;  %v10684_v20 = vshll.u32 %v10628_v29, 16 }
 0x96c   : > { %v10536_v32 = vpop.f32.mrb[137].mxu0  ;;  %22872 = vst [vmem:[#allocation18_spill] sm:$0xff] %v21162_v52  ;;  %v21166_v33 = vsel %vm19271_vm0, %v10767_v39, 0  ;;  %v10683_v19 = vrot.slane %v10681_v58, 7  ;;  %v10913_v56 = vshrl.u32 %v21145_v34, 16  ;;  %v10916_v30 = vshll.u32 %v21145_v34, 16 }
 0x96d   : > { %22873 = vst [vmem:[#allocation23_spill] sm:$0xff] %v21166_v33  ;;  %v15571_v28 = vpop.f32.mrb[138].mxu0  ;;  %v10922_v11 = vshll.u32 %v21149_v24, 16  ;;  %v21173_v43 = vcombine.low %v21166_v33, %v21166_v33  ;;  %v21177_v54 = vcombine.low %v21157_v51, %v21157_v51  ;;  %v21181_v59 = vcombine.high %v21166_v33, %v21166_v33 }
 0x96e   : > { %v10539_v49 = vpop.f32.mrb[139].mxu0  ;;  %v10667_v18 = vshrl.u32 %v10626_v15, 16  ;;  %v21187_v40 = vcombine.low %v21162_v52, %v21162_v52  ;;  %v10686_v16 = vor.u32 %v10684_v20, %v10683_v19  ;;  %v10670_v48 = vshll.u32 %v10626_v15, 16 }
 0x96f   : > { %v10899_v5 = vshrl.u32 %v21173_v43, 16  ;;  %v10902_v23 = vshll.u32 %v21173_v43, 16  ;;  %v21191_v42 = vrot.slane %v10913_v56, 4  ;;  %v21193_v13 = vrot.slane %v10916_v30, 5 }
 0x970   : > { %v10669_v14 = vrot.slane %v10667_v18, 7  ;;  %v21195_v2 = vrot.slane %v10922_v11, 5  ;;  %v21197_v50 = vpack.c.bf16 %v10613_v57, %v10613_v57  ;;  %v10908_v8 = vshll.u32 %v21181_v59, 16 }
 0x971   : > { %v10611_v61 = vmax.f32 %v10595_v10, 0.0  ;;  %v21201_v37 = vrot.slane %v10899_v5, 4  ;;  %v10600_v3 = vadd.f32 %v15570_v38, %v21126_v41  ;;  %v10598_v25 = vadd.f32 %v21126_v41, %v10536_v32 }
 0x972   : > { %v10672_v21 = vor.u32 %v10670_v48, %v10669_v14  ;;  %v21206_v45 = vrot.slane %v10902_v23, 5  ;;  %v10772_v7 = vsel %vm17040_vm4, 0, %v10686_v16  ;;  %v10601_v9 = vadd.f32 %v15571_v28, %v21126_v41 }
 0x973   : > { %v15574_v35 = vpop.f32.mrb[140].mxu0  ;;  %v10627_v46 = vpack.c.bf16 %v10611_v61, %v10611_v61  ;;  %v10688_v29 = vshrl.u32 %v21197_v50, 16  ;;  %v10616_v44 = vmax.f32 %v10600_v3, 0.0  ;;  %v10614_v1 = vmax.f32 %v10598_v25, 0.0 }
 0x974   : > { %v10552_v27 = vpop.f32.mrb[141].mxu0  ;;  %v21213_v58 = vrot.slane %v10908_v8, 5  ;;  %v10770_v15 = vsel %vm17040_vm4, 0, %v10672_v21  ;;  %v10617_v10 = vmax.f32 %v10601_v9, 0.0  ;;  %v21219_v32 = vsel %vm19271_vm0, %v10772_v7, 0 }
 0x975   : > { %v15575_v6 = vpop.f32.mrb[142].mxu0  ;;  %v10674_v38 = vshrl.u32 %v10627_v46, 16  ;;  %22874 = vst [vmem:[#allocation56_spill] sm:$0xff] %v21219_v32  ;;  %v10632_v19 = vpack.c.bf16 %v10616_v44, %v10616_v44  ;;  %v10630_v57 = vpack.c.bf16 %v10614_v1, %v10614_v1  ;;  %v10599_v28 = vadd.f32 %v21126_v41, %v10539_v49 }
 0x976   : > { %v10555_v39 = vpop.f32.mrb[143].mxu0  ;;  %v10677_v30 = vshll.u32 %v10627_v46, 16  ;;  %v10633_v11 = vpack.c.bf16 %v10617_v10, %v10617_v10  ;;  %v10604_v20 = vadd.f32 %v15574_v35, %v21126_v41  ;;  %v21225_v18 = vsel %vm19271_vm0, %v10770_v15, 0 }
 0x977   : > { %v10676_v56 = vrot.slane %v10674_v38, 7  ;;  %22875 = vst [vmem:[#allocation12_spill] sm:$0xff] %v21225_v18  ;;  %v10709_v5 = vshrl.u32 %v10632_v19, 16  ;;  %v10695_v23 = vshrl.u32 %v10630_v57, 16  ;;  %v10602_v16 = vadd.f32 %v21126_v41, %v10552_v27 }
 0x978   : > { %v10712_v48 = vshll.u32 %v10632_v19, 16  ;;  %v10716_v8 = vshrl.u32 %v10633_v11, 16  ;;  %v10615_v21 = vmax.f32 %v10599_v28, 0.0  ;;  %v10698_v49 = vshll.u32 %v10630_v57, 16 }
 0x979   : > { %v10679_v14 = vor.u32 %v10677_v30, %v10676_v56  ;;  %v10711_v61 = vrot.slane %v10709_v5, 7  ;;  %v10697_v3 = vrot.slane %v10695_v23, 7  ;;  %v10620_v25 = vmax.f32 %v10604_v20, 0.0 }
 0x97a   : > { %v10718_v7 = vrot.slane %v10716_v8, 7  ;;  %v10719_v46 = vshll.u32 %v10633_v11, 16  ;;  %v10631_v9 = vpack.c.bf16 %v10615_v21, %v10615_v21  ;;  %v10605_v35 = vadd.f32 %v15575_v6, %v21126_v41 }
 0x97b   : > { %v10771_v44 = vsel %vm17040_vm4, 0, %v10679_v14  ;;  %v10714_v1 = vor.u32 %v10712_v48, %v10711_v61  ;;  %v10700_v15 = vor.u32 %v10698_v49, %v10697_v3  ;;  %v10636_v38 = vpack.c.bf16 %v10620_v25, %v10620_v25 }
 0x97c   : > { %v21231_v27 = vrot.slane %v10688_v29, 7  ;;  %v10721_v10 = vor.u32 %v10719_v46, %v10718_v7  ;;  %v10702_v19 = vshrl.u32 %v10631_v9, 16  ;;  %v10618_v28 = vmax.f32 %v10602_v16, 0.0 }
 0x97d   : > { %v21235_v57 = vcombine.low %v21219_v32, %v21219_v32  ;;  %v10776_v56 = vsel %vm17040_vm4, 0, %v10714_v1  ;;  %v10774_v6 = vsel %vm17040_vm4, 0, %v10700_v15  ;;  %v10737_v30 = vshrl.u32 %v10636_v38, 16 }
 0x97e   : > { %v21243_v11 = vcombine.low %v21225_v18, %v21225_v18  ;;  %v21247_v29 = vsel %vm19271_vm0, %v10771_v44, 0  ;;  %v10704_v20 = vrot.slane %v10702_v19, 7  ;;  %v10705_v5 = vshll.u32 %v10631_v9, 16 }
 0x97f   : > { %22876 = vst [vmem:[#allocation54_spill] sm:$0xff] %v21247_v29  ;;  %v21251_v23 = vsel %vm19271_vm0, %v10776_v56, 0  ;;  %v21255_v16 = vsel %vm19271_vm0, %v10774_v6, 0  ;;  %v10739_v14 = vrot.slane %v10737_v30, 7  ;;  %v10740_v48 = vshll.u32 %v10636_v38, 16 }
 0x980   : > { %22877 = vst [vmem:[#allocation40_spill] sm:$0xff] %v21255_v16  ;;  %v10777_v8 = vsel %vm17040_vm4, 0, %v10721_v10  ;;  %v10707_v21 = vor.u32 %v10705_v5, %v10704_v20  ;;  %v10634_v61 = vpack.c.bf16 %v10618_v28, %v10618_v28  ;;  %v10621_v3 = vmax.f32 %v10605_v35, 0.0 }
 0x981   : > { %v21261_v49 = vcombine.low %v21247_v29, %v21247_v29  ;;  %v10742_v25 = vor.u32 %v10740_v48, %v10739_v14  ;;  %v10603_v7 = vadd.f32 %v21126_v41, %v10555_v39  ;;  %v10885_v46 = vshrl.u32 %v21177_v54, 16 }
 0x982   : > { %v21267_v9 = vcombine.low %v21251_v23, %v21251_v23  ;;  %v10775_v44 = vsel %vm17040_vm4, 0, %v10707_v21  ;;  %v10723_v1 = vshrl.u32 %v10634_v61, 16  ;;  %v21273_v35 = vcombine.high %v21157_v51, %v21157_v51 }
 0x983   : > { %v21277_v15 = vcombine.low %v21255_v16, %v21255_v16  ;;  %v21281_v41 = vsel %vm19271_vm0, %v10777_v8, 0  ;;  %v10780_v39 = vsel %vm17040_vm4, 0, %v10742_v25  ;;  %v10619_v38 = vmax.f32 %v10603_v7, 0.0 }
 0x984   : > { %v21287_v10 = vsel %vm19271_vm0, %v10775_v44, 0  ;;  %v10725_v19 = vrot.slane %v10723_v1, 7  ;;  %v10726_v28 = vshll.u32 %v10634_v61, 16  ;;  %v21289_v56 = vpack.c.bf16 %v10621_v3, %v10621_v3 }
 0x985   : > { %v21293_v6 = vsel %vm19271_vm0, %v10780_v39, 0  ;;  %v10635_v30 = vpack.c.bf16 %v10619_v38, %v10619_v38  ;;  %v10887_v20 = vrot.slane %v10885_v46, 4  ;;  %v10888_v5 = vshll.u32 %v21177_v54, 16 }
 0x986   : > { %22878 = vst [vmem:[#allocation53_spill] sm:$0xff] %v21293_v6  ;;  %v21298_v14 = vcombine.low %v21281_v41, %v21281_v41  ;;  %v10728_v48 = vor.u32 %v10726_v28, %v10725_v19  ;;  %v10894_v8 = vshll.u32 %v21273_v35, 16  ;;  %v10905_v21 = vor.u32 %v21206_v45, %v21201_v37 }
 0x987   : > { %v21305_v61 = vcombine.low %v21287_v10, %v21287_v10  ;;  %v10730_v3 = vshrl.u32 %v10635_v30, 16  ;;  %v10890_v25 = vrot.slane %v10888_v5, 5  ;;  %v10919_v7 = vor.u32 %v21193_v13, %v21191_v42 }
 0x988   : > { %v21311_v46 = vcombine.low %v21293_v6, %v21293_v6  ;;  %v10778_v44 = vsel %vm17040_vm4, 0, %v10728_v48  ;;  %v10906_v39 = vrot.slane %v10905_v21, 4  ;;  %v10733_v45 = vshll.u32 %v10635_v30, 16 }
 0x989   : > { %v10732_v37 = vrot.slane %v10730_v3, 7  ;;  %v10891_v38 = vor.u32 %v10890_v25, %v10887_v20  ;;  %v10920_v19 = vrot.slane %v10919_v7, 4  ;;  %v21318_v28 = vsel %vm19271_vm0, %v10778_v44, 0 }
 0x98a   : > { %v10896_v5 = vrot.slane %v10894_v8, 5  ;;  %v21323_v42 = vsel %vm19316_vm5, %v10906_v39, %v21213_v58  ;;  %v21327_v13 = vcombine.high %v21162_v52, %v21162_v52  ;;  %v21336_v20 = vcombine.high %v21225_v18, %v21225_v18 }
 0x98b   : > { %22879 = vst [vmem:[#allocation57_spill] sm:$0xff] %v21323_v42  ;;  %v10735_v48 = vor.u32 %v10733_v45, %v10732_v37  ;;  %v10892_v21 = vrot.slane %v10891_v38, 4  ;;  %v21332_v30 = vsel %vm19316_vm5, %v10920_v19, %v21195_v2  ;;  %v10927_v58 = vshrl.u32 %v21187_v40, 16 }
 0x98c   : > { %22880 = vst [vmem:[#allocation17_spill] sm:$0xff] %v21332_v30  ;;  %v21340_v8 = vcombine.low %v21323_v42, %v21332_v30  ;;  %v10930_v3 = vshll.u32 %v21187_v40, 16  ;;  %v10936_v25 = vshll.u32 %v21327_v13, 16  ;;  %v10941_v44 = vshrl.u32 %v21243_v11, 16 }
 0x98d   : > { %v10779_v7 = vsel %vm17040_vm4, 0, %v10735_v48  ;;  %v21349_v2 = vsel %vm19316_vm5, %v10892_v21, %v10896_v5  ;;  %v10944_v39 = vshll.u32 %v21243_v11, 16  ;;  %v21355_v37 = vcombine.low %v21318_v28, %v21318_v28  ;;  %v16765_v5 = vld [vmem:[%s22052_s7 + $0x8] sm:$0xff]  }
 0x98e   : > { %22881 = vst [vmem:[#allocation13_spill] sm:$0xff] %v21340_v8  ;;  %22882 = vst [vmem:[#allocation9_spill] sm:$0xff] %v21349_v2  ;;  %v13772_v45 = vcombine.low %v22867_v31, %v21349_v2  ;;  %v10929_v38 = vrot.slane %v10927_v58, 4  ;;  %v10932_v19 = vrot.slane %v10930_v3, 5  ;;  %v21361_v48 = vsel %vm19271_vm0, %v10779_v7, 0 }
 0x98f   : > { %v10938_v21 = vrot.slane %v10936_v25, 5  ;;  %v10943_v63 = vrot.slane %v10941_v44, 4  ;;  %v10946_v53 = vrot.slane %v10944_v39, 5  ;;  %v10950_v62 = vshll.u32 %v21336_v20, 16 }
 0x990   : > { %15592 = vmatprep.mubr.bf16.mxu0 %v13772_v45  ;;  %v10933_v17 = vor.u32 %v10932_v19, %v10929_v38  ;;  %v21369_v26 = vcombine.high %v21247_v29, %v21247_v29  ;;  %v21373_v58 = vcombine.high %v21219_v32, %v21219_v32  ;;  %v10955_v7 = vshrl.u32 %v21261_v49, 16 }
 0x991   : > { %15593 = vmatmul.mubr.bf16.vlgmr.msra.gmra.mrb[144].mxu0 %v21340_v8  ;;  %v10947_v3 = vor.u32 %v10946_v53, %v10943_v63  ;;  %v10958_v25 = vshll.u32 %v21261_v49, 16  ;;  %v10969_v44 = vshrl.u32 %v21235_v57, 16  ;;  %v10952_v45 = vrot.slane %v10950_v62, 5  ;;  %v16766_v63 = vld [vmem:[%s22052_s7 + $0x10] sm:$0xff]  }
 0x992   : > { %15609 = vmatpush3.bf16.msra.mxu0 %v21120_v4  ;;  %v10934_v39 = vrot.slane %v10933_v17, 4  ;;  %v10964_v38 = vshll.u32 %v21369_v26, 16  ;;  %v10972_v19 = vshll.u32 %v21235_v57, 16  ;;  %v10957_v53 = vrot.slane %v10955_v7, 4 }
 0x993   : > { %15610 = vmatprep.subr.bf16.mxu0 %v16765_v5  ;;  %v10948_v1 = vrot.slane %v10947_v3, 4  ;;  %v10960_v8 = vrot.slane %v10958_v25, 5  ;;  %v10971_v22 = vrot.slane %v10969_v44, 4  ;;  %v10978_v62 = vshll.u32 %v21373_v58, 16 }
 0x994   : > { %v21387_v2 = vsel %vm19316_vm5, %v10934_v39, %v10938_v21  ;;  %v10966_v4 = vrot.slane %v10964_v38, 5  ;;  %v10974_v17 = vrot.slane %v10972_v19, 5  ;;  %v21398_v7 = vcombine.high %v21255_v16, %v21255_v16 }
 0x995   : > { %22883 = vst [vmem:[#allocation14_spill] sm:$0xff] %v21387_v2  ;;  %v21392_v42 = vsel %vm19316_vm5, %v10948_v1, %v10952_v45  ;;  %v10961_v29 = vor.u32 %v10960_v8, %v10957_v53  ;;  %v10980_v44 = vrot.slane %v10978_v62, 5  ;;  %v10983_v39 = vshrl.u32 %v21277_v15, 16  ;;  %v16767_v45 = vld [vmem:[%s22052_s7 + $0x18] sm:$0xff]  }
 0x996   : > { %22884 = vst [vmem:[#allocation19_spill] sm:$0xff] %v21392_v42  ;;  %15611 = vmatpush3.bf16.msra.mxu0 %v16765_v5  ;;  %v21402_v21 = vcombine.low %v21387_v2, %v21392_v42  ;;  %v10975_v25 = vor.u32 %v10974_v17, %v10971_v22  ;;  %v10986_v8 = vshll.u32 %v21277_v15, 16  ;;  %v10992_v38 = vshll.u32 %v21398_v7, 16 }
 0x997   : > { %15612 = vmatprep.subr.bf16.mxu0 %v16766_v63  ;;  %v10962_v1 = vrot.slane %v10961_v29, 4  ;;  %v21412_v5 = vcombine.high %v21287_v10, %v21287_v10  ;;  %v10985_v19 = vrot.slane %v10983_v39, 4  ;;  %v21417_v53 = vcombine.high %v21251_v23, %v21251_v23 }
 0x998   : > { %22885 = vst [vmem:[#allocation22_spill] sm:$0xff] %v21402_v21  ;;  %15596 = vmatprep.mubr.bf16.mxu0 %v21402_v21  ;;  %v10976_v22 = vrot.slane %v10975_v25, 4  ;;  %v10997_v29 = vshrl.u32 %v21305_v61, 16  ;;  %v21422_v17 = vcombine.low %v21361_v48, %v21361_v48  ;;  %v10988_v3 = vrot.slane %v10986_v8, 5 }
 0x999   : > { %v21426_v62 = vsel %vm19316_vm5, %v10962_v1, %v10966_v4  ;;  %v11000_v2 = vshll.u32 %v21305_v61, 16  ;;  %v11006_v21 = vshll.u32 %v21412_v5, 16  ;;  %v11011_v30 = vshrl.u32 %v21267_v9, 16  ;;  %v16768_v1 = vld [vmem:[%s22052_s7 + $0x20] sm:$0xff]  }
 0x99a   : > { %22886 = vst [vmem:[#allocation25_spill] sm:$0xff] %v21422_v17  ;;  %22887 = vst [vmem:[#allocation26_spill] sm:$0xff] %v21426_v62  ;;  %v21431_v25 = vsel %vm19316_vm5, %v10976_v22, %v10980_v44  ;;  %15613 = vmatpush3.bf16.msra.mxu0 %v16766_v63  ;;  %v10999_v39 = vrot.slane %v10997_v29, 4  ;;  %v10989_v4 = vor.u32 %v10988_v3, %v10985_v19  ;;  %v11014_v44 = vshll.u32 %v21267_v9, 16 }
 0x99b   : > { %22888 = vst [vmem:[#allocation27_spill] sm:$0xff] %v21431_v25  ;;  %v21437_v42 = vcombine.low %v21426_v62, %v21431_v25  ;;  %15614 = vmatprep.subr.bf16.mxu0 %v16767_v45  ;;  %v11002_v8 = vrot.slane %v11000_v2, 5  ;;  %v10994_v22 = vrot.slane %v10992_v38, 5  ;;  %v11013_v63 = vrot.slane %v11011_v30, 4 }
 0x99c   : > { %v11020_v29 = vshll.u32 %v21417_v53, 16  ;;  %v21446_v16 = vcombine.high %v21281_v41, %v21281_v41  ;;  %v10990_v25 = vrot.slane %v10989_v4, 4  ;;  %v11008_v3 = vrot.slane %v11006_v21, 5  ;;  %v16769_v21 = vld [vmem:[%s22052_s7 + $0x28] sm:$0xff]  }
 0x99d   : > { %22889 = vst [vmem:[#allocation24_spill] sm:$0xff] %v21437_v42  ;;  %15597 = vmatmul.mubr.bf16.gmra.mrb[148].mxu0 %v21437_v42  ;;  %v11003_v62 = vor.u32 %v11002_v8, %v10999_v39  ;;  %v11016_v19 = vrot.slane %v11014_v44, 5  ;;  %v21451_v2 = vcombine.high %v21318_v28, %v21318_v28  ;;  %v11025_v30 = vshrl.u32 %v21298_v14, 16 }
 0x99e   : > { %15615 = vmatpush3.bf16.msra.mxu0 %v16767_v45  ;;  %v11022_v32 = vrot.slane %v11020_v29, 5  ;;  %v11028_v38 = vshll.u32 %v21298_v14, 16  ;;  %v21457_v0 = vsel %vm19316_vm5, %v10990_v25, %v10994_v22  ;;  %v11039_v45 = vshrl.u32 %v21355_v37, 16 }
 0x99f   : > { %22890 = vst [vmem:[#allocation30_spill] sm:$0xff] %v21451_v2  ;;  %22891 = vst [vmem:[#allocation29_spill] sm:$0xff] %v21457_v0  ;;  %15616 = vmatprep.subr.bf16.mxu0 %v16768_v1  ;;  %v11004_v42 = vrot.slane %v11003_v62, 4  ;;  %v11017_v4 = vor.u32 %v11016_v19, %v11013_v63  ;;  %v13776_v39 = vcombine.low %v22867_v31, %v21457_v0  ;;  %v11027_v8 = vrot.slane %v11025_v30, 4 }
 0x9a0   : > { %v11030_v44 = vrot.slane %v11028_v38, 5  ;;  %v11034_v29 = vshll.u32 %v21446_v16, 16  ;;  %v11041_v62 = vrot.slane %v11039_v45, 4  ;;  %v11042_v63 = vshll.u32 %v21355_v37, 16 }
 0x9a1   : > { %v21468_v25 = vsel %vm19316_vm5, %v11004_v42, %v11008_v3  ;;  %v11018_v22 = vrot.slane %v11017_v4, 4  ;;  %15600 = vmatprep.mubr.bf16.mxu0 %v13776_v39  ;;  %v11048_v52 = vshll.u32 %v21451_v2, 16  ;;  %v21474_v31 = vcombine.high %v21361_v48, %v21361_v48 }
 0x9a2   : > { %22892 = vst [vmem:[#allocation35_spill] sm:$0xff] %v21468_v25  ;;  %15617 = vmatpush3.bf16.msra.mxu0 %v16768_v1  ;;  %v11031_v19 = vor.u32 %v11030_v44, %v11027_v8  ;;  %v21478_v30 = vcombine.high %v21293_v6, %v21293_v6  ;;  %v11044_v3 = vrot.slane %v11042_v63, 5  ;;  %v11053_v38 = vshrl.u32 %v21422_v17, 16  ;;  %v16770_v44 = vld [vmem:[%s22052_s7 + $0x30] sm:$0xff]  }
 0x9a3   : > { %v21482_v42 = vsel %vm19316_vm5, %v11018_v22, %v11022_v32  ;;  %15618 = vmatprep.subr.bf16.mxu0 %v16769_v21  ;;  %v11056_v1 = vshll.u32 %v21422_v17, 16  ;;  %v22894_v4 = vshrl.u32 %v21289_v56, 16  ;;  %v11062_v32 = vshll.u32 %v21474_v31, 16 }
 0x9a4   : > { %22893 = vst [vmem:[#allocation46_spill] sm:$0xff] %v21482_v42  ;;  %v21490_v39 = vcombine.low %v21468_v25, %v21482_v42  ;;  %v11032_v8 = vrot.slane %v11031_v19, 4  ;;  %v11045_v22 = vor.u32 %v11044_v3, %v11041_v62  ;;  %v11055_v63 = vrot.slane %v11053_v38, 4 }
 0x9a5   : > { %v10746_v45 = vrot.slane %v22894_v4, 7  ;;  %v11058_v0 = vrot.slane %v11056_v1, 5  ;;  %v11067_v18 = vshrl.u32 %v21311_v46, 16  ;;  %v10747_v33 = vshll.u32 %v21289_v56, 16 }
 0x9a6   : > { %22895 = vst [vmem:[#allocation21_spill] sm:$0xff] %v21490_v39  ;;  %15601 = vmatmul.mubr.bf16.gmra.mrb[152].mxu0 %v21490_v39  ;;  %v11036_v4 = vrot.slane %v11034_v29, 5  ;;  %v11070_v42 = vshll.u32 %v21311_v46, 16  ;;  %v11076_v19 = vshll.u32 %v21478_v30, 16  ;;  %v11046_v25 = vrot.slane %v11045_v22, 4  ;;  %v22927_v39 = vld [vmem:[#allocation29_spill] sm:$0xff] }
 0x9a7   : > { %15619 = vmatpush3.bf16.msra.mxu0 %v16769_v21  ;;  %v11050_v60 = vrot.slane %v11048_v52, 5  ;;  %v11059_v17 = vor.u32 %v11058_v0, %v11055_v63  ;;  %v11069_v2 = vrot.slane %v11067_v18, 4  ;;  %v22896_v62 = vshll.u32 %v21197_v50, 16  ;;  %v16771_v21 = vld [vmem:[%s22052_s7 + $0x38] sm:$0xff]  }
 0x9a8   : > { %v21506_v38 = vor.u32 %v10747_v33, %v10746_v45  ;;  %v21510_v56 = vsel %vm19316_vm5, %v11032_v8, %v11036_v4  ;;  %15620 = vmatprep.subr.bf16.mxu0 %v16770_v44  ;;  %v11072_v29 = vrot.slane %v11070_v42, 5  ;;  %v11064_v50 = vrot.slane %v11062_v32, 5  ;;  %v16772_v8 = vld [vmem:[%s22052_s7 + $0x80] sm:$0xff]  }
 0x9a9   : > { %v21504_v3 = vor.u32 %v22896_v62, %v21231_v27  ;;  %22897 = vst [vmem:[#allocation49_spill] sm:$0xff] %v21510_v56  ;;  %v21517_v0 = vsel %vm19316_vm5, %v11046_v25, %v11050_v60  ;;  %v11060_v52 = vrot.slane %v11059_v17, 4  ;;  %v11078_v18 = vrot.slane %v11076_v19, 5 }
 0x9aa   : > { %22898 = vst [vmem:[#allocation62_spill] sm:$0xff] %v21517_v0  ;;  %v21521_v33 = vcombine.low %v21510_v56, %v21517_v0  ;;  %v11073_v27 = vor.u32 %v11072_v29, %v11069_v2  ;;  %v21525_v1 = vcombine.low %v21287_v10, %v21251_v23  ;;  %v21529_v42 = vcombine.low %v21281_v41, %v21318_v28 }
 0x9ab   : > { %v21533_v60 = vsel %vm19316_vm5, %v11060_v52, %v11064_v50  ;;  %15621 = vmatpush3.bf16.msra.mxu0 %v16770_v44  ;;  %v21537_v17 = vcombine.low %v21361_v48, %v21293_v6  ;;  %v13804_v25 = vrot.slane %v21177_v54, 9  ;;  %v11435_v2 = vrot.slane %v21273_v35, 5 }
 0x9ac   : > { %22899 = vst [vmem:[#allocation48_spill] sm:$0xff] %v21521_v33  ;;  %22900 = vst [vmem:[#allocation52_spill] sm:$0xff] %v21533_v60  ;;  %15604 = vmatprep.mubr.bf16.mxu0 %v21521_v33  ;;  %v11074_v45 = vrot.slane %v11073_v27, 4  ;;  %15622 = vmatprep.subr.bf16.mxu0 %v16771_v21  ;;  %v22901_v32 = vrot.slane %v21181_v59, 5  ;;  %v22902_v44 = vrot.slane %v21173_v43, 9  ;;  %v22903_v54 = vrot.slane %v21149_v24, 5 }
 0x9ad   : > { %v22904_v35 = vrot.slane %v21145_v34, 9  ;;  %v13807_v4 = vrot.slane %v21187_v40, 9  ;;  %v21564_v19 = vsel %vm20565_vm14, %v13804_v25, %v11435_v2  ;;  %v11447_v59 = vrot.slane %v21327_v13, 5  ;;  %v22928_v33 = vld [vmem:[#allocation46_spill] sm:$0xff] }
 0x9ae   : > { %v21551_v22 = vsel %vm20565_vm14, %v22902_v44, %v22901_v32  ;;  %v13808_v24 = vrot.slane %v21243_v11, 9  ;;  %v21574_v34 = vsel %vm19316_vm5, %v11074_v45, %v11078_v18  ;;  %v13788_v62 = vcombine.low %v22863_v55, %v21157_v51 }
 0x9af   : > { %v21559_v63 = vsel %vm20565_vm14, %v22904_v35, %v22903_v54  ;;  %v11451_v40 = vrot.slane %v21336_v20, 5  ;;  %v13809_v29 = vrot.slane %v21261_v49, 9  ;;  %v21582_v52 = vcombine.low %v21533_v60, %v21574_v34  ;;  %15623 = vmatpush3.bf16.msra.mxu0 %v16771_v21 }
 0x9b0   : > { %22905 = vst [vmem:[#allocation28_spill] sm:$0xff] %v21559_v63  ;;  %v21568_v43 = vcombine.low %v21551_v22, %v21559_v63  ;;  %v21586_v13 = vsel %vm20565_vm14, %v13807_v4, %v11447_v59  ;;  %v11455_v11 = vrot.slane %v21369_v26, 5  ;;  %v13810_v50 = vrot.slane %v21235_v57, 9  ;;  %15640 = vmatprep.subr.bf16.mxu0 %v16772_v8  ;;  %v22911_v4 = vld [vmem:[#allocation25_spill] sm:$0xff] }
 0x9b1   : > { %22906 = vst [vmem:[#allocation7_spill] sm:$0xff] %v21582_v52  ;;  %22907 = vst [vmem:[#allocation33_spill] sm:$0xff] %v21586_v13  ;;  %v21592_v18 = vsel %vm20565_vm14, %v13808_v24, %v11451_v40  ;;  %v11459_v20 = vrot.slane %v21373_v58, 5  ;;  %v13811_v21 = vrot.slane %v21277_v15, 9  ;;  %15605 = vmatmul.mubr.bf16.gmra.mrb[156].mxu0 %v21582_v52  ;;  %v11463_v57 = vrot.slane %v21398_v7, 5 }
 0x9b2   : > { %22908 = vst [vmem:[#allocation5_spill] sm:$0xff] %v21592_v18  ;;  %v21601_v27 = vcombine.low %v21586_v13, %v21592_v18  ;;  %v21605_v26 = vsel %vm20565_vm14, %v13809_v29, %v11455_v11  ;;  %v13812_v25 = vrot.slane %v21305_v61, 9  ;;  %15624 = vmatprep.mubr.bf16.mxu0 %v13788_v62  ;;  %v11467_v15 = vrot.slane %v21412_v5, 5  ;;  %v22912_v29 = vld [vmem:[#allocation114_spill] sm:$0xff]  ;;  %v22913_v11 = vld [vmem:[#allocation23_spill] sm:$0xff] }
 0x9b3   : > { %22909 = vst [vmem:[#allocation10_spill] sm:$0xff] %v21605_v26  ;;  %v21611_v58 = vsel %vm20565_vm14, %v13810_v50, %v11459_v20  ;;  %v13813_v2 = vrot.slane %v21267_v9, 9  ;;  %v11471_v45 = vrot.slane %v21417_v53, 5  ;;  %v21622_v7 = vsel %vm20565_vm14, %v13811_v21, %v11463_v57  ;;  %v22915_v20 = vld [vmem:[#allocation12_spill] sm:$0xff]  ;;  %v22916_v21 = vld [vmem:[#allocation18_spill] sm:$0xff] }
 0x9b4   : > { %v21618_v32 = vcombine.low %v21605_v26, %v21611_v58  ;;  %v13814_v61 = vrot.slane %v21298_v14, 9  ;;  %v11475_v44 = vrot.slane %v21446_v16, 5  ;;  %v10773_v5 = vsel %vm17040_vm4, 0, %v21504_v3  ;;  %v22910_v14 = vld [vmem:[#allocation30_spill] sm:$0xff] }
 0x9b5   : > { %v21631_v9 = vsel %vm20565_vm14, %v13812_v25, %v11467_v15  ;;  %v21635_v53 = vsel %vm20565_vm14, %v13813_v2, %v11471_v45  ;;  %v13815_v54 = vrot.slane %v21355_v37, 9  ;;  %v11479_v3 = vrot.slane %v22910_v14, 5  ;;  %v16773_v25 = vld [vmem:[%s22052_s7 + $0x88] sm:$0xff]  }
 0x9b6   : > { %v21640_v35 = vcombine.low %v21631_v9, %v21635_v53  ;;  %v21644_v16 = vsel %vm20565_vm14, %v13814_v61, %v11475_v44  ;;  %v13816_v59 = vrot.slane %v22911_v4, 9  ;;  %v10781_v24 = vsel %vm17040_vm4, 0, %v21506_v38  ;;  %v22920_v38 = vld [vmem:[#allocation54_spill] sm:$0xff] }
 0x9b7   : > { %v11483_v62 = vrot.slane %v21474_v31, 5  ;;  %v13817_v37 = vrot.slane %v21311_v46, 9  ;;  %v11487_v40 = vrot.slane %v21478_v30, 5  ;;  %v21656_v50 = vcombine.low %v22913_v11, %v22912_v29  ;;  %v22919_v30 = vld [vmem:[#allocation56_spill] sm:$0xff] }
 0x9b8   : > { %v21660_v57 = vcombine.low %v22916_v21, %v22915_v20  ;;  %v21667_v47 = vsel %vm20565_vm14, %v13815_v54, %v11479_v3  ;;  %v21671_v46 = vsel %vm19271_vm0, %v10773_v5, 0  ;;  %v21675_v15 = vcombine.low %v22920_v38, %v22919_v30  ;;  %v22921_v54 = vld [vmem:[#allocation40_spill] sm:$0xff] }
 0x9b9   : > { %22914 = vst [vmem:[#allocation63_spill] sm:$0xff] %v21656_v50  ;;  %v21679_v2 = vcombine.low %v21644_v16, %v21667_v47  ;;  %v21683_v45 = vsel %vm20565_vm14, %v13816_v59, %v11483_v62  ;;  %v21687_v61 = vsel %vm20565_vm14, %v13817_v37, %v11487_v40  ;;  %15625 = vmatmul.mubr.bf16.vlgmr.msra.gmra.mrb[144].mxu0 %v21656_v50  ;;  %v21705_v59 = vsel %vm19271_vm0, %v10781_v24, 0  ;;  %v22926_v40 = vld [vmem:[#allocation35_spill] sm:$0xff] }
 0x9ba   : > { %22917 = vst [vmem:[#allocation32_spill] sm:$0xff] %v21660_v57  ;;  %v21692_v44 = vcombine.low %v21683_v45, %v21687_v61  ;;  %v13882_v5 = vcombine.low %v21671_v46, %v21671_v46  ;;  %15641 = vmatpush3.bf16.msra.mxu0 %v16772_v8  ;;  %15628 = vmatprep.mubr.bf16.mxu0 %v21660_v57  ;;  %v16774_v8 = vld [vmem:[%s22052_s7 + $0x90] sm:$0xff]  }
 0x9bb   : > { %15642 = vmatprep.subr.bf16.mxu0 %v16773_v25  ;;  %v13884_v4 = vcombine.low %v21705_v59, %v21705_v59  ;;  %v13883_v24 = vcombine.high %v21671_v46, %v21671_v46  ;;  %v13885_v3 = vcombine.high %v21705_v59, %v21705_v59  ;;  %v13792_v50 = vcombine.low %v22863_v55, %v22921_v54 }
 0x9bc   : > { %v11902_v31 = vshrl.u32 %v13882_v5, 16  ;;  %v11905_v14 = vshll.u32 %v13882_v5, 16  ;;  %v13918_v0 = vrot.slane %v13882_v5, 9  ;;  %v13940_v6 = vcombine.low %v21622_v7, %v21631_v9 }
 0x9bd   : > { %v11911_v49 = vshll.u32 %v13883_v24, 16  ;;  %v11916_v52 = vshrl.u32 %v13884_v4, 16  ;;  %v11919_v37 = vshll.u32 %v13884_v4, 16  ;;  %v11925_v60 = vshll.u32 %v13885_v3, 16 }
 0x9be   : > { %v11904_v63 = vrot.slane %v11902_v31, 4  ;;  %15643 = vmatpush3.bf16.msra.mxu0 %v16773_v25  ;;  %v11907_v62 = vrot.slane %v11905_v14, 5  ;;  %v16775_v31 = vld [vmem:[%s22052_s7 + $0x98] sm:$0xff]   ;;  %v12127_v56 = vrot.slane %v13883_v24, 5  ;;  %v13941_v26 = vcombine.low %v21635_v53, %v21644_v16  ;;  %v16814_v53 = vld [vmem:[%s22052_s7 + $0x1d0] sm:$0xff]  }
 0x9bf   : > { %15644 = vmatprep.subr.bf16.mxu0 %v16774_v8  ;;  %v11918_v13 = vrot.slane %v11916_v52, 4  ;;  %v11921_v14 = vrot.slane %v11919_v37, 5  ;;  %v11913_v57 = vrot.slane %v11911_v49, 5  ;;  %v13942_v55 = vcombine.low %v21667_v47, %v21683_v45  ;;  %v16776_v49 = vld [vmem:[%s22052_s7 + $0xa0] sm:$0xff]   ;;  %v16815_v45 = vld [vmem:[%s22052_s7 + $0x1d8] sm:$0xff]  }
 0x9c0   : > { %v11908_v25 = vor.u32 %v11907_v62, %v11904_v63  ;;  %v13919_v18 = vrot.slane %v13884_v4, 9  ;;  %v21746_v63 = vsel %vm20565_vm14, %v13918_v0, %v12127_v56  ;;  %v12131_v62 = vrot.slane %v13885_v3, 5  ;;  %v22929_v56 = vld [vmem:[#allocation27_spill] sm:$0xff] }
 0x9c1   : > { %15629 = vmatmul.mubr.bf16.gmra.mrb[148].mxu0 %v21675_v15  ;;  %v11922_v5 = vor.u32 %v11921_v14, %v11918_v13  ;;  %v13939_v37 = vcombine.low %v21611_v58, %v21746_v63  ;;  %v16781_v14 = vld [vmem:[%s22052_s7 + $0xc8] sm:$0xff]   ;;  %v16811_v58 = vld [vmem:[%s22052_s7 + $0x1b8] sm:$0xff]   ;;  %v22959_v9 = vld [vmem:[#allocation32_spill] sm:$0xff]  ;;  %v22960_v16 = vmov 0  }
 0x9c2   : > { %15645 = vmatpush3.bf16.msra.mxu0 %v16774_v8  ;;  %15632 = vmatprep.mubr.bf16.mxu0 %v13792_v50  ;;  %v11909_v52 = vrot.slane %v11908_v25, 4  ;;  %v11927_v8 = vrot.slane %v11925_v60, 5  ;;  %v21759_v13 = vsel %vm20565_vm14, %v13919_v18, %v12131_v62  ;;  %v16777_v60 = vld [vmem:[%s22052_s7 + $0xa8] sm:$0xff]   ;;  %v16779_v18 = vld [vmem:[%s22052_s7 + $0xb8] sm:$0xff]   ;;  %v16780_v25 = vld [vmem:[%s22052_s7 + $0xc0] sm:$0xff]   ;;  %v13968_v47 = vcombine.low %v21671_v46, %v22960_v16 }
 0x9c3   : > { %15646 = vmatprep.subr.bf16.mxu0 %v16775_v31  ;;  %v11923_v50 = vrot.slane %v11922_v5, 4  ;;  %v13943_v3 = vcombine.low %v21687_v61, %v21759_v13  ;;  %v16783_v5 = vld [vmem:[%s22052_s7 + $0xd8] sm:$0xff]   ;;  %v16817_v61 = vld [vmem:[%s22052_s7 + $0x1e8] sm:$0xff]  }
 0x9c4   : > { %v21755_v4 = vsel %vm19316_vm5, %v11909_v52, %v11913_v57  ;;  %v22930_v57 = vld [vmem:[#allocation113_spill] sm:$0xff]  ;;  %v16782_v52 = vld [vmem:[%s22052_s7 + $0xd0] sm:$0xff]  }
 0x9c5   : > { %v13905_v0 = vcombine.low %v22929_v56, %v21755_v4  ;;  %v21767_v24 = vsel %vm19316_vm5, %v11923_v50, %v11927_v8  ;;  %v13838_v62 = vcombine.low %v22930_v57, %v21622_v7  ;;  %v16785_v50 = vld [vmem:[%s22052_s7 + $0xe8] sm:$0xff]   ;;  %v16786_v8 = vld [vmem:[%s22052_s7 + $0xf0] sm:$0xff]  }
 0x9c6   : > { %15647 = vmatpush3.bf16.msra.mxu0 %v16775_v31  ;;  %v13909_v12 = vcombine.low %v21574_v34, %v21767_v24  ;;  %v13834_v31 = vcombine.low %v22930_v57, %v21564_v19  ;;  %v16813_v7 = vld [vmem:[%s22052_s7 + $0x1c8] sm:$0xff]  }
 0x9c7   : > { %15648 = vmatprep.subr.bf16.mxu0 %v16776_v49 }
 0x9c9   : > { %15633 = vmatmul.mubr.bf16.gmra.mrb[152].mxu0 %v21525_v1 }
 0x9ca   : > { %15649 = vmatpush3.bf16.msra.mxu0 %v16776_v49  ;;  %15636 = vmatprep.mubr.bf16.mxu0 %v21529_v42  ;;  %v16784_v49 = vld [vmem:[%s22052_s7 + $0xe0] sm:$0xff]  }
 0x9cb   : > { %15650 = vmatprep.subr.bf16.mxu0 %v16777_v60 }
 0x9ce   : > { %15651 = vmatpush3.bf16.msra.mxu0 %v16777_v60  ;;  %v16787_v60 = vld [vmem:[%s22052_s7 + $0xf8] sm:$0xff]  }
 0x9cf   : > { %15652 = vmatprep.subr.bf16.mxu0 %v16778_v36 }
 0x9d1   : > { %15637 = vmatmul.mubr.bf16.gmra.mrb[156].mxu0 %v21537_v17 }
 0x9d2   : > { %15653 = vmatpush3.bf16.msra.mxu0 %v16778_v36  ;;  %15656 = vmatprep.mubr.bf16.mxu0 %v13834_v31  ;;  %v13866_v36 = vcombine.low %v21157_v51, %v22913_v11  ;;  %v13867_v31 = vcombine.low %v22912_v29, %v22916_v21  ;;  %v13868_v51 = vcombine.low %v22915_v20, %v22920_v38  ;;  %v16790_v11 = vld [vmem:[%s22052_s7 + $0x110] sm:$0xff]   ;;  %v16791_v21 = vld [vmem:[%s22052_s7 + $0x118] sm:$0xff]   ;;  %v16792_v38 = vld [vmem:[%s22052_s7 + $0x120] sm:$0xff]  }
 0x9d3   : > { %15654 = vmatprep.subr.bf16.mxu0 %v16779_v18  ;;  %v13869_v29 = vcombine.low %v22919_v30, %v21671_v46  ;;  %v22931_v20 = vcombine.low %v22921_v54, %v21287_v10  ;;  %v16793_v30 = vld [vmem:[%s22052_s7 + $0x128] sm:$0xff]   ;;  %v22933_v10 = vcombine.low %v21318_v28, %v21361_v48  ;;  %v16794_v54 = vld [vmem:[%s22052_s7 + $0x130] sm:$0xff]   ;;  %v16796_v48 = vld [vmem:[%s22052_s7 + $0x140] sm:$0xff]   ;;  %v13969_v46 = vcombine.low %v21705_v59, %v22960_v16 }
 0x9d6   : > { %15655 = vmatpush3.bf16.msra.mxu0 %v16779_v18  ;;  %v16788_v18 = vld [vmem:[%s22052_s7 + $0x100] sm:$0xff]  }
 0x9d7   : > { %15672 = vmatprep.subr.bf16.mxu0 %v16780_v25 }
 0x9d9   : > { %15657 = vmatmul.mubr.bf16.vlgmr.msra.gmra.mrb[144].mxu0 %v21568_v43 }
 0x9da   : > { %15673 = vmatpush3.bf16.msra.mxu0 %v16780_v25  ;;  %15660 = vmatprep.mubr.bf16.mxu0 %v21601_v27  ;;  %v16789_v25 = vld [vmem:[%s22052_s7 + $0x108] sm:$0xff]  }
 0x9db   : > { %15674 = vmatprep.subr.bf16.mxu0 %v16781_v14 }
 0x9de   : > { %15675 = vmatpush3.bf16.msra.mxu0 %v16781_v14  ;;  %v22932_v14 = vcombine.low %v21251_v23, %v21281_v41  ;;  %v22936_v41 = vld [vmem:[#allocation9_spill] sm:$0xff] }
 0x9df   : > { %15676 = vmatprep.subr.bf16.mxu0 %v16782_v52 }
 0x9e1   : > { %15661 = vmatmul.mubr.bf16.gmra.mrb[148].mxu0 %v21618_v32 }
 0x9e2   : > { %15677 = vmatpush3.bf16.msra.mxu0 %v16782_v52  ;;  %15664 = vmatprep.mubr.bf16.mxu0 %v13838_v62  ;;  %v16795_v52 = vld [vmem:[%s22052_s7 + $0x138] sm:$0xff]  }
 0x9e3   : > { %15678 = vmatprep.subr.bf16.mxu0 %v16783_v5  ;;  %v22937_v62 = vld [vmem:[#allocation57_spill] sm:$0xff] }
 0x9e4   : > { %v22938_v28 = vcombine.low %v22936_v41, %v22937_v62  ;;  %v16808_v41 = vld [vmem:[%s22052_s7 + $0x1a0] sm:$0xff]   ;;  %v16809_v62 = vld [vmem:[%s22052_s7 + $0x1a8] sm:$0xff]  }
 0x9e6   : > { %15679 = vmatpush3.bf16.msra.mxu0 %v16783_v5  ;;  %v22934_v5 = vld [vmem:[#allocation53_spill] sm:$0xff] }
 0x9e7   : > { %15680 = vmatprep.subr.bf16.mxu0 %v16784_v49  ;;  %v22935_v23 = vcombine.low %v22934_v5, %v21705_v59  ;;  %v22956_v5 = vld [vmem:[#allocation10_spill] sm:$0xff] }
 0x9e8   : > { %v22962_v59 = vld [vmem:[#allocation22_spill] sm:$0xff] }
 0x9e9   : > { %15665 = vmatmul.mubr.bf16.gmra.mrb[152].mxu0 %v21640_v35 }
 0x9ea   : > { %15681 = vmatpush3.bf16.msra.mxu0 %v16784_v49  ;;  %15668 = vmatprep.mubr.bf16.mxu0 %v21679_v2  ;;  %v16797_v49 = vld [vmem:[%s22052_s7 + $0x148] sm:$0xff]  }
 0x9eb   : > { %15682 = vmatprep.subr.bf16.mxu0 %v16785_v50 }
 0x9ee   : > { %15683 = vmatpush3.bf16.msra.mxu0 %v16785_v50  ;;  %v22939_v50 = vld [vmem:[#allocation17_spill] sm:$0xff] }
 0x9ef   : > { %15684 = vmatprep.subr.bf16.mxu0 %v16786_v8 }
 0x9f1   : > { %15669 = vmatmul.mubr.bf16.gmra.mrb[156].mxu0 %v21692_v44 }
 0x9f2   : > { %15685 = vmatpush3.bf16.msra.mxu0 %v16786_v8  ;;  %15688 = vmatprep.mubr.bf16.mxu0 %v13866_v36  ;;  %v22940_v8 = vld [vmem:[#allocation14_spill] sm:$0xff]  ;;  %v22942_v36 = vld [vmem:[#allocation19_spill] sm:$0xff] }
 0x9f3   : > { %15686 = vmatprep.subr.bf16.mxu0 %v16787_v60 }
 0x9f6   : > { %15687 = vmatpush3.bf16.msra.mxu0 %v16787_v60  ;;  %v22941_v60 = vcombine.low %v22939_v50, %v22940_v8  ;;  %v16823_v8 = vld [vmem:[%s22052_s7 + $0x218] sm:$0xff]  }
 0x9f7   : > { %15704 = vmatprep.subr.bf16.mxu0 %v16788_v18 }
 0x9f9   : > { %15689 = vmatmul.mubr.bf16.vlgmr.msra.gmra.mrb[144].mxu0 %v13867_v31 }
 0x9fa   : > { %15705 = vmatpush3.bf16.msra.mxu0 %v16788_v18  ;;  %15692 = vmatprep.mubr.bf16.mxu0 %v13868_v51  ;;  %v22943_v18 = vld [vmem:[#allocation26_spill] sm:$0xff]  ;;  %v16799_v51 = vld [vmem:[%s22052_s7 + $0x158] sm:$0xff]  }
 0x9fb   : > { %15706 = vmatprep.subr.bf16.mxu0 %v16789_v25  ;;  %v22944_v31 = vcombine.low %v22942_v36, %v22943_v18  ;;  %v16824_v36 = vld [vmem:[%s22052_s7 + $0x220] sm:$0xff]   ;;  %v16825_v18 = vld [vmem:[%s22052_s7 + $0x228] sm:$0xff]  }
 0x9fe   : > { %15707 = vmatpush3.bf16.msra.mxu0 %v16789_v25  ;;  %v16798_v25 = vld [vmem:[%s22052_s7 + $0x150] sm:$0xff]  }
 0x9ff   : > { %15708 = vmatprep.subr.bf16.mxu0 %v16790_v11 }
 0xa01   : > { %15693 = vmatmul.mubr.bf16.gmra.mrb[148].mxu0 %v13869_v29  ;;  %v16800_v29 = vld [vmem:[%s22052_s7 + $0x160] sm:$0xff]  }
 0xa02   : > { %15709 = vmatpush3.bf16.msra.mxu0 %v16790_v11  ;;  %15696 = vmatprep.mubr.bf16.mxu0 %v22931_v20  ;;  %v22945_v11 = vcombine.low %v22927_v39, %v22926_v40  ;;  %v22946_v20 = vld [vmem:[#allocation49_spill] sm:$0xff]  ;;  %v16802_v40 = vld [vmem:[%s22052_s7 + $0x170] sm:$0xff]  }
 0xa03   : > { %15710 = vmatprep.subr.bf16.mxu0 %v16791_v21  ;;  %v22947_v56 = vcombine.low %v22928_v33, %v22946_v20  ;;  %v22951_v33 = vcombine.low %v21564_v19, %v21551_v22  ;;  %v16806_v19 = vld [vmem:[%s22052_s7 + $0x190] sm:$0xff]  }
 0xa06   : > { %15711 = vmatpush3.bf16.msra.mxu0 %v16791_v21  ;;  %v16801_v21 = vld [vmem:[%s22052_s7 + $0x168] sm:$0xff]  }
 0xa07   : > { %15712 = vmatprep.subr.bf16.mxu0 %v16792_v38 }
 0xa09   : > { %15697 = vmatmul.mubr.bf16.gmra.mrb[152].mxu0 %v22932_v14  ;;  %v16804_v14 = vld [vmem:[%s22052_s7 + $0x180] sm:$0xff]  }
 0xa0a   : > { %15713 = vmatpush3.bf16.msra.mxu0 %v16792_v38  ;;  %15700 = vmatprep.mubr.bf16.mxu0 %v22933_v10  ;;  %v22949_v38 = vld [vmem:[#allocation52_spill] sm:$0xff]  ;;  %v16805_v10 = vld [vmem:[%s22052_s7 + $0x188] sm:$0xff]  }
 0xa0b   : > { %15714 = vmatprep.subr.bf16.mxu0 %v16793_v30 }
 0xa0e   : > { %15715 = vmatpush3.bf16.msra.mxu0 %v16793_v30  ;;  %v16803_v30 = vld [vmem:[%s22052_s7 + $0x178] sm:$0xff]  }
 0xa0f   : > { %15716 = vmatprep.subr.bf16.mxu0 %v16794_v54 }
 0xa11   : > { %15701 = vmatmul.mubr.bf16.gmra.mrb[156].mxu0 %v22935_v23  ;;  %v16807_v23 = vld [vmem:[%s22052_s7 + $0x198] sm:$0xff]  }
 0xa12   : > { %15717 = vmatpush3.bf16.msra.mxu0 %v16794_v54  ;;  %15720 = vmatprep.mubr.bf16.mxu0 %v22938_v28  ;;  %v22952_v54 = vld [vmem:[#allocation28_spill] sm:$0xff] }
 0xa13   : > { %15718 = vmatprep.subr.bf16.mxu0 %v16795_v52  ;;  %v22963_v28 = vld [vmem:[#allocation24_spill] sm:$0xff] }
 0xa16   : > { %15719 = vmatpush3.bf16.msra.mxu0 %v16795_v52  ;;  %v22953_v52 = vld [vmem:[#allocation33_spill] sm:$0xff] }
 0xa17   : > { %15736 = vmatprep.subr.bf16.mxu0 %v16796_v48  ;;  %v22954_v34 = vcombine.low %v22952_v54, %v22953_v52 }
 0xa19   : > { %15721 = vmatmul.mubr.bf16.vlgmr.msra.gmra.mrb[144].mxu0 %v22941_v60  ;;  %v22965_v60 = vld [vmem:[#allocation21_spill] sm:$0xff] }
 0xa1a   : > { %15737 = vmatpush3.bf16.msra.mxu0 %v16796_v48  ;;  %15724 = vmatprep.mubr.bf16.mxu0 %v22944_v31  ;;  %v16822_v48 = vld [vmem:[%s22052_s7 + $0x210] sm:$0xff]   ;;  %v22967_v31 = vld [vmem:[#allocation7_spill] sm:$0xff] }
 0xa1b   : > { %15738 = vmatprep.subr.bf16.mxu0 %v16797_v49 }
 0xa1e   : > { %15739 = vmatpush3.bf16.msra.mxu0 %v16797_v49  ;;  %v22964_v49 = vld [vmem:[#allocation2_spill] sm:$0xff] }
 0xa1f   : > { %15740 = vmatprep.subr.bf16.mxu0 %v16798_v25  ;;  %v13994_v50 = vcombine.low %v21755_v4, %v22964_v49  ;;  %v22966_v4 = vld [vmem:[#allocation48_spill] sm:$0xff] }
 0xa21   : > { %15725 = vmatmul.mubr.bf16.gmra.mrb[148].mxu0 %v13905_v0  ;;  %v22948_v0 = vld [vmem:[#allocation62_spill] sm:$0xff] }
 0xa22   : > { %15741 = vmatpush3.bf16.msra.mxu0 %v16798_v25  ;;  %15728 = vmatprep.mubr.bf16.mxu0 %v22945_v11  ;;  %v22950_v39 = vcombine.low %v22948_v0, %v22949_v38  ;;  %v16826_v25 = vld [vmem:[%s22052_s7 + $0x230] sm:$0xff]   ;;  %v16827_v11 = vld [vmem:[%s22052_s7 + $0x238] sm:$0xff]  }
 0xa23   : > { %15742 = vmatprep.subr.bf16.mxu0 %v16799_v51 }
 0xa26   : > { %15743 = vmatpush3.bf16.msra.mxu0 %v16799_v51  ;;  %v13995_v51 = vcombine.low %v21767_v24, %v22964_v49  ;;  %v14021_v24 = vcombine.low %v21759_v13, %v22930_v57 }
 0xa27   : > { %15744 = vmatprep.subr.bf16.mxu0 %v16800_v29 }
 0xa29   : > { %15729 = vmatmul.mubr.bf16.gmra.mrb[152].mxu0 %v22947_v56 }
 0xa2a   : > { %15745 = vmatpush3.bf16.msra.mxu0 %v16800_v29  ;;  %15732 = vmatprep.mubr.bf16.mxu0 %v22950_v39  ;;  %v14020_v29 = vcombine.low %v21746_v63, %v22930_v57 }
 0xa2b   : > { %15746 = vmatprep.subr.bf16.mxu0 %v16801_v21 }
 0xa2e   : > { %15747 = vmatpush3.bf16.msra.mxu0 %v16801_v21 }
 0xa2f   : > { %15748 = vmatprep.subr.bf16.mxu0 %v16802_v40 }
 0xa31   : > { %15733 = vmatmul.mubr.bf16.gmra.mrb[156].mxu0 %v13909_v12  ;;  %v22955_v12 = vld [vmem:[#allocation5_spill] sm:$0xff] }
 0xa32   : > { %15749 = vmatpush3.bf16.msra.mxu0 %v16802_v40  ;;  %15752 = vmatprep.mubr.bf16.mxu0 %v22951_v33  ;;  %v22957_v22 = vcombine.low %v22955_v12, %v22956_v5 }
 0xa33   : > { %15750 = vmatprep.subr.bf16.mxu0 %v16803_v30 }
 0xa36   : > { %15751 = vmatpush3.bf16.msra.mxu0 %v16803_v30 }
 0xa37   : > { %15768 = vmatprep.subr.bf16.mxu0 %v16804_v14 }
 0xa39   : > { %15753 = vmatmul.mubr.bf16.vlgmr.msra.gmra.mrb[144].mxu0 %v22954_v34 }
 0xa3a   : > { %15769 = vmatpush3.bf16.msra.mxu0 %v16804_v14  ;;  %15756 = vmatprep.mubr.bf16.mxu0 %v22957_v22 }
 0xa3b   : > { %15770 = vmatprep.subr.bf16.mxu0 %v16805_v10 }
 0xa3e   : > { %15771 = vmatpush3.bf16.msra.mxu0 %v16805_v10 }
 0xa3f   : > { %15772 = vmatprep.subr.bf16.mxu0 %v16806_v19 }
 0xa41   : > { %15757 = vmatmul.mubr.bf16.gmra.mrb[148].mxu0 %v13939_v37  ;;  %v16819_v37 = vld [vmem:[%s22052_s7 + $0x1f8] sm:$0xff]  }
 0xa42   : > { %15773 = vmatpush3.bf16.msra.mxu0 %v16806_v19  ;;  %15760 = vmatprep.mubr.bf16.mxu0 %v13940_v6  ;;  %v16810_v6 = vld [vmem:[%s22052_s7 + $0x1b0] sm:$0xff]  }
 0xa43   : > { %15774 = vmatprep.subr.bf16.mxu0 %v16807_v23 }
 0xa46   : > { %15775 = vmatpush3.bf16.msra.mxu0 %v16807_v23 }
 0xa47   : > { %15776 = vmatprep.subr.bf16.mxu0 %v16808_v41 }
 0xa49   : > { %15761 = vmatmul.mubr.bf16.gmra.mrb[152].mxu0 %v13941_v26  ;;  %v22958_v26 = vld [vmem:[#allocation63_spill] sm:$0xff] }
 0xa4a   : > { %15777 = vmatpush3.bf16.msra.mxu0 %v16808_v41  ;;  %15764 = vmatprep.mubr.bf16.mxu0 %v13942_v55  ;;  %v16812_v55 = vld [vmem:[%s22052_s7 + $0x1c0] sm:$0xff]  }
 0xa4b   : > { %15778 = vmatprep.subr.bf16.mxu0 %v16809_v62 }
 0xa4e   : > { %15779 = vmatpush3.bf16.msra.mxu0 %v16809_v62 }
 0xa4f   : > { %15780 = vmatprep.subr.bf16.mxu0 %v16810_v6 }
 0xa51   : > { %15765 = vmatmul.mubr.bf16.gmra.mrb[156].mxu0 %v13943_v3  ;;  %v16821_v3 = vld [vmem:[%s22052_s7 + $0x208] sm:$0xff]  }
 0xa52   : > { %15781 = vmatpush3.bf16.msra.mxu0 %v16810_v6  ;;  %15784 = vmatprep.mubr.bf16.mxu0 %v22958_v26 }
 0xa53   : > { %15782 = vmatprep.subr.bf16.mxu0 %v16811_v58 }
 0xa56   : > { %15783 = vmatpush3.bf16.msra.mxu0 %v16811_v58 }
 0xa57   : > { %15800 = vmatprep.subr.bf16.mxu0 %v16812_v55 }
 0xa59   : > { %15785 = vmatmul.mubr.bf16.vlgmr.msra.gmra.mrb[144].mxu0 %v22959_v9 }
 0xa5a   : > { %15801 = vmatpush3.bf16.msra.mxu0 %v16812_v55  ;;  %15788 = vmatprep.mubr.bf16.mxu0 %v21675_v15  ;;  %v16816_v15 = vld [vmem:[%s22052_s7 + $0x1e0] sm:$0xff]  }
 0xa5b   : > { %15802 = vmatprep.subr.bf16.mxu0 %v16813_v7 }
 0xa5e   : > { %15803 = vmatpush3.bf16.msra.mxu0 %v16813_v7 }
 0xa5f   : > { %15804 = vmatprep.subr.bf16.mxu0 %v16814_v53 }
 0xa61   : > { %15789 = vmatmul.mubr.bf16.gmra.mrb[148].mxu0 %v13968_v47 }
 0xa62   : > { %15805 = vmatpush3.bf16.msra.mxu0 %v16814_v53  ;;  %15792 = vmatprep.mubr.bf16.mxu0 %v21525_v1  ;;  %v16818_v1 = vld [vmem:[%s22052_s7 + $0x1f0] sm:$0xff]  }
 0xa63   : > { %15806 = vmatprep.subr.bf16.mxu0 %v16815_v45 }
 0xa66   : > { %15807 = vmatpush3.bf16.msra.mxu0 %v16815_v45 }
 0xa67   : > { %15808 = vmatprep.subr.bf16.mxu0 %v16816_v15 }
 0xa69   : > { %15793 = vmatmul.mubr.bf16.gmra.mrb[152].mxu0 %v21529_v42  ;;  %v22961_v42 = vld [vmem:[#allocation13_spill] sm:$0xff] }
 0xa6a   : > { %15809 = vmatpush3.bf16.msra.mxu0 %v16816_v15  ;;  %15796 = vmatprep.mubr.bf16.mxu0 %v21537_v17  ;;  %v16820_v17 = vld [vmem:[%s22052_s7 + $0x200] sm:$0xff]  }
 0xa6b   : > { %15810 = vmatprep.subr.bf16.mxu0 %v16817_v61 }
 0xa6e   : > { %15811 = vmatpush3.bf16.msra.mxu0 %v16817_v61 }
 0xa6f   : > { %15812 = vmatprep.subr.bf16.mxu0 %v16818_v1 }
 0xa71   : > { %15797 = vmatmul.mubr.bf16.gmra.mrb[156].mxu0 %v13969_v46 }
 0xa72   : > { %15813 = vmatpush3.bf16.msra.mxu0 %v16818_v1  ;;  %15816 = vmatprep.mubr.bf16.mxu0 %v22961_v42 }
 0xa73   : > { %15814 = vmatprep.subr.bf16.mxu0 %v16819_v37 }
 0xa76   : > { %15815 = vmatpush3.bf16.msra.mxu0 %v16819_v37 }
 0xa77   : > { %15832 = vmatprep.subr.bf16.mxu0 %v16820_v17 }
 0xa79   : > { %15817 = vmatmul.mubr.bf16.vlgmr.msra.gmra.mrb[144].mxu0 %v22962_v59 }
 0xa7a   : > { %15833 = vmatpush3.bf16.msra.mxu0 %v16820_v17  ;;  %15820 = vmatprep.mubr.bf16.mxu0 %v22963_v28 }
 0xa7b   : > { %15834 = vmatprep.subr.bf16.mxu0 %v16821_v3 }
 0xa7e   : > { %15835 = vmatpush3.bf16.msra.mxu0 %v16821_v3 }
 0xa7f   : > { %15836 = vmatprep.subr.bf16.mxu0 %v16822_v48 }
 0xa81   : > { %15821 = vmatmul.mubr.bf16.gmra.mrb[148].mxu0 %v13994_v50 }
 0xa82   : > { %15837 = vmatpush3.bf16.msra.mxu0 %v16822_v48  ;;  %15824 = vmatprep.mubr.bf16.mxu0 %v22965_v60 }
 0xa83   : > { %15838 = vmatprep.subr.bf16.mxu0 %v16823_v8 }
 0xa86   : > { %15839 = vmatpush3.bf16.msra.mxu0 %v16823_v8 }
 0xa87   : > { %15840 = vmatprep.subr.bf16.mxu0 %v16824_v36 }
 0xa89   : > { %15825 = vmatmul.mubr.bf16.gmra.mrb[152].mxu0 %v22966_v4 }
 0xa8a   : > { %15841 = vmatpush3.bf16.msra.mxu0 %v16824_v36  ;;  %15828 = vmatprep.mubr.bf16.mxu0 %v22967_v31 }
 0xa8b   : > { %15842 = vmatprep.subr.bf16.mxu0 %v16825_v18 }
 0xa8e   : > { %15843 = vmatpush3.bf16.msra.mxu0 %v16825_v18 }
 0xa8f   : > { %15844 = vmatprep.subr.bf16.mxu0 %v16826_v25 }
 0xa91   : > { %15829 = vmatmul.mubr.bf16.gmra.mrb[156].mxu0 %v13995_v51 }
 0xa92   : > { %15845 = vmatpush3.bf16.msra.mxu0 %v16826_v25  ;;  %15848 = vmatprep.mubr.bf16.mxu0 %v21568_v43 }
 0xa93   : > { %15846 = vmatprep.subr.bf16.mxu0 %v16827_v11 }
 0xa96   : > { %15847 = vmatpush3.bf16.msra.mxu0 %v16827_v11 }
 0xa99   : > { %15849 = vmatmul.mubr.bf16.vlgmr.msra.gmra.mrb[144].mxu0 %v21601_v27 }
 0xa9a   : > { %15852 = vmatprep.mubr.bf16.mxu0 %v21618_v32 }
 0xaa1   : > { %15853 = vmatmul.mubr.bf16.gmra.mrb[148].mxu0 %v14020_v29 }
 0xaa2   : > { %15856 = vmatprep.mubr.bf16.mxu0 %v21640_v35  ;;  %v14030_v35 = vld [vmem:[%s22053_s8] ss:$0 sm:$0xff] }
 0xaa9   : > { %15857 = vmatmul.mubr.bf16.gmra.mrb[152].mxu0 %v21679_v2 }
 0xaaa   : > { %15860 = vmatprep.mubr.bf16.mxu0 %v21692_v44 }
 0xab1   : > { %15861 = vmatmul.mubr.bf16.gmra.mrb[156].mxu0 %v14021_v24 }
 0xb6c   : > { %v15850_v43 = vpop.f32.mrb[144].mxu0 }
 0xb6d   : > { %v12796_v21 = vpop.f32.mrb[145].mxu0  ;;  %v12884_v63 = vadd.f32 %v15850_v43, %v14030_v35 }
 0xb6e   : > { %v15851_v20 = vpop.f32.mrb[146].mxu0  ;;  %v12882_v2 = vadd.f32 %v14030_v35, %v12796_v21 }
 0xb6f   : > { %v12799_v27 = vpop.f32.mrb[147].mxu0  ;;  %v12885_v44 = vadd.f32 %v15851_v20, %v14030_v35  ;;  %v12900_v14 = vmax.f32 %v12884_v63, 0.0 }
 0xb70   : > { %v12883_v13 = vadd.f32 %v14030_v35, %v12799_v27  ;;  %v12898_v34 = vmax.f32 %v12882_v2, 0.0 }
 0xb71   : > { %v12901_v22 = vmax.f32 %v12885_v44, 0.0 }
 0xb72   : > { %v12899_v41 = vmax.f32 %v12883_v13, 0.0 }
 0xb74   : > { %v15854_v56 = vpop.f32.mrb[148].mxu0 }
 0xb75   : > { %v12812_v32 = vpop.f32.mrb[149].mxu0  ;;  %v12888_v58 = vadd.f32 %v15854_v56, %v14030_v35 }
 0xb76   : > { %v15855_v0 = vpop.f32.mrb[150].mxu0  ;;  %v12886_v26 = vadd.f32 %v14030_v35, %v12812_v32 }
 0xb77   : > { %v12815_v38 = vpop.f32.mrb[151].mxu0  ;;  %v12889_v53 = vadd.f32 %v15855_v0, %v14030_v35  ;;  %v12904_v37 = vmax.f32 %v12888_v58, 0.0 }
 0xb78   : > { %v12887_v16 = vadd.f32 %v14030_v35, %v12815_v38  ;;  %v12902_v42 = vmax.f32 %v12886_v26, 0.0 }
 0xb79   : > { %v12905_v8 = vmax.f32 %v12889_v53, 0.0 }
 0xb7a   : > { %v12903_v60 = vmax.f32 %v12887_v16, 0.0 }
 0xb7c   : > { %v15858_v39 = vpop.f32.mrb[152].mxu0 }
 0xb7d   : > { %v12892_v40 = vadd.f32 %v15858_v39, %v14030_v35  ;;  %v12828_v30 = vpop.f32.mrb[153].mxu0 }
 0xb7e   : > { %v12890_v57 = vadd.f32 %v14030_v35, %v12828_v30  ;;  %v15859_v33 = vpop.f32.mrb[154].mxu0 }
 0xb7f   : > { %v12908_v10 = vmax.f32 %v12892_v40, 0.0  ;;  %v12893_v54 = vadd.f32 %v15859_v33, %v14030_v35  ;;  %v12831_v52 = vpop.f32.mrb[155].mxu0 }
 0xb80   : > { %v12906_v12 = vmax.f32 %v12890_v57, 0.0  ;;  %v12891_v5 = vadd.f32 %v14030_v35, %v12831_v52 }
 0xb81   : > { %v12916_v19 = vsub.f32 %v12900_v14, %v12908_v10  ;;  %v12909_v23 = vmax.f32 %v12893_v54, 0.0 }
 0xb82   : > { %v12914_v62 = vsub.f32 %v12898_v34, %v12906_v12  ;;  %v12907_v6 = vmax.f32 %v12891_v5, 0.0 }
 0xb83   : > { %v12917_v55 = vsub.f32 %v12901_v22, %v12909_v23  ;;  %v12924_v28 = vmul.f32 %v12916_v19, %v12916_v19 }
 0xb84   : > { %v12915_v7 = vsub.f32 %v12899_v41, %v12907_v6  ;;  %v15862_v9 = vpop.f32.mrb[156].mxu0  ;;  %v12922_v15 = vmul.f32 %v12914_v62, %v12914_v62 }
 0xb85   : > { %v12896_v47 = vadd.f32 %v15862_v9, %v14030_v35  ;;  %v12844_v45 = vpop.f32.mrb[157].mxu0  ;;  %v12925_v4 = vmul.f32 %v12917_v55, %v12917_v55 }
 0xb86   : > { %v12923_v61 = vmul.f32 %v12915_v7, %v12915_v7  ;;  %v12894_v1 = vadd.f32 %v14030_v35, %v12844_v45  ;;  %v15863_v46 = vpop.f32.mrb[158].mxu0 }
 0xb87   : > { %v12912_v17 = vmax.f32 %v12896_v47, 0.0  ;;  %v12897_v3 = vadd.f32 %v15863_v46, %v14030_v35  ;;  %v12847_v59 = vpop.f32.mrb[159].mxu0 }
 0xb88   : > { %v12930_v48 = vadd.f32 %v12923_v61, %v12922_v15  ;;  %v12910_v49 = vmax.f32 %v12894_v1, 0.0  ;;  %v12895_v50 = vadd.f32 %v14030_v35, %v12847_v59 }
 0xb89   : > { %v12920_v36 = vsub.f32 %v12904_v37, %v12912_v17  ;;  %v12913_v18 = vmax.f32 %v12897_v3, 0.0 }
 0xb8a   : > { %v12931_v31 = vadd.f32 %v12930_v48, %v12924_v28  ;;  %v12918_v25 = vsub.f32 %v12902_v42, %v12910_v49  ;;  %v12911_v51 = vmax.f32 %v12895_v50, 0.0 }
 0xb8b   : > { %v12921_v11 = vsub.f32 %v12905_v8, %v12913_v18  ;;  %v12928_v27 = vmul.f32 %v12920_v36, %v12920_v36 }
 0xb8c   : > { %v12926_v29 = vmul.f32 %v12918_v25, %v12918_v25  ;;  %v12932_v24 = vadd.f32 %v12931_v31, %v12925_v4  ;;  %v12919_v43 = vsub.f32 %v12903_v60, %v12911_v51 }
 0xb8d   : > { %v12929_v32 = vmul.f32 %v12921_v11, %v12921_v11 }
 0xb8e   : > { %v12933_v21 = vadd.f32 %v12932_v24, %v12926_v29  ;;  %v12927_v20 = vmul.f32 %v12919_v43, %v12919_v43 }
 0xb90   : > { %v12934_v56 = vadd.f32 %v12933_v21, %v12927_v20 }
 0xb92   : > { %v12935_v0 = vadd.f32 %v12934_v56, %v12928_v27 }
 0xb94   : > { %v12936_v38 = vadd.f32 %v12935_v0, %v12929_v32 }
 0xb96   : > { %v12937_v35 = vrot.slane %v12936_v38, 4 }
 0xb98   : > { %v12938_v63 = vadd.f32 %v12937_v35, %v12936_v38 }
 0xb9a   : > { %v12939_v2 = vrot.slane %v12938_v63, 2 }
 0xb9c   : > { %v12940_v39 = vadd.f32 %v12939_v2, %v12938_v63 }
 0xb9e   : > { %v12941_v44 = vrot.slane %v12940_v39, 1 }
 0xba0   : > { %v12942_v40 = vadd.f32 %v12941_v44, %v12940_v39 }
 0xba2   : > { %12943 = vst [vmem:[%s328_s25] sm:$0x1] %v12942_v40 }
 0xba3 PF: > { %s19_s30 = sadd.s32 1, %s16840_s30  }
 0xba4   : > { %p16_p4 = scmp.ge.s32.totalorder %s19_s30, 4  }
 0xba6   :  { %18 = sbr.rel (!%p16_p4) target bundleno = 1 (0x1), region = 110 }

</bundles_post_ra>
